<compile_context>
chip_gen: v7x
topology: tpu7x:2x2x1
jax: 0.10.0
libtpu: 0.0.40
codegen_flags: <defaults>
</compile_context>

<pallas_src>
import jax
import jax.numpy as jnp
from jax.experimental import pallas as pl
from jax.experimental.pallas import tpu as pltpu

# Static network configuration: (H, W, Cin, Cout) per stage (input 16x16x4).
_STAGES = ((16, 16, 4, 16), (8, 8, 16, 32), (4, 4, 32, 64), (2, 2, 64, 128))
_TAPS = tuple((dy, dx) for dy in range(3) for dx in range(3))
_K_STRIDE = 128            # lane stride of one 3x3 tap inside the im2col matrix
_K_PAD = 9 * _K_STRIDE     # padded contraction dim of every conv matmul
_COL0 = 8                  # sublane-aligned column offset of the interior (left halo at _COL0-1)


def _stage(pad_ref, col_ref, w_ref, scale_ref, bias_ref, H, W, Cin, Cout):
    """One stage: 3x3 SAME conv (single MXU matmul on an im2col matrix),
    folded-BN affine, ReLU, 2x2 max-pool.  Returns (H//2, W//2, Cout) f32."""
    # Build the im2col matrix.  Tap t occupies lanes [t*128, t*128 + Cin); the
    # padding lanes stay zero and meet zero rows of the packed weight matrix.
    col_ref[...] = jnp.zeros_like(col_ref)
    for t, (dy, dx) in enumerate(_TAPS):
        col_ref[:, :, t * _K_STRIDE:t * _K_STRIDE + Cin] = (
            pad_ref[dy:dy + H, _COL0 - 1 + dx:_COL0 - 1 + dx + W, :])
    patches = col_ref[...].reshape(H * W, _K_PAD).astype(jnp.bfloat16)
    acc = jnp.dot(patches, w_ref[...], preferred_element_type=jnp.float32)
    y = jnp.maximum(acc * scale_ref[...] + bias_ref[...], 0.0)       # BN (eval) + ReLU
    y = y.reshape(H // 2, 2, W // 2, 2, Cout)
    return jnp.max(jnp.max(y, axis=3), axis=1)                       # 2x2 max-pool


def _mttx_seq_kernel(x_ref,
                     w1_ref, s1_ref, b1_ref,
                     w2_ref, s2_ref, b2_ref,
                     w3_ref, s3_ref, b3_ref,
                     w4_ref, s4_ref, b4_ref,
                     o_ref,
                     pad0, pad1, pad2, pad3,
                     col0, col1, col2, col3):
    pads = (pad0, pad1, pad2, pad3)
    cols = (col0, col1, col2, col3)
    wsb = ((w1_ref, s1_ref, b1_ref), (w2_ref, s2_ref, b2_ref),
           (w3_ref, s3_ref, b3_ref), (w4_ref, s4_ref, b4_ref))

    # Zero the halo'd activation scratches; interiors are overwritten below.
    for p in pads:
        p[...] = jnp.zeros_like(p)

    act = x_ref[0]                                            # (16, 16, 4) f32
    for i, (H, W, Cin, Cout) in enumerate(_STAGES):
        pads[i][1:1 + H, _COL0:_COL0 + W, :] = act            # write interior
        act = _stage(pads[i], cols[i], *wsb[i], H, W, Cin, Cout)

    o_ref[0] = act.astype(o_ref.dtype)                        # (1, 1, 128)


def _pack_conv_weights(w_hwio):
    """(3, 3, Cin, Cout) HWIO -> (9*128, Cout) bf16, each tap's Cin rows placed
    at a 128-row stride (zero rows elsewhere) to match the im2col layout."""
    cin, cout = w_hwio.shape[2], w_hwio.shape[3]
    wk = jnp.zeros((_K_PAD, cout), jnp.float32)
    for t, (dy, dx) in enumerate(_TAPS):
        wk = wk.at[t * _K_STRIDE:t * _K_STRIDE + cin, :].set(w_hwio[dy, dx])
    return wk.astype(jnp.bfloat16)


def mttx_seq_forward(x_nhwc, params):
    """Fused forward.  x_nhwc: (N, 16, 16, 4) f32.
    params: 4 tuples (w_hwio (3,3,Cin,Cout), scale (1,Cout), bias (1,Cout))."""
    N = x_nhwc.shape[0]
    h0, w0, c0, _ = _STAGES[0]
    assert x_nhwc.shape[1:] == (h0, w0, c0), x_nhwc.shape
    for (h, w, _, _) in _STAGES:                  # 2x2/2 pooling needs even dims
        assert h % 2 == 0 and w % 2 == 0

    flat_params = []
    for (w_hwio, scale, bias) in params:
        flat_params += [_pack_conv_weights(w_hwio), scale, bias]

    in_specs = [pl.BlockSpec((1, h0, w0, c0), lambda n: (n, 0, 0, 0))]
    for (_, _, _, cout) in _STAGES:
        in_specs += [pl.BlockSpec((_K_PAD, cout), lambda n: (0, 0)),
                     pl.BlockSpec((1, cout), lambda n: (0, 0)),
                     pl.BlockSpec((1, cout), lambda n: (0, 0))]

    # Halo'd per-stage activation scratches + lane-aligned im2col scratches.
    scratch = [pltpu.VMEM((h + 2, w + _COL0 + 1, cin), jnp.float32)
               for (h, w, cin, _) in _STAGES]
    scratch += [pltpu.VMEM((h, w, _K_PAD), jnp.float32)
                for (h, w, _, _) in _STAGES]

    c_last = _STAGES[-1][3]
    return pl.pallas_call(
        _mttx_seq_kernel,
        out_shape=jax.ShapeDtypeStruct((N, 1, 1, c_last), x_nhwc.dtype),
        grid_spec=pltpu.PrefetchScalarGridSpec(
            num_scalar_prefetch=0,
            grid=(N,),
            in_specs=in_specs,
            out_specs=pl.BlockSpec((1, 1, 1, c_last), lambda n: (n, 0, 0, 0)),
            scratch_shapes=scratch,
        ),
        compiler_params=pltpu.CompilerParams(
            dimension_semantics=("parallel",)),
    )(x_nhwc, *flat_params)


def init_stage(key, cin, cout):
    """Deterministic synthetic parameters for conv_k3 + BatchNorm2d (eval)."""
    kw, kb, kg, kbe, km, kv = jax.random.split(key, 6)
    w = 0.1 * jax.random.normal(kw, (3, 3, cin, cout), jnp.float32)   # HWIO
    b = 0.1 * jax.random.normal(kb, (cout,), jnp.float32)
    gamma = 1.0 + 0.1 * jax.random.normal(kg, (cout,), jnp.float32)
    beta = 0.1 * jax.random.normal(kbe, (cout,), jnp.float32)
    running_mean = 0.1 * jax.random.normal(km, (cout,), jnp.float32)
    running_var = 1.0 + 0.1 * jnp.abs(jax.random.normal(kv, (cout,), jnp.float32))
    eps = 1e-5
    s = gamma / jnp.sqrt(running_var + eps)
    scale = s.reshape(1, cout)
    bias = ((b - running_mean) * s + beta).reshape(1, cout)
    return w, scale, bias


def ref_stage(x, w, scale, bias):
    """Plain-JAX reference for one stage (NHWC).  Conv operands are cast to
    bfloat16 with f32 accumulation to mirror the kernel's MXU input precision."""
    y = jax.lax.conv_general_dilated(
        x.astype(jnp.bfloat16), w.astype(jnp.bfloat16),
        window_strides=(1, 1), padding="SAME",
        dimension_numbers=("NHWC", "HWIO", "NHWC"),
        preferred_element_type=jnp.float32)
    y = jnp.maximum(y * scale.reshape(1, 1, 1, -1) + bias.reshape(1, 1, 1, -1),
                    0.0)
    y = jax.lax.reduce_window(y, -jnp.inf, jax.lax.max,
                              (1, 2, 2, 1), (1, 2, 2, 1), "VALID")
    return y


if __name__ == "__main__":
    key = jax.random.PRNGKey(0)
    k_x, k1, k2, k3, k4 = jax.random.split(key, 5)

    # PyTorch-convention input: NCHW = (2, 4, 16, 16)
    N, C_in, H, W = 2, 4, 16, 16
    x_nchw = jax.random.normal(k_x, (N, C_in, H, W), jnp.float32)
    x = jnp.transpose(x_nchw, (0, 2, 3, 1))                    # -> NHWC

    stage_keys = [k1, k2, k3, k4]
    params = [init_stage(stage_keys[i], _STAGES[i][2], _STAGES[i][3])
              for i in range(4)]

    y = mttx_seq_forward(x, params)
    y = jax.block_until_ready(y)

    y_ref = x
    for (w, scale, bias) in params:
        y_ref = ref_stage(y_ref, w, scale, bias)

    assert y.shape == (N, 1, 1, 128), y.shape                  # NHWC of NCHW (2,128,1,1)
    max_err = float(jnp.max(jnp.abs(y - y_ref)))
    assert jnp.allclose(y, y_ref, atol=1e-2, rtol=1e-2), max_err
    print("KERNEL_OK")
</pallas_src>

<mosaic_0001>
module attributes {stable_mosaic.version = 11 : i64} {
  func.func @_mttx_seq_kernel(%arg0: i32, %arg1: memref<1x16x16x4xf32, #tpu.memory_space<vmem>>, %arg2: memref<1152x16xbf16, #tpu.memory_space<vmem>>, %arg3: memref<1x16xf32, #tpu.memory_space<vmem>>, %arg4: memref<1x16xf32, #tpu.memory_space<vmem>>, %arg5: memref<1152x32xbf16, #tpu.memory_space<vmem>>, %arg6: memref<1x32xf32, #tpu.memory_space<vmem>>, %arg7: memref<1x32xf32, #tpu.memory_space<vmem>>, %arg8: memref<1152x64xbf16, #tpu.memory_space<vmem>>, %arg9: memref<1x64xf32, #tpu.memory_space<vmem>>, %arg10: memref<1x64xf32, #tpu.memory_space<vmem>>, %arg11: memref<1152x128xbf16, #tpu.memory_space<vmem>>, %arg12: memref<1x128xf32, #tpu.memory_space<vmem>>, %arg13: memref<1x128xf32, #tpu.memory_space<vmem>>, %arg14: memref<1x1x1x128xf32, #tpu.memory_space<vmem>>, %arg15: memref<18x25x4xf32, #tpu.memory_space<vmem>>, %arg16: memref<10x17x16xf32, #tpu.memory_space<vmem>>, %arg17: memref<6x13x32xf32, #tpu.memory_space<vmem>>, %arg18: memref<4x11x64xf32, #tpu.memory_space<vmem>>, %arg19: memref<16x16x1152xf32, #tpu.memory_space<vmem>>, %arg20: memref<8x8x1152xf32, #tpu.memory_space<vmem>>, %arg21: memref<4x4x1152xf32, #tpu.memory_space<vmem>>, %arg22: memref<2x2x1152xf32, #tpu.memory_space<vmem>>) attributes {dimension_semantics = [#tpu.dimension_semantics<parallel>], iteration_bounds = array<i64: 2>, scalar_prefetch = 0 : i64, scratch_operands = 8 : i64, tpu.core_type = #tpu.core_type<tc>, window_params = [{transform_indices = @transform_0, window_bounds = array<i64: 1, 16, 16, 4>}, {pipeline_mode = #tpu.pipeline_mode<synchronous>, transform_indices = @transform_1, window_bounds = array<i64: 1152, 16>}, {pipeline_mode = #tpu.pipeline_mode<synchronous>, transform_indices = @transform_2, window_bounds = array<i64: 1, 16>}, {pipeline_mode = #tpu.pipeline_mode<synchronous>, transform_indices = @transform_3, window_bounds = array<i64: 1, 16>}, {pipeline_mode = #tpu.pipeline_mode<synchronous>, transform_indices = @transform_4, window_bounds = array<i64: 1152, 32>}, {pipeline_mode = #tpu.pipeline_mode<synchronous>, transform_indices = @transform_5, window_bounds = array<i64: 1, 32>}, {pipeline_mode = #tpu.pipeline_mode<synchronous>, transform_indices = @transform_6, window_bounds = array<i64: 1, 32>}, {pipeline_mode = #tpu.pipeline_mode<synchronous>, transform_indices = @transform_7, window_bounds = array<i64: 1152, 64>}, {pipeline_mode = #tpu.pipeline_mode<synchronous>, transform_indices = @transform_8, window_bounds = array<i64: 1, 64>}, {pipeline_mode = #tpu.pipeline_mode<synchronous>, transform_indices = @transform_9, window_bounds = array<i64: 1, 64>}, {pipeline_mode = #tpu.pipeline_mode<synchronous>, transform_indices = @transform_10, window_bounds = array<i64: 1152, 128>}, {pipeline_mode = #tpu.pipeline_mode<synchronous>, transform_indices = @transform_11, window_bounds = array<i64: 1, 128>}, {pipeline_mode = #tpu.pipeline_mode<synchronous>, transform_indices = @transform_12, window_bounds = array<i64: 1, 128>}, {transform_indices = @transform_13, window_bounds = array<i64: 1, 1, 1, 128>}]} {
    %cst = arith.constant 0.000000e+00 : f32
    %0 = vector.broadcast %cst : f32 to vector<18x25x4xf32>
    %c0 = arith.constant 0 : index
    %c0_0 = arith.constant 0 : index
    %c0_1 = arith.constant 0 : index
    %1 = vector.load %arg15[%c0, %c0_0, %c0_1] : memref<18x25x4xf32, #tpu.memory_space<vmem>>, vector<18x25x4xf32>
    tpu.vector_store %arg15[%c0, %c0_0, %c0_1], %0 {strides = array<i32>} : memref<18x25x4xf32, #tpu.memory_space<vmem>>, vector<18x25x4xf32>,
    %cst_2 = arith.constant 0.000000e+00 : f32
    %2 = vector.broadcast %cst_2 : f32 to vector<10x17x16xf32>
    %c0_3 = arith.constant 0 : index
    %c0_4 = arith.constant 0 : index
    %c0_5 = arith.constant 0 : index
    %3 = vector.load %arg16[%c0_3, %c0_4, %c0_5] : memref<10x17x16xf32, #tpu.memory_space<vmem>>, vector<10x17x16xf32>
    tpu.vector_store %arg16[%c0_3, %c0_4, %c0_5], %2 {strides = array<i32>} : memref<10x17x16xf32, #tpu.memory_space<vmem>>, vector<10x17x16xf32>,
    %cst_6 = arith.constant 0.000000e+00 : f32
    %4 = vector.broadcast %cst_6 : f32 to vector<6x13x32xf32>
    %c0_7 = arith.constant 0 : index
    %c0_8 = arith.constant 0 : index
    %c0_9 = arith.constant 0 : index
    %5 = vector.load %arg17[%c0_7, %c0_8, %c0_9] : memref<6x13x32xf32, #tpu.memory_space<vmem>>, vector<6x13x32xf32>
    tpu.vector_store %arg17[%c0_7, %c0_8, %c0_9], %4 {strides = array<i32>} : memref<6x13x32xf32, #tpu.memory_space<vmem>>, vector<6x13x32xf32>,
    %cst_10 = arith.constant 0.000000e+00 : f32
    %6 = vector.broadcast %cst_10 : f32 to vector<4x11x64xf32>
    %c0_11 = arith.constant 0 : index
    %c0_12 = arith.constant 0 : index
    %c0_13 = arith.constant 0 : index
    %7 = vector.load %arg18[%c0_11, %c0_12, %c0_13] : memref<4x11x64xf32, #tpu.memory_space<vmem>>, vector<4x11x64xf32>
    tpu.vector_store %arg18[%c0_11, %c0_12, %c0_13], %6 {strides = array<i32>} : memref<4x11x64xf32, #tpu.memory_space<vmem>>, vector<4x11x64xf32>,
    %c0_14 = arith.constant 0 : index
    %c0_15 = arith.constant 0 : index
    %c0_16 = arith.constant 0 : index
    %c0_17 = arith.constant 0 : index
    %8 = vector.load %arg1[%c0_14, %c0_15, %c0_16, %c0_17] : memref<1x16x16x4xf32, #tpu.memory_space<vmem>>, vector<1x16x16x4xf32>
    %9 = vector.shape_cast %8 : vector<1x16x16x4xf32> to vector<16x16x4xf32>
    %c1 = arith.constant 1 : index
    %c8 = arith.constant 8 : index
    %c0_18 = arith.constant 0 : index
    %10 = vector.load %arg15[%c1, %c8, %c0_18] : memref<18x25x4xf32, #tpu.memory_space<vmem>>, vector<16x16x4xf32>
    tpu.vector_store %arg15[%c1, %c8, %c0_18], %9 {strides = array<i32>} : memref<18x25x4xf32, #tpu.memory_space<vmem>>, vector<16x16x4xf32>,
    %cst_19 = arith.constant 0.000000e+00 : f32
    %11 = vector.broadcast %cst_19 : f32 to vector<16x16x1152xf32>
    %c0_20 = arith.constant 0 : index
    %c0_21 = arith.constant 0 : index
    %c0_22 = arith.constant 0 : index
    %12 = vector.load %arg19[%c0_20, %c0_21, %c0_22] : memref<16x16x1152xf32, #tpu.memory_space<vmem>>, vector<16x16x1152xf32>
    tpu.vector_store %arg19[%c0_20, %c0_21, %c0_22], %11 {strides = array<i32>} : memref<16x16x1152xf32, #tpu.memory_space<vmem>>, vector<16x16x1152xf32>,
    %c0_23 = arith.constant 0 : index
    %c7 = arith.constant 7 : index
    %c0_24 = arith.constant 0 : index
    %13 = vector.load %arg15[%c0_23, %c7, %c0_24] : memref<18x25x4xf32, #tpu.memory_space<vmem>>, vector<16x16x4xf32>
    %c0_25 = arith.constant 0 : index
    %c0_26 = arith.constant 0 : index
    %c0_27 = arith.constant 0 : index
    %14 = vector.load %arg19[%c0_25, %c0_26, %c0_27] : memref<16x16x1152xf32, #tpu.memory_space<vmem>>, vector<16x16x4xf32>
    tpu.vector_store %arg19[%c0_25, %c0_26, %c0_27], %13 {strides = array<i32>} : memref<16x16x1152xf32, #tpu.memory_space<vmem>>, vector<16x16x4xf32>,
    %c0_28 = arith.constant 0 : index
    %c8_29 = arith.constant 8 : index
    %c0_30 = arith.constant 0 : index
    %15 = vector.load %arg15[%c0_28, %c8_29, %c0_30] : memref<18x25x4xf32, #tpu.memory_space<vmem>>, vector<16x16x4xf32>
    %c0_31 = arith.constant 0 : index
    %c0_32 = arith.constant 0 : index
    %c128 = arith.constant 128 : index
    %16 = vector.load %arg19[%c0_31, %c0_32, %c128] : memref<16x16x1152xf32, #tpu.memory_space<vmem>>, vector<16x16x4xf32>
    tpu.vector_store %arg19[%c0_31, %c0_32, %c128], %15 {strides = array<i32>} : memref<16x16x1152xf32, #tpu.memory_space<vmem>>, vector<16x16x4xf32>,
    %c0_33 = arith.constant 0 : index
    %c9 = arith.constant 9 : index
    %c0_34 = arith.constant 0 : index
    %17 = vector.load %arg15[%c0_33, %c9, %c0_34] : memref<18x25x4xf32, #tpu.memory_space<vmem>>, vector<16x16x4xf32>
    %c0_35 = arith.constant 0 : index
    %c0_36 = arith.constant 0 : index
    %c256 = arith.constant 256 : index
    %18 = vector.load %arg19[%c0_35, %c0_36, %c256] : memref<16x16x1152xf32, #tpu.memory_space<vmem>>, vector<16x16x4xf32>
    tpu.vector_store %arg19[%c0_35, %c0_36, %c256], %17 {strides = array<i32>} : memref<16x16x1152xf32, #tpu.memory_space<vmem>>, vector<16x16x4xf32>,
    %c1_37 = arith.constant 1 : index
    %c7_38 = arith.constant 7 : index
    %c0_39 = arith.constant 0 : index
    %19 = vector.load %arg15[%c1_37, %c7_38, %c0_39] : memref<18x25x4xf32, #tpu.memory_space<vmem>>, vector<16x16x4xf32>
    %c0_40 = arith.constant 0 : index
    %c0_41 = arith.constant 0 : index
    %c384 = arith.constant 384 : index
    %20 = vector.load %arg19[%c0_40, %c0_41, %c384] : memref<16x16x1152xf32, #tpu.memory_space<vmem>>, vector<16x16x4xf32>
    tpu.vector_store %arg19[%c0_40, %c0_41, %c384], %19 {strides = array<i32>} : memref<16x16x1152xf32, #tpu.memory_space<vmem>>, vector<16x16x4xf32>,
    %c1_42 = arith.constant 1 : index
    %c8_43 = arith.constant 8 : index
    %c0_44 = arith.constant 0 : index
    %21 = vector.load %arg15[%c1_42, %c8_43, %c0_44] : memref<18x25x4xf32, #tpu.memory_space<vmem>>, vector<16x16x4xf32>
    %c0_45 = arith.constant 0 : index
    %c0_46 = arith.constant 0 : index
    %c512 = arith.constant 512 : index
    %22 = vector.load %arg19[%c0_45, %c0_46, %c512] : memref<16x16x1152xf32, #tpu.memory_space<vmem>>, vector<16x16x4xf32>
    tpu.vector_store %arg19[%c0_45, %c0_46, %c512], %21 {strides = array<i32>} : memref<16x16x1152xf32, #tpu.memory_space<vmem>>, vector<16x16x4xf32>,
    %c1_47 = arith.constant 1 : index
    %c9_48 = arith.constant 9 : index
    %c0_49 = arith.constant 0 : index
    %23 = vector.load %arg15[%c1_47, %c9_48, %c0_49] : memref<18x25x4xf32, #tpu.memory_space<vmem>>, vector<16x16x4xf32>
    %c0_50 = arith.constant 0 : index
    %c0_51 = arith.constant 0 : index
    %c640 = arith.constant 640 : index
    %24 = vector.load %arg19[%c0_50, %c0_51, %c640] : memref<16x16x1152xf32, #tpu.memory_space<vmem>>, vector<16x16x4xf32>
    tpu.vector_store %arg19[%c0_50, %c0_51, %c640], %23 {strides = array<i32>} : memref<16x16x1152xf32, #tpu.memory_space<vmem>>, vector<16x16x4xf32>,
    %c2 = arith.constant 2 : index
    %c7_52 = arith.constant 7 : index
    %c0_53 = arith.constant 0 : index
    %25 = vector.load %arg15[%c2, %c7_52, %c0_53] : memref<18x25x4xf32, #tpu.memory_space<vmem>>, vector<16x16x4xf32>
    %c0_54 = arith.constant 0 : index
    %c0_55 = arith.constant 0 : index
    %c768 = arith.constant 768 : index
    %26 = vector.load %arg19[%c0_54, %c0_55, %c768] : memref<16x16x1152xf32, #tpu.memory_space<vmem>>, vector<16x16x4xf32>
    tpu.vector_store %arg19[%c0_54, %c0_55, %c768], %25 {strides = array<i32>} : memref<16x16x1152xf32, #tpu.memory_space<vmem>>, vector<16x16x4xf32>,
    %c2_56 = arith.constant 2 : index
    %c8_57 = arith.constant 8 : index
    %c0_58 = arith.constant 0 : index
    %27 = vector.load %arg15[%c2_56, %c8_57, %c0_58] : memref<18x25x4xf32, #tpu.memory_space<vmem>>, vector<16x16x4xf32>
    %c0_59 = arith.constant 0 : index
    %c0_60 = arith.constant 0 : index
    %c896 = arith.constant 896 : index
    %28 = vector.load %arg19[%c0_59, %c0_60, %c896] : memref<16x16x1152xf32, #tpu.memory_space<vmem>>, vector<16x16x4xf32>
    tpu.vector_store %arg19[%c0_59, %c0_60, %c896], %27 {strides = array<i32>} : memref<16x16x1152xf32, #tpu.memory_space<vmem>>, vector<16x16x4xf32>,
    %c2_61 = arith.constant 2 : index
    %c9_62 = arith.constant 9 : index
    %c0_63 = arith.constant 0 : index
    %29 = vector.load %arg15[%c2_61, %c9_62, %c0_63] : memref<18x25x4xf32, #tpu.memory_space<vmem>>, vector<16x16x4xf32>
    %c0_64 = arith.constant 0 : index
    %c0_65 = arith.constant 0 : index
    %c1024 = arith.constant 1024 : index
    %30 = vector.load %arg19[%c0_64, %c0_65, %c1024] : memref<16x16x1152xf32, #tpu.memory_space<vmem>>, vector<16x16x4xf32>
    tpu.vector_store %arg19[%c0_64, %c0_65, %c1024], %29 {strides = array<i32>} : memref<16x16x1152xf32, #tpu.memory_space<vmem>>, vector<16x16x4xf32>,
    %c0_66 = arith.constant 0 : index
    %c0_67 = arith.constant 0 : index
    %c0_68 = arith.constant 0 : index
    %31 = vector.load %arg19[%c0_66, %c0_67, %c0_68] : memref<16x16x1152xf32, #tpu.memory_space<vmem>>, vector<16x16x1152xf32>
    %32 = vector.shape_cast %31 : vector<16x16x1152xf32> to vector<256x1152xf32>
    %33 = arith.truncf %32 : vector<256x1152xf32> to vector<256x1152xbf16>
    %c0_69 = arith.constant 0 : index
    %c0_70 = arith.constant 0 : index
    %34 = vector.load %arg2[%c0_69, %c0_70] : memref<1152x16xbf16, #tpu.memory_space<vmem>>, vector<1152x16xbf16>
    %cst_71 = arith.constant dense<0.000000e+00> : vector<256x16xf32>
    %35 = tpu.matmul %33, %34, %cst_71 {dimension_numbers = #tpu.dot_dimension_numbers<[1], [0], [0], [1], [0, 0, 1, 1], [], []>} : vector<256x1152xbf16>, vector<1152x16xbf16>, vector<256x16xf32> -> vector<256x16xf32>
    %c0_72 = arith.constant 0 : index
    %c0_73 = arith.constant 0 : index
    %36 = vector.load %arg3[%c0_72, %c0_73] : memref<1x16xf32, #tpu.memory_space<vmem>>, vector<1x16xf32>
    %37 = vector.broadcast %36 : vector<1x16xf32> to vector<256x16xf32>
    %38 = arith.mulf %35, %37 : vector<256x16xf32>
    %c0_74 = arith.constant 0 : index
    %c0_75 = arith.constant 0 : index
    %39 = vector.load %arg4[%c0_74, %c0_75] : memref<1x16xf32, #tpu.memory_space<vmem>>, vector<1x16xf32>
    %40 = vector.broadcast %39 : vector<1x16xf32> to vector<256x16xf32>
    %41 = arith.addf %38, %40 : vector<256x16xf32>
    %cst_76 = arith.constant 0.000000e+00 : f32
    %42 = vector.broadcast %cst_76 : f32 to vector<256x16xf32>
    %43 = arith.maximumf %41, %42 : vector<256x16xf32>
    %44 = vector.shape_cast %43 : vector<256x16xf32> to vector<8x2x8x2x16xf32>
    %cst_77 = arith.constant dense<0xFF800000> : vector<8x2x8x16xf32>
    %45 = vector.multi_reduction <maximumf>, %44, %cst_77 [3] : vector<8x2x8x2x16xf32> to vector<8x2x8x16xf32>
    %cst_78 = arith.constant dense<0xFF800000> : vector<8x8x16xf32>
    %46 = vector.multi_reduction <maximumf>, %45, %cst_78 [1] : vector<8x2x8x16xf32> to vector<8x8x16xf32>
    %c1_79 = arith.constant 1 : index
    %c8_80 = arith.constant 8 : index
    %c0_81 = arith.constant 0 : index
    %47 = vector.load %arg16[%c1_79, %c8_80, %c0_81] : memref<10x17x16xf32, #tpu.memory_space<vmem>>, vector<8x8x16xf32>
    tpu.vector_store %arg16[%c1_79, %c8_80, %c0_81], %46 {strides = array<i32>} : memref<10x17x16xf32, #tpu.memory_space<vmem>>, vector<8x8x16xf32>,
    %cst_82 = arith.constant 0.000000e+00 : f32
    %48 = vector.broadcast %cst_82 : f32 to vector<8x8x1152xf32>
    %c0_83 = arith.constant 0 : index
    %c0_84 = arith.constant 0 : index
    %c0_85 = arith.constant 0 : index
    %49 = vector.load %arg20[%c0_83, %c0_84, %c0_85] : memref<8x8x1152xf32, #tpu.memory_space<vmem>>, vector<8x8x1152xf32>
    tpu.vector_store %arg20[%c0_83, %c0_84, %c0_85], %48 {strides = array<i32>} : memref<8x8x1152xf32, #tpu.memory_space<vmem>>, vector<8x8x1152xf32>,
    %c0_86 = arith.constant 0 : index
    %c7_87 = arith.constant 7 : index
    %c0_88 = arith.constant 0 : index
    %50 = vector.load %arg16[%c0_86, %c7_87, %c0_88] : memref<10x17x16xf32, #tpu.memory_space<vmem>>, vector<8x8x16xf32>
    %c0_89 = arith.constant 0 : index
    %c0_90 = arith.constant 0 : index
    %c0_91 = arith.constant 0 : index
    %51 = vector.load %arg20[%c0_89, %c0_90, %c0_91] : memref<8x8x1152xf32, #tpu.memory_space<vmem>>, vector<8x8x16xf32>
    tpu.vector_store %arg20[%c0_89, %c0_90, %c0_91], %50 {strides = array<i32>} : memref<8x8x1152xf32, #tpu.memory_space<vmem>>, vector<8x8x16xf32>,
    %c0_92 = arith.constant 0 : index
    %c8_93 = arith.constant 8 : index
    %c0_94 = arith.constant 0 : index
    %52 = vector.load %arg16[%c0_92, %c8_93, %c0_94] : memref<10x17x16xf32, #tpu.memory_space<vmem>>, vector<8x8x16xf32>
    %c0_95 = arith.constant 0 : index
    %c0_96 = arith.constant 0 : index
    %c128_97 = arith.constant 128 : index
    %53 = vector.load %arg20[%c0_95, %c0_96, %c128_97] : memref<8x8x1152xf32, #tpu.memory_space<vmem>>, vector<8x8x16xf32>
    tpu.vector_store %arg20[%c0_95, %c0_96, %c128_97], %52 {strides = array<i32>} : memref<8x8x1152xf32, #tpu.memory_space<vmem>>, vector<8x8x16xf32>,
    %c0_98 = arith.constant 0 : index
    %c9_99 = arith.constant 9 : index
    %c0_100 = arith.constant 0 : index
    %54 = vector.load %arg16[%c0_98, %c9_99, %c0_100] : memref<10x17x16xf32, #tpu.memory_space<vmem>>, vector<8x8x16xf32>
    %c0_101 = arith.constant 0 : index
    %c0_102 = arith.constant 0 : index
    %c256_103 = arith.constant 256 : index
    %55 = vector.load %arg20[%c0_101, %c0_102, %c256_103] : memref<8x8x1152xf32, #tpu.memory_space<vmem>>, vector<8x8x16xf32>
    tpu.vector_store %arg20[%c0_101, %c0_102, %c256_103], %54 {strides = array<i32>} : memref<8x8x1152xf32, #tpu.memory_space<vmem>>, vector<8x8x16xf32>,
    %c1_104 = arith.constant 1 : index
    %c7_105 = arith.constant 7 : index
    %c0_106 = arith.constant 0 : index
    %56 = vector.load %arg16[%c1_104, %c7_105, %c0_106] : memref<10x17x16xf32, #tpu.memory_space<vmem>>, vector<8x8x16xf32>
    %c0_107 = arith.constant 0 : index
    %c0_108 = arith.constant 0 : index
    %c384_109 = arith.constant 384 : index
    %57 = vector.load %arg20[%c0_107, %c0_108, %c384_109] : memref<8x8x1152xf32, #tpu.memory_space<vmem>>, vector<8x8x16xf32>
    tpu.vector_store %arg20[%c0_107, %c0_108, %c384_109], %56 {strides = array<i32>} : memref<8x8x1152xf32, #tpu.memory_space<vmem>>, vector<8x8x16xf32>,
    %c1_110 = arith.constant 1 : index
    %c8_111 = arith.constant 8 : index
    %c0_112 = arith.constant 0 : index
    %58 = vector.load %arg16[%c1_110, %c8_111, %c0_112] : memref<10x17x16xf32, #tpu.memory_space<vmem>>, vector<8x8x16xf32>
    %c0_113 = arith.constant 0 : index
    %c0_114 = arith.constant 0 : index
    %c512_115 = arith.constant 512 : index
    %59 = vector.load %arg20[%c0_113, %c0_114, %c512_115] : memref<8x8x1152xf32, #tpu.memory_space<vmem>>, vector<8x8x16xf32>
    tpu.vector_store %arg20[%c0_113, %c0_114, %c512_115], %58 {strides = array<i32>} : memref<8x8x1152xf32, #tpu.memory_space<vmem>>, vector<8x8x16xf32>,
    %c1_116 = arith.constant 1 : index
    %c9_117 = arith.constant 9 : index
    %c0_118 = arith.constant 0 : index
    %60 = vector.load %arg16[%c1_116, %c9_117, %c0_118] : memref<10x17x16xf32, #tpu.memory_space<vmem>>, vector<8x8x16xf32>
    %c0_119 = arith.constant 0 : index
    %c0_120 = arith.constant 0 : index
    %c640_121 = arith.constant 640 : index
    %61 = vector.load %arg20[%c0_119, %c0_120, %c640_121] : memref<8x8x1152xf32, #tpu.memory_space<vmem>>, vector<8x8x16xf32>
    tpu.vector_store %arg20[%c0_119, %c0_120, %c640_121], %60 {strides = array<i32>} : memref<8x8x1152xf32, #tpu.memory_space<vmem>>, vector<8x8x16xf32>,
    %c2_122 = arith.constant 2 : index
    %c7_123 = arith.constant 7 : index
    %c0_124 = arith.constant 0 : index
    %62 = vector.load %arg16[%c2_122, %c7_123, %c0_124] : memref<10x17x16xf32, #tpu.memory_space<vmem>>, vector<8x8x16xf32>
    %c0_125 = arith.constant 0 : index
    %c0_126 = arith.constant 0 : index
    %c768_127 = arith.constant 768 : index
    %63 = vector.load %arg20[%c0_125, %c0_126, %c768_127] : memref<8x8x1152xf32, #tpu.memory_space<vmem>>, vector<8x8x16xf32>
    tpu.vector_store %arg20[%c0_125, %c0_126, %c768_127], %62 {strides = array<i32>} : memref<8x8x1152xf32, #tpu.memory_space<vmem>>, vector<8x8x16xf32>,
    %c2_128 = arith.constant 2 : index
    %c8_129 = arith.constant 8 : index
    %c0_130 = arith.constant 0 : index
    %64 = vector.load %arg16[%c2_128, %c8_129, %c0_130] : memref<10x17x16xf32, #tpu.memory_space<vmem>>, vector<8x8x16xf32>
    %c0_131 = arith.constant 0 : index
    %c0_132 = arith.constant 0 : index
    %c896_133 = arith.constant 896 : index
    %65 = vector.load %arg20[%c0_131, %c0_132, %c896_133] : memref<8x8x1152xf32, #tpu.memory_space<vmem>>, vector<8x8x16xf32>
    tpu.vector_store %arg20[%c0_131, %c0_132, %c896_133], %64 {strides = array<i32>} : memref<8x8x1152xf32, #tpu.memory_space<vmem>>, vector<8x8x16xf32>,
    %c2_134 = arith.constant 2 : index
    %c9_135 = arith.constant 9 : index
    %c0_136 = arith.constant 0 : index
    %66 = vector.load %arg16[%c2_134, %c9_135, %c0_136] : memref<10x17x16xf32, #tpu.memory_space<vmem>>, vector<8x8x16xf32>
    %c0_137 = arith.constant 0 : index
    %c0_138 = arith.constant 0 : index
    %c1024_139 = arith.constant 1024 : index
    %67 = vector.load %arg20[%c0_137, %c0_138, %c1024_139] : memref<8x8x1152xf32, #tpu.memory_space<vmem>>, vector<8x8x16xf32>
    tpu.vector_store %arg20[%c0_137, %c0_138, %c1024_139], %66 {strides = array<i32>} : memref<8x8x1152xf32, #tpu.memory_space<vmem>>, vector<8x8x16xf32>,
    %c0_140 = arith.constant 0 : index
    %c0_141 = arith.constant 0 : index
    %c0_142 = arith.constant 0 : index
    %68 = vector.load %arg20[%c0_140, %c0_141, %c0_142] : memref<8x8x1152xf32, #tpu.memory_space<vmem>>, vector<8x8x1152xf32>
    %69 = vector.shape_cast %68 : vector<8x8x1152xf32> to vector<64x1152xf32>
    %70 = arith.truncf %69 : vector<64x1152xf32> to vector<64x1152xbf16>
    %c0_143 = arith.constant 0 : index
    %c0_144 = arith.constant 0 : index
    %71 = vector.load %arg5[%c0_143, %c0_144] : memref<1152x32xbf16, #tpu.memory_space<vmem>>, vector<1152x32xbf16>
    %cst_145 = arith.constant dense<0.000000e+00> : vector<64x32xf32>
    %72 = tpu.matmul %70, %71, %cst_145 {dimension_numbers = #tpu.dot_dimension_numbers<[1], [0], [0], [1], [0, 0, 1, 1], [], []>} : vector<64x1152xbf16>, vector<1152x32xbf16>, vector<64x32xf32> -> vector<64x32xf32>
    %c0_146 = arith.constant 0 : index
    %c0_147 = arith.constant 0 : index
    %73 = vector.load %arg6[%c0_146, %c0_147] : memref<1x32xf32, #tpu.memory_space<vmem>>, vector<1x32xf32>
    %74 = vector.broadcast %73 : vector<1x32xf32> to vector<64x32xf32>
    %75 = arith.mulf %72, %74 : vector<64x32xf32>
    %c0_148 = arith.constant 0 : index
    %c0_149 = arith.constant 0 : index
    %76 = vector.load %arg7[%c0_148, %c0_149] : memref<1x32xf32, #tpu.memory_space<vmem>>, vector<1x32xf32>
    %77 = vector.broadcast %76 : vector<1x32xf32> to vector<64x32xf32>
    %78 = arith.addf %75, %77 : vector<64x32xf32>
    %cst_150 = arith.constant 0.000000e+00 : f32
    %79 = vector.broadcast %cst_150 : f32 to vector<64x32xf32>
    %80 = arith.maximumf %78, %79 : vector<64x32xf32>
    %81 = vector.shape_cast %80 : vector<64x32xf32> to vector<4x2x4x2x32xf32>
    %cst_151 = arith.constant dense<0xFF800000> : vector<4x2x4x32xf32>
    %82 = vector.multi_reduction <maximumf>, %81, %cst_151 [3] : vector<4x2x4x2x32xf32> to vector<4x2x4x32xf32>
    %cst_152 = arith.constant dense<0xFF800000> : vector<4x4x32xf32>
    %83 = vector.multi_reduction <maximumf>, %82, %cst_152 [1] : vector<4x2x4x32xf32> to vector<4x4x32xf32>
    %c1_153 = arith.constant 1 : index
    %c8_154 = arith.constant 8 : index
    %c0_155 = arith.constant 0 : index
    %84 = vector.load %arg17[%c1_153, %c8_154, %c0_155] : memref<6x13x32xf32, #tpu.memory_space<vmem>>, vector<4x4x32xf32>
    tpu.vector_store %arg17[%c1_153, %c8_154, %c0_155], %83 {strides = array<i32>} : memref<6x13x32xf32, #tpu.memory_space<vmem>>, vector<4x4x32xf32>,
    %cst_156 = arith.constant 0.000000e+00 : f32
    %85 = vector.broadcast %cst_156 : f32 to vector<4x4x1152xf32>
    %c0_157 = arith.constant 0 : index
    %c0_158 = arith.constant 0 : index
    %c0_159 = arith.constant 0 : index
    %86 = vector.load %arg21[%c0_157, %c0_158, %c0_159] : memref<4x4x1152xf32, #tpu.memory_space<vmem>>, vector<4x4x1152xf32>
    tpu.vector_store %arg21[%c0_157, %c0_158, %c0_159], %85 {strides = array<i32>} : memref<4x4x1152xf32, #tpu.memory_space<vmem>>, vector<4x4x1152xf32>,
    %c0_160 = arith.constant 0 : index
    %c7_161 = arith.constant 7 : index
    %c0_162 = arith.constant 0 : index
    %87 = vector.load %arg17[%c0_160, %c7_161, %c0_162] : memref<6x13x32xf32, #tpu.memory_space<vmem>>, vector<4x4x32xf32>
    %c0_163 = arith.constant 0 : index
    %c0_164 = arith.constant 0 : index
    %c0_165 = arith.constant 0 : index
    %88 = vector.load %arg21[%c0_163, %c0_164, %c0_165] : memref<4x4x1152xf32, #tpu.memory_space<vmem>>, vector<4x4x32xf32>
    tpu.vector_store %arg21[%c0_163, %c0_164, %c0_165], %87 {strides = array<i32>} : memref<4x4x1152xf32, #tpu.memory_space<vmem>>, vector<4x4x32xf32>,
    %c0_166 = arith.constant 0 : index
    %c8_167 = arith.constant 8 : index
    %c0_168 = arith.constant 0 : index
    %89 = vector.load %arg17[%c0_166, %c8_167, %c0_168] : memref<6x13x32xf32, #tpu.memory_space<vmem>>, vector<4x4x32xf32>
    %c0_169 = arith.constant 0 : index
    %c0_170 = arith.constant 0 : index
    %c128_171 = arith.constant 128 : index
    %90 = vector.load %arg21[%c0_169, %c0_170, %c128_171] : memref<4x4x1152xf32, #tpu.memory_space<vmem>>, vector<4x4x32xf32>
    tpu.vector_store %arg21[%c0_169, %c0_170, %c128_171], %89 {strides = array<i32>} : memref<4x4x1152xf32, #tpu.memory_space<vmem>>, vector<4x4x32xf32>,
    %c0_172 = arith.constant 0 : index
    %c9_173 = arith.constant 9 : index
    %c0_174 = arith.constant 0 : index
    %91 = vector.load %arg17[%c0_172, %c9_173, %c0_174] : memref<6x13x32xf32, #tpu.memory_space<vmem>>, vector<4x4x32xf32>
    %c0_175 = arith.constant 0 : index
    %c0_176 = arith.constant 0 : index
    %c256_177 = arith.constant 256 : index
    %92 = vector.load %arg21[%c0_175, %c0_176, %c256_177] : memref<4x4x1152xf32, #tpu.memory_space<vmem>>, vector<4x4x32xf32>
    tpu.vector_store %arg21[%c0_175, %c0_176, %c256_177], %91 {strides = array<i32>} : memref<4x4x1152xf32, #tpu.memory_space<vmem>>, vector<4x4x32xf32>,
    %c1_178 = arith.constant 1 : index
    %c7_179 = arith.constant 7 : index
    %c0_180 = arith.constant 0 : index
    %93 = vector.load %arg17[%c1_178, %c7_179, %c0_180] : memref<6x13x32xf32, #tpu.memory_space<vmem>>, vector<4x4x32xf32>
    %c0_181 = arith.constant 0 : index
    %c0_182 = arith.constant 0 : index
    %c384_183 = arith.constant 384 : index
    %94 = vector.load %arg21[%c0_181, %c0_182, %c384_183] : memref<4x4x1152xf32, #tpu.memory_space<vmem>>, vector<4x4x32xf32>
    tpu.vector_store %arg21[%c0_181, %c0_182, %c384_183], %93 {strides = array<i32>} : memref<4x4x1152xf32, #tpu.memory_space<vmem>>, vector<4x4x32xf32>,
    %c1_184 = arith.constant 1 : index
    %c8_185 = arith.constant 8 : index
    %c0_186 = arith.constant 0 : index
    %95 = vector.load %arg17[%c1_184, %c8_185, %c0_186] : memref<6x13x32xf32, #tpu.memory_space<vmem>>, vector<4x4x32xf32>
    %c0_187 = arith.constant 0 : index
    %c0_188 = arith.constant 0 : index
    %c512_189 = arith.constant 512 : index
    %96 = vector.load %arg21[%c0_187, %c0_188, %c512_189] : memref<4x4x1152xf32, #tpu.memory_space<vmem>>, vector<4x4x32xf32>
    tpu.vector_store %arg21[%c0_187, %c0_188, %c512_189], %95 {strides = array<i32>} : memref<4x4x1152xf32, #tpu.memory_space<vmem>>, vector<4x4x32xf32>,
    %c1_190 = arith.constant 1 : index
    %c9_191 = arith.constant 9 : index
    %c0_192 = arith.constant 0 : index
    %97 = vector.load %arg17[%c1_190, %c9_191, %c0_192] : memref<6x13x32xf32, #tpu.memory_space<vmem>>, vector<4x4x32xf32>
    %c0_193 = arith.constant 0 : index
    %c0_194 = arith.constant 0 : index
    %c640_195 = arith.constant 640 : index
    %98 = vector.load %arg21[%c0_193, %c0_194, %c640_195] : memref<4x4x1152xf32, #tpu.memory_space<vmem>>, vector<4x4x32xf32>
    tpu.vector_store %arg21[%c0_193, %c0_194, %c640_195], %97 {strides = array<i32>} : memref<4x4x1152xf32, #tpu.memory_space<vmem>>, vector<4x4x32xf32>,
    %c2_196 = arith.constant 2 : index
    %c7_197 = arith.constant 7 : index
    %c0_198 = arith.constant 0 : index
    %99 = vector.load %arg17[%c2_196, %c7_197, %c0_198] : memref<6x13x32xf32, #tpu.memory_space<vmem>>, vector<4x4x32xf32>
    %c0_199 = arith.constant 0 : index
    %c0_200 = arith.constant 0 : index
    %c768_201 = arith.constant 768 : index
    %100 = vector.load %arg21[%c0_199, %c0_200, %c768_201] : memref<4x4x1152xf32, #tpu.memory_space<vmem>>, vector<4x4x32xf32>
    tpu.vector_store %arg21[%c0_199, %c0_200, %c768_201], %99 {strides = array<i32>} : memref<4x4x1152xf32, #tpu.memory_space<vmem>>, vector<4x4x32xf32>,
    %c2_202 = arith.constant 2 : index
    %c8_203 = arith.constant 8 : index
    %c0_204 = arith.constant 0 : index
    %101 = vector.load %arg17[%c2_202, %c8_203, %c0_204] : memref<6x13x32xf32, #tpu.memory_space<vmem>>, vector<4x4x32xf32>
    %c0_205 = arith.constant 0 : index
    %c0_206 = arith.constant 0 : index
    %c896_207 = arith.constant 896 : index
    %102 = vector.load %arg21[%c0_205, %c0_206, %c896_207] : memref<4x4x1152xf32, #tpu.memory_space<vmem>>, vector<4x4x32xf32>
    tpu.vector_store %arg21[%c0_205, %c0_206, %c896_207], %101 {strides = array<i32>} : memref<4x4x1152xf32, #tpu.memory_space<vmem>>, vector<4x4x32xf32>,
    %c2_208 = arith.constant 2 : index
    %c9_209 = arith.constant 9 : index
    %c0_210 = arith.constant 0 : index
    %103 = vector.load %arg17[%c2_208, %c9_209, %c0_210] : memref<6x13x32xf32, #tpu.memory_space<vmem>>, vector<4x4x32xf32>
    %c0_211 = arith.constant 0 : index
    %c0_212 = arith.constant 0 : index
    %c1024_213 = arith.constant 1024 : index
    %104 = vector.load %arg21[%c0_211, %c0_212, %c1024_213] : memref<4x4x1152xf32, #tpu.memory_space<vmem>>, vector<4x4x32xf32>
    tpu.vector_store %arg21[%c0_211, %c0_212, %c1024_213], %103 {strides = array<i32>} : memref<4x4x1152xf32, #tpu.memory_space<vmem>>, vector<4x4x32xf32>,
    %c0_214 = arith.constant 0 : index
    %c0_215 = arith.constant 0 : index
    %c0_216 = arith.constant 0 : index
    %105 = vector.load %arg21[%c0_214, %c0_215, %c0_216] : memref<4x4x1152xf32, #tpu.memory_space<vmem>>, vector<4x4x1152xf32>
    %106 = vector.shape_cast %105 : vector<4x4x1152xf32> to vector<16x1152xf32>
    %107 = arith.truncf %106 : vector<16x1152xf32> to vector<16x1152xbf16>
    %c0_217 = arith.constant 0 : index
    %c0_218 = arith.constant 0 : index
    %108 = vector.load %arg8[%c0_217, %c0_218] : memref<1152x64xbf16, #tpu.memory_space<vmem>>, vector<1152x64xbf16>
    %cst_219 = arith.constant dense<0.000000e+00> : vector<16x64xf32>
    %109 = tpu.matmul %107, %108, %cst_219 {dimension_numbers = #tpu.dot_dimension_numbers<[1], [0], [0], [1], [0, 0, 1, 1], [], []>} : vector<16x1152xbf16>, vector<1152x64xbf16>, vector<16x64xf32> -> vector<16x64xf32>
    %c0_220 = arith.constant 0 : index
    %c0_221 = arith.constant 0 : index
    %110 = vector.load %arg9[%c0_220, %c0_221] : memref<1x64xf32, #tpu.memory_space<vmem>>, vector<1x64xf32>
    %111 = vector.broadcast %110 : vector<1x64xf32> to vector<16x64xf32>
    %112 = arith.mulf %109, %111 : vector<16x64xf32>
    %c0_222 = arith.constant 0 : index
    %c0_223 = arith.constant 0 : index
    %113 = vector.load %arg10[%c0_222, %c0_223] : memref<1x64xf32, #tpu.memory_space<vmem>>, vector<1x64xf32>
    %114 = vector.broadcast %113 : vector<1x64xf32> to vector<16x64xf32>
    %115 = arith.addf %112, %114 : vector<16x64xf32>
    %cst_224 = arith.constant 0.000000e+00 : f32
    %116 = vector.broadcast %cst_224 : f32 to vector<16x64xf32>
    %117 = arith.maximumf %115, %116 : vector<16x64xf32>
    %118 = vector.shape_cast %117 : vector<16x64xf32> to vector<2x2x2x2x64xf32>
    %cst_225 = arith.constant dense<0xFF800000> : vector<2x2x2x64xf32>
    %119 = vector.multi_reduction <maximumf>, %118, %cst_225 [3] : vector<2x2x2x2x64xf32> to vector<2x2x2x64xf32>
    %cst_226 = arith.constant dense<0xFF800000> : vector<2x2x64xf32>
    %120 = vector.multi_reduction <maximumf>, %119, %cst_226 [1] : vector<2x2x2x64xf32> to vector<2x2x64xf32>
    %c1_227 = arith.constant 1 : index
    %c8_228 = arith.constant 8 : index
    %c0_229 = arith.constant 0 : index
    %121 = vector.load %arg18[%c1_227, %c8_228, %c0_229] : memref<4x11x64xf32, #tpu.memory_space<vmem>>, vector<2x2x64xf32>
    tpu.vector_store %arg18[%c1_227, %c8_228, %c0_229], %120 {strides = array<i32>} : memref<4x11x64xf32, #tpu.memory_space<vmem>>, vector<2x2x64xf32>,
    %cst_230 = arith.constant 0.000000e+00 : f32
    %122 = vector.broadcast %cst_230 : f32 to vector<2x2x1152xf32>
    %c0_231 = arith.constant 0 : index
    %c0_232 = arith.constant 0 : index
    %c0_233 = arith.constant 0 : index
    %123 = vector.load %arg22[%c0_231, %c0_232, %c0_233] : memref<2x2x1152xf32, #tpu.memory_space<vmem>>, vector<2x2x1152xf32>
    tpu.vector_store %arg22[%c0_231, %c0_232, %c0_233], %122 {strides = array<i32>} : memref<2x2x1152xf32, #tpu.memory_space<vmem>>, vector<2x2x1152xf32>,
    %c0_234 = arith.constant 0 : index
    %c7_235 = arith.constant 7 : index
    %c0_236 = arith.constant 0 : index
    %124 = vector.load %arg18[%c0_234, %c7_235, %c0_236] : memref<4x11x64xf32, #tpu.memory_space<vmem>>, vector<2x2x64xf32>
    %c0_237 = arith.constant 0 : index
    %c0_238 = arith.constant 0 : index
    %c0_239 = arith.constant 0 : index
    %125 = vector.load %arg22[%c0_237, %c0_238, %c0_239] : memref<2x2x1152xf32, #tpu.memory_space<vmem>>, vector<2x2x64xf32>
    tpu.vector_store %arg22[%c0_237, %c0_238, %c0_239], %124 {strides = array<i32>} : memref<2x2x1152xf32, #tpu.memory_space<vmem>>, vector<2x2x64xf32>,
    %c0_240 = arith.constant 0 : index
    %c8_241 = arith.constant 8 : index
    %c0_242 = arith.constant 0 : index
    %126 = vector.load %arg18[%c0_240, %c8_241, %c0_242] : memref<4x11x64xf32, #tpu.memory_space<vmem>>, vector<2x2x64xf32>
    %c0_243 = arith.constant 0 : index
    %c0_244 = arith.constant 0 : index
    %c128_245 = arith.constant 128 : index
    %127 = vector.load %arg22[%c0_243, %c0_244, %c128_245] : memref<2x2x1152xf32, #tpu.memory_space<vmem>>, vector<2x2x64xf32>
    tpu.vector_store %arg22[%c0_243, %c0_244, %c128_245], %126 {strides = array<i32>} : memref<2x2x1152xf32, #tpu.memory_space<vmem>>, vector<2x2x64xf32>,
    %c0_246 = arith.constant 0 : index
    %c9_247 = arith.constant 9 : index
    %c0_248 = arith.constant 0 : index
    %128 = vector.load %arg18[%c0_246, %c9_247, %c0_248] : memref<4x11x64xf32, #tpu.memory_space<vmem>>, vector<2x2x64xf32>
    %c0_249 = arith.constant 0 : index
    %c0_250 = arith.constant 0 : index
    %c256_251 = arith.constant 256 : index
    %129 = vector.load %arg22[%c0_249, %c0_250, %c256_251] : memref<2x2x1152xf32, #tpu.memory_space<vmem>>, vector<2x2x64xf32>
    tpu.vector_store %arg22[%c0_249, %c0_250, %c256_251], %128 {strides = array<i32>} : memref<2x2x1152xf32, #tpu.memory_space<vmem>>, vector<2x2x64xf32>,
    %c1_252 = arith.constant 1 : index
    %c7_253 = arith.constant 7 : index
    %c0_254 = arith.constant 0 : index
    %130 = vector.load %arg18[%c1_252, %c7_253, %c0_254] : memref<4x11x64xf32, #tpu.memory_space<vmem>>, vector<2x2x64xf32>
    %c0_255 = arith.constant 0 : index
    %c0_256 = arith.constant 0 : index
    %c384_257 = arith.constant 384 : index
    %131 = vector.load %arg22[%c0_255, %c0_256, %c384_257] : memref<2x2x1152xf32, #tpu.memory_space<vmem>>, vector<2x2x64xf32>
    tpu.vector_store %arg22[%c0_255, %c0_256, %c384_257], %130 {strides = array<i32>} : memref<2x2x1152xf32, #tpu.memory_space<vmem>>, vector<2x2x64xf32>,
    %c1_258 = arith.constant 1 : index
    %c8_259 = arith.constant 8 : index
    %c0_260 = arith.constant 0 : index
    %132 = vector.load %arg18[%c1_258, %c8_259, %c0_260] : memref<4x11x64xf32, #tpu.memory_space<vmem>>, vector<2x2x64xf32>
    %c0_261 = arith.constant 0 : index
    %c0_262 = arith.constant 0 : index
    %c512_263 = arith.constant 512 : index
    %133 = vector.load %arg22[%c0_261, %c0_262, %c512_263] : memref<2x2x1152xf32, #tpu.memory_space<vmem>>, vector<2x2x64xf32>
    tpu.vector_store %arg22[%c0_261, %c0_262, %c512_263], %132 {strides = array<i32>} : memref<2x2x1152xf32, #tpu.memory_space<vmem>>, vector<2x2x64xf32>,
    %c1_264 = arith.constant 1 : index
    %c9_265 = arith.constant 9 : index
    %c0_266 = arith.constant 0 : index
    %134 = vector.load %arg18[%c1_264, %c9_265, %c0_266] : memref<4x11x64xf32, #tpu.memory_space<vmem>>, vector<2x2x64xf32>
    %c0_267 = arith.constant 0 : index
    %c0_268 = arith.constant 0 : index
    %c640_269 = arith.constant 640 : index
    %135 = vector.load %arg22[%c0_267, %c0_268, %c640_269] : memref<2x2x1152xf32, #tpu.memory_space<vmem>>, vector<2x2x64xf32>
    tpu.vector_store %arg22[%c0_267, %c0_268, %c640_269], %134 {strides = array<i32>} : memref<2x2x1152xf32, #tpu.memory_space<vmem>>, vector<2x2x64xf32>,
    %c2_270 = arith.constant 2 : index
    %c7_271 = arith.constant 7 : index
    %c0_272 = arith.constant 0 : index
    %136 = vector.load %arg18[%c2_270, %c7_271, %c0_272] : memref<4x11x64xf32, #tpu.memory_space<vmem>>, vector<2x2x64xf32>
    %c0_273 = arith.constant 0 : index
    %c0_274 = arith.constant 0 : index
    %c768_275 = arith.constant 768 : index
    %137 = vector.load %arg22[%c0_273, %c0_274, %c768_275] : memref<2x2x1152xf32, #tpu.memory_space<vmem>>, vector<2x2x64xf32>
    tpu.vector_store %arg22[%c0_273, %c0_274, %c768_275], %136 {strides = array<i32>} : memref<2x2x1152xf32, #tpu.memory_space<vmem>>, vector<2x2x64xf32>,
    %c2_276 = arith.constant 2 : index
    %c8_277 = arith.constant 8 : index
    %c0_278 = arith.constant 0 : index
    %138 = vector.load %arg18[%c2_276, %c8_277, %c0_278] : memref<4x11x64xf32, #tpu.memory_space<vmem>>, vector<2x2x64xf32>
    %c0_279 = arith.constant 0 : index
    %c0_280 = arith.constant 0 : index
    %c896_281 = arith.constant 896 : index
    %139 = vector.load %arg22[%c0_279, %c0_280, %c896_281] : memref<2x2x1152xf32, #tpu.memory_space<vmem>>, vector<2x2x64xf32>
    tpu.vector_store %arg22[%c0_279, %c0_280, %c896_281], %138 {strides = array<i32>} : memref<2x2x1152xf32, #tpu.memory_space<vmem>>, vector<2x2x64xf32>,
    %c2_282 = arith.constant 2 : index
    %c9_283 = arith.constant 9 : index
    %c0_284 = arith.constant 0 : index
    %140 = vector.load %arg18[%c2_282, %c9_283, %c0_284] : memref<4x11x64xf32, #tpu.memory_space<vmem>>, vector<2x2x64xf32>
    %c0_285 = arith.constant 0 : index
    %c0_286 = arith.constant 0 : index
    %c1024_287 = arith.constant 1024 : index
    %141 = vector.load %arg22[%c0_285, %c0_286, %c1024_287] : memref<2x2x1152xf32, #tpu.memory_space<vmem>>, vector<2x2x64xf32>
    tpu.vector_store %arg22[%c0_285, %c0_286, %c1024_287], %140 {strides = array<i32>} : memref<2x2x1152xf32, #tpu.memory_space<vmem>>, vector<2x2x64xf32>,
    %c0_288 = arith.constant 0 : index
    %c0_289 = arith.constant 0 : index
    %c0_290 = arith.constant 0 : index
    %142 = vector.load %arg22[%c0_288, %c0_289, %c0_290] : memref<2x2x1152xf32, #tpu.memory_space<vmem>>, vector<2x2x1152xf32>
    %143 = vector.shape_cast %142 : vector<2x2x1152xf32> to vector<4x1152xf32>
    %144 = arith.truncf %143 : vector<4x1152xf32> to vector<4x1152xbf16>
    %c0_291 = arith.constant 0 : index
    %c0_292 = arith.constant 0 : index
    %145 = vector.load %arg11[%c0_291, %c0_292] : memref<1152x128xbf16, #tpu.memory_space<vmem>>, vector<1152x128xbf16>
    %cst_293 = arith.constant dense<0.000000e+00> : vector<4x128xf32>
    %146 = tpu.matmul %144, %145, %cst_293 {dimension_numbers = #tpu.dot_dimension_numbers<[1], [0], [0], [1], [0, 0, 1, 1], [], []>} : vector<4x1152xbf16>, vector<1152x128xbf16>, vector<4x128xf32> -> vector<4x128xf32>
    %c0_294 = arith.constant 0 : index
    %c0_295 = arith.constant 0 : index
    %147 = vector.load %arg12[%c0_294, %c0_295] : memref<1x128xf32, #tpu.memory_space<vmem>>, vector<1x128xf32>
    %148 = vector.broadcast %147 : vector<1x128xf32> to vector<4x128xf32>
    %149 = arith.mulf %146, %148 : vector<4x128xf32>
    %c0_296 = arith.constant 0 : index
    %c0_297 = arith.constant 0 : index
    %150 = vector.load %arg13[%c0_296, %c0_297] : memref<1x128xf32, #tpu.memory_space<vmem>>, vector<1x128xf32>
    %151 = vector.broadcast %150 : vector<1x128xf32> to vector<4x128xf32>
    %152 = arith.addf %149, %151 : vector<4x128xf32>
    %cst_298 = arith.constant 0.000000e+00 : f32
    %153 = vector.broadcast %cst_298 : f32 to vector<4x128xf32>
    %154 = arith.maximumf %152, %153 : vector<4x128xf32>
    %155 = vector.shape_cast %154 : vector<4x128xf32> to vector<1x2x1x2x128xf32>
    %cst_299 = arith.constant dense<0xFF800000> : vector<1x2x1x128xf32>
    %156 = vector.multi_reduction <maximumf>, %155, %cst_299 [3] : vector<1x2x1x2x128xf32> to vector<1x2x1x128xf32>
    %cst_300 = arith.constant dense<0xFF800000> : vector<1x1x128xf32>
    %157 = vector.multi_reduction <maximumf>, %156, %cst_300 [1] : vector<1x2x1x128xf32> to vector<1x1x128xf32>
    %c0_301 = arith.constant 0 : index
    %c0_302 = arith.constant 0 : index
    %c0_303 = arith.constant 0 : index
    %c0_304 = arith.constant 0 : index
    %158 = vector.load %arg14[%c0_301, %c0_302, %c0_303, %c0_304] : memref<1x1x1x128xf32, #tpu.memory_space<vmem>>, vector<1x1x1x128xf32>
    %159 = vector.shape_cast %158 : vector<1x1x1x128xf32> to vector<1x1x128xf32>
    %160 = vector.shape_cast %157 : vector<1x1x128xf32> to vector<1x1x1x128xf32>
    tpu.vector_store %arg14[%c0_301, %c0_302, %c0_303, %c0_304], %160 {strides = array<i32>} : memref<1x1x1x128xf32, #tpu.memory_space<vmem>>, vector<1x1x1x128xf32>,
    return
  }
  func.func @transform_0(%arg0: i32) -> (i32, i32, i32, i32) {
    %c0_i32 = arith.constant 0 : i32
    %c0_i32_0 = arith.constant 0 : i32
    %c0_i32_1 = arith.constant 0 : i32
    %c0_i32_2 = arith.constant 0 : i32
    return %arg0, %c0_i32, %c0_i32_0, %c0_i32_1 : i32, i32, i32, i32
  }
  func.func @transform_1(%arg0: i32) -> (i32, i32) {
    %c0_i32 = arith.constant 0 : i32
    %c0_i32_0 = arith.constant 0 : i32
    %c0_i32_1 = arith.constant 0 : i32
    return %c0_i32, %c0_i32_0 : i32, i32
  }
  func.func @transform_2(%arg0: i32) -> (i32, i32) {
    %c0_i32 = arith.constant 0 : i32
    %c0_i32_0 = arith.constant 0 : i32
    %c0_i32_1 = arith.constant 0 : i32
    return %c0_i32, %c0_i32_0 : i32, i32
  }
  func.func @transform_3(%arg0: i32) -> (i32, i32) {
    %c0_i32 = arith.constant 0 : i32
    %c0_i32_0 = arith.constant 0 : i32
    %c0_i32_1 = arith.constant 0 : i32
    return %c0_i32, %c0_i32_0 : i32, i32
  }
  func.func @transform_4(%arg0: i32) -> (i32, i32) {
    %c0_i32 = arith.constant 0 : i32
    %c0_i32_0 = arith.constant 0 : i32
    %c0_i32_1 = arith.constant 0 : i32
    return %c0_i32, %c0_i32_0 : i32, i32
  }
  func.func @transform_5(%arg0: i32) -> (i32, i32) {
    %c0_i32 = arith.constant 0 : i32
    %c0_i32_0 = arith.constant 0 : i32
    %c0_i32_1 = arith.constant 0 : i32
    return %c0_i32, %c0_i32_0 : i32, i32
  }
  func.func @transform_6(%arg0: i32) -> (i32, i32) {
    %c0_i32 = arith.constant 0 : i32
    %c0_i32_0 = arith.constant 0 : i32
    %c0_i32_1 = arith.constant 0 : i32
    return %c0_i32, %c0_i32_0 : i32, i32
  }
  func.func @transform_7(%arg0: i32) -> (i32, i32) {
    %c0_i32 = arith.constant 0 : i32
    %c0_i32_0 = arith.constant 0 : i32
    %c0_i32_1 = arith.constant 0 : i32
    return %c0_i32, %c0_i32_0 : i32, i32
  }
  func.func @transform_8(%arg0: i32) -> (i32, i32) {
    %c0_i32 = arith.constant 0 : i32
    %c0_i32_0 = arith.constant 0 : i32
    %c0_i32_1 = arith.constant 0 : i32
    return %c0_i32, %c0_i32_0 : i32, i32
  }
  func.func @transform_9(%arg0: i32) -> (i32, i32) {
    %c0_i32 = arith.constant 0 : i32
    %c0_i32_0 = arith.constant 0 : i32
    %c0_i32_1 = arith.constant 0 : i32
    return %c0_i32, %c0_i32_0 : i32, i32
  }
  func.func @transform_10(%arg0: i32) -> (i32, i32) {
    %c0_i32 = arith.constant 0 : i32
    %c0_i32_0 = arith.constant 0 : i32
    %c0_i32_1 = arith.constant 0 : i32
    return %c0_i32, %c0_i32_0 : i32, i32
  }
  func.func @transform_11(%arg0: i32) -> (i32, i32) {
    %c0_i32 = arith.constant 0 : i32
    %c0_i32_0 = arith.constant 0 : i32
    %c0_i32_1 = arith.constant 0 : i32
    return %c0_i32, %c0_i32_0 : i32, i32
  }
  func.func @transform_12(%arg0: i32) -> (i32, i32) {
    %c0_i32 = arith.constant 0 : i32
    %c0_i32_0 = arith.constant 0 : i32
    %c0_i32_1 = arith.constant 0 : i32
    return %c0_i32, %c0_i32_0 : i32, i32
  }
  func.func @transform_13(%arg0: i32) -> (i32, i32, i32, i32) {
    %c0_i32 = arith.constant 0 : i32
    %c0_i32_0 = arith.constant 0 : i32
    %c0_i32_1 = arith.constant 0 : i32
    %c0_i32_2 = arith.constant 0 : i32
    return %arg0, %c0_i32, %c0_i32_0, %c0_i32_1 : i32, i32, i32, i32
  }
}

</mosaic_0001>

<bundles_post_ra>
// kernel: tpu_custom_call.1
= control target key start
LH: loop header
LB: loop body
LE: loop exit
PB: predicated region body
PF: predicated region fallthrough
CT: control target
= control target key end

     0   :  { %18 = vsyncpa [#allocation11], 0  ;;  %s14264_s0 = inlined_call_operand.vmem [shape: f32[2,16,16,4], index: 0, kind: input, shape index: {}]   ;;  %s14265_s1 = inlined_call_operand.vmem [shape: bf16[1152,16], index: 1, kind: input, shape index: {}]   ;;  %s14266_s2 = inlined_call_operand.vmem [shape: f32[1,16], index: 2, kind: input, shape index: {}]   ;;  %s14267_s3 = inlined_call_operand.vmem [shape: f32[1,16], index: 3, kind: input, shape index: {}]   ;;  %s14268_s4 = inlined_call_operand.vmem [shape: bf16[1152,32], index: 4, kind: input, shape index: {}]   ;;  %s14269_s5 = inlined_call_operand.vmem [shape: f32[1,32], index: 5, kind: input, shape index: {}]   ;;  %s14270_s6 = inlined_call_operand.vmem [shape: f32[1,32], index: 6, kind: input, shape index: {}]   ;;  %s14271_s7 = inlined_call_operand.vmem [shape: bf16[1152,64], index: 7, kind: input, shape index: {}]   ;;  %s14272_s8 = inlined_call_operand.vmem [shape: f32[1,64], index: 8, kind: input, shape index: {}]   ;;  %s14273_s9 = inlined_call_operand.vmem [shape: f32[1,64], index: 9, kind: input, shape index: {}]   ;;  %s14274_s10 = inlined_call_operand.vmem [shape: bf16[1152,128], index: 10, kind: input, shape index: {}]   ;;  %s14275_s11 = inlined_call_operand.vmem [shape: f32[1,128], index: 11, kind: input, shape index: {}]   ;;  %s14276_s12 = inlined_call_operand.vmem [shape: f32[1,128], index: 12, kind: input, shape index: {}]   ;;  %s14277_s13 = inlined_call_operand.hbm [shape: f32[2,1,1,128], index: 13, kind: output, shape index: {}]  }
   0x1   :  { %20 = vsyncpa [#allocation11 + $0x1], 0  ;;  %s10984_s25 = smov 0   ;;  %s10986_s26 = smov 0  }
   0x2   :  { %s10988_s27 = smov 0   ;;  %s10990_s28 = smov 0  }
   0x3 LB: > { %14282 = sst [smem:[#allocation13_spill]] %s10904_s27  ;;  %s11005_s29 = sadd.s32 4294967295, %s10908_s28   ;;  %s10908_s28 = sphi %s10990_s28, %s14337_s28   ;;  %s10904_s27 = sphi %s10988_s27, %s14339_s27   ;;  %s10900_s26 = sphi %s10986_s26, %s14341_s26   ;;  %s10896_s25 = sphi %s10984_s25, %s14340_s25  }
   0x4   : > { %s9219_s30 = sadd.s32 4294967294, %s10908_s28   ;;  %s11009_s14 = sadd.s32 1, %s10908_s28  }
   0x5   : > { %14283 = sst [smem:[#allocation14_spill]] %s11009_s14  ;;  %s311_s15 = sadd.s32 1, %s10904_s27 }
   0x6   : > { %s308_s16 = ssub.s32 %s10908_s28, %s11009_s14  ;;  %p321_p0 = scmp.ne.s32.totalorder %s10904_s27, %s10900_s26 }
   0x7   : > { %p309_p1 = scmp.eq.s32.totalorder %s308_s16, 0  ;;  %p322_p2 = scmp.eq.s32.totalorder %s11005_s29, 1 }
   0x8   : > { %p327_p3 = scmp.ne.s32.totalorder %s10900_s26, %s10896_s25  ;;  %p328_p4 = scmp.eq.s32.totalorder %s9219_s30, 1 }
   0x9   : > { %s11020_s17 = scalar_select %p309_p1, %s10904_s27, %s311_s15  }
   0xa   : > { %p11022_p5 = por %p322_p2, %p321_p0  ;;  %p11026_p6 = por %p328_p4, %p327_p3 }
   0xb   : > { %14284 = sst [smem:[#allocation15_spill]] %s11020_s17  ;;  %p9222_p7 = scmp.ge.s32.totalorder %s10908_s28, 1 }
   0xc   : > { %s14286_s19 = scalar_select %p11026_p6, 1, 0 }
   0xd   : > { %p390_p8 = scmp.lt.s32.totalorder %s10908_s28, 3 }
   0xe   : > { %14287 = sst [smem:[#allocation16_spill]] %s14286_s19 }
   0xf   : > { %p391_p9 = pnand %p9222_p7, %p390_p8 }
  0x11   : > { %394 = sbr.rel (%p391_p9) target bundleno = 2117 (0x845), region = 72 }
  0x18   : > { %v10517_v0 = vld [vmem:[%s14265_s1 + $0x40] sm:$0xff]   ;;  %vm439_vm0 = vcmask 31744   ;;  %v10910_v3 = vmov 0.0   ;;  %vm443_vm1 = vcmask 24576   ;;  %v10521_v5 = vld [vmem:[%s14265_s1 + $0x48] sm:$0xff]   ;;  %v10525_v9 = vld [vmem:[%s14265_s1 + $0x50] sm:$0xff]  }
  0x19   : > { %v11038_v1 = vld [vmem:[%s14265_s1 + $0xc0] sm:$0xff]   ;;  %9525 = vmatprep.subr.bf16.mxu0 %v10517_v0  ;;  %441 = vst.msk [vmem:[#allocation2 + $0x8] sm:$0xff] %vm439_vm0, %v10910_v3  ;;  %442 = vst.msk [vmem:[#allocation2 + $0x10] sm:$0xff] %vm439_vm0, %v10910_v3  ;;  %v10522_v6 = vld [vmem:[%s14265_s1 + $0xc8] sm:$0xff]   ;;  %p433_p10 = scmp.lt.s32.totalorder %s11005_s29, 1  ;;  %vm513_vm2 = vcmask 130048  }
  0x1a   : > { %v11043_v2 = vld [vmem:[%s14265_s1] sm:$0xff]   ;;  %635 = vst [vmem:[#allocation6 + $0x8] sm:$0xff] %v10910_v3  ;;  %644 = vst [vmem:[#allocation6 + $0x50] sm:$0xff] %v10910_v3  ;;  %9637 = vmatprep.subr.bf16.mxu1 %v11038_v1  ;;  %v10523_v7 = vld [vmem:[%s14265_s1 + $0x8] sm:$0xff]   ;;  %vm4126_vm3 = vcmask 123904   ;;  %vm5279_vm4 = vcmask 1041409  }
  0x1b   : > { %440 = vst.msk [vmem:[#allocation2] sm:$0xff] %vm439_vm0, %v10910_v3  ;;  %445 = vst.msk [vmem:[#allocation2 + $0x20] sm:$0xff] %vm439_vm0, %v10910_v3  ;;  %v10520_v4 = vld [vmem:[%s14265_s1 + $0x80] sm:$0xff]   ;;  %9526 = vmatpush3.bf16.msra.mxu0 %v11043_v2  ;;  %v10524_v8 = vld [vmem:[%s14265_s1 + $0x88] sm:$0xff]   ;;  %s434_s20 = scalar_select %p433_p10, %s11005_s29, 1  ;;  %vm5281_vm5 = vcmask 1042434  }
  0x1c   : > { %446 = vst.msk [vmem:[#allocation2 + $0x28] sm:$0xff] %vm439_vm0, %v10910_v3  ;;  %447 = vst.msk [vmem:[#allocation2 + $0x30] sm:$0xff] %vm439_vm0, %v10910_v3  ;;  %9638 = vmatpush3.bf16.msra.mxu1 %v10520_v4  ;;  %9527 = vmatprep.subr.bf16.mxu0 %v10521_v5  ;;  %v10526_v10 = vld [vmem:[%s14265_s1 + $0xd0] sm:$0xff]   ;;  %v10529_v13 = vld [vmem:[%s14265_s1 + $0x58] sm:$0xff]   ;;  %vm5283_vm6 = vcmask 1043459   ;;  %vm5285_vm7 = vcmask 1044484  }
  0x1d   : > { %449 = vst.msk [vmem:[#allocation2 + $0x40] sm:$0xff] %vm439_vm0, %v10910_v3  ;;  %450 = vst.msk [vmem:[#allocation2 + $0x48] sm:$0xff] %vm439_vm0, %v10910_v3  ;;  %9639 = vmatprep.subr.bf16.mxu1 %v10522_v6  ;;  %v10527_v11 = vld [vmem:[%s14265_s1 + $0x10] sm:$0xff]   ;;  %v10530_v14 = vld [vmem:[%s14265_s1 + $0xd8] sm:$0xff]   ;;  %s9524_s16 = sshll.u32 %s434_s20, 8  ;;  %vm5287_vm8 = vcmask 1045509  }
  0x1e   : > { %451 = vst.msk [vmem:[#allocation2 + $0x50] sm:$0xff] %vm439_vm0, %v10910_v3  ;;  %453 = vst.msk [vmem:[#allocation2 + $0x60] sm:$0xff] %vm439_vm0, %v10910_v3  ;;  %v10528_v12 = vld [vmem:[%s14265_s1 + $0x90] sm:$0xff]   ;;  %v10531_v15 = vld [vmem:[%s14265_s1 + $0x18] sm:$0xff]   ;;  %s11663_s30 = scalar_lea.vmem %s14264_s0, %s9524_s16  ;;  %vm5289_vm9 = vcmask 1046534   ;;  %vm5291_vm10 = vcmask 1047559  }
  0x1f   : > { %454 = vst.msk [vmem:[#allocation2 + $0x68] sm:$0xff] %vm439_vm0, %v10910_v3  ;;  %455 = vst.msk [vmem:[#allocation2 + $0x70] sm:$0xff] %vm439_vm0, %v10910_v3  ;;  %9528 = vmatpush3.bf16.msra.mxu0 %v10523_v7  ;;  %v10532_v16 = vld [vmem:[%s14265_s1 + $0x98] sm:$0xff]   ;;  %v10533_v17 = vld [vmem:[%s14265_s1 + $0x60] sm:$0xff]   ;;  %vm516_vm11 = vcmask 122880   ;;  %vm545_vm12 = vcmask 261120  }
  0x20   : > { %457 = vst.msk [vmem:[#allocation2 + $0x80] sm:$0xff] %vm439_vm0, %v10910_v3  ;;  %458 = vst.msk [vmem:[#allocation2 + $0x88] sm:$0xff] %vm439_vm0, %v10910_v3  ;;  %9640 = vmatpush3.bf16.msra.mxu1 %v10524_v8  ;;  %9529 = vmatprep.subr.bf16.mxu0 %v10525_v9  ;;  %v10534_v18 = vld [vmem:[%s14265_s1 + $0xe0] sm:$0xff]   ;;  %v10537_v21 = vld [vmem:[%s14265_s1 + $0x68] sm:$0xff]   ;;  %vm547_vm13 = vcmask 258048   ;;  %vm7105_vm14 = vcmask 257024  }
  0x21   : > { %459 = vst.msk [vmem:[#allocation2 + $0x90] sm:$0xff] %vm439_vm0, %v10910_v3  ;;  %461 = vst.msk [vmem:[#allocation2 + $0xa0] sm:$0xff] %vm439_vm0, %v10910_v3  ;;  %9641 = vmatprep.subr.bf16.mxu1 %v10526_v10  ;;  %v10535_v19 = vld [vmem:[%s14265_s1 + $0x20] sm:$0xff]   ;;  %v10538_v22 = vld [vmem:[%s14265_s1 + $0xe8] sm:$0xff]   ;;  %vm6799_vm15 = vcmask 254976   ;;  %s431_s17 = sand.u32 1, %s10900_s26  }
  0x22   : > { %462 = vst.msk [vmem:[#allocation2 + $0xa8] sm:$0xff] %vm439_vm0, %v10910_v3  ;;  %463 = vst.msk [vmem:[#allocation2 + $0xb0] sm:$0xff] %vm439_vm0, %v10910_v3  ;;  %v10536_v20 = vld [vmem:[%s14265_s1 + $0xa0] sm:$0xff]   ;;  %v10539_v23 = vld [vmem:[%s14265_s1 + $0x28] sm:$0xff]   ;;  %s9521_s21 = sshll.u32 %s11005_s29, 4  ;;  %s432_s22 = scalar_lea.vmem [#allocation10], %s431_s17 }
  0x23   : > { %465 = vst.msk [vmem:[#allocation2 + $0xc0] sm:$0xff] %vm439_vm0, %v10910_v3  ;;  %466 = vst.msk [vmem:[#allocation2 + $0xc8] sm:$0xff] %vm439_vm0, %v10910_v3  ;;  %9530 = vmatpush3.bf16.msra.mxu0 %v10527_v11  ;;  %v10540_v24 = vld [vmem:[%s14265_s1 + $0xa8] sm:$0xff]   ;;  %v10541_v25 = vld [vmem:[%s14265_s1 + $0x70] sm:$0xff]   ;;  %s9164_s23 = sshll.u32 %s432_s22, 4  ;;  %s14222_s20 = scalar_lea.hbm %s14277_s13, %s9521_s21  ;;  %s14224_s23 = int_to_ptr.vmem [resolvable:$true] %s9164_s23 }
  0x24   : > { %467 = vst.msk [vmem:[#allocation2 + $0xd0] sm:$0xff] %vm439_vm0, %v10910_v3  ;;  %469 = vst.msk [vmem:[#allocation2 + $0xe0] sm:$0xff] %vm439_vm0, %v10910_v3  ;;  %9642 = vmatpush3.bf16.msra.mxu1 %v10528_v12  ;;  %9531 = vmatprep.subr.bf16.mxu0 %v10529_v13  ;;  %v10542_v26 = vld [vmem:[%s14265_s1 + $0xf0] sm:$0xff]   ;;  %v10545_v29 = vld [vmem:[%s14265_s1 + $0x78] sm:$0xff]   ;;  %s9152_s15 = scalar_lea.sflag [#allocation11], %s431_s17  ;;  %s10846_s27 = scalar_lea.vmem %s14224_s23, 16 }
  0x25   : > { %470 = vst.msk [vmem:[#allocation2 + $0xe8] sm:$0xff] %vm439_vm0, %v10910_v3  ;;  %471 = vst.msk [vmem:[#allocation2 + $0xf0] sm:$0xff] %vm439_vm0, %v10910_v3  ;;  %9643 = vmatprep.subr.bf16.mxu1 %v10530_v14  ;;  %v10543_v27 = vld [vmem:[%s14265_s1 + $0x30] sm:$0xff]   ;;  %v10546_v30 = vld [vmem:[%s14265_s1 + $0xf8] sm:$0xff]   ;;  %p10847_p11 = scmp.ne.s32.totalorder %s14224_s23, %s10846_s27  ;;  %s10913_s29 = smov [#allocation10]  }
  0x26   : > { %473 = vst.msk [vmem:[#allocation2 + $0x100] sm:$0xff] %vm439_vm0, %v10910_v3  ;;  %474 = vst.msk [vmem:[#allocation2 + $0x108] sm:$0xff] %vm439_vm0, %v10910_v3  ;;  %v10544_v28 = vld [vmem:[%s14265_s1 + $0xb0] sm:$0xff]   ;;  %v10547_v31 = vld [vmem:[%s14265_s1 + $0x38] sm:$0xff]   ;;  %s10850_s19 = sshll.u32 %s10913_s29, 4  ;;  %s10851_s19 = int_to_ptr.vmem [resolvable:$false] %s10850_s19 }
  0x27   : > { %475 = vst.msk [vmem:[#allocation2 + $0x110] sm:$0xff] %vm439_vm0, %v10910_v3  ;;  %477 = vst.msk [vmem:[#allocation2 + $0x120] sm:$0xff] %vm439_vm0, %v10910_v3  ;;  %9532 = vmatpush3.bf16.msra.mxu0 %v10531_v15  ;;  %v10548_v32 = vld [vmem:[%s14265_s1 + $0xb8] sm:$0xff]   ;;  %v986_v33 = vld [vmem:[#allocation2 + $0x8] sm:$0xff]  ;;  %p10848_p12 = pnand %p10847_p11, %p11022_p5  ;;  %p10853_p0 = scmp.lt.s32.totalorder %s14224_s23, %s10851_s19 }
  0x28   : > { %478 = vst.msk [vmem:[#allocation2 + $0x128] sm:$0xff] %vm439_vm0, %v10910_v3  ;;  %479 = vst.msk [vmem:[#allocation2 + $0x130] sm:$0xff] %vm439_vm0, %v10910_v3  ;;  %9644 = vmatpush3.bf16.msra.mxu1 %v10532_v16  ;;  %9533 = vmatprep.subr.bf16.mxu0 %v10533_v17  ;;  %v987_v34 = vld [vmem:[#allocation2 + $0x10] sm:$0xff]  ;;  %v569_v35 = vld [vmem:[%s11663_s30] sm:$0xff] }
  0x29   : > { %481 = vst.msk [vmem:[#allocation2 + $0x140] sm:$0xff] %vm439_vm0, %v10910_v3  ;;  %482 = vst.msk [vmem:[#allocation2 + $0x148] sm:$0xff] %vm439_vm0, %v10910_v3  ;;  %9645 = vmatprep.subr.bf16.mxu1 %v10534_v18  ;;  %v570_v36 = vld [vmem:[%s11663_s30 + $0x8] sm:$0xff]  ;;  %v10549_v41 = vld [vmem:[%s14265_s1 + $0x140] sm:$0xff]   ;;  %p10849_p13 = pneg %p10848_p12 }
  0x2a   : > { %483 = vst.msk [vmem:[#allocation2 + $0x150] sm:$0xff] %vm439_vm0, %v10910_v3  ;;  %485 = vst.msk [vmem:[#allocation2 + $0x160] sm:$0xff] %vm439_vm0, %v10910_v3  ;;  %v922_v37 = vld [vmem:[#allocation2 + $0x7] sm:$0xff]  ;;  %v923_v38 = vld [vmem:[#allocation2 + $0xf] sm:$0xff] }
  0x2b   : > { %486 = vst.msk [vmem:[#allocation2 + $0x168] sm:$0xff] %vm439_vm0, %v10910_v3  ;;  %487 = vst.msk [vmem:[#allocation2 + $0x170] sm:$0xff] %vm439_vm0, %v10910_v3  ;;  %9534 = vmatpush3.bf16.msra.mxu0 %v10535_v19  ;;  %v1050_v39 = vld [vmem:[#allocation2 + $0x9] sm:$0xff]  ;;  %v572_v43 = vld [vmem:[%s11663_s30 + $0x18] sm:$0xff] }
  0x2c   : > { %489 = vst.msk [vmem:[#allocation2 + $0x180] sm:$0xff] %vm439_vm0, %v10910_v3  ;;  %490 = vst.msk [vmem:[#allocation2 + $0x188] sm:$0xff] %vm439_vm0, %v10910_v3  ;;  %9646 = vmatpush3.bf16.msra.mxu1 %v10536_v20  ;;  %9535 = vmatprep.subr.bf16.mxu0 %v10537_v21  ;;  %v571_v42 = vld [vmem:[%s11663_s30 + $0x10] sm:$0xff]  ;;  %v573_v44 = vld [vmem:[%s11663_s30 + $0x20] sm:$0xff] }
  0x2d   : > { %491 = vst.msk [vmem:[#allocation2 + $0x190] sm:$0xff] %vm439_vm0, %v10910_v3  ;;  %493 = vst.msk [vmem:[#allocation2 + $0x1a0] sm:$0xff] %vm439_vm0, %v10910_v3  ;;  %9647 = vmatprep.subr.bf16.mxu1 %v10538_v22  ;;  %v574_v45 = vld [vmem:[%s11663_s30 + $0x28] sm:$0xff]  ;;  %v10550_v46 = vld [vmem:[%s14265_s1 + $0x100] sm:$0xff]  }
  0x2e   : > { %494 = vst.msk [vmem:[#allocation2 + $0x1a8] sm:$0xff] %vm439_vm0, %v10910_v3  ;;  %495 = vst.msk [vmem:[#allocation2 + $0x1b0] sm:$0xff] %vm439_vm0, %v10910_v3  ;;  %v10551_v56 = vld [vmem:[%s14265_s1 + $0x148] sm:$0xff]   ;;  %v575_v1 = vld [vmem:[%s11663_s30 + $0x30] sm:$0xff] }
  0x2f   : > { %497 = vst.msk [vmem:[#allocation2 + $0x1c0] sm:$0xff] %vm439_vm0, %v10910_v3  ;;  %498 = vst.msk [vmem:[#allocation2 + $0x1c8] sm:$0xff] %vm439_vm0, %v10910_v3  ;;  %9536 = vmatpush3.bf16.msra.mxu0 %v10539_v23  ;;  %v10552_v60 = vld [vmem:[%s14265_s1 + $0x108] sm:$0xff]   ;;  %v576_v10 = vld [vmem:[%s11663_s30 + $0x38] sm:$0xff] }
  0x30   : > { %499 = vst.msk [vmem:[#allocation2 + $0x1d0] sm:$0xff] %vm439_vm0, %v10910_v3  ;;  %501 = vst.msk [vmem:[#allocation2 + $0x1e0] sm:$0xff] %vm439_vm0, %v10910_v3  ;;  %9648 = vmatpush3.bf16.msra.mxu1 %v10540_v24  ;;  %9537 = vmatprep.subr.bf16.mxu0 %v10541_v25  ;;  %v577_v20 = vld [vmem:[%s11663_s30 + $0x40] sm:$0xff]  ;;  %v578_v21 = vld [vmem:[%s11663_s30 + $0x48] sm:$0xff] }
  0x31   : > { %502 = vst.msk [vmem:[#allocation2 + $0x1e8] sm:$0xff] %vm439_vm0, %v10910_v3  ;;  %503 = vst.msk [vmem:[#allocation2 + $0x1f0] sm:$0xff] %vm439_vm0, %v10910_v3  ;;  %9649 = vmatprep.subr.bf16.mxu1 %v10542_v26 }
  0x32   : > { %505 = vst.msk [vmem:[#allocation2 + $0x200] sm:$0xff] %vm439_vm0, %v10910_v3  ;;  %506 = vst.msk [vmem:[#allocation2 + $0x208] sm:$0xff] %vm439_vm0, %v10910_v3 }
  0x33   : > { %507 = vst.msk [vmem:[#allocation2 + $0x210] sm:$0xff] %vm439_vm0, %v10910_v3  ;;  %509 = vst.msk [vmem:[#allocation2 + $0x220] sm:$0xff] %vm439_vm0, %v10910_v3  ;;  %9538 = vmatpush3.bf16.msra.mxu0 %v10543_v27 }
  0x34   : > { %510 = vst.msk [vmem:[#allocation2 + $0x228] sm:$0xff] %vm439_vm0, %v10910_v3  ;;  %511 = vst.msk [vmem:[#allocation2 + $0x230] sm:$0xff] %vm439_vm0, %v10910_v3  ;;  %9650 = vmatpush3.bf16.msra.mxu1 %v10544_v28  ;;  %9539 = vmatprep.subr.bf16.mxu0 %v10545_v29 }
  0x35   : > { %634 = vst [vmem:[#allocation6] sm:$0xff] %v10910_v3  ;;  %636 = vst [vmem:[#allocation6 + $0x10] sm:$0xff] %v10910_v3  ;;  %9651 = vmatprep.subr.bf16.mxu1 %v10546_v30 }
  0x36   : > { %637 = vst [vmem:[#allocation6 + $0x18] sm:$0xff] %v10910_v3  ;;  %638 = vst [vmem:[#allocation6 + $0x20] sm:$0xff] %v10910_v3 }
  0x37   : > { %639 = vst [vmem:[#allocation6 + $0x28] sm:$0xff] %v10910_v3  ;;  %640 = vst [vmem:[#allocation6 + $0x30] sm:$0xff] %v10910_v3  ;;  %9540 = vmatpush3.bf16.msra.mxu0 %v10547_v31 }
  0x38   : > { %641 = vst [vmem:[#allocation6 + $0x38] sm:$0xff] %v10910_v3  ;;  %642 = vst [vmem:[#allocation6 + $0x40] sm:$0xff] %v10910_v3  ;;  %9652 = vmatpush3.bf16.msra.mxu1 %v10548_v32  ;;  %9749 = vmatprep.subr.bf16.mxu0 %v10549_v41 }
  0x39   : > { %643 = vst [vmem:[#allocation6 + $0x48] sm:$0xff] %v10910_v3  ;;  %645 = vst [vmem:[#allocation6 + $0x58] sm:$0xff] %v10910_v3 }
  0x3a   : > { %646 = vst [vmem:[#allocation6 + $0x60] sm:$0xff] %v10910_v3  ;;  %647 = vst [vmem:[#allocation6 + $0x68] sm:$0xff] %v10910_v3 }
  0x3b   : > { %648 = vst [vmem:[#allocation6 + $0x70] sm:$0xff] %v10910_v3  ;;  %649 = vst [vmem:[#allocation6 + $0x78] sm:$0xff] %v10910_v3 }
  0x3c   : > { %650 = vst [vmem:[#allocation6 + $0x80] sm:$0xff] %v10910_v3  ;;  %651 = vst [vmem:[#allocation6 + $0x88] sm:$0xff] %v10910_v3 }
  0x3d   : > { %652 = vst [vmem:[#allocation6 + $0x90] sm:$0xff] %v10910_v3  ;;  %653 = vst [vmem:[#allocation6 + $0x98] sm:$0xff] %v10910_v3 }
  0x3e   : > { %654 = vst [vmem:[#allocation6 + $0xa0] sm:$0xff] %v10910_v3  ;;  %655 = vst [vmem:[#allocation6 + $0xa8] sm:$0xff] %v10910_v3 }
  0x3f   : > { %656 = vst [vmem:[#allocation6 + $0xb0] sm:$0xff] %v10910_v3  ;;  %657 = vst [vmem:[#allocation6 + $0xb8] sm:$0xff] %v10910_v3 }
  0x40   : > { %658 = vst [vmem:[#allocation6 + $0xc0] sm:$0xff] %v10910_v3  ;;  %659 = vst [vmem:[#allocation6 + $0xc8] sm:$0xff] %v10910_v3 }
  0x41   : > { %660 = vst [vmem:[#allocation6 + $0xd0] sm:$0xff] %v10910_v3  ;;  %661 = vst [vmem:[#allocation6 + $0xd8] sm:$0xff] %v10910_v3 }
  0x42   : > { %662 = vst [vmem:[#allocation6 + $0xe0] sm:$0xff] %v10910_v3  ;;  %663 = vst [vmem:[#allocation6 + $0xe8] sm:$0xff] %v10910_v3 }
  0x43   : > { %664 = vst [vmem:[#allocation6 + $0xf0] sm:$0xff] %v10910_v3  ;;  %665 = vst [vmem:[#allocation6 + $0xf8] sm:$0xff] %v10910_v3 }
  0x44   : > { %666 = vst [vmem:[#allocation6 + $0x100] sm:$0xff] %v10910_v3  ;;  %667 = vst [vmem:[#allocation6 + $0x108] sm:$0xff] %v10910_v3 }
  0x45   : > { %668 = vst [vmem:[#allocation6 + $0x110] sm:$0xff] %v10910_v3  ;;  %669 = vst [vmem:[#allocation6 + $0x118] sm:$0xff] %v10910_v3 }
  0x46   : > { %670 = vst [vmem:[#allocation6 + $0x120] sm:$0xff] %v10910_v3  ;;  %671 = vst [vmem:[#allocation6 + $0x128] sm:$0xff] %v10910_v3 }
  0x47   : > { %672 = vst [vmem:[#allocation6 + $0x130] sm:$0xff] %v10910_v3  ;;  %673 = vst [vmem:[#allocation6 + $0x138] sm:$0xff] %v10910_v3 }
  0x48   : > { %674 = vst [vmem:[#allocation6 + $0x140] sm:$0xff] %v10910_v3  ;;  %675 = vst [vmem:[#allocation6 + $0x148] sm:$0xff] %v10910_v3 }
  0x49   : > { %676 = vst [vmem:[#allocation6 + $0x150] sm:$0xff] %v10910_v3  ;;  %677 = vst [vmem:[#allocation6 + $0x158] sm:$0xff] %v10910_v3 }
  0x4a   : > { %678 = vst [vmem:[#allocation6 + $0x160] sm:$0xff] %v10910_v3  ;;  %679 = vst [vmem:[#allocation6 + $0x168] sm:$0xff] %v10910_v3 }
  0x4b   : > { %680 = vst [vmem:[#allocation6 + $0x170] sm:$0xff] %v10910_v3  ;;  %681 = vst [vmem:[#allocation6 + $0x178] sm:$0xff] %v10910_v3 }
  0x4c   : > { %682 = vst [vmem:[#allocation6 + $0x180] sm:$0xff] %v10910_v3  ;;  %683 = vst [vmem:[#allocation6 + $0x188] sm:$0xff] %v10910_v3 }
  0x4d   : > { %684 = vst [vmem:[#allocation6 + $0x190] sm:$0xff] %v10910_v3  ;;  %685 = vst [vmem:[#allocation6 + $0x198] sm:$0xff] %v10910_v3 }
  0x4e   : > { %686 = vst [vmem:[#allocation6 + $0x1a0] sm:$0xff] %v10910_v3  ;;  %687 = vst [vmem:[#allocation6 + $0x1a8] sm:$0xff] %v10910_v3 }
  0x4f   : > { %688 = vst [vmem:[#allocation6 + $0x1b0] sm:$0xff] %v10910_v3  ;;  %689 = vst [vmem:[#allocation6 + $0x1b8] sm:$0xff] %v10910_v3 }
  0x50   : > { %690 = vst [vmem:[#allocation6 + $0x1c0] sm:$0xff] %v10910_v3  ;;  %691 = vst [vmem:[#allocation6 + $0x1c8] sm:$0xff] %v10910_v3 }
  0x51   : > { %692 = vst [vmem:[#allocation6 + $0x1d0] sm:$0xff] %v10910_v3  ;;  %693 = vst [vmem:[#allocation6 + $0x1d8] sm:$0xff] %v10910_v3 }
  0x52   : > { %694 = vst [vmem:[#allocation6 + $0x1e0] sm:$0xff] %v10910_v3  ;;  %695 = vst [vmem:[#allocation6 + $0x1e8] sm:$0xff] %v10910_v3 }
  0x53   : > { %696 = vst [vmem:[#allocation6 + $0x1f0] sm:$0xff] %v10910_v3  ;;  %697 = vst [vmem:[#allocation6 + $0x1f8] sm:$0xff] %v10910_v3 }
  0x54   : > { %698 = vst [vmem:[#allocation6 + $0x200] sm:$0xff] %v10910_v3  ;;  %699 = vst [vmem:[#allocation6 + $0x208] sm:$0xff] %v10910_v3 }
  0x55   : > { %700 = vst [vmem:[#allocation6 + $0x210] sm:$0xff] %v10910_v3  ;;  %701 = vst [vmem:[#allocation6 + $0x218] sm:$0xff] %v10910_v3 }
  0x56   : > { %702 = vst [vmem:[#allocation6 + $0x220] sm:$0xff] %v10910_v3  ;;  %703 = vst [vmem:[#allocation6 + $0x228] sm:$0xff] %v10910_v3 }
  0x57   : > { %704 = vst [vmem:[#allocation6 + $0x230] sm:$0xff] %v10910_v3  ;;  %705 = vst [vmem:[#allocation6 + $0x238] sm:$0xff] %v10910_v3 }
  0x58   : > { %706 = vst [vmem:[#allocation6 + $0x240] sm:$0xff] %v10910_v3  ;;  %707 = vst [vmem:[#allocation6 + $0x248] sm:$0xff] %v10910_v3 }
  0x59   : > { %708 = vst [vmem:[#allocation6 + $0x250] sm:$0xff] %v10910_v3  ;;  %709 = vst [vmem:[#allocation6 + $0x258] sm:$0xff] %v10910_v3 }
  0x5a   : > { %710 = vst [vmem:[#allocation6 + $0x260] sm:$0xff] %v10910_v3  ;;  %711 = vst [vmem:[#allocation6 + $0x268] sm:$0xff] %v10910_v3 }
  0x5b   : > { %712 = vst [vmem:[#allocation6 + $0x270] sm:$0xff] %v10910_v3  ;;  %713 = vst [vmem:[#allocation6 + $0x278] sm:$0xff] %v10910_v3 }
  0x5c   : > { %714 = vst [vmem:[#allocation6 + $0x280] sm:$0xff] %v10910_v3  ;;  %715 = vst [vmem:[#allocation6 + $0x288] sm:$0xff] %v10910_v3 }
  0x5d   : > { %716 = vst [vmem:[#allocation6 + $0x290] sm:$0xff] %v10910_v3  ;;  %717 = vst [vmem:[#allocation6 + $0x298] sm:$0xff] %v10910_v3 }
  0x5e   : > { %718 = vst [vmem:[#allocation6 + $0x2a0] sm:$0xff] %v10910_v3  ;;  %719 = vst [vmem:[#allocation6 + $0x2a8] sm:$0xff] %v10910_v3 }
  0x5f   : > { %720 = vst [vmem:[#allocation6 + $0x2b0] sm:$0xff] %v10910_v3  ;;  %721 = vst [vmem:[#allocation6 + $0x2b8] sm:$0xff] %v10910_v3 }
  0x60   : > { %722 = vst [vmem:[#allocation6 + $0x2c0] sm:$0xff] %v10910_v3  ;;  %723 = vst [vmem:[#allocation6 + $0x2c8] sm:$0xff] %v10910_v3 }
  0x61   : > { %724 = vst [vmem:[#allocation6 + $0x2d0] sm:$0xff] %v10910_v3  ;;  %725 = vst [vmem:[#allocation6 + $0x2d8] sm:$0xff] %v10910_v3 }
  0x62   : > { %726 = vst [vmem:[#allocation6 + $0x2e0] sm:$0xff] %v10910_v3  ;;  %727 = vst [vmem:[#allocation6 + $0x2e8] sm:$0xff] %v10910_v3 }
  0x63   : > { %728 = vst [vmem:[#allocation6 + $0x2f0] sm:$0xff] %v10910_v3  ;;  %729 = vst [vmem:[#allocation6 + $0x2f8] sm:$0xff] %v10910_v3 }
  0x64   : > { %730 = vst [vmem:[#allocation6 + $0x300] sm:$0xff] %v10910_v3  ;;  %731 = vst [vmem:[#allocation6 + $0x308] sm:$0xff] %v10910_v3 }
  0x65   : > { %732 = vst [vmem:[#allocation6 + $0x310] sm:$0xff] %v10910_v3  ;;  %733 = vst [vmem:[#allocation6 + $0x318] sm:$0xff] %v10910_v3 }
  0x66   : > { %734 = vst [vmem:[#allocation6 + $0x320] sm:$0xff] %v10910_v3  ;;  %735 = vst [vmem:[#allocation6 + $0x328] sm:$0xff] %v10910_v3 }
  0x67   : > { %736 = vst [vmem:[#allocation6 + $0x330] sm:$0xff] %v10910_v3  ;;  %737 = vst [vmem:[#allocation6 + $0x338] sm:$0xff] %v10910_v3 }
  0x68   : > { %738 = vst [vmem:[#allocation6 + $0x340] sm:$0xff] %v10910_v3  ;;  %739 = vst [vmem:[#allocation6 + $0x348] sm:$0xff] %v10910_v3 }
  0x69   : > { %740 = vst [vmem:[#allocation6 + $0x350] sm:$0xff] %v10910_v3  ;;  %741 = vst [vmem:[#allocation6 + $0x358] sm:$0xff] %v10910_v3 }
  0x6a   : > { %742 = vst [vmem:[#allocation6 + $0x360] sm:$0xff] %v10910_v3  ;;  %743 = vst [vmem:[#allocation6 + $0x368] sm:$0xff] %v10910_v3 }
  0x6b   : > { %744 = vst [vmem:[#allocation6 + $0x370] sm:$0xff] %v10910_v3  ;;  %745 = vst [vmem:[#allocation6 + $0x378] sm:$0xff] %v10910_v3 }
  0x6c   : > { %746 = vst [vmem:[#allocation6 + $0x380] sm:$0xff] %v10910_v3  ;;  %747 = vst [vmem:[#allocation6 + $0x388] sm:$0xff] %v10910_v3 }
  0x6d   : > { %748 = vst [vmem:[#allocation6 + $0x390] sm:$0xff] %v10910_v3  ;;  %749 = vst [vmem:[#allocation6 + $0x398] sm:$0xff] %v10910_v3 }
  0x6e   : > { %750 = vst [vmem:[#allocation6 + $0x3a0] sm:$0xff] %v10910_v3  ;;  %751 = vst [vmem:[#allocation6 + $0x3a8] sm:$0xff] %v10910_v3 }
  0x6f   : > { %752 = vst [vmem:[#allocation6 + $0x3b0] sm:$0xff] %v10910_v3  ;;  %753 = vst [vmem:[#allocation6 + $0x3b8] sm:$0xff] %v10910_v3 }
  0x70   : > { %754 = vst [vmem:[#allocation6 + $0x3c0] sm:$0xff] %v10910_v3  ;;  %755 = vst [vmem:[#allocation6 + $0x3c8] sm:$0xff] %v10910_v3 }
  0x71   : > { %756 = vst [vmem:[#allocation6 + $0x3d0] sm:$0xff] %v10910_v3  ;;  %757 = vst [vmem:[#allocation6 + $0x3d8] sm:$0xff] %v10910_v3 }
  0x72   : > { %758 = vst [vmem:[#allocation6 + $0x3e0] sm:$0xff] %v10910_v3  ;;  %759 = vst [vmem:[#allocation6 + $0x3e8] sm:$0xff] %v10910_v3 }
  0x73   : > { %760 = vst [vmem:[#allocation6 + $0x3f0] sm:$0xff] %v10910_v3  ;;  %761 = vst [vmem:[#allocation6 + $0x3f8] sm:$0xff] %v10910_v3 }
  0x74   : > { %762 = vst [vmem:[#allocation6 + $0x400] sm:$0xff] %v10910_v3  ;;  %763 = vst [vmem:[#allocation6 + $0x408] sm:$0xff] %v10910_v3 }
  0x75   : > { %764 = vst [vmem:[#allocation6 + $0x410] sm:$0xff] %v10910_v3  ;;  %765 = vst [vmem:[#allocation6 + $0x418] sm:$0xff] %v10910_v3 }
  0x76   : > { %766 = vst [vmem:[#allocation6 + $0x420] sm:$0xff] %v10910_v3  ;;  %767 = vst [vmem:[#allocation6 + $0x428] sm:$0xff] %v10910_v3 }
  0x77   : > { %768 = vst [vmem:[#allocation6 + $0x430] sm:$0xff] %v10910_v3  ;;  %769 = vst [vmem:[#allocation6 + $0x438] sm:$0xff] %v10910_v3 }
  0x78   : > { %770 = vst [vmem:[#allocation6 + $0x440] sm:$0xff] %v10910_v3  ;;  %771 = vst [vmem:[#allocation6 + $0x448] sm:$0xff] %v10910_v3 }
  0x79   : > { %772 = vst [vmem:[#allocation6 + $0x450] sm:$0xff] %v10910_v3  ;;  %773 = vst [vmem:[#allocation6 + $0x458] sm:$0xff] %v10910_v3 }
  0x7a   : > { %774 = vst [vmem:[#allocation6 + $0x460] sm:$0xff] %v10910_v3  ;;  %775 = vst [vmem:[#allocation6 + $0x468] sm:$0xff] %v10910_v3 }
  0x7b   : > { %776 = vst [vmem:[#allocation6 + $0x470] sm:$0xff] %v10910_v3  ;;  %777 = vst [vmem:[#allocation6 + $0x478] sm:$0xff] %v10910_v3 }
  0x7c   : > { %778 = vst [vmem:[#allocation6 + $0x480] sm:$0xff] %v10910_v3  ;;  %779 = vst [vmem:[#allocation6 + $0x488] sm:$0xff] %v10910_v3 }
  0x7d   : > { %780 = vst [vmem:[#allocation6 + $0x490] sm:$0xff] %v10910_v3  ;;  %781 = vst [vmem:[#allocation6 + $0x498] sm:$0xff] %v10910_v3 }
  0x7e   : > { %782 = vst [vmem:[#allocation6 + $0x4a0] sm:$0xff] %v10910_v3  ;;  %783 = vst [vmem:[#allocation6 + $0x4a8] sm:$0xff] %v10910_v3 }
  0x7f   : > { %784 = vst [vmem:[#allocation6 + $0x4b0] sm:$0xff] %v10910_v3  ;;  %785 = vst [vmem:[#allocation6 + $0x4b8] sm:$0xff] %v10910_v3 }
  0x80   : > { %786 = vst [vmem:[#allocation6 + $0x4c0] sm:$0xff] %v10910_v3  ;;  %787 = vst [vmem:[#allocation6 + $0x4c8] sm:$0xff] %v10910_v3 }
  0x81   : > { %788 = vst [vmem:[#allocation6 + $0x4d0] sm:$0xff] %v10910_v3  ;;  %789 = vst [vmem:[#allocation6 + $0x4d8] sm:$0xff] %v10910_v3 }
  0x82   : > { %790 = vst [vmem:[#allocation6 + $0x4e0] sm:$0xff] %v10910_v3  ;;  %791 = vst [vmem:[#allocation6 + $0x4e8] sm:$0xff] %v10910_v3 }
  0x83   : > { %792 = vst [vmem:[#allocation6 + $0x4f0] sm:$0xff] %v10910_v3  ;;  %793 = vst [vmem:[#allocation6 + $0x4f8] sm:$0xff] %v10910_v3 }
  0x84   : > { %794 = vst [vmem:[#allocation6 + $0x500] sm:$0xff] %v10910_v3  ;;  %795 = vst [vmem:[#allocation6 + $0x508] sm:$0xff] %v10910_v3 }
  0x85   : > { %796 = vst [vmem:[#allocation6 + $0x510] sm:$0xff] %v10910_v3  ;;  %797 = vst [vmem:[#allocation6 + $0x518] sm:$0xff] %v10910_v3 }
  0x86   : > { %798 = vst [vmem:[#allocation6 + $0x520] sm:$0xff] %v10910_v3  ;;  %799 = vst [vmem:[#allocation6 + $0x528] sm:$0xff] %v10910_v3 }
  0x87   : > { %800 = vst [vmem:[#allocation6 + $0x530] sm:$0xff] %v10910_v3  ;;  %801 = vst [vmem:[#allocation6 + $0x538] sm:$0xff] %v10910_v3 }
  0x88   : > { %802 = vst [vmem:[#allocation6 + $0x540] sm:$0xff] %v10910_v3  ;;  %803 = vst [vmem:[#allocation6 + $0x548] sm:$0xff] %v10910_v3 }
  0x89   : > { %804 = vst [vmem:[#allocation6 + $0x550] sm:$0xff] %v10910_v3  ;;  %805 = vst [vmem:[#allocation6 + $0x558] sm:$0xff] %v10910_v3 }
  0x8a   : > { %806 = vst [vmem:[#allocation6 + $0x560] sm:$0xff] %v10910_v3  ;;  %807 = vst [vmem:[#allocation6 + $0x568] sm:$0xff] %v10910_v3 }
  0x8b   : > { %808 = vst [vmem:[#allocation6 + $0x570] sm:$0xff] %v10910_v3  ;;  %809 = vst [vmem:[#allocation6 + $0x578] sm:$0xff] %v10910_v3 }
  0x8c   : > { %810 = vst [vmem:[#allocation6 + $0x580] sm:$0xff] %v10910_v3  ;;  %811 = vst [vmem:[#allocation6 + $0x588] sm:$0xff] %v10910_v3 }
  0x8d   : > { %812 = vst [vmem:[#allocation6 + $0x590] sm:$0xff] %v10910_v3  ;;  %813 = vst [vmem:[#allocation6 + $0x598] sm:$0xff] %v10910_v3 }
  0x8e   : > { %814 = vst [vmem:[#allocation6 + $0x5a0] sm:$0xff] %v10910_v3  ;;  %815 = vst [vmem:[#allocation6 + $0x5a8] sm:$0xff] %v10910_v3 }
  0x8f   : > { %816 = vst [vmem:[#allocation6 + $0x5b0] sm:$0xff] %v10910_v3  ;;  %817 = vst [vmem:[#allocation6 + $0x5b8] sm:$0xff] %v10910_v3 }
  0x90   : > { %818 = vst [vmem:[#allocation6 + $0x5c0] sm:$0xff] %v10910_v3  ;;  %819 = vst [vmem:[#allocation6 + $0x5c8] sm:$0xff] %v10910_v3 }
  0x91   : > { %820 = vst [vmem:[#allocation6 + $0x5d0] sm:$0xff] %v10910_v3  ;;  %821 = vst [vmem:[#allocation6 + $0x5d8] sm:$0xff] %v10910_v3 }
  0x92   : > { %822 = vst [vmem:[#allocation6 + $0x5e0] sm:$0xff] %v10910_v3  ;;  %823 = vst [vmem:[#allocation6 + $0x5e8] sm:$0xff] %v10910_v3 }
  0x93   : > { %824 = vst [vmem:[#allocation6 + $0x5f0] sm:$0xff] %v10910_v3  ;;  %825 = vst [vmem:[#allocation6 + $0x5f8] sm:$0xff] %v10910_v3 }
  0x94   : > { %826 = vst [vmem:[#allocation6 + $0x600] sm:$0xff] %v10910_v3  ;;  %827 = vst [vmem:[#allocation6 + $0x608] sm:$0xff] %v10910_v3 }
  0x95   : > { %828 = vst [vmem:[#allocation6 + $0x610] sm:$0xff] %v10910_v3  ;;  %829 = vst [vmem:[#allocation6 + $0x618] sm:$0xff] %v10910_v3 }
  0x96   : > { %830 = vst [vmem:[#allocation6 + $0x620] sm:$0xff] %v10910_v3  ;;  %831 = vst [vmem:[#allocation6 + $0x628] sm:$0xff] %v10910_v3 }
  0x97   : > { %832 = vst [vmem:[#allocation6 + $0x630] sm:$0xff] %v10910_v3  ;;  %833 = vst [vmem:[#allocation6 + $0x638] sm:$0xff] %v10910_v3 }
  0x98   : > { %834 = vst [vmem:[#allocation6 + $0x640] sm:$0xff] %v10910_v3  ;;  %835 = vst [vmem:[#allocation6 + $0x648] sm:$0xff] %v10910_v3 }
  0x99   : > { %836 = vst [vmem:[#allocation6 + $0x650] sm:$0xff] %v10910_v3  ;;  %837 = vst [vmem:[#allocation6 + $0x658] sm:$0xff] %v10910_v3 }
  0x9a   : > { %838 = vst [vmem:[#allocation6 + $0x660] sm:$0xff] %v10910_v3  ;;  %839 = vst [vmem:[#allocation6 + $0x668] sm:$0xff] %v10910_v3 }
  0x9b   : > { %840 = vst [vmem:[#allocation6 + $0x670] sm:$0xff] %v10910_v3  ;;  %841 = vst [vmem:[#allocation6 + $0x678] sm:$0xff] %v10910_v3 }
  0x9c   : > { %842 = vst [vmem:[#allocation6 + $0x680] sm:$0xff] %v10910_v3  ;;  %843 = vst [vmem:[#allocation6 + $0x688] sm:$0xff] %v10910_v3 }
  0x9d   : > { %844 = vst [vmem:[#allocation6 + $0x690] sm:$0xff] %v10910_v3  ;;  %845 = vst [vmem:[#allocation6 + $0x698] sm:$0xff] %v10910_v3 }
  0x9e   : > { %846 = vst [vmem:[#allocation6 + $0x6a0] sm:$0xff] %v10910_v3  ;;  %847 = vst [vmem:[#allocation6 + $0x6a8] sm:$0xff] %v10910_v3 }
  0x9f   : > { %848 = vst [vmem:[#allocation6 + $0x6b0] sm:$0xff] %v10910_v3  ;;  %849 = vst [vmem:[#allocation6 + $0x6b8] sm:$0xff] %v10910_v3 }
  0xa0   : > { %850 = vst [vmem:[#allocation6 + $0x6c0] sm:$0xff] %v10910_v3  ;;  %851 = vst [vmem:[#allocation6 + $0x6c8] sm:$0xff] %v10910_v3 }
  0xa1   : > { %852 = vst [vmem:[#allocation6 + $0x6d0] sm:$0xff] %v10910_v3  ;;  %853 = vst [vmem:[#allocation6 + $0x6d8] sm:$0xff] %v10910_v3 }
  0xa2   : > { %854 = vst [vmem:[#allocation6 + $0x6e0] sm:$0xff] %v10910_v3  ;;  %855 = vst [vmem:[#allocation6 + $0x6e8] sm:$0xff] %v10910_v3 }
  0xa3   : > { %856 = vst [vmem:[#allocation6 + $0x6f0] sm:$0xff] %v10910_v3  ;;  %857 = vst [vmem:[#allocation6 + $0x6f8] sm:$0xff] %v10910_v3 }
  0xa4   : > { %858 = vst [vmem:[#allocation6 + $0x700] sm:$0xff] %v10910_v3  ;;  %859 = vst [vmem:[#allocation6 + $0x708] sm:$0xff] %v10910_v3 }
  0xa5   : > { %860 = vst [vmem:[#allocation6 + $0x710] sm:$0xff] %v10910_v3  ;;  %861 = vst [vmem:[#allocation6 + $0x718] sm:$0xff] %v10910_v3 }
  0xa6   : > { %862 = vst [vmem:[#allocation6 + $0x720] sm:$0xff] %v10910_v3  ;;  %863 = vst [vmem:[#allocation6 + $0x728] sm:$0xff] %v10910_v3 }
  0xa7   : > { %864 = vst [vmem:[#allocation6 + $0x730] sm:$0xff] %v10910_v3  ;;  %865 = vst [vmem:[#allocation6 + $0x738] sm:$0xff] %v10910_v3 }
  0xa8   : > { %866 = vst [vmem:[#allocation6 + $0x740] sm:$0xff] %v10910_v3  ;;  %867 = vst [vmem:[#allocation6 + $0x748] sm:$0xff] %v10910_v3 }
  0xa9   : > { %868 = vst [vmem:[#allocation6 + $0x750] sm:$0xff] %v10910_v3  ;;  %869 = vst [vmem:[#allocation6 + $0x758] sm:$0xff] %v10910_v3 }
  0xaa   : > { %870 = vst [vmem:[#allocation6 + $0x760] sm:$0xff] %v10910_v3  ;;  %871 = vst [vmem:[#allocation6 + $0x768] sm:$0xff] %v10910_v3 }
  0xab   : > { %872 = vst [vmem:[#allocation6 + $0x770] sm:$0xff] %v10910_v3  ;;  %873 = vst [vmem:[#allocation6 + $0x778] sm:$0xff] %v10910_v3 }
  0xac   : > { %874 = vst [vmem:[#allocation6 + $0x780] sm:$0xff] %v10910_v3  ;;  %875 = vst [vmem:[#allocation6 + $0x788] sm:$0xff] %v10910_v3 }
  0xad   : > { %876 = vst [vmem:[#allocation6 + $0x790] sm:$0xff] %v10910_v3  ;;  %877 = vst [vmem:[#allocation6 + $0x798] sm:$0xff] %v10910_v3 }
  0xae   : > { %878 = vst [vmem:[#allocation6 + $0x7a0] sm:$0xff] %v10910_v3  ;;  %879 = vst [vmem:[#allocation6 + $0x7a8] sm:$0xff] %v10910_v3 }
  0xaf   : > { %880 = vst [vmem:[#allocation6 + $0x7b0] sm:$0xff] %v10910_v3  ;;  %881 = vst [vmem:[#allocation6 + $0x7b8] sm:$0xff] %v10910_v3 }
  0xb0   : > { %882 = vst [vmem:[#allocation6 + $0x7c0] sm:$0xff] %v10910_v3  ;;  %883 = vst [vmem:[#allocation6 + $0x7c8] sm:$0xff] %v10910_v3 }
  0xb1   : > { %884 = vst [vmem:[#allocation6 + $0x7d0] sm:$0xff] %v10910_v3  ;;  %885 = vst [vmem:[#allocation6 + $0x7d8] sm:$0xff] %v10910_v3 }
  0xb2   : > { %886 = vst [vmem:[#allocation6 + $0x7e0] sm:$0xff] %v10910_v3  ;;  %887 = vst [vmem:[#allocation6 + $0x7e8] sm:$0xff] %v10910_v3 }
  0xb3   : > { %888 = vst [vmem:[#allocation6 + $0x7f0] sm:$0xff] %v10910_v3  ;;  %889 = vst [vmem:[#allocation6 + $0x7f8] sm:$0xff] %v10910_v3 }
  0xb4   : > { %890 = vst [vmem:[#allocation6 + $0x800] sm:$0xff] %v10910_v3  ;;  %891 = vst [vmem:[#allocation6 + $0x808] sm:$0xff] %v10910_v3 }
  0xb5   : > { %892 = vst [vmem:[#allocation6 + $0x810] sm:$0xff] %v10910_v3  ;;  %893 = vst [vmem:[#allocation6 + $0x818] sm:$0xff] %v10910_v3 }
  0xb6   : > { %894 = vst [vmem:[#allocation6 + $0x820] sm:$0xff] %v10910_v3  ;;  %895 = vst [vmem:[#allocation6 + $0x828] sm:$0xff] %v10910_v3 }
  0xb7   : > { %896 = vst [vmem:[#allocation6 + $0x830] sm:$0xff] %v10910_v3  ;;  %897 = vst [vmem:[#allocation6 + $0x838] sm:$0xff] %v10910_v3 }
  0xb8   : > { %898 = vst [vmem:[#allocation6 + $0x840] sm:$0xff] %v10910_v3  ;;  %899 = vst [vmem:[#allocation6 + $0x848] sm:$0xff] %v10910_v3 }
  0xb9   : > { %900 = vst [vmem:[#allocation6 + $0x850] sm:$0xff] %v10910_v3  ;;  %901 = vst [vmem:[#allocation6 + $0x858] sm:$0xff] %v10910_v3 }
  0xba   : > { %902 = vst [vmem:[#allocation6 + $0x860] sm:$0xff] %v10910_v3  ;;  %903 = vst [vmem:[#allocation6 + $0x868] sm:$0xff] %v10910_v3 }
  0xbb   : > { %904 = vst [vmem:[#allocation6 + $0x870] sm:$0xff] %v10910_v3  ;;  %905 = vst [vmem:[#allocation6 + $0x878] sm:$0xff] %v10910_v3 }
  0xbc   : > { %906 = vst [vmem:[#allocation6 + $0x880] sm:$0xff] %v10910_v3  ;;  %907 = vst [vmem:[#allocation6 + $0x888] sm:$0xff] %v10910_v3 }
  0xbd   : > { %908 = vst [vmem:[#allocation6 + $0x890] sm:$0xff] %v10910_v3  ;;  %909 = vst [vmem:[#allocation6 + $0x898] sm:$0xff] %v10910_v3 }
  0xbe   : > { %910 = vst [vmem:[#allocation6 + $0x8a0] sm:$0xff] %v10910_v3  ;;  %911 = vst [vmem:[#allocation6 + $0x8a8] sm:$0xff] %v10910_v3 }
  0xbf   : > { %912 = vst [vmem:[#allocation6 + $0x8b0] sm:$0xff] %v10910_v3  ;;  %913 = vst [vmem:[#allocation6 + $0x8b8] sm:$0xff] %v10910_v3 }
  0xc0   : > { %914 = vst [vmem:[#allocation6 + $0x8c0] sm:$0xff] %v10910_v3  ;;  %915 = vst [vmem:[#allocation6 + $0x8c8] sm:$0xff] %v10910_v3 }
  0xc1   : > { %916 = vst [vmem:[#allocation6 + $0x8d0] sm:$0xff] %v10910_v3  ;;  %917 = vst [vmem:[#allocation6 + $0x8d8] sm:$0xff] %v10910_v3 }
  0xc2   : > { %918 = vst [vmem:[#allocation6 + $0x8e0] sm:$0xff] %v10910_v3  ;;  %919 = vst [vmem:[#allocation6 + $0x8e8] sm:$0xff] %v10910_v3 }
  0xc3   : > { %920 = vst [vmem:[#allocation6 + $0x8f0] sm:$0xff] %v10910_v3  ;;  %921 = vst [vmem:[#allocation6 + $0x8f8] sm:$0xff] %v10910_v3 }
  0xc4   : > { %5359 = vst [vmem:[#allocation7] sm:$0xff] %v10910_v3  ;;  %5360 = vst [vmem:[#allocation7 + $0x8] sm:$0xff] %v10910_v3 }
  0xc5   : > { %5361 = vst [vmem:[#allocation7 + $0x10] sm:$0xff] %v10910_v3  ;;  %5362 = vst [vmem:[#allocation7 + $0x18] sm:$0xff] %v10910_v3 }
  0xc6   : > { %5363 = vst [vmem:[#allocation7 + $0x20] sm:$0xff] %v10910_v3  ;;  %5364 = vst [vmem:[#allocation7 + $0x28] sm:$0xff] %v10910_v3 }
  0xc7   : > { %5365 = vst [vmem:[#allocation7 + $0x30] sm:$0xff] %v10910_v3  ;;  %5366 = vst [vmem:[#allocation7 + $0x38] sm:$0xff] %v10910_v3 }
  0xc8   : > { %5367 = vst [vmem:[#allocation7 + $0x40] sm:$0xff] %v10910_v3  ;;  %5368 = vst [vmem:[#allocation7 + $0x48] sm:$0xff] %v10910_v3 }
  0xc9   : > { %5369 = vst [vmem:[#allocation7 + $0x50] sm:$0xff] %v10910_v3  ;;  %5370 = vst [vmem:[#allocation7 + $0x58] sm:$0xff] %v10910_v3 }
  0xca   : > { %5371 = vst [vmem:[#allocation7 + $0x60] sm:$0xff] %v10910_v3  ;;  %5372 = vst [vmem:[#allocation7 + $0x68] sm:$0xff] %v10910_v3 }
  0xcb   : > { %5373 = vst [vmem:[#allocation7 + $0x70] sm:$0xff] %v10910_v3  ;;  %5374 = vst [vmem:[#allocation7 + $0x78] sm:$0xff] %v10910_v3 }
  0xcc   : > { %5375 = vst [vmem:[#allocation7 + $0x80] sm:$0xff] %v10910_v3  ;;  %5376 = vst [vmem:[#allocation7 + $0x88] sm:$0xff] %v10910_v3 }
  0xcd   : > { %5377 = vst [vmem:[#allocation7 + $0x90] sm:$0xff] %v10910_v3  ;;  %5378 = vst [vmem:[#allocation7 + $0x98] sm:$0xff] %v10910_v3 }
  0xce   : > { %5379 = vst [vmem:[#allocation7 + $0xa0] sm:$0xff] %v10910_v3  ;;  %5380 = vst [vmem:[#allocation7 + $0xa8] sm:$0xff] %v10910_v3 }
  0xcf   : > { %5381 = vst [vmem:[#allocation7 + $0xb0] sm:$0xff] %v10910_v3  ;;  %5382 = vst [vmem:[#allocation7 + $0xb8] sm:$0xff] %v10910_v3 }
  0xd0   : > { %5383 = vst [vmem:[#allocation7 + $0xc0] sm:$0xff] %v10910_v3  ;;  %5384 = vst [vmem:[#allocation7 + $0xc8] sm:$0xff] %v10910_v3 }
  0xd1   : > { %5385 = vst [vmem:[#allocation7 + $0xd0] sm:$0xff] %v10910_v3  ;;  %5386 = vst [vmem:[#allocation7 + $0xd8] sm:$0xff] %v10910_v3 }
  0xd2   : > { %5387 = vst [vmem:[#allocation7 + $0xe0] sm:$0xff] %v10910_v3  ;;  %5388 = vst [vmem:[#allocation7 + $0xe8] sm:$0xff] %v10910_v3 }
  0xd3   : > { %5389 = vst [vmem:[#allocation7 + $0xf0] sm:$0xff] %v10910_v3  ;;  %5390 = vst [vmem:[#allocation7 + $0xf8] sm:$0xff] %v10910_v3 }
  0xd4   : > { %5391 = vst [vmem:[#allocation7 + $0x100] sm:$0xff] %v10910_v3  ;;  %5392 = vst [vmem:[#allocation7 + $0x108] sm:$0xff] %v10910_v3 }
  0xd5   : > { %5393 = vst [vmem:[#allocation7 + $0x110] sm:$0xff] %v10910_v3  ;;  %5394 = vst [vmem:[#allocation7 + $0x118] sm:$0xff] %v10910_v3 }
  0xd6   : > { %5395 = vst [vmem:[#allocation7 + $0x120] sm:$0xff] %v10910_v3  ;;  %5396 = vst [vmem:[#allocation7 + $0x128] sm:$0xff] %v10910_v3 }
  0xd7   : > { %5397 = vst [vmem:[#allocation7 + $0x130] sm:$0xff] %v10910_v3  ;;  %5398 = vst [vmem:[#allocation7 + $0x138] sm:$0xff] %v10910_v3 }
  0xd8   : > { %5399 = vst [vmem:[#allocation7 + $0x140] sm:$0xff] %v10910_v3  ;;  %5400 = vst [vmem:[#allocation7 + $0x148] sm:$0xff] %v10910_v3 }
  0xd9   : > { %5401 = vst [vmem:[#allocation7 + $0x150] sm:$0xff] %v10910_v3  ;;  %5402 = vst [vmem:[#allocation7 + $0x158] sm:$0xff] %v10910_v3 }
  0xda   : > { %5403 = vst [vmem:[#allocation7 + $0x160] sm:$0xff] %v10910_v3  ;;  %5404 = vst [vmem:[#allocation7 + $0x168] sm:$0xff] %v10910_v3 }
  0xdb   : > { %5405 = vst [vmem:[#allocation7 + $0x170] sm:$0xff] %v10910_v3  ;;  %5406 = vst [vmem:[#allocation7 + $0x178] sm:$0xff] %v10910_v3 }
  0xdc   : > { %5407 = vst [vmem:[#allocation7 + $0x180] sm:$0xff] %v10910_v3  ;;  %5408 = vst [vmem:[#allocation7 + $0x188] sm:$0xff] %v10910_v3 }
  0xdd   : > { %5409 = vst [vmem:[#allocation7 + $0x190] sm:$0xff] %v10910_v3  ;;  %5410 = vst [vmem:[#allocation7 + $0x198] sm:$0xff] %v10910_v3 }
  0xde   : > { %5411 = vst [vmem:[#allocation7 + $0x1a0] sm:$0xff] %v10910_v3  ;;  %5412 = vst [vmem:[#allocation7 + $0x1a8] sm:$0xff] %v10910_v3 }
  0xdf   : > { %5413 = vst [vmem:[#allocation7 + $0x1b0] sm:$0xff] %v10910_v3  ;;  %5414 = vst [vmem:[#allocation7 + $0x1b8] sm:$0xff] %v10910_v3 }
  0xe0   : > { %5415 = vst [vmem:[#allocation7 + $0x1c0] sm:$0xff] %v10910_v3  ;;  %5416 = vst [vmem:[#allocation7 + $0x1c8] sm:$0xff] %v10910_v3 }
  0xe1   : > { %5417 = vst [vmem:[#allocation7 + $0x1d0] sm:$0xff] %v10910_v3  ;;  %5418 = vst [vmem:[#allocation7 + $0x1d8] sm:$0xff] %v10910_v3 }
  0xe2   : > { %5419 = vst [vmem:[#allocation7 + $0x1e0] sm:$0xff] %v10910_v3  ;;  %5420 = vst [vmem:[#allocation7 + $0x1e8] sm:$0xff] %v10910_v3 }
  0xe3   : > { %5421 = vst [vmem:[#allocation7 + $0x1f0] sm:$0xff] %v10910_v3  ;;  %5422 = vst [vmem:[#allocation7 + $0x1f8] sm:$0xff] %v10910_v3 }
  0xe4   : > { %5423 = vst [vmem:[#allocation7 + $0x200] sm:$0xff] %v10910_v3  ;;  %5424 = vst [vmem:[#allocation7 + $0x208] sm:$0xff] %v10910_v3 }
  0xe5   : > { %5425 = vst [vmem:[#allocation7 + $0x210] sm:$0xff] %v10910_v3  ;;  %5426 = vst [vmem:[#allocation7 + $0x218] sm:$0xff] %v10910_v3 }
  0xe6   : > { %5427 = vst [vmem:[#allocation7 + $0x220] sm:$0xff] %v10910_v3  ;;  %5428 = vst [vmem:[#allocation7 + $0x228] sm:$0xff] %v10910_v3 }
  0xe7   : > { %5429 = vst [vmem:[#allocation7 + $0x230] sm:$0xff] %v10910_v3  ;;  %5430 = vst [vmem:[#allocation7 + $0x238] sm:$0xff] %v10910_v3 }
  0xe8   : > { %7110 = vst [vmem:[#allocation8] sm:$0xff] %v10910_v3  ;;  %7111 = vst [vmem:[#allocation8 + $0x8] sm:$0xff] %v10910_v3 }
  0xe9   : > { %7112 = vst [vmem:[#allocation8 + $0x10] sm:$0xff] %v10910_v3  ;;  %7113 = vst [vmem:[#allocation8 + $0x18] sm:$0xff] %v10910_v3 }
  0xea   : > { %7114 = vst [vmem:[#allocation8 + $0x20] sm:$0xf] %v10910_v3  ;;  %7115 = vst [vmem:[#allocation8 + $0x24] sm:$0xff] %v10910_v3 }
  0xeb   : > { %7116 = vst [vmem:[#allocation8 + $0x2c] sm:$0xff] %v10910_v3  ;;  %7117 = vst [vmem:[#allocation8 + $0x34] sm:$0xff] %v10910_v3 }
  0xec   : > { %7118 = vst [vmem:[#allocation8 + $0x3c] sm:$0xff] %v10910_v3  ;;  %7119 = vst [vmem:[#allocation8 + $0x44] sm:$0xf] %v10910_v3 }
  0xed   : > { %7120 = vst [vmem:[#allocation8 + $0x48] sm:$0xff] %v10910_v3  ;;  %7121 = vst [vmem:[#allocation8 + $0x50] sm:$0xff] %v10910_v3 }
  0xee   : > { %7122 = vst [vmem:[#allocation8 + $0x58] sm:$0xff] %v10910_v3  ;;  %7123 = vst [vmem:[#allocation8 + $0x60] sm:$0xff] %v10910_v3 }
  0xef   : > { %7124 = vst [vmem:[#allocation8 + $0x68] sm:$0xf] %v10910_v3  ;;  %7125 = vst [vmem:[#allocation8 + $0x6c] sm:$0xff] %v10910_v3 }
  0xf0   : > { %7126 = vst [vmem:[#allocation8 + $0x74] sm:$0xff] %v10910_v3  ;;  %7127 = vst [vmem:[#allocation8 + $0x7c] sm:$0xff] %v10910_v3 }
  0xf1   : > { %7128 = vst [vmem:[#allocation8 + $0x84] sm:$0xff] %v10910_v3  ;;  %7129 = vst [vmem:[#allocation8 + $0x8c] sm:$0xf] %v10910_v3 }
  0xf2   : > { %8213 = vst [vmem:[#allocation9] sm:$0xff] %v10910_v3  ;;  %8214 = vst [vmem:[#allocation9 + $0x8] sm:$0xff] %v10910_v3 }
  0xf3   : > { %8215 = vst [vmem:[#allocation9 + $0x10] sm:$0x3] %v10910_v3  ;;  %8216 = vst [vmem:[#allocation9 + $0x12] sm:$0xff] %v10910_v3 }
  0xf4   : > { %8217 = vst [vmem:[#allocation9 + $0x1a] sm:$0xff] %v10910_v3  ;;  %8218 = vst [vmem:[#allocation9 + $0x22] sm:$0x3] %v10910_v3 }
  0xf5   : > { %444 = vst.msk [vmem:[#allocation2 + $0x18] sm:$0x1] %vm443_vm1, %v10910_v3  ;;  %448 = vst.msk [vmem:[#allocation2 + $0x38] sm:$0x1] %vm443_vm1, %v10910_v3 }
  0xf6   : > { %452 = vst.msk [vmem:[#allocation2 + $0x58] sm:$0x1] %vm443_vm1, %v10910_v3  ;;  %456 = vst.msk [vmem:[#allocation2 + $0x78] sm:$0x1] %vm443_vm1, %v10910_v3 }
  0xf7   : > { %460 = vst.msk [vmem:[#allocation2 + $0x98] sm:$0x1] %vm443_vm1, %v10910_v3  ;;  %464 = vst.msk [vmem:[#allocation2 + $0xb8] sm:$0x1] %vm443_vm1, %v10910_v3 }
  0xf8   : > { %468 = vst.msk [vmem:[#allocation2 + $0xd8] sm:$0x1] %vm443_vm1, %v10910_v3  ;;  %472 = vst.msk [vmem:[#allocation2 + $0xf8] sm:$0x1] %vm443_vm1, %v10910_v3 }
  0xf9   : > { %476 = vst.msk [vmem:[#allocation2 + $0x118] sm:$0x1] %vm443_vm1, %v10910_v3  ;;  %480 = vst.msk [vmem:[#allocation2 + $0x138] sm:$0x1] %vm443_vm1, %v10910_v3 }
  0xfa   : > { %484 = vst.msk [vmem:[#allocation2 + $0x158] sm:$0x1] %vm443_vm1, %v10910_v3  ;;  %488 = vst.msk [vmem:[#allocation2 + $0x178] sm:$0x1] %vm443_vm1, %v10910_v3 }
  0xfb   : > { %492 = vst.msk [vmem:[#allocation2 + $0x198] sm:$0x1] %vm443_vm1, %v10910_v3  ;;  %496 = vst.msk [vmem:[#allocation2 + $0x1b8] sm:$0x1] %vm443_vm1, %v10910_v3 }
  0xfc   : > { %500 = vst.msk [vmem:[#allocation2 + $0x1d8] sm:$0x1] %vm443_vm1, %v10910_v3  ;;  %504 = vst.msk [vmem:[#allocation2 + $0x1f8] sm:$0x1] %vm443_vm1, %v10910_v3  ;;  %v1051_v40 = vld [vmem:[#allocation2 + $0x11] sm:$0xff] }
  0xfd   : > { %508 = vst.msk [vmem:[#allocation2 + $0x218] sm:$0x1] %vm443_vm1, %v10910_v3  ;;  %512 = vst.msk [vmem:[#allocation2 + $0x238] sm:$0x1] %vm443_vm1, %v10910_v3  ;;  %vm559_vm1 = vcmask 523264  }
  0xfe   : > { %1018 = vst.msk [vmem:[#allocation6 + $0x8] sm:$0xff] %vm439_vm0, %v986_v33  ;;  %1019 = vst.msk [vmem:[#allocation6 + $0x50] sm:$0xff] %vm439_vm0, %v987_v34 }
  0xff   : > { %602 = vst.msk [vmem:[#allocation2 + $0x28] sm:$0xff] %vm439_vm0, %v569_v35  ;;  %603 = vst.msk [vmem:[#allocation2 + $0x30] sm:$0xff] %vm439_vm0, %v570_v36 }
 0x100   : > { %954 = vst.msk [vmem:[#allocation6] sm:$0xff] %vm439_vm0, %v922_v37  ;;  %955 = vst.msk [vmem:[#allocation6 + $0x48] sm:$0xff] %vm439_vm0, %v923_v38 }
 0x101   : > { %1082 = vst.msk [vmem:[#allocation6 + $0x10] sm:$0xff] %vm439_vm0, %v1050_v39  ;;  %1083 = vst.msk [vmem:[#allocation6 + $0x58] sm:$0xff] %vm439_vm0, %v1051_v40 }
 0x102   : > { %604 = vst.msk [vmem:[#allocation2 + $0x48] sm:$0xff] %vm439_vm0, %v571_v42  ;;  %605 = vst.msk [vmem:[#allocation2 + $0x50] sm:$0xff] %vm439_vm0, %v572_v43 }
 0x103   : > { %606 = vst.msk [vmem:[#allocation2 + $0x68] sm:$0xff] %vm439_vm0, %v573_v44  ;;  %607 = vst.msk [vmem:[#allocation2 + $0x70] sm:$0xff] %vm439_vm0, %v574_v45 }
 0x104   : > { %608 = vst.msk [vmem:[#allocation2 + $0x88] sm:$0xff] %vm439_vm0, %v575_v1  ;;  %609 = vst.msk [vmem:[#allocation2 + $0x90] sm:$0xff] %vm439_vm0, %v576_v10 }
 0x105   : > { %v1500_v47 = vld [vmem:[#allocation6 + $0x8] sm:$0xff]  ;;  %v1509_v48 = vld [vmem:[#allocation6 + $0x50] sm:$0xff]  ;;  %610 = vst.msk [vmem:[#allocation2 + $0xa8] sm:$0xff] %vm439_vm0, %v577_v20  ;;  %611 = vst.msk [vmem:[#allocation2 + $0xb0] sm:$0xff] %vm439_vm0, %v578_v21 }
 0x106   : > { %v1114_v49 = vld [vmem:[#allocation2 + $0x27] sm:$0xff]  ;;  %v1788_v50 = vpack.c.bf16 %v1509_v48, %v1500_v47  ;;  %v1115_v51 = vld [vmem:[#allocation2 + $0x2f] sm:$0xff] }
 0x107   : > { %1146 = vst.msk [vmem:[#allocation6 + $0x18] sm:$0xff] %vm439_vm0, %v1114_v49  ;;  %v1499_v52 = vld [vmem:[#allocation6] sm:$0xff]  ;;  %v1508_v53 = vld [vmem:[#allocation6 + $0x48] sm:$0xff]  ;;  %956 = vst.msk [vmem:[#allocation6 + $0x90] sm:$0xff] %vm439_vm0, %v1114_v49 }
 0x108   : > { %1147 = vst.msk [vmem:[#allocation6 + $0x60] sm:$0xff] %vm439_vm0, %v1115_v51  ;;  %v1787_v54 = vpack.c.bf16 %v1508_v53, %v1499_v52  ;;  %v988_v55 = vld [vmem:[#allocation2 + $0x28] sm:$0xff]  ;;  %957 = vst.msk [vmem:[#allocation6 + $0xd8] sm:$0xff] %vm439_vm0, %v1115_v51  ;;  %2539 = vmatprep.mubr.bf16.mxu0 %v1788_v50  ;;  %v989_v57 = vld [vmem:[#allocation2 + $0x30] sm:$0xff] }
 0x109   : > { %1020 = vst.msk [vmem:[#allocation6 + $0x98] sm:$0xff] %vm439_vm0, %v988_v55  ;;  %v1052_v58 = vld [vmem:[#allocation2 + $0x29] sm:$0xff]  ;;  %v1053_v59 = vld [vmem:[#allocation2 + $0x31] sm:$0xff]  ;;  %v1501_v61 = vld [vmem:[#allocation6 + $0x10] sm:$0xff] }
 0x10a   : > { %2540 = vmatmul.mubr.bf16.vlgmr.msra.gmra.mrb[0].mxu0 %v1787_v54  ;;  %v1510_v62 = vld [vmem:[#allocation6 + $0x58] sm:$0xff]  ;;  %1021 = vst.msk [vmem:[#allocation6 + $0xe0] sm:$0xff] %vm439_vm0, %v989_v57  ;;  %1084 = vst.msk [vmem:[#allocation6 + $0xa0] sm:$0xff] %vm439_vm0, %v1052_v58  ;;  %v991_v3 = vld [vmem:[#allocation2 + $0x50] sm:$0xff] }
 0x10b   : > { %v1116_v63 = vld [vmem:[#allocation2 + $0x47] sm:$0xff]  ;;  %1085 = vst.msk [vmem:[#allocation6 + $0xe8] sm:$0xff] %vm439_vm0, %v1053_v59  ;;  %9750 = vmatpush3.bf16.msra.mxu0 %v10550_v46  ;;  %v1117_v2 = vld [vmem:[#allocation2 + $0x4f] sm:$0xff]  ;;  %1023 = vst.msk [vmem:[#allocation6 + $0x170] sm:$0xff] %vm439_vm0, %v991_v3  ;;  %v1789_v15 = vpack.c.bf16 %v1510_v62, %v1501_v61 }
 0x10c   : > { %v990_v0 = vld [vmem:[#allocation2 + $0x48] sm:$0xff]  ;;  %1148 = vst.msk [vmem:[#allocation6 + $0xa8] sm:$0xff] %vm439_vm0, %v1116_v63  ;;  %958 = vst.msk [vmem:[#allocation6 + $0x120] sm:$0xff] %vm439_vm0, %v1116_v63  ;;  %v1055_v7 = vld [vmem:[#allocation2 + $0x51] sm:$0xff]  ;;  %9751 = vmatprep.subr.bf16.mxu0 %v10551_v56 }
 0x10d   : > { %1022 = vst.msk [vmem:[#allocation6 + $0x128] sm:$0xff] %vm439_vm0, %v990_v0  ;;  %v1118_v4 = vld [vmem:[#allocation2 + $0x67] sm:$0xff]  ;;  %1149 = vst.msk [vmem:[#allocation6 + $0xf0] sm:$0xff] %vm439_vm0, %v1117_v2  ;;  %v1119_v5 = vld [vmem:[#allocation2 + $0x6f] sm:$0xff] }
 0x10e   : > { %1150 = vst.msk [vmem:[#allocation6 + $0x138] sm:$0xff] %vm439_vm0, %v1118_v4  ;;  %959 = vst.msk [vmem:[#allocation6 + $0x168] sm:$0xff] %vm439_vm0, %v1117_v2  ;;  %v1054_v6 = vld [vmem:[#allocation2 + $0x49] sm:$0xff]  ;;  %v1517_v12 = vld [vmem:[#allocation6 + $0x90] sm:$0xff] }
 0x10f   : > { %960 = vst.msk [vmem:[#allocation6 + $0x1b0] sm:$0xff] %vm439_vm0, %v1118_v4  ;;  %1151 = vst.msk [vmem:[#allocation6 + $0x180] sm:$0xff] %vm439_vm0, %v1119_v5  ;;  %v992_v8 = vld [vmem:[#allocation2 + $0x68] sm:$0xff]  ;;  %v993_v9 = vld [vmem:[#allocation2 + $0x70] sm:$0xff]  ;;  %9752 = vmatpush3.bf16.msra.mxu0 %v10552_v60 }
 0x110   : > { %1086 = vst.msk [vmem:[#allocation6 + $0x130] sm:$0xff] %vm439_vm0, %v1054_v6  ;;  %1087 = vst.msk [vmem:[#allocation6 + $0x178] sm:$0xff] %vm439_vm0, %v1055_v7  ;;  %v1502_v11 = vld [vmem:[#allocation6 + $0x18] sm:$0xff]  ;;  %v1511_v14 = vld [vmem:[#allocation6 + $0x60] sm:$0xff] }
 0x111   : > { %961 = vst.msk [vmem:[#allocation6 + $0x1f8] sm:$0xff] %vm439_vm0, %v1119_v5  ;;  %1024 = vst.msk [vmem:[#allocation6 + $0x1b8] sm:$0xff] %vm439_vm0, %v992_v8  ;;  %v1056_v13 = vld [vmem:[#allocation2 + $0x69] sm:$0xff]  ;;  %v1057_v17 = vld [vmem:[#allocation2 + $0x71] sm:$0xff]  ;;  %v1790_v18 = vpack.c.bf16 %v1511_v14, %v1502_v11 }
 0x112   : > { %1025 = vst.msk [vmem:[#allocation6 + $0x200] sm:$0xff] %vm439_vm0, %v993_v9  ;;  %v1526_v16 = vld [vmem:[#allocation6 + $0xd8] sm:$0xff]  ;;  %1088 = vst.msk [vmem:[#allocation6 + $0x1c0] sm:$0xff] %vm439_vm0, %v1056_v13  ;;  %v1527_v22 = vld [vmem:[#allocation6 + $0xe0] sm:$0xff] }
 0x113   : > { %v1518_v19 = vld [vmem:[#allocation6 + $0x98] sm:$0xff]  ;;  %1089 = vst.msk [vmem:[#allocation6 + $0x208] sm:$0xff] %vm439_vm0, %v1057_v17  ;;  %v1796_v23 = vpack.c.bf16 %v1526_v16, %v1517_v12  ;;  %2700 = vmatprep.mubr.bf16.mxu1 %v1790_v18  ;;  %v1520_v25 = vld [vmem:[#allocation6 + $0xa8] sm:$0xff]  ;;  %v1545_v28 = vld [vmem:[#allocation6 + $0x170] sm:$0xff] }
 0x114   : > { %v1797_v24 = vpack.c.bf16 %v1527_v22, %v1518_v19  ;;  %v1536_v26 = vld [vmem:[#allocation6 + $0x128] sm:$0xff]  ;;  %2701 = vmatmul.mubr.bf16.vlgmr.msra.gmra.mrb[0].mxu1 %v1789_v15  ;;  %v1529_v27 = vld [vmem:[#allocation6 + $0xf0] sm:$0xff]  ;;  %v1519_v30 = vld [vmem:[#allocation6 + $0xa0] sm:$0xff] }
 0x115   : > { %v1799_v29 = vpack.c.bf16 %v1529_v27, %v1520_v25  ;;  %v1528_v31 = vld [vmem:[#allocation6 + $0xe8] sm:$0xff]  ;;  %v1806_v32 = vpack.c.bf16 %v1545_v28, %v1536_v26  ;;  %v1538_v33 = vld [vmem:[#allocation6 + $0x138] sm:$0xff]  ;;  %v1535_v35 = vld [vmem:[#allocation6 + $0x120] sm:$0xff] }
 0x116   : > { %2547 = vmatprep.mubr.bf16.mxu0 %v1797_v24  ;;  %v1547_v34 = vld [vmem:[#allocation6 + $0x180] sm:$0xff]  ;;  %v1544_v36 = vld [vmem:[#allocation6 + $0x168] sm:$0xff]  ;;  %v1120_v37 = vld [vmem:[#allocation2 + $0x87] sm:$0xff]  ;;  %v1798_v39 = vpack.c.bf16 %v1528_v31, %v1519_v30 }
 0x117   : > { %2548 = vmatmul.mubr.bf16.gmra.mrb[4].mxu0 %v1796_v23  ;;  %2708 = vmatprep.mubr.bf16.mxu1 %v1799_v29  ;;  %v1121_v38 = vld [vmem:[#allocation2 + $0x8f] sm:$0xff]  ;;  %1152 = vst.msk [vmem:[#allocation6 + $0x1c8] sm:$0xff] %vm439_vm0, %v1120_v37  ;;  %962 = vst.msk [vmem:[#allocation6 + $0x240] sm:$0xff] %vm439_vm0, %v1120_v37  ;;  %v1808_v42 = vpack.c.bf16 %v1547_v34, %v1538_v33  ;;  %v1122_v45 = vld [vmem:[#allocation2 + $0xa7] sm:$0xff]  ;;  %v1805_v46 = vpack.c.bf16 %v1544_v36, %v1535_v35 }
 0x118   : > { %2555 = vmatprep.mubr.bf16.mxu0 %v1806_v32  ;;  %v1554_v40 = vld [vmem:[#allocation6 + $0x1b8] sm:$0xff]  ;;  %1153 = vst.msk [vmem:[#allocation6 + $0x210] sm:$0xff] %vm439_vm0, %v1121_v38  ;;  %963 = vst.msk [vmem:[#allocation6 + $0x288] sm:$0xff] %vm439_vm0, %v1121_v38  ;;  %v995_v44 = vld [vmem:[#allocation2 + $0x90] sm:$0xff] }
 0x119   : > { %v1563_v41 = vld [vmem:[#allocation6 + $0x200] sm:$0xff]  ;;  %v994_v43 = vld [vmem:[#allocation2 + $0x88] sm:$0xff]  ;;  %1027 = vst.msk [vmem:[#allocation6 + $0x290] sm:$0xff] %vm439_vm0, %v995_v44  ;;  %1154 = vst.msk [vmem:[#allocation6 + $0x258] sm:$0xff] %vm439_vm0, %v1122_v45 }
 0x11a   : > { %1026 = vst.msk [vmem:[#allocation6 + $0x248] sm:$0xff] %vm439_vm0, %v994_v43  ;;  %v1123_v47 = vld [vmem:[#allocation2 + $0xaf] sm:$0xff]  ;;  %964 = vst.msk [vmem:[#allocation6 + $0x2d0] sm:$0xff] %vm439_vm0, %v1122_v45  ;;  %v1537_v50 = vld [vmem:[#allocation6 + $0x130] sm:$0xff]  ;;  %v1815_v52 = vpack.c.bf16 %v1563_v41, %v1554_v40 }
 0x11b   : > { %v1058_v48 = vld [vmem:[#allocation2 + $0x89] sm:$0xff]  ;;  %v1059_v49 = vld [vmem:[#allocation2 + $0x91] sm:$0xff]  ;;  %1155 = vst.msk [vmem:[#allocation6 + $0x2a0] sm:$0xff] %vm439_vm0, %v1123_v47  ;;  %965 = vst.msk [vmem:[#allocation6 + $0x318] sm:$0xff] %vm439_vm0, %v1123_v47 }
 0x11c   : > { %v1546_v51 = vld [vmem:[#allocation6 + $0x178] sm:$0xff]  ;;  %1090 = vst.msk [vmem:[#allocation6 + $0x250] sm:$0xff] %vm439_vm0, %v1058_v48  ;;  %1091 = vst.msk [vmem:[#allocation6 + $0x298] sm:$0xff] %vm439_vm0, %v1059_v49  ;;  %v10553_v53 = vld [vmem:[%s14265_s1 + $0x150] sm:$0xff]   ;;  %2709 = vmatmul.mubr.bf16.gmra.mrb[4].mxu1 %v1798_v39 }
 0x11d   : > { %v10554_v54 = vld [vmem:[%s14265_s1 + $0x110] sm:$0xff]   ;;  %2716 = vmatprep.mubr.bf16.mxu1 %v1808_v42  ;;  %v1553_v55 = vld [vmem:[#allocation6 + $0x1b0] sm:$0xff]  ;;  %9753 = vmatprep.subr.bf16.mxu0 %v10553_v53  ;;  %v996_v56 = vld [vmem:[#allocation2 + $0xa8] sm:$0xff]  ;;  %v1807_v1 = vpack.c.bf16 %v1546_v51, %v1537_v50 }
 0x11e   : > { %v997_v57 = vld [vmem:[#allocation2 + $0xb0] sm:$0xff]  ;;  %1028 = vst.msk [vmem:[#allocation6 + $0x2d8] sm:$0xff] %vm439_vm0, %v996_v56  ;;  %v580_v59 = vld [vmem:[%s11663_s30 + $0x58] sm:$0xff]  ;;  %v1562_v0 = vld [vmem:[#allocation6 + $0x1f8] sm:$0xff]  ;;  %9754 = vmatpush3.bf16.msra.mxu0 %v10554_v54 }
 0x11f   : > { %v579_v58 = vld [vmem:[%s11663_s30 + $0x50] sm:$0xff]  ;;  %2556 = vmatmul.mubr.bf16.gmra.mrb[8].mxu0 %v1805_v46  ;;  %1029 = vst.msk [vmem:[#allocation6 + $0x320] sm:$0xff] %vm439_vm0, %v997_v57  ;;  %v1556_v62 = vld [vmem:[#allocation6 + $0x1c8] sm:$0xff]  ;;  %v1565_v63 = vld [vmem:[#allocation6 + $0x210] sm:$0xff]  ;;  %v1814_v7 = vpack.c.bf16 %v1562_v0, %v1553_v55 }
 0x120   : > { %612 = vst.msk [vmem:[#allocation2 + $0xc8] sm:$0xff] %vm439_vm0, %v579_v58  ;;  %v1060_v60 = vld [vmem:[#allocation2 + $0xa9] sm:$0xff]  ;;  %v1061_v61 = vld [vmem:[#allocation2 + $0xb1] sm:$0xff]  ;;  %2563 = vmatprep.mubr.bf16.mxu0 %v1815_v52  ;;  %613 = vst.msk [vmem:[#allocation2 + $0xd0] sm:$0xff] %vm439_vm0, %v580_v59  ;;  %v1817_v4 = vpack.c.bf16 %v1565_v63, %v1556_v62 }
 0x121   : > { %1092 = vst.msk [vmem:[#allocation6 + $0x2e0] sm:$0xff] %vm439_vm0, %v1060_v60  ;;  %1093 = vst.msk [vmem:[#allocation6 + $0x328] sm:$0xff] %vm439_vm0, %v1061_v61  ;;  %v581_v2 = vld [vmem:[%s11663_s30 + $0x60] sm:$0xff]  ;;  %v582_v3 = vld [vmem:[%s11663_s30 + $0x68] sm:$0xff] }
 0x122   : > { %v1572_v5 = vld [vmem:[#allocation6 + $0x248] sm:$0xff]  ;;  %v1581_v6 = vld [vmem:[#allocation6 + $0x290] sm:$0xff]  ;;  %614 = vst.msk [vmem:[#allocation2 + $0xe8] sm:$0xff] %vm439_vm0, %v581_v2  ;;  %615 = vst.msk [vmem:[#allocation2 + $0xf0] sm:$0xff] %vm439_vm0, %v582_v3 }
 0x123   : > { %v1555_v8 = vld [vmem:[#allocation6 + $0x1c0] sm:$0xff]  ;;  %v1564_v9 = vld [vmem:[#allocation6 + $0x208] sm:$0xff]  ;;  %v1824_v10 = vpack.c.bf16 %v1581_v6, %v1572_v5  ;;  %v1574_v12 = vld [vmem:[#allocation6 + $0x258] sm:$0xff] }
 0x124   : > { %2717 = vmatmul.mubr.bf16.gmra.mrb[8].mxu1 %v1807_v1  ;;  %v10555_v11 = vld [vmem:[%s14265_s1 + $0x158] sm:$0xff]   ;;  %v1583_v13 = vld [vmem:[#allocation6 + $0x2a0] sm:$0xff]  ;;  %v1816_v23 = vpack.c.bf16 %v1564_v9, %v1555_v8  ;;  %v585_v37 = vld [vmem:[%s11663_s30 + $0x80] sm:$0xff] }
 0x125   : > { %2724 = vmatprep.mubr.bf16.mxu1 %v1817_v4  ;;  %v1571_v14 = vld [vmem:[#allocation6 + $0x240] sm:$0xff]  ;;  %v1580_v15 = vld [vmem:[#allocation6 + $0x288] sm:$0xff]  ;;  %v1590_v17 = vld [vmem:[#allocation6 + $0x2d8] sm:$0xff]  ;;  %9755 = vmatprep.subr.bf16.mxu0 %v10555_v11  ;;  %v1826_v27 = vpack.c.bf16 %v1583_v13, %v1574_v12  ;;  %618 = vst.msk [vmem:[#allocation2 + $0x128] sm:$0xff] %vm439_vm0, %v585_v37 }
 0x126   : > { %v1599_v18 = vld [vmem:[#allocation6 + $0x320] sm:$0xff]  ;;  %v10556_v28 = vld [vmem:[%s14265_s1 + $0x118] sm:$0xff]   ;;  %v1823_v30 = vpack.c.bf16 %v1580_v15, %v1571_v14  ;;  %v586_v38 = vld [vmem:[%s11663_s30 + $0x88] sm:$0xff] }
 0x127   : > { %v1124_v16 = vld [vmem:[#allocation2 + $0xc7] sm:$0xff]  ;;  %2564 = vmatmul.mubr.bf16.gmra.mrb[12].mxu0 %v1814_v7  ;;  %v1125_v19 = vld [vmem:[#allocation2 + $0xcf] sm:$0xff]  ;;  %v584_v33 = vld [vmem:[%s11663_s30 + $0x78] sm:$0xff]  ;;  %v1833_v34 = vpack.c.bf16 %v1599_v18, %v1590_v17  ;;  %619 = vst.msk [vmem:[#allocation2 + $0x130] sm:$0xff] %vm439_vm0, %v586_v38 }
 0x128   : > { %1156 = vst.msk [vmem:[#allocation6 + $0x2e8] sm:$0xff] %vm439_vm0, %v1124_v16  ;;  %966 = vst.msk [vmem:[#allocation6 + $0x360] sm:$0xff] %vm439_vm0, %v1124_v16  ;;  %2571 = vmatprep.mubr.bf16.mxu0 %v1824_v10  ;;  %v998_v20 = vld [vmem:[#allocation2 + $0xc8] sm:$0xff]  ;;  %v999_v21 = vld [vmem:[#allocation2 + $0xd0] sm:$0xff]  ;;  %9756 = vmatpush3.bf16.msra.mxu0 %v10556_v28 }
 0x129   : > { %1157 = vst.msk [vmem:[#allocation6 + $0x330] sm:$0xff] %vm439_vm0, %v1125_v19  ;;  %967 = vst.msk [vmem:[#allocation6 + $0x3a8] sm:$0xff] %vm439_vm0, %v1125_v19  ;;  %v1062_v22 = vld [vmem:[#allocation2 + $0xc9] sm:$0xff]  ;;  %v1063_v26 = vld [vmem:[#allocation2 + $0xd1] sm:$0xff] }
 0x12a   : > { %1030 = vst.msk [vmem:[#allocation6 + $0x368] sm:$0xff] %vm439_vm0, %v998_v20  ;;  %1031 = vst.msk [vmem:[#allocation6 + $0x3b0] sm:$0xff] %vm439_vm0, %v999_v21  ;;  %v1126_v24 = vld [vmem:[#allocation2 + $0xe7] sm:$0xff]  ;;  %v1127_v25 = vld [vmem:[#allocation2 + $0xef] sm:$0xff] }
 0x12b   : > { %1094 = vst.msk [vmem:[#allocation6 + $0x370] sm:$0xff] %vm439_vm0, %v1062_v22  ;;  %1158 = vst.msk [vmem:[#allocation6 + $0x378] sm:$0xff] %vm439_vm0, %v1126_v24  ;;  %v1000_v29 = vld [vmem:[#allocation2 + $0xe8] sm:$0xff]  ;;  %v1001_v31 = vld [vmem:[#allocation2 + $0xf0] sm:$0xff] }
 0x12c   : > { %1159 = vst.msk [vmem:[#allocation6 + $0x3c0] sm:$0xff] %vm439_vm0, %v1127_v25  ;;  %1095 = vst.msk [vmem:[#allocation6 + $0x3b8] sm:$0xff] %vm439_vm0, %v1063_v26  ;;  %v583_v32 = vld [vmem:[%s11663_s30 + $0x70] sm:$0xff]  ;;  %2725 = vmatmul.mubr.bf16.gmra.mrb[12].mxu1 %v1816_v23  ;;  %v1573_v39 = vld [vmem:[#allocation6 + $0x250] sm:$0xff] }
 0x12d   : > { %968 = vst.msk [vmem:[#allocation6 + $0x3f0] sm:$0xff] %vm439_vm0, %v1126_v24  ;;  %969 = vst.msk [vmem:[#allocation6 + $0x438] sm:$0xff] %vm439_vm0, %v1127_v25  ;;  %v1064_v35 = vld [vmem:[#allocation2 + $0xe9] sm:$0xff]  ;;  %v1065_v36 = vld [vmem:[#allocation2 + $0xf1] sm:$0xff]  ;;  %2732 = vmatprep.mubr.bf16.mxu1 %v1826_v27 }
 0x12e   : > { %1032 = vst.msk [vmem:[#allocation6 + $0x3f8] sm:$0xff] %vm439_vm0, %v1000_v29  ;;  %1033 = vst.msk [vmem:[#allocation6 + $0x440] sm:$0xff] %vm439_vm0, %v1001_v31  ;;  %v1582_v40 = vld [vmem:[#allocation6 + $0x298] sm:$0xff]  ;;  %v10557_v41 = vld [vmem:[%s14265_s1 + $0x160] sm:$0xff]  }
 0x12f   : > { %616 = vst.msk [vmem:[#allocation2 + $0x108] sm:$0xff] %vm439_vm0, %v583_v32  ;;  %617 = vst.msk [vmem:[#allocation2 + $0x110] sm:$0xff] %vm439_vm0, %v584_v33  ;;  %2572 = vmatmul.mubr.bf16.gmra.mrb[16].mxu0 %v1823_v30  ;;  %v1592_v42 = vld [vmem:[#allocation6 + $0x2e8] sm:$0xff]  ;;  %v1589_v44 = vld [vmem:[#allocation6 + $0x2d0] sm:$0xff]  ;;  %9757 = vmatprep.subr.bf16.mxu0 %v10557_v41  ;;  %v1825_v46 = vpack.c.bf16 %v1582_v40, %v1573_v39 }
 0x130   : > { %1096 = vst.msk [vmem:[#allocation6 + $0x400] sm:$0xff] %vm439_vm0, %v1064_v35  ;;  %1097 = vst.msk [vmem:[#allocation6 + $0x448] sm:$0xff] %vm439_vm0, %v1065_v36  ;;  %v1601_v43 = vld [vmem:[#allocation6 + $0x330] sm:$0xff]  ;;  %2579 = vmatprep.mubr.bf16.mxu0 %v1833_v34  ;;  %v1598_v45 = vld [vmem:[#allocation6 + $0x318] sm:$0xff] }
 0x131   : > { %v1608_v47 = vld [vmem:[#allocation6 + $0x368] sm:$0xff]  ;;  %v1617_v48 = vld [vmem:[#allocation6 + $0x3b0] sm:$0xff]  ;;  %v1835_v49 = vpack.c.bf16 %v1601_v43, %v1592_v42  ;;  %v1832_v50 = vpack.c.bf16 %v1598_v45, %v1589_v44  ;;  %v1591_v53 = vld [vmem:[#allocation6 + $0x2e0] sm:$0xff] }
 0x132   : > { %v1600_v54 = vld [vmem:[#allocation6 + $0x328] sm:$0xff]  ;;  %v1842_v55 = vpack.c.bf16 %v1617_v48, %v1608_v47  ;;  %v1610_v57 = vld [vmem:[#allocation6 + $0x378] sm:$0xff]  ;;  %v1607_v62 = vld [vmem:[#allocation6 + $0x360] sm:$0xff] }
 0x133   : > { %v1619_v58 = vld [vmem:[#allocation6 + $0x3c0] sm:$0xff]  ;;  %v1130_v60 = vld [vmem:[#allocation2 + $0x127] sm:$0xff]  ;;  %v1616_v63 = vld [vmem:[#allocation6 + $0x3a8] sm:$0xff]  ;;  %v1834_v6 = vpack.c.bf16 %v1600_v54, %v1591_v53 }
 0x134   : > { %2733 = vmatmul.mubr.bf16.gmra.mrb[16].mxu1 %v1825_v46  ;;  %v1131_v61 = vld [vmem:[#allocation2 + $0x12f] sm:$0xff]  ;;  %1162 = vst.msk [vmem:[#allocation6 + $0x498] sm:$0xff] %vm439_vm0, %v1130_v60  ;;  %972 = vst.msk [vmem:[#allocation6 + $0x510] sm:$0xff] %vm439_vm0, %v1130_v60  ;;  %v10558_v4 = vld [vmem:[%s14265_s1 + $0x120] sm:$0xff]   ;;  %v1844_v10 = vpack.c.bf16 %v1619_v58, %v1610_v57  ;;  %v1841_v14 = vpack.c.bf16 %v1616_v63, %v1607_v62 }
 0x135   : > { %2740 = vmatprep.mubr.bf16.mxu1 %v1835_v49  ;;  %1163 = vst.msk [vmem:[#allocation6 + $0x4e0] sm:$0xff] %vm439_vm0, %v1131_v61  ;;  %973 = vst.msk [vmem:[#allocation6 + $0x558] sm:$0xff] %vm439_vm0, %v1131_v61  ;;  %v1626_v2 = vld [vmem:[#allocation6 + $0x3f8] sm:$0xff]  ;;  %v1635_v3 = vld [vmem:[#allocation6 + $0x440] sm:$0xff]  ;;  %9758 = vmatpush3.bf16.msra.mxu0 %v10558_v4 }
 0x136   : > { %v1128_v51 = vld [vmem:[#allocation2 + $0x107] sm:$0xff]  ;;  %v1129_v52 = vld [vmem:[#allocation2 + $0x10f] sm:$0xff]  ;;  %v588_v12 = vld [vmem:[%s11663_s30 + $0x98] sm:$0xff]  ;;  %v1851_v15 = vpack.c.bf16 %v1635_v3, %v1626_v2 }
 0x137   : > { %1160 = vst.msk [vmem:[#allocation6 + $0x408] sm:$0xff] %vm439_vm0, %v1128_v51  ;;  %1161 = vst.msk [vmem:[#allocation6 + $0x450] sm:$0xff] %vm439_vm0, %v1129_v52  ;;  %v1002_v56 = vld [vmem:[#allocation2 + $0x108] sm:$0xff]  ;;  %v1003_v59 = vld [vmem:[#allocation2 + $0x110] sm:$0xff]  ;;  %2580 = vmatmul.mubr.bf16.gmra.mrb[20].mxu0 %v1832_v50 }
 0x138   : > { %970 = vst.msk [vmem:[#allocation6 + $0x480] sm:$0xff] %vm439_vm0, %v1128_v51  ;;  %971 = vst.msk [vmem:[#allocation6 + $0x4c8] sm:$0xff] %vm439_vm0, %v1129_v52  ;;  %v1066_v0 = vld [vmem:[#allocation2 + $0x109] sm:$0xff]  ;;  %v1067_v1 = vld [vmem:[#allocation2 + $0x111] sm:$0xff]  ;;  %2587 = vmatprep.mubr.bf16.mxu0 %v1842_v55 }
 0x139   : > { %1034 = vst.msk [vmem:[#allocation6 + $0x488] sm:$0xff] %vm439_vm0, %v1002_v56  ;;  %1035 = vst.msk [vmem:[#allocation6 + $0x4d0] sm:$0xff] %vm439_vm0, %v1003_v59  ;;  %v10559_v5 = vld [vmem:[%s14265_s1 + $0x1c0] sm:$0xff]   ;;  %v1004_v8 = vld [vmem:[#allocation2 + $0x128] sm:$0xff] }
 0x13a   : > { %1098 = vst.msk [vmem:[#allocation6 + $0x490] sm:$0xff] %vm439_vm0, %v1066_v0  ;;  %1099 = vst.msk [vmem:[#allocation6 + $0x4d8] sm:$0xff] %vm439_vm0, %v1067_v1  ;;  %v10560_v7 = vld [vmem:[%s14265_s1 + $0x180] sm:$0xff]   ;;  %v1005_v9 = vld [vmem:[#allocation2 + $0x130] sm:$0xff]  ;;  %9861 = vmatprep.subr.bf16.mxu1 %v10559_v5 }
 0x13b   : > { %1036 = vst.msk [vmem:[#allocation6 + $0x518] sm:$0xff] %vm439_vm0, %v1004_v8  ;;  %1037 = vst.msk [vmem:[#allocation6 + $0x560] sm:$0xff] %vm439_vm0, %v1005_v9  ;;  %v587_v11 = vld [vmem:[%s11663_s30 + $0x90] sm:$0xff]  ;;  %9862 = vmatpush3.bf16.msra.mxu1 %v10560_v7  ;;  %v1609_v17 = vld [vmem:[#allocation6 + $0x370] sm:$0xff] }
 0x13c   : > { %v1068_v13 = vld [vmem:[#allocation2 + $0x129] sm:$0xff]  ;;  %620 = vst.msk [vmem:[#allocation2 + $0x148] sm:$0xff] %vm439_vm0, %v587_v11  ;;  %621 = vst.msk [vmem:[#allocation2 + $0x150] sm:$0xff] %vm439_vm0, %v588_v12  ;;  %v1069_v16 = vld [vmem:[#allocation2 + $0x131] sm:$0xff]  ;;  %2741 = vmatmul.mubr.bf16.gmra.mrb[20].mxu1 %v1834_v6 }
 0x13d   : > { %1100 = vst.msk [vmem:[#allocation6 + $0x520] sm:$0xff] %vm439_vm0, %v1068_v13  ;;  %v1618_v18 = vld [vmem:[#allocation6 + $0x3b8] sm:$0xff]  ;;  %1101 = vst.msk [vmem:[#allocation6 + $0x568] sm:$0xff] %vm439_vm0, %v1069_v16  ;;  %2748 = vmatprep.mubr.bf16.mxu1 %v1844_v10  ;;  %v1625_v20 = vld [vmem:[#allocation6 + $0x3f0] sm:$0xff] }
 0x13e   : > { %v1628_v19 = vld [vmem:[#allocation6 + $0x408] sm:$0xff]  ;;  %v1634_v21 = vld [vmem:[#allocation6 + $0x438] sm:$0xff]  ;;  %v1637_v22 = vld [vmem:[#allocation6 + $0x450] sm:$0xff]  ;;  %v1843_v26 = vpack.c.bf16 %v1618_v18, %v1609_v17 }
 0x13f   : > { %2588 = vmatmul.mubr.bf16.gmra.mrb[24].mxu0 %v1841_v14  ;;  %v589_v23 = vld [vmem:[%s11663_s30 + $0xa0] sm:$0xff]  ;;  %v590_v24 = vld [vmem:[%s11663_s30 + $0xa8] sm:$0xff]  ;;  %v1853_v29 = vpack.c.bf16 %v1637_v22, %v1628_v19  ;;  %v1850_v32 = vpack.c.bf16 %v1634_v21, %v1625_v20  ;;  %v1627_v36 = vld [vmem:[#allocation6 + $0x400] sm:$0xff] }
 0x140   : > { %2595 = vmatprep.mubr.bf16.mxu0 %v1851_v15  ;;  %622 = vst.msk [vmem:[#allocation2 + $0x168] sm:$0xff] %vm439_vm0, %v589_v23  ;;  %623 = vst.msk [vmem:[#allocation2 + $0x170] sm:$0xff] %vm439_vm0, %v590_v24  ;;  %v10561_v25 = vld [vmem:[%s14265_s1 + $0x168] sm:$0xff]   ;;  %v1644_v27 = vld [vmem:[#allocation6 + $0x488] sm:$0xff] }
 0x141   : > { %v1653_v28 = vld [vmem:[#allocation6 + $0x4d0] sm:$0xff]  ;;  %9759 = vmatprep.subr.bf16.mxu0 %v10561_v25  ;;  %v1636_v37 = vld [vmem:[#allocation6 + $0x448] sm:$0xff]  ;;  %v1646_v40 = vld [vmem:[#allocation6 + $0x498] sm:$0xff] }
 0x142   : > { %v1860_v38 = vpack.c.bf16 %v1653_v28, %v1644_v27  ;;  %v1655_v41 = vld [vmem:[#allocation6 + $0x4e0] sm:$0xff]  ;;  %v10562_v42 = vld [vmem:[%s14265_s1 + $0x128] sm:$0xff]   ;;  %v1652_v44 = vld [vmem:[#allocation6 + $0x4c8] sm:$0xff]  ;;  %v1852_v54 = vpack.c.bf16 %v1636_v37, %v1627_v36 }
 0x143   : > { %v1132_v30 = vld [vmem:[#allocation2 + $0x147] sm:$0xff]  ;;  %v1133_v31 = vld [vmem:[#allocation2 + $0x14f] sm:$0xff]  ;;  %9760 = vmatpush3.bf16.msra.mxu0 %v10562_v42  ;;  %v592_v55 = vld [vmem:[%s11663_s30 + $0xb8] sm:$0xff]  ;;  %v1862_v58 = vpack.c.bf16 %v1655_v41, %v1646_v40 }
 0x144   : > { %1164 = vst.msk [vmem:[#allocation6 + $0x528] sm:$0xff] %vm439_vm0, %v1132_v30  ;;  %1165 = vst.msk [vmem:[#allocation6 + $0x570] sm:$0xff] %vm439_vm0, %v1133_v31  ;;  %v1006_v33 = vld [vmem:[#allocation2 + $0x148] sm:$0xff]  ;;  %v1007_v34 = vld [vmem:[#allocation2 + $0x150] sm:$0xff]  ;;  %2749 = vmatmul.mubr.bf16.gmra.mrb[24].mxu1 %v1843_v26 }
 0x145   : > { %974 = vst.msk [vmem:[#allocation6 + $0x5a0] sm:$0xff] %vm439_vm0, %v1132_v30  ;;  %975 = vst.msk [vmem:[#allocation6 + $0x5e8] sm:$0xff] %vm439_vm0, %v1133_v31  ;;  %v1070_v35 = vld [vmem:[#allocation2 + $0x149] sm:$0xff]  ;;  %v1071_v39 = vld [vmem:[#allocation2 + $0x151] sm:$0xff]  ;;  %2756 = vmatprep.mubr.bf16.mxu1 %v1853_v29 }
 0x146   : > { %1038 = vst.msk [vmem:[#allocation6 + $0x5a8] sm:$0xff] %vm439_vm0, %v1006_v33  ;;  %1039 = vst.msk [vmem:[#allocation6 + $0x5f0] sm:$0xff] %vm439_vm0, %v1007_v34  ;;  %v1643_v43 = vld [vmem:[#allocation6 + $0x480] sm:$0xff]  ;;  %v10563_v45 = vld [vmem:[%s14265_s1 + $0x1c8] sm:$0xff]  }
 0x147   : > { %1102 = vst.msk [vmem:[#allocation6 + $0x5b0] sm:$0xff] %vm439_vm0, %v1070_v35  ;;  %1103 = vst.msk [vmem:[#allocation6 + $0x5f8] sm:$0xff] %vm439_vm0, %v1071_v39  ;;  %2596 = vmatmul.mubr.bf16.gmra.mrb[28].mxu0 %v1850_v32  ;;  %v1662_v46 = vld [vmem:[#allocation6 + $0x518] sm:$0xff]  ;;  %v1671_v47 = vld [vmem:[#allocation6 + $0x560] sm:$0xff]  ;;  %9863 = vmatprep.subr.bf16.mxu1 %v10563_v45  ;;  %v1859_v59 = vpack.c.bf16 %v1652_v44, %v1643_v43 }
 0x148   : > { %v1134_v48 = vld [vmem:[#allocation2 + $0x167] sm:$0xff]  ;;  %v1135_v49 = vld [vmem:[#allocation2 + $0x16f] sm:$0xff]  ;;  %2603 = vmatprep.mubr.bf16.mxu0 %v1860_v38  ;;  %625 = vst.msk [vmem:[#allocation2 + $0x190] sm:$0xff] %vm439_vm0, %v592_v55  ;;  %v1869_v62 = vpack.c.bf16 %v1671_v47, %v1662_v46  ;;  %v1672_v19 = vld [vmem:[#allocation6 + $0x568] sm:$0xff] }
 0x149   : > { %v10564_v50 = vld [vmem:[%s14265_s1 + $0x188] sm:$0xff]   ;;  %1166 = vst.msk [vmem:[#allocation6 + $0x5b8] sm:$0xff] %vm439_vm0, %v1134_v48  ;;  %1167 = vst.msk [vmem:[#allocation6 + $0x600] sm:$0xff] %vm439_vm0, %v1135_v49  ;;  %v1009_v52 = vld [vmem:[#allocation2 + $0x170] sm:$0xff] }
 0x14a   : > { %v1008_v51 = vld [vmem:[#allocation2 + $0x168] sm:$0xff]  ;;  %v591_v53 = vld [vmem:[%s11663_s30 + $0xb0] sm:$0xff]  ;;  %976 = vst.msk [vmem:[#allocation6 + $0x630] sm:$0xff] %vm439_vm0, %v1134_v48  ;;  %977 = vst.msk [vmem:[#allocation6 + $0x678] sm:$0xff] %vm439_vm0, %v1135_v49  ;;  %9864 = vmatpush3.bf16.msra.mxu1 %v10564_v50 }
 0x14b   : > { %1040 = vst.msk [vmem:[#allocation6 + $0x638] sm:$0xff] %vm439_vm0, %v1008_v51  ;;  %1041 = vst.msk [vmem:[#allocation6 + $0x680] sm:$0xff] %vm439_vm0, %v1009_v52  ;;  %v1072_v56 = vld [vmem:[#allocation2 + $0x169] sm:$0xff]  ;;  %v1073_v57 = vld [vmem:[#allocation2 + $0x171] sm:$0xff] }
 0x14c   : > { %624 = vst.msk [vmem:[#allocation2 + $0x188] sm:$0xff] %vm439_vm0, %v591_v53  ;;  %1104 = vst.msk [vmem:[#allocation6 + $0x640] sm:$0xff] %vm439_vm0, %v1072_v56  ;;  %v1645_v60 = vld [vmem:[#allocation6 + $0x490] sm:$0xff]  ;;  %v1654_v61 = vld [vmem:[#allocation6 + $0x4d8] sm:$0xff]  ;;  %2757 = vmatmul.mubr.bf16.gmra.mrb[28].mxu1 %v1852_v54 }
 0x14d   : > { %1105 = vst.msk [vmem:[#allocation6 + $0x688] sm:$0xff] %vm439_vm0, %v1073_v57  ;;  %v593_v63 = vld [vmem:[%s11663_s30 + $0xc0] sm:$0xff]  ;;  %v594_v0 = vld [vmem:[%s11663_s30 + $0xc8] sm:$0xff]  ;;  %2764 = vmatprep.mubr.bf16.mxu1 %v1862_v58  ;;  %v10565_v1 = vld [vmem:[%s14265_s1 + $0x170] sm:$0xff]   ;;  %v1861_v7 = vpack.c.bf16 %v1654_v61, %v1645_v60 }
 0x14e   : > { %626 = vst.msk [vmem:[#allocation2 + $0x1a8] sm:$0xff] %vm439_vm0, %v593_v63  ;;  %627 = vst.msk [vmem:[#allocation2 + $0x1b0] sm:$0xff] %vm439_vm0, %v594_v0  ;;  %v1664_v2 = vld [vmem:[#allocation6 + $0x528] sm:$0xff]  ;;  %v1673_v3 = vld [vmem:[#allocation6 + $0x570] sm:$0xff]  ;;  %9761 = vmatprep.subr.bf16.mxu0 %v10565_v1 }
 0x14f   : > { %2604 = vmatmul.mubr.bf16.gmra.mrb[32].mxu0 %v1859_v59  ;;  %v1661_v4 = vld [vmem:[#allocation6 + $0x510] sm:$0xff]  ;;  %v1670_v5 = vld [vmem:[#allocation6 + $0x558] sm:$0xff]  ;;  %v1680_v8 = vld [vmem:[#allocation6 + $0x5a8] sm:$0xff]  ;;  %v1871_v11 = vpack.c.bf16 %v1673_v3, %v1664_v2 }
 0x150   : > { %2611 = vmatprep.mubr.bf16.mxu0 %v1869_v62  ;;  %v1689_v9 = vld [vmem:[#allocation6 + $0x5f0] sm:$0xff]  ;;  %v1011_v13 = vld [vmem:[#allocation2 + $0x190] sm:$0xff]  ;;  %v1868_v14 = vpack.c.bf16 %v1670_v5, %v1661_v4  ;;  %v1682_v22 = vld [vmem:[#allocation6 + $0x5b8] sm:$0xff] }
 0x151   : > { %1043 = vst.msk [vmem:[#allocation6 + $0x710] sm:$0xff] %vm439_vm0, %v1011_v13  ;;  %v1075_v16 = vld [vmem:[#allocation2 + $0x191] sm:$0xff]  ;;  %v1878_v20 = vpack.c.bf16 %v1689_v9, %v1680_v8  ;;  %v1681_v42 = vld [vmem:[#allocation6 + $0x5b0] sm:$0xff]  ;;  %v1690_v43 = vld [vmem:[#allocation6 + $0x5f8] sm:$0xff] }
 0x152   : > { %v10566_v17 = vld [vmem:[%s14265_s1 + $0x130] sm:$0xff]   ;;  %1107 = vst.msk [vmem:[#allocation6 + $0x718] sm:$0xff] %vm439_vm0, %v1075_v16  ;;  %v596_v30 = vld [vmem:[%s11663_s30 + $0xd8] sm:$0xff]  ;;  %v1698_v35 = vld [vmem:[#allocation6 + $0x638] sm:$0xff]  ;;  %v1879_v55 = vpack.c.bf16 %v1690_v43, %v1681_v42 }
 0x153   : > { %v1136_v6 = vld [vmem:[#allocation2 + $0x187] sm:$0xff]  ;;  %v1137_v10 = vld [vmem:[#allocation2 + $0x18f] sm:$0xff]  ;;  %9762 = vmatpush3.bf16.msra.mxu0 %v10566_v17  ;;  %v1688_v32 = vld [vmem:[#allocation6 + $0x5e8] sm:$0xff]  ;;  %629 = vst.msk [vmem:[#allocation2 + $0x1d0] sm:$0xff] %vm439_vm0, %v596_v30 }
 0x154   : > { %1168 = vst.msk [vmem:[#allocation6 + $0x648] sm:$0xff] %vm439_vm0, %v1136_v6  ;;  %978 = vst.msk [vmem:[#allocation6 + $0x6c0] sm:$0xff] %vm439_vm0, %v1136_v6  ;;  %v1010_v12 = vld [vmem:[#allocation2 + $0x188] sm:$0xff]  ;;  %v1663_v18 = vld [vmem:[#allocation6 + $0x520] sm:$0xff]  ;;  %2765 = vmatmul.mubr.bf16.gmra.mrb[32].mxu1 %v1861_v7 }
 0x155   : > { %1169 = vst.msk [vmem:[#allocation6 + $0x690] sm:$0xff] %vm439_vm0, %v1137_v10  ;;  %979 = vst.msk [vmem:[#allocation6 + $0x708] sm:$0xff] %vm439_vm0, %v1137_v10  ;;  %v1074_v15 = vld [vmem:[#allocation2 + $0x189] sm:$0xff]  ;;  %2772 = vmatprep.mubr.bf16.mxu1 %v1871_v11  ;;  %v1870_v34 = vpack.c.bf16 %v1672_v19, %v1663_v18  ;;  %v1077_v37 = vld [vmem:[#allocation2 + $0x1b1] sm:$0xff] }
 0x156   : > { %1042 = vst.msk [vmem:[#allocation6 + $0x6c8] sm:$0xff] %vm439_vm0, %v1010_v12  ;;  %v1138_v21 = vld [vmem:[#allocation2 + $0x1a7] sm:$0xff]  ;;  %1106 = vst.msk [vmem:[#allocation6 + $0x6d0] sm:$0xff] %vm439_vm0, %v1074_v15  ;;  %v1691_v23 = vld [vmem:[#allocation6 + $0x600] sm:$0xff] }
 0x157   : > { %v1139_v24 = vld [vmem:[#allocation2 + $0x1af] sm:$0xff]  ;;  %1170 = vst.msk [vmem:[#allocation6 + $0x6d8] sm:$0xff] %vm439_vm0, %v1138_v21  ;;  %980 = vst.msk [vmem:[#allocation6 + $0x750] sm:$0xff] %vm439_vm0, %v1138_v21  ;;  %2612 = vmatmul.mubr.bf16.gmra.mrb[36].mxu0 %v1868_v14  ;;  %v1880_v38 = vpack.c.bf16 %v1691_v23, %v1682_v22  ;;  %v10569_v41 = vld [vmem:[%s14265_s1 + $0x1d8] sm:$0xff]  }
 0x158   : > { %v10567_v25 = vld [vmem:[%s14265_s1 + $0x1d0] sm:$0xff]   ;;  %1171 = vst.msk [vmem:[#allocation6 + $0x720] sm:$0xff] %vm439_vm0, %v1139_v24  ;;  %v1012_v27 = vld [vmem:[#allocation2 + $0x1a8] sm:$0xff]  ;;  %981 = vst.msk [vmem:[#allocation6 + $0x798] sm:$0xff] %vm439_vm0, %v1139_v24  ;;  %2619 = vmatprep.mubr.bf16.mxu0 %v1878_v20 }
 0x159   : > { %v10568_v26 = vld [vmem:[%s14265_s1 + $0x190] sm:$0xff]   ;;  %9865 = vmatprep.subr.bf16.mxu1 %v10567_v25  ;;  %1044 = vst.msk [vmem:[#allocation6 + $0x758] sm:$0xff] %vm439_vm0, %v1012_v27  ;;  %1109 = vst.msk [vmem:[#allocation6 + $0x7a8] sm:$0xff] %vm439_vm0, %v1077_v37  ;;  %v597_v44 = vld [vmem:[%s11663_s30 + $0xe0] sm:$0xff] }
 0x15a   : > { %v1013_v28 = vld [vmem:[#allocation2 + $0x1b0] sm:$0xff]  ;;  %9866 = vmatpush3.bf16.msra.mxu1 %v10568_v26  ;;  %v1697_v46 = vld [vmem:[#allocation6 + $0x630] sm:$0xff]  ;;  %v1706_v47 = vld [vmem:[#allocation6 + $0x678] sm:$0xff]  ;;  %630 = vst.msk [vmem:[#allocation2 + $0x1e8] sm:$0xff] %vm439_vm0, %v597_v44 }
 0x15b   : > { %v595_v29 = vld [vmem:[%s11663_s30 + $0xd0] sm:$0xff]  ;;  %1045 = vst.msk [vmem:[#allocation6 + $0x7a0] sm:$0xff] %vm439_vm0, %v1013_v28  ;;  %v1700_v45 = vld [vmem:[#allocation6 + $0x648] sm:$0xff]  ;;  %9867 = vmatprep.subr.bf16.mxu1 %v10569_v41  ;;  %v598_v48 = vld [vmem:[%s11663_s30 + $0xe8] sm:$0xff]  ;;  %v1886_v61 = vpack.c.bf16 %v1706_v47, %v1697_v46 }
 0x15c   : > { %v1679_v31 = vld [vmem:[#allocation6 + $0x5a0] sm:$0xff]  ;;  %628 = vst.msk [vmem:[#allocation2 + $0x1c8] sm:$0xff] %vm439_vm0, %v595_v29  ;;  %2773 = vmatmul.mubr.bf16.gmra.mrb[36].mxu1 %v1870_v34  ;;  %v1709_v49 = vld [vmem:[#allocation6 + $0x690] sm:$0xff]  ;;  %631 = vst.msk [vmem:[#allocation2 + $0x1f0] sm:$0xff] %vm439_vm0, %v598_v48 }
 0x15d   : > { %v1076_v33 = vld [vmem:[#allocation2 + $0x1a9] sm:$0xff]  ;;  %v1877_v39 = vpack.c.bf16 %v1688_v32, %v1679_v31  ;;  %2780 = vmatprep.mubr.bf16.mxu1 %v1880_v38  ;;  %v1716_v52 = vld [vmem:[#allocation6 + $0x6c8] sm:$0xff]  ;;  %v1725_v56 = vld [vmem:[#allocation6 + $0x710] sm:$0xff]  ;;  %v1889_v58 = vpack.c.bf16 %v1709_v49, %v1700_v45 }
 0x15e   : > { %v1707_v36 = vld [vmem:[#allocation6 + $0x680] sm:$0xff]  ;;  %1108 = vst.msk [vmem:[#allocation6 + $0x760] sm:$0xff] %vm439_vm0, %v1076_v33  ;;  %v10570_v57 = vld [vmem:[%s14265_s1 + $0x198] sm:$0xff]   ;;  %v1896_v1 = vpack.c.bf16 %v1725_v56, %v1716_v52  ;;  %v10573_v4 = vld [vmem:[%s14265_s1 + $0x1e0] sm:$0xff]  }
 0x15f   : > { %v1887_v40 = vpack.c.bf16 %v1707_v36, %v1698_v35  ;;  %2620 = vmatmul.mubr.bf16.gmra.mrb[40].mxu0 %v1877_v39  ;;  %v1015_v54 = vld [vmem:[#allocation2 + $0x1d0] sm:$0xff]  ;;  %9868 = vmatpush3.bf16.msra.mxu1 %v10570_v57  ;;  %v10571_v62 = vld [vmem:[%s14265_s1 + $0x178] sm:$0xff]   ;;  %v1718_v6 = vld [vmem:[#allocation6 + $0x6d8] sm:$0xff] }
 0x160   : > { %1047 = vst.msk [vmem:[#allocation6 + $0x830] sm:$0xff] %vm439_vm0, %v1015_v54  ;;  %v1079_v60 = vld [vmem:[#allocation2 + $0x1d1] sm:$0xff]  ;;  %9763 = vmatprep.subr.bf16.mxu0 %v10571_v62  ;;  %9869 = vmatprep.subr.bf16.mxu1 %v10573_v4  ;;  %v1734_v10 = vld [vmem:[#allocation6 + $0x758] sm:$0xff]  ;;  %v10574_v13 = vld [vmem:[%s14265_s1 + $0x1a0] sm:$0xff]  }
 0x161   : > { %2627 = vmatprep.mubr.bf16.mxu0 %v1887_v40  ;;  %1111 = vst.msk [vmem:[#allocation6 + $0x838] sm:$0xff] %vm439_vm0, %v1079_v60  ;;  %v1699_v63 = vld [vmem:[#allocation6 + $0x640] sm:$0xff]  ;;  %v1708_v0 = vld [vmem:[#allocation6 + $0x688] sm:$0xff]  ;;  %v1142_v3 = vld [vmem:[#allocation2 + $0x1e7] sm:$0xff] }
 0x162   : > { %v10572_v2 = vld [vmem:[%s14265_s1 + $0x138] sm:$0xff]   ;;  %1174 = vst.msk [vmem:[#allocation6 + $0x7f8] sm:$0xff] %vm439_vm0, %v1142_v3  ;;  %984 = vst.msk [vmem:[#allocation6 + $0x870] sm:$0xff] %vm439_vm0, %v1142_v3  ;;  %v1727_v7 = vld [vmem:[#allocation6 + $0x720] sm:$0xff]  ;;  %v1888_v12 = vpack.c.bf16 %v1708_v0, %v1699_v63 }
 0x163   : > { %v1140_v50 = vld [vmem:[#allocation2 + $0x1c7] sm:$0xff]  ;;  %v1141_v51 = vld [vmem:[#allocation2 + $0x1cf] sm:$0xff]  ;;  %9764 = vmatpush3.bf16.msra.mxu0 %v10572_v2  ;;  %v1724_v9 = vld [vmem:[#allocation6 + $0x708] sm:$0xff]  ;;  %v1898_v14 = vpack.c.bf16 %v1727_v7, %v1718_v6  ;;  %9870 = vmatpush3.bf16.msra.mxu1 %v10574_v13 }
 0x164   : > { %1172 = vst.msk [vmem:[#allocation6 + $0x768] sm:$0xff] %vm439_vm0, %v1140_v50  ;;  %1173 = vst.msk [vmem:[#allocation6 + $0x7b0] sm:$0xff] %vm439_vm0, %v1141_v51  ;;  %v1014_v53 = vld [vmem:[#allocation2 + $0x1c8] sm:$0xff]  ;;  %2781 = vmatmul.mubr.bf16.gmra.mrb[40].mxu1 %v1879_v55  ;;  %v1715_v8 = vld [vmem:[#allocation6 + $0x6c0] sm:$0xff] }
 0x165   : > { %982 = vst.msk [vmem:[#allocation6 + $0x7e0] sm:$0xff] %vm439_vm0, %v1140_v50  ;;  %983 = vst.msk [vmem:[#allocation6 + $0x828] sm:$0xff] %vm439_vm0, %v1141_v51  ;;  %v1078_v59 = vld [vmem:[#allocation2 + $0x1c9] sm:$0xff]  ;;  %2788 = vmatprep.mubr.bf16.mxu1 %v1889_v58  ;;  %v1895_v16 = vpack.c.bf16 %v1724_v9, %v1715_v8  ;;  %v600_v21 = vld [vmem:[%s11663_s30 + $0xf8] sm:$0xff] }
 0x166   : > { %1046 = vst.msk [vmem:[#allocation6 + $0x7e8] sm:$0xff] %vm439_vm0, %v1014_v53  ;;  %1110 = vst.msk [vmem:[#allocation6 + $0x7f0] sm:$0xff] %vm439_vm0, %v1078_v59  ;;  %v1143_v5 = vld [vmem:[#allocation2 + $0x1ef] sm:$0xff]  ;;  %v1717_v22 = vld [vmem:[#allocation6 + $0x6d0] sm:$0xff] }
 0x167   : > { %2628 = vmatmul.mubr.bf16.gmra.mrb[44].mxu0 %v1886_v61  ;;  %1175 = vst.msk [vmem:[#allocation6 + $0x840] sm:$0xff] %vm439_vm0, %v1143_v5  ;;  %985 = vst.msk [vmem:[#allocation6 + $0x8b8] sm:$0xff] %vm439_vm0, %v1143_v5  ;;  %v1743_v11 = vld [vmem:[#allocation6 + $0x7a0] sm:$0xff]  ;;  %v10575_v15 = vld [vmem:[%s14265_s1 + $0x1e8] sm:$0xff]  }
 0x168   : > { %2635 = vmatprep.mubr.bf16.mxu0 %v1896_v1  ;;  %v1016_v17 = vld [vmem:[#allocation2 + $0x1e8] sm:$0xff]  ;;  %v1017_v18 = vld [vmem:[#allocation2 + $0x1f0] sm:$0xff]  ;;  %v1905_v20 = vpack.c.bf16 %v1743_v11, %v1734_v10  ;;  %9871 = vmatprep.subr.bf16.mxu1 %v10575_v15  ;;  %633 = vst.msk [vmem:[#allocation2 + $0x210] sm:$0xff] %vm439_vm0, %v600_v21  ;;  %v1733_v27 = vld [vmem:[#allocation6 + $0x750] sm:$0xff] }
 0x169   : > { %v599_v19 = vld [vmem:[%s11663_s30 + $0xf0] sm:$0xff]  ;;  %1048 = vst.msk [vmem:[#allocation6 + $0x878] sm:$0xff] %vm439_vm0, %v1016_v17  ;;  %1049 = vst.msk [vmem:[#allocation6 + $0x8c0] sm:$0xff] %vm439_vm0, %v1017_v18  ;;  %v1726_v23 = vld [vmem:[#allocation6 + $0x718] sm:$0xff]  ;;  %s10852_s30 = scalar_lea.vmem %s10851_s19, 32 }
 0x16a   : > { %632 = vst.msk [vmem:[#allocation2 + $0x208] sm:$0xff] %vm439_vm0, %v599_v19  ;;  %v10576_v24 = vld [vmem:[%s14265_s1 + $0x1a8] sm:$0xff]   ;;  %v1761_v31 = vld [vmem:[#allocation6 + $0x830] sm:$0xff]  ;;  %v1081_v32 = vld [vmem:[#allocation2 + $0x1f1] sm:$0xff]  ;;  %v1897_v34 = vpack.c.bf16 %v1726_v23, %v1717_v22  ;;  %p10854_p1 = scmp.lt.s32.totalorder %s10852_s30, %s10846_s27 }
 0x16b   : > { %v1736_v25 = vld [vmem:[#allocation6 + $0x768] sm:$0xff]  ;;  %v1745_v26 = vld [vmem:[#allocation6 + $0x7b0] sm:$0xff]  ;;  %v1742_v28 = vld [vmem:[#allocation6 + $0x798] sm:$0xff]  ;;  %9872 = vmatpush3.bf16.msra.mxu1 %v10576_v24  ;;  %1113 = vst.msk [vmem:[#allocation6 + $0x8c8] sm:$0xff] %vm439_vm0, %v1081_v32 }
 0x16c   : > { %2789 = vmatmul.mubr.bf16.gmra.mrb[44].mxu1 %v1888_v12  ;;  %v1080_v29 = vld [vmem:[#allocation2 + $0x1e9] sm:$0xff]  ;;  %v1907_v36 = vpack.c.bf16 %v1745_v26, %v1736_v25  ;;  %v10579_v37 = vld [vmem:[%s14265_s1 + $0x1f8] sm:$0xff]   ;;  %v1904_v40 = vpack.c.bf16 %v1742_v28, %v1733_v27  ;;  %v11966_v55 = vld [vmem:[%s14265_s1 + $0x200] sm:$0xff]   ;;  %p10855_p2 = por %p10854_p1, %p10853_p0 }
 0x16d   : > { %2796 = vmatprep.mubr.bf16.mxu1 %v1898_v14  ;;  %v1752_v30 = vld [vmem:[#allocation6 + $0x7e8] sm:$0xff]  ;;  %1112 = vst.msk [vmem:[#allocation6 + $0x880] sm:$0xff] %vm439_vm0, %v1080_v29  ;;  %v10577_v33 = vld [vmem:[%s14265_s1 + $0x1f0] sm:$0xff]   ;;  %v1754_v46 = vld [vmem:[#allocation6 + $0x7f8] sm:$0xff]  ;;  %10363 = vmatprep.subr.bf16.mxu0 %v11966_v55 }
 0x16e   : > { %v10578_v35 = vld [vmem:[%s14265_s1 + $0x1b0] sm:$0xff]   ;;  %9873 = vmatprep.subr.bf16.mxu1 %v10577_v33  ;;  %v1744_v43 = vld [vmem:[#allocation6 + $0x7a8] sm:$0xff]  ;;  %v1914_v44 = vpack.c.bf16 %v1761_v31, %v1752_v30  ;;  %v1178_v48 = vld [vmem:[#allocation2 + $0x28] sm:$0xff]  ;;  %p10856_p3 = pnand %p10855_p2, %p10849_p13 }
 0x16f   : > { %2636 = vmatmul.mubr.bf16.gmra.mrb[48].mxu0 %v1895_v16  ;;  %v1242_v38 = vld [vmem:[#allocation2 + $0x29] sm:$0xff]  ;;  %v1243_v39 = vld [vmem:[#allocation2 + $0x31] sm:$0xff]  ;;  %9874 = vmatpush3.bf16.msra.mxu1 %v10578_v35  ;;  %1210 = vst.msk [vmem:[#allocation6 + $0x20] sm:$0xff] %vm439_vm0, %v1178_v48  ;;  %v1753_v8 = vld [vmem:[#allocation6 + $0x7f0] sm:$0xff] }
 0x170   : > { %2643 = vmatprep.mubr.bf16.mxu0 %v1905_v20  ;;  %1274 = vst.msk [vmem:[#allocation6 + $0x28] sm:$0xff] %vm439_vm0, %v1242_v38  ;;  %1275 = vst.msk [vmem:[#allocation6 + $0x70] sm:$0xff] %vm439_vm0, %v1243_v39  ;;  %v1735_v42 = vld [vmem:[#allocation6 + $0x760] sm:$0xff]  ;;  %9875 = vmatprep.subr.bf16.mxu1 %v10579_v37  ;;  %v10580_v47 = vld [vmem:[%s14265_s1 + $0x1b8] sm:$0xff]  }
 0x171   : > { %v1144_v41 = vld [vmem:[#allocation2 + $0x207] sm:$0xff]  ;;  %v1145_v45 = vld [vmem:[#allocation2 + $0x20f] sm:$0xff]  ;;  %v1760_v52 = vld [vmem:[#allocation6 + $0x828] sm:$0xff]  ;;  %v1906_v60 = vpack.c.bf16 %v1744_v43, %v1735_v42 }
 0x172   : > { %1176 = vst.msk [vmem:[#allocation6 + $0x888] sm:$0xff] %vm439_vm0, %v1144_v41  ;;  %1177 = vst.msk [vmem:[#allocation6 + $0x8d0] sm:$0xff] %vm439_vm0, %v1145_v45  ;;  %v1179_v49 = vld [vmem:[#allocation2 + $0x30] sm:$0xff]  ;;  %v1770_v53 = vld [vmem:[#allocation6 + $0x878] sm:$0xff] }
 0x173   : > { %v1763_v50 = vld [vmem:[#allocation6 + $0x840] sm:$0xff]  ;;  %1211 = vst.msk [vmem:[#allocation6 + $0x68] sm:$0xff] %vm439_vm0, %v1179_v49  ;;  %9876 = vmatpush3.bf16.msra.mxu1 %v10580_v47  ;;  %v1371_v56 = vld [vmem:[#allocation2 + $0x48] sm:$0xff]  ;;  %v1769_v14 = vld [vmem:[#allocation6 + $0x870] sm:$0xff] }
 0x174   : > { %2797 = vmatmul.mubr.bf16.gmra.mrb[48].mxu1 %v1897_v34  ;;  %v1751_v51 = vld [vmem:[#allocation6 + $0x7e0] sm:$0xff]  ;;  %1403 = vst.msk [vmem:[#allocation6 + $0x38] sm:$0xff] %vm439_vm0, %v1371_v56  ;;  %v1307_v58 = vld [vmem:[#allocation2 + $0x47] sm:$0xff]  ;;  %1212 = vst.msk [vmem:[#allocation6 + $0xb0] sm:$0xff] %vm439_vm0, %v1371_v56  ;;  %v1916_v0 = vpack.c.bf16 %v1763_v50, %v1754_v46 }
 0x175   : > { %2804 = vmatprep.mubr.bf16.mxu1 %v1907_v36  ;;  %v1779_v54 = vld [vmem:[#allocation6 + $0x8c0] sm:$0xff]  ;;  %1339 = vst.msk [vmem:[#allocation6 + $0x30] sm:$0xff] %vm439_vm0, %v1307_v58  ;;  %v1373_v63 = vld [vmem:[#allocation2 + $0x68] sm:$0xff]  ;;  %v1913_v2 = vpack.c.bf16 %v1760_v52, %v1751_v51  ;;  %v1780_v22 = vld [vmem:[#allocation6 + $0x8c8] sm:$0xff] }
 0x176   : > { %v1372_v57 = vld [vmem:[#allocation2 + $0x50] sm:$0xff]  ;;  %1405 = vst.msk [vmem:[#allocation6 + $0xc8] sm:$0xff] %vm439_vm0, %v1373_v63  ;;  %1214 = vst.msk [vmem:[#allocation6 + $0x140] sm:$0xff] %vm439_vm0, %v1373_v63  ;;  %v1309_v3 = vld [vmem:[#allocation2 + $0x67] sm:$0xff]  ;;  %v1923_v5 = vpack.c.bf16 %v1779_v54, %v1770_v53 }
 0x177   : > { %2644 = vmatmul.mubr.bf16.gmra.mrb[52].mxu0 %v1904_v40  ;;  %v1308_v59 = vld [vmem:[#allocation2 + $0x4f] sm:$0xff]  ;;  %1404 = vst.msk [vmem:[#allocation6 + $0x80] sm:$0xff] %vm439_vm0, %v1372_v57  ;;  %1213 = vst.msk [vmem:[#allocation6 + $0xf8] sm:$0xff] %vm439_vm0, %v1372_v57  ;;  %v1504_v17 = vld [vmem:[#allocation6 + $0x28] sm:$0xff] }
 0x178   : > { %2651 = vmatprep.mubr.bf16.mxu0 %v1914_v44  ;;  %1340 = vst.msk [vmem:[#allocation6 + $0x78] sm:$0xff] %vm439_vm0, %v1308_v59  ;;  %v1244_v61 = vld [vmem:[#allocation2 + $0x49] sm:$0xff]  ;;  %v1245_v62 = vld [vmem:[#allocation2 + $0x51] sm:$0xff]  ;;  %1341 = vst.msk [vmem:[#allocation6 + $0xc0] sm:$0xff] %vm439_vm0, %v1309_v3 }
 0x179   : > { %1276 = vst.msk [vmem:[#allocation6 + $0xb8] sm:$0xff] %vm439_vm0, %v1244_v61  ;;  %1277 = vst.msk [vmem:[#allocation6 + $0x100] sm:$0xff] %vm439_vm0, %v1245_v62  ;;  %v1374_v1 = vld [vmem:[#allocation2 + $0x70] sm:$0xff]  ;;  %v1762_v9 = vld [vmem:[#allocation6 + $0x838] sm:$0xff] }
 0x17a   : > { %1406 = vst.msk [vmem:[#allocation6 + $0x110] sm:$0xff] %vm439_vm0, %v1374_v1  ;;  %v1310_v4 = vld [vmem:[#allocation2 + $0x6f] sm:$0xff]  ;;  %1215 = vst.msk [vmem:[#allocation6 + $0x188] sm:$0xff] %vm439_vm0, %v1374_v1  ;;  %v1772_v11 = vld [vmem:[#allocation6 + $0x888] sm:$0xff]  ;;  %v1915_v16 = vpack.c.bf16 %v1762_v9, %v1753_v8 }
 0x17b   : > { %1342 = vst.msk [vmem:[#allocation6 + $0x108] sm:$0xff] %vm439_vm0, %v1310_v4  ;;  %v1246_v6 = vld [vmem:[#allocation2 + $0x69] sm:$0xff]  ;;  %v1247_v7 = vld [vmem:[#allocation2 + $0x71] sm:$0xff]  ;;  %v1781_v12 = vld [vmem:[#allocation6 + $0x8d0] sm:$0xff] }
 0x17c   : > { %2805 = vmatmul.mubr.bf16.gmra.mrb[52].mxu1 %v1906_v60  ;;  %1278 = vst.msk [vmem:[#allocation6 + $0x148] sm:$0xff] %vm439_vm0, %v1246_v6  ;;  %1279 = vst.msk [vmem:[#allocation6 + $0x190] sm:$0xff] %vm439_vm0, %v1247_v7  ;;  %v1375_v10 = vld [vmem:[#allocation2 + $0x88] sm:$0xff]  ;;  %v1376_v13 = vld [vmem:[#allocation2 + $0x90] sm:$0xff]  ;;  %v1925_v19 = vpack.c.bf16 %v1781_v12, %v1772_v11 }
 0x17d   : > { %2812 = vmatprep.mubr.bf16.mxu1 %v1916_v0  ;;  %1407 = vst.msk [vmem:[#allocation6 + $0x158] sm:$0xff] %vm439_vm0, %v1375_v10  ;;  %1216 = vst.msk [vmem:[#allocation6 + $0x1d0] sm:$0xff] %vm439_vm0, %v1375_v10  ;;  %v1778_v15 = vld [vmem:[#allocation6 + $0x8b8] sm:$0xff]  ;;  %v1513_v18 = vld [vmem:[#allocation6 + $0x70] sm:$0xff] }
 0x17e   : > { %1408 = vst.msk [vmem:[#allocation6 + $0x1a0] sm:$0xff] %vm439_vm0, %v1376_v13  ;;  %1217 = vst.msk [vmem:[#allocation6 + $0x218] sm:$0xff] %vm439_vm0, %v1376_v13  ;;  %v1922_v20 = vpack.c.bf16 %v1778_v15, %v1769_v14  ;;  %v1771_v21 = vld [vmem:[#allocation6 + $0x880] sm:$0xff]  ;;  %v1792_v23 = vpack.c.bf16 %v1513_v18, %v1504_v17  ;;  %v1311_v24 = vld [vmem:[#allocation2 + $0x87] sm:$0xff] }
 0x17f   : > { %2652 = vmatmul.mubr.bf16.gmra.mrb[56].mxu0 %v1913_v2  ;;  %v1312_v25 = vld [vmem:[#allocation2 + $0x8f] sm:$0xff]  ;;  %1343 = vst.msk [vmem:[#allocation6 + $0x150] sm:$0xff] %vm439_vm0, %v1311_v24  ;;  %v1512_v29 = vld [vmem:[#allocation6 + $0x68] sm:$0xff]  ;;  %v1313_v36 = vld [vmem:[#allocation2 + $0xa7] sm:$0xff]  ;;  %v1924_v39 = vpack.c.bf16 %v1780_v22, %v1771_v21 }
 0x180   : > { %2659 = vmatprep.mubr.bf16.mxu0 %v1923_v5  ;;  %v1248_v26 = vld [vmem:[#allocation2 + $0x89] sm:$0xff]  ;;  %v1249_v27 = vld [vmem:[#allocation2 + $0x91] sm:$0xff]  ;;  %1344 = vst.msk [vmem:[#allocation6 + $0x198] sm:$0xff] %vm439_vm0, %v1312_v25  ;;  %1345 = vst.msk [vmem:[#allocation6 + $0x1e0] sm:$0xff] %vm439_vm0, %v1313_v36 }
 0x181   : > { %v1503_v28 = vld [vmem:[#allocation6 + $0x20] sm:$0xff]  ;;  %v1506_v30 = vld [vmem:[#allocation6 + $0x38] sm:$0xff]  ;;  %1280 = vst.msk [vmem:[#allocation6 + $0x1d8] sm:$0xff] %vm439_vm0, %v1248_v26  ;;  %1281 = vst.msk [vmem:[#allocation6 + $0x220] sm:$0xff] %vm439_vm0, %v1249_v27 }
 0x182   : > { %v1515_v31 = vld [vmem:[#allocation6 + $0x80] sm:$0xff]  ;;  %v1377_v32 = vld [vmem:[#allocation2 + $0xa8] sm:$0xff]  ;;  %v1791_v44 = vpack.c.bf16 %v1512_v29, %v1503_v28  ;;  %v1505_v52 = vld [vmem:[#allocation6 + $0x30] sm:$0xff] }
 0x183   : > { %v1522_v33 = vld [vmem:[#allocation6 + $0xb8] sm:$0xff]  ;;  %v1531_v34 = vld [vmem:[#allocation6 + $0x100] sm:$0xff]  ;;  %1409 = vst.msk [vmem:[#allocation6 + $0x1e8] sm:$0xff] %vm439_vm0, %v1377_v32  ;;  %1218 = vst.msk [vmem:[#allocation6 + $0x260] sm:$0xff] %vm439_vm0, %v1377_v32  ;;  %v1794_v41 = vpack.c.bf16 %v1515_v31, %v1506_v30 }
 0x184   : > { %2813 = vmatmul.mubr.bf16.gmra.mrb[56].mxu1 %v1915_v16  ;;  %v1378_v35 = vld [vmem:[#allocation2 + $0xb0] sm:$0xff]  ;;  %v1379_v42 = vld [vmem:[#allocation2 + $0xc8] sm:$0xff]  ;;  %v1801_v48 = vpack.c.bf16 %v1531_v34, %v1522_v33  ;;  %v1521_v54 = vld [vmem:[#allocation6 + $0xb0] sm:$0xff] }
 0x185   : > { %2820 = vmatprep.mubr.bf16.mxu1 %v1925_v19  ;;  %1410 = vst.msk [vmem:[#allocation6 + $0x230] sm:$0xff] %vm439_vm0, %v1378_v35  ;;  %v1314_v37 = vld [vmem:[#allocation2 + $0xaf] sm:$0xff]  ;;  %1219 = vst.msk [vmem:[#allocation6 + $0x2a8] sm:$0xff] %vm439_vm0, %v1378_v35  ;;  %v1315_v45 = vld [vmem:[#allocation2 + $0xc7] sm:$0xff] }
 0x186   : > { %v1250_v38 = vld [vmem:[#allocation2 + $0xa9] sm:$0xff]  ;;  %1346 = vst.msk [vmem:[#allocation6 + $0x228] sm:$0xff] %vm439_vm0, %v1314_v37  ;;  %v1251_v40 = vld [vmem:[#allocation2 + $0xb1] sm:$0xff]  ;;  %1411 = vst.msk [vmem:[#allocation6 + $0x278] sm:$0xff] %vm439_vm0, %v1379_v42 }
 0x187   : > { %2660 = vmatmul.mubr.bf16.gmra.mrb[60].mxu0 %v1922_v20  ;;  %1282 = vst.msk [vmem:[#allocation6 + $0x268] sm:$0xff] %vm439_vm0, %v1250_v38  ;;  %1283 = vst.msk [vmem:[#allocation6 + $0x2b0] sm:$0xff] %vm439_vm0, %v1251_v40  ;;  %v1380_v43 = vld [vmem:[#allocation2 + $0xd0] sm:$0xff]  ;;  %v1381_v50 = vld [vmem:[#allocation2 + $0xe8] sm:$0xff] }
 0x188   : > { %2861 = vmatprep.mubr.bf16.mxu0 %v1792_v23  ;;  %1412 = vst.msk [vmem:[#allocation6 + $0x2c0] sm:$0xff] %vm439_vm0, %v1380_v43  ;;  %v1316_v46 = vld [vmem:[#allocation2 + $0xcf] sm:$0xff]  ;;  %1220 = vst.msk [vmem:[#allocation6 + $0x2f0] sm:$0xff] %vm439_vm0, %v1379_v42  ;;  %v1524_v57 = vld [vmem:[#allocation6 + $0xc8] sm:$0xff] }
 0x189   : > { %v1252_v47 = vld [vmem:[#allocation2 + $0xc9] sm:$0xff]  ;;  %1221 = vst.msk [vmem:[#allocation6 + $0x338] sm:$0xff] %vm439_vm0, %v1380_v43  ;;  %1347 = vst.msk [vmem:[#allocation6 + $0x270] sm:$0xff] %vm439_vm0, %v1315_v45  ;;  %v1253_v49 = vld [vmem:[#allocation2 + $0xd1] sm:$0xff] }
 0x18a   : > { %1348 = vst.msk [vmem:[#allocation6 + $0x2b8] sm:$0xff] %vm439_vm0, %v1316_v46  ;;  %1284 = vst.msk [vmem:[#allocation6 + $0x2f8] sm:$0xff] %vm439_vm0, %v1252_v47  ;;  %v10582_v51 = vld [vmem:[%s14265_s1 + $0x208] sm:$0xff]   ;;  %v1382_v56 = vld [vmem:[#allocation2 + $0xf0] sm:$0xff] }
 0x18b   : > { %1285 = vst.msk [vmem:[#allocation6 + $0x340] sm:$0xff] %vm439_vm0, %v1253_v49  ;;  %1413 = vst.msk [vmem:[#allocation6 + $0x308] sm:$0xff] %vm439_vm0, %v1381_v50  ;;  %v1514_v53 = vld [vmem:[#allocation6 + $0x78] sm:$0xff]  ;;  %v1533_v58 = vld [vmem:[#allocation6 + $0x110] sm:$0xff] }
 0x18c   : > { %2821 = vmatmul.mubr.bf16.gmra.mrb[60].mxu1 %v1924_v39  ;;  %1222 = vst.msk [vmem:[#allocation6 + $0x380] sm:$0xff] %vm439_vm0, %v1381_v50  ;;  %1414 = vst.msk [vmem:[#allocation6 + $0x350] sm:$0xff] %vm439_vm0, %v1382_v56  ;;  %v1317_v59 = vld [vmem:[#allocation2 + $0xe7] sm:$0xff]  ;;  %v1540_v61 = vld [vmem:[#allocation6 + $0x148] sm:$0xff]  ;;  %v1793_v63 = vpack.c.bf16 %v1514_v53, %v1505_v52  ;;  %v1803_v3 = vpack.c.bf16 %v1533_v58, %v1524_v57 }
 0x18d   : > { %3022 = vmatprep.mubr.bf16.mxu1 %v1794_v41  ;;  %1223 = vst.msk [vmem:[#allocation6 + $0x3c8] sm:$0xff] %vm439_vm0, %v1382_v56  ;;  %v1530_v60 = vld [vmem:[#allocation6 + $0xf8] sm:$0xff]  ;;  %v1549_v62 = vld [vmem:[#allocation6 + $0x190] sm:$0xff]  ;;  %1349 = vst.msk [vmem:[#allocation6 + $0x300] sm:$0xff] %vm439_vm0, %v1317_v59 }
 0x18e   : > { %v10583_v0 = vld [vmem:[%s14265_s1 + $0x210] sm:$0xff]   ;;  %v1810_v5 = vpack.c.bf16 %v1549_v62, %v1540_v61  ;;  %v1532_v6 = vld [vmem:[#allocation6 + $0x108] sm:$0xff]  ;;  %v1542_v10 = vld [vmem:[#allocation6 + $0x158] sm:$0xff] }
 0x18f   : > { %2862 = vmatmul.mubr.bf16.vlgmr.msra.gmra.mrb[64].mxu0 %v1791_v44  ;;  %v1318_v1 = vld [vmem:[#allocation2 + $0xef] sm:$0xff]  ;;  %v1548_v9 = vld [vmem:[#allocation6 + $0x188] sm:$0xff]  ;;  %v1319_v15 = vld [vmem:[#allocation2 + $0x107] sm:$0xff] }
 0x190   : > { %10364 = vmatpush3.bf16.msra.mxu0 %v11966_v55  ;;  %2869 = vmatprep.mubr.bf16.mxu0 %v1801_v48  ;;  %v1254_v2 = vld [vmem:[#allocation2 + $0xe9] sm:$0xff]  ;;  %1350 = vst.msk [vmem:[#allocation6 + $0x348] sm:$0xff] %vm439_vm0, %v1318_v1  ;;  %v1800_v55 = vpack.c.bf16 %v1530_v60, %v1521_v54  ;;  %v1255_v7 = vld [vmem:[#allocation2 + $0xf1] sm:$0xff]  ;;  %1351 = vst.msk [vmem:[#allocation6 + $0x390] sm:$0xff] %vm439_vm0, %v1319_v15 }
 0x191   : > { %10365 = vmatprep.subr.bf16.mxu0 %v10582_v51  ;;  %1286 = vst.msk [vmem:[#allocation6 + $0x388] sm:$0xff] %vm439_vm0, %v1254_v2  ;;  %1477 = vst.msk [vmem:[#allocation6 + $0x310] sm:$0xff] %vm439_vm0, %v1254_v2  ;;  %v1523_v4 = vld [vmem:[#allocation6 + $0xc0] sm:$0xff]  ;;  %v10584_v12 = vld [vmem:[%s14265_s1 + $0x218] sm:$0xff]  }
 0x192   : > { %v1539_v8 = vld [vmem:[#allocation6 + $0x140] sm:$0xff]  ;;  %1287 = vst.msk [vmem:[#allocation6 + $0x3d0] sm:$0xff] %vm439_vm0, %v1255_v7  ;;  %1478 = vst.msk [vmem:[#allocation6 + $0x358] sm:$0xff] %vm439_vm0, %v1255_v7  ;;  %v1383_v13 = vld [vmem:[#allocation2 + $0x108] sm:$0xff]  ;;  %v1802_v17 = vpack.c.bf16 %v1532_v6, %v1523_v4 }
 0x193   : > { %v1551_v11 = vld [vmem:[#allocation6 + $0x1a0] sm:$0xff]  ;;  %1415 = vst.msk [vmem:[#allocation6 + $0x398] sm:$0xff] %vm439_vm0, %v1383_v13  ;;  %1224 = vst.msk [vmem:[#allocation6 + $0x410] sm:$0xff] %vm439_vm0, %v1383_v13  ;;  %v1558_v18 = vld [vmem:[#allocation6 + $0x1d8] sm:$0xff]  ;;  %v1809_v25 = vpack.c.bf16 %v1548_v9, %v1539_v8 }
 0x194   : > { %10366 = vmatpush3.bf16.msra.mxu0 %v10582_v51  ;;  %3023 = vmatmul.mubr.bf16.vlgmr.msra.gmra.mrb[64].mxu1 %v1793_v63  ;;  %v1384_v14 = vld [vmem:[#allocation2 + $0x110] sm:$0xff]  ;;  %v1812_v21 = vpack.c.bf16 %v1551_v11, %v1542_v10  ;;  %v1385_v23 = vld [vmem:[#allocation2 + $0x128] sm:$0xff]  ;;  %v1541_v29 = vld [vmem:[#allocation6 + $0x150] sm:$0xff] }
 0x195   : > { %10367 = vmatprep.subr.bf16.mxu0 %v10583_v0  ;;  %3030 = vmatprep.mubr.bf16.mxu1 %v1803_v3  ;;  %v1320_v16 = vld [vmem:[#allocation2 + $0x10f] sm:$0xff]  ;;  %1416 = vst.msk [vmem:[#allocation6 + $0x3e0] sm:$0xff] %vm439_vm0, %v1384_v14  ;;  %1225 = vst.msk [vmem:[#allocation6 + $0x458] sm:$0xff] %vm439_vm0, %v1384_v14  ;;  %v1321_v26 = vld [vmem:[#allocation2 + $0x127] sm:$0xff] }
 0x196   : > { %v1567_v19 = vld [vmem:[#allocation6 + $0x220] sm:$0xff]  ;;  %1352 = vst.msk [vmem:[#allocation6 + $0x3d8] sm:$0xff] %vm439_vm0, %v1320_v16  ;;  %1417 = vst.msk [vmem:[#allocation6 + $0x428] sm:$0xff] %vm439_vm0, %v1385_v23  ;;  %v1550_v32 = vld [vmem:[#allocation6 + $0x198] sm:$0xff] }
 0x197   : > { %2870 = vmatmul.mubr.bf16.gmra.mrb[68].mxu0 %v1800_v55  ;;  %v1256_v20 = vld [vmem:[#allocation2 + $0x109] sm:$0xff]  ;;  %v1257_v22 = vld [vmem:[#allocation2 + $0x111] sm:$0xff]  ;;  %1226 = vst.msk [vmem:[#allocation6 + $0x4a0] sm:$0xff] %vm439_vm0, %v1385_v23  ;;  %v1819_v30 = vpack.c.bf16 %v1567_v19, %v1558_v18  ;;  %1353 = vst.msk [vmem:[#allocation6 + $0x420] sm:$0xff] %vm439_vm0, %v1321_v26  ;;  %v1811_v43 = vpack.c.bf16 %v1550_v32, %v1541_v29 }
 0x198   : > { %2877 = vmatprep.mubr.bf16.mxu0 %v1810_v5  ;;  %10368 = vmatpush3.bf16.msra.mxu0 %v10583_v0  ;;  %1288 = vst.msk [vmem:[#allocation6 + $0x418] sm:$0xff] %vm439_vm0, %v1256_v20  ;;  %v1386_v24 = vld [vmem:[#allocation2 + $0x130] sm:$0xff]  ;;  %1479 = vst.msk [vmem:[#allocation6 + $0x3a0] sm:$0xff] %vm439_vm0, %v1256_v20  ;;  %v10585_v33 = vld [vmem:[%s14265_s1 + $0x220] sm:$0xff]  }
 0x199   : > { %10369 = vmatprep.subr.bf16.mxu0 %v10584_v12  ;;  %1289 = vst.msk [vmem:[#allocation6 + $0x460] sm:$0xff] %vm439_vm0, %v1257_v22  ;;  %1418 = vst.msk [vmem:[#allocation6 + $0x470] sm:$0xff] %vm439_vm0, %v1386_v24  ;;  %v1322_v27 = vld [vmem:[#allocation2 + $0x12f] sm:$0xff]  ;;  %v1323_v36 = vld [vmem:[#allocation2 + $0x147] sm:$0xff] }
 0x19a   : > { %v1258_v28 = vld [vmem:[#allocation2 + $0x129] sm:$0xff]  ;;  %1227 = vst.msk [vmem:[#allocation6 + $0x4e8] sm:$0xff] %vm439_vm0, %v1386_v24  ;;  %1480 = vst.msk [vmem:[#allocation6 + $0x3e8] sm:$0xff] %vm439_vm0, %v1257_v22  ;;  %v1259_v31 = vld [vmem:[#allocation2 + $0x131] sm:$0xff] }
 0x19b   : > { %1354 = vst.msk [vmem:[#allocation6 + $0x468] sm:$0xff] %vm439_vm0, %v1322_v27  ;;  %1290 = vst.msk [vmem:[#allocation6 + $0x4a8] sm:$0xff] %vm439_vm0, %v1258_v28  ;;  %v1387_v34 = vld [vmem:[#allocation2 + $0x148] sm:$0xff]  ;;  %v1388_v35 = vld [vmem:[#allocation2 + $0x150] sm:$0xff] }
 0x19c   : > { %10370 = vmatpush3.bf16.msra.mxu0 %v10584_v12  ;;  %1481 = vst.msk [vmem:[#allocation6 + $0x430] sm:$0xff] %vm439_vm0, %v1258_v28  ;;  %3031 = vmatmul.mubr.bf16.gmra.mrb[68].mxu1 %v1802_v17  ;;  %1291 = vst.msk [vmem:[#allocation6 + $0x4f0] sm:$0xff] %vm439_vm0, %v1259_v31  ;;  %v1324_v37 = vld [vmem:[#allocation2 + $0x14f] sm:$0xff]  ;;  %v1560_v38 = vld [vmem:[#allocation6 + $0x1e8] sm:$0xff] }
 0x19d   : > { %1482 = vst.msk [vmem:[#allocation6 + $0x478] sm:$0xff] %vm439_vm0, %v1259_v31  ;;  %3038 = vmatprep.mubr.bf16.mxu1 %v1812_v21  ;;  %1419 = vst.msk [vmem:[#allocation6 + $0x4b8] sm:$0xff] %vm439_vm0, %v1387_v34  ;;  %v1569_v39 = vld [vmem:[#allocation6 + $0x230] sm:$0xff]  ;;  %10371 = vmatprep.subr.bf16.mxu0 %v10585_v33  ;;  %v1260_v40 = vld [vmem:[#allocation2 + $0x149] sm:$0xff] }
 0x19e   : > { %1228 = vst.msk [vmem:[#allocation6 + $0x530] sm:$0xff] %vm439_vm0, %v1387_v34  ;;  %1420 = vst.msk [vmem:[#allocation6 + $0x500] sm:$0xff] %vm439_vm0, %v1388_v35  ;;  %v1557_v41 = vld [vmem:[#allocation6 + $0x1d0] sm:$0xff]  ;;  %v1566_v42 = vld [vmem:[#allocation6 + $0x218] sm:$0xff]  ;;  %v1821_v47 = vpack.c.bf16 %v1569_v39, %v1560_v38 }
 0x19f   : > { %2878 = vmatmul.mubr.bf16.gmra.mrb[72].mxu0 %v1809_v25  ;;  %1355 = vst.msk [vmem:[#allocation6 + $0x4b0] sm:$0xff] %vm439_vm0, %v1323_v36  ;;  %1356 = vst.msk [vmem:[#allocation6 + $0x4f8] sm:$0xff] %vm439_vm0, %v1324_v37  ;;  %v1576_v44 = vld [vmem:[#allocation6 + $0x268] sm:$0xff]  ;;  %v1585_v45 = vld [vmem:[#allocation6 + $0x2b0] sm:$0xff]  ;;  %v1818_v48 = vpack.c.bf16 %v1566_v42, %v1557_v41 }
 0x1a0   : > { %1229 = vst.msk [vmem:[#allocation6 + $0x578] sm:$0xff] %vm439_vm0, %v1388_v35  ;;  %2885 = vmatprep.mubr.bf16.mxu0 %v1819_v30  ;;  %10372 = vmatpush3.bf16.msra.mxu0 %v10585_v33  ;;  %1292 = vst.msk [vmem:[#allocation6 + $0x538] sm:$0xff] %vm439_vm0, %v1260_v40  ;;  %v1261_v46 = vld [vmem:[#allocation2 + $0x151] sm:$0xff]  ;;  %v1828_v49 = vpack.c.bf16 %v1585_v45, %v1576_v44  ;;  %v1389_v50 = vld [vmem:[#allocation2 + $0x168] sm:$0xff] }
 0x1a1   : > { %1483 = vst.msk [vmem:[#allocation6 + $0x4c0] sm:$0xff] %vm439_vm0, %v1260_v40  ;;  %1293 = vst.msk [vmem:[#allocation6 + $0x580] sm:$0xff] %vm439_vm0, %v1261_v46  ;;  %v1559_v51 = vld [vmem:[#allocation6 + $0x1e0] sm:$0xff]  ;;  %v1568_v52 = vld [vmem:[#allocation6 + $0x228] sm:$0xff] }
 0x1a2   : > { %1484 = vst.msk [vmem:[#allocation6 + $0x508] sm:$0xff] %vm439_vm0, %v1261_v46  ;;  %v1575_v53 = vld [vmem:[#allocation6 + $0x260] sm:$0xff]  ;;  %v1584_v54 = vld [vmem:[#allocation6 + $0x2a8] sm:$0xff]  ;;  %v1578_v56 = vld [vmem:[#allocation6 + $0x278] sm:$0xff]  ;;  %v1820_v63 = vpack.c.bf16 %v1568_v52, %v1559_v51 }
 0x1a3   : > { %1421 = vst.msk [vmem:[#allocation6 + $0x548] sm:$0xff] %vm439_vm0, %v1389_v50  ;;  %1230 = vst.msk [vmem:[#allocation6 + $0x5c0] sm:$0xff] %vm439_vm0, %v1389_v50  ;;  %v1587_v57 = vld [vmem:[#allocation6 + $0x2c0] sm:$0xff]  ;;  %v1594_v58 = vld [vmem:[#allocation6 + $0x2f8] sm:$0xff]  ;;  %v1827_v4 = vpack.c.bf16 %v1584_v54, %v1575_v53 }
 0x1a4   : > { %3039 = vmatmul.mubr.bf16.gmra.mrb[72].mxu1 %v1811_v43  ;;  %v1390_v59 = vld [vmem:[#allocation2 + $0x170] sm:$0xff]  ;;  %v1325_v60 = vld [vmem:[#allocation2 + $0x167] sm:$0xff]  ;;  %v1830_v2 = vpack.c.bf16 %v1587_v57, %v1578_v56  ;;  %v1596_v18 = vld [vmem:[#allocation6 + $0x308] sm:$0xff] }
 0x1a5   : > { %3046 = vmatprep.mubr.bf16.mxu1 %v1821_v47  ;;  %1422 = vst.msk [vmem:[#allocation6 + $0x590] sm:$0xff] %vm439_vm0, %v1390_v59  ;;  %v1326_v61 = vld [vmem:[#allocation2 + $0x16f] sm:$0xff]  ;;  %1231 = vst.msk [vmem:[#allocation6 + $0x608] sm:$0xff] %vm439_vm0, %v1390_v59  ;;  %v1327_v6 = vld [vmem:[#allocation2 + $0x187] sm:$0xff] }
 0x1a6   : > { %v1262_v62 = vld [vmem:[#allocation2 + $0x169] sm:$0xff]  ;;  %1357 = vst.msk [vmem:[#allocation6 + $0x540] sm:$0xff] %vm439_vm0, %v1325_v60  ;;  %1358 = vst.msk [vmem:[#allocation6 + $0x588] sm:$0xff] %vm439_vm0, %v1326_v61  ;;  %v1263_v1 = vld [vmem:[#allocation2 + $0x171] sm:$0xff] }
 0x1a7   : > { %2886 = vmatmul.mubr.bf16.gmra.mrb[76].mxu0 %v1818_v48  ;;  %v1603_v0 = vld [vmem:[#allocation6 + $0x340] sm:$0xff]  ;;  %1294 = vst.msk [vmem:[#allocation6 + $0x5c8] sm:$0xff] %vm439_vm0, %v1262_v62  ;;  %1485 = vst.msk [vmem:[#allocation6 + $0x550] sm:$0xff] %vm439_vm0, %v1262_v62  ;;  %v10586_v3 = vld [vmem:[%s14265_s1 + $0x228] sm:$0xff]  }
 0x1a8   : > { %2893 = vmatprep.mubr.bf16.mxu0 %v1828_v49  ;;  %1295 = vst.msk [vmem:[#allocation6 + $0x610] sm:$0xff] %vm439_vm0, %v1263_v1  ;;  %v1391_v55 = vld [vmem:[#allocation2 + $0x188] sm:$0xff]  ;;  %1486 = vst.msk [vmem:[#allocation6 + $0x598] sm:$0xff] %vm439_vm0, %v1263_v1  ;;  %v1392_v5 = vld [vmem:[#allocation2 + $0x190] sm:$0xff]  ;;  %v1837_v8 = vpack.c.bf16 %v1603_v0, %v1594_v58  ;;  %10373 = vmatprep.subr.bf16.mxu0 %v10586_v3 }
 0x1a9   : > { %1423 = vst.msk [vmem:[#allocation6 + $0x5d8] sm:$0xff] %vm439_vm0, %v1391_v55  ;;  %v1328_v7 = vld [vmem:[#allocation2 + $0x18f] sm:$0xff]  ;;  %1232 = vst.msk [vmem:[#allocation6 + $0x650] sm:$0xff] %vm439_vm0, %v1391_v55  ;;  %v1577_v12 = vld [vmem:[#allocation6 + $0x270] sm:$0xff]  ;;  %10374 = vmatpush3.bf16.msra.mxu0 %v10586_v3 }
 0x1aa   : > { %1424 = vst.msk [vmem:[#allocation6 + $0x620] sm:$0xff] %vm439_vm0, %v1392_v5  ;;  %1359 = vst.msk [vmem:[#allocation6 + $0x5d0] sm:$0xff] %vm439_vm0, %v1327_v6  ;;  %v1264_v9 = vld [vmem:[#allocation2 + $0x189] sm:$0xff]  ;;  %v1265_v10 = vld [vmem:[#allocation2 + $0x191] sm:$0xff] }
 0x1ab   : > { %1360 = vst.msk [vmem:[#allocation6 + $0x618] sm:$0xff] %vm439_vm0, %v1328_v7  ;;  %1233 = vst.msk [vmem:[#allocation6 + $0x698] sm:$0xff] %vm439_vm0, %v1392_v5  ;;  %v1393_v11 = vld [vmem:[#allocation2 + $0x1a8] sm:$0xff]  ;;  %v1394_v14 = vld [vmem:[#allocation2 + $0x1b0] sm:$0xff] }
 0x1ac   : > { %3047 = vmatmul.mubr.bf16.gmra.mrb[76].mxu1 %v1820_v63  ;;  %v1586_v13 = vld [vmem:[#allocation6 + $0x2b8] sm:$0xff]  ;;  %1296 = vst.msk [vmem:[#allocation6 + $0x658] sm:$0xff] %vm439_vm0, %v1264_v9  ;;  %1297 = vst.msk [vmem:[#allocation6 + $0x6a0] sm:$0xff] %vm439_vm0, %v1265_v10  ;;  %v1605_v19 = vld [vmem:[#allocation6 + $0x350] sm:$0xff] }
 0x1ad   : > { %1425 = vst.msk [vmem:[#allocation6 + $0x668] sm:$0xff] %vm439_vm0, %v1393_v11  ;;  %1234 = vst.msk [vmem:[#allocation6 + $0x6e0] sm:$0xff] %vm439_vm0, %v1393_v11  ;;  %3054 = vmatprep.mubr.bf16.mxu1 %v1830_v2  ;;  %v1329_v15 = vld [vmem:[#allocation2 + $0x1a7] sm:$0xff]  ;;  %v1330_v16 = vld [vmem:[#allocation2 + $0x1af] sm:$0xff]  ;;  %v1829_v24 = vpack.c.bf16 %v1586_v13, %v1577_v12  ;;  %v1839_v26 = vpack.c.bf16 %v1605_v19, %v1596_v18 }
 0x1ae   : > { %1487 = vst.msk [vmem:[#allocation6 + $0x5e0] sm:$0xff] %vm439_vm0, %v1264_v9  ;;  %1488 = vst.msk [vmem:[#allocation6 + $0x628] sm:$0xff] %vm439_vm0, %v1265_v10  ;;  %v1266_v17 = vld [vmem:[#allocation2 + $0x1a9] sm:$0xff]  ;;  %v1267_v20 = vld [vmem:[#allocation2 + $0x1b1] sm:$0xff] }
 0x1af   : > { %1426 = vst.msk [vmem:[#allocation6 + $0x6b0] sm:$0xff] %vm439_vm0, %v1394_v14  ;;  %1235 = vst.msk [vmem:[#allocation6 + $0x728] sm:$0xff] %vm439_vm0, %v1394_v14  ;;  %2894 = vmatmul.mubr.bf16.gmra.mrb[80].mxu0 %v1827_v4  ;;  %v1593_v21 = vld [vmem:[#allocation6 + $0x2f0] sm:$0xff]  ;;  %v1602_v22 = vld [vmem:[#allocation6 + $0x338] sm:$0xff] }
 0x1b0   : > { %1361 = vst.msk [vmem:[#allocation6 + $0x660] sm:$0xff] %vm439_vm0, %v1329_v15  ;;  %1362 = vst.msk [vmem:[#allocation6 + $0x6a8] sm:$0xff] %vm439_vm0, %v1330_v16  ;;  %2901 = vmatprep.mubr.bf16.mxu0 %v1837_v8  ;;  %v1612_v23 = vld [vmem:[#allocation6 + $0x388] sm:$0xff]  ;;  %v1621_v25 = vld [vmem:[#allocation6 + $0x3d0] sm:$0xff]  ;;  %v1836_v28 = vpack.c.bf16 %v1602_v22, %v1593_v21 }
 0x1b1   : > { %1298 = vst.msk [vmem:[#allocation6 + $0x6e8] sm:$0xff] %vm439_vm0, %v1266_v17  ;;  %1489 = vst.msk [vmem:[#allocation6 + $0x670] sm:$0xff] %vm439_vm0, %v1266_v17  ;;  %v10587_v27 = vld [vmem:[%s14265_s1 + $0x230] sm:$0xff]   ;;  %v1846_v29 = vpack.c.bf16 %v1621_v25, %v1612_v23  ;;  %v1604_v31 = vld [vmem:[#allocation6 + $0x348] sm:$0xff] }
 0x1b2   : > { %1299 = vst.msk [vmem:[#allocation6 + $0x730] sm:$0xff] %vm439_vm0, %v1267_v20  ;;  %1490 = vst.msk [vmem:[#allocation6 + $0x6b8] sm:$0xff] %vm439_vm0, %v1267_v20  ;;  %10375 = vmatprep.subr.bf16.mxu0 %v10587_v27  ;;  %v1595_v30 = vld [vmem:[#allocation6 + $0x300] sm:$0xff]  ;;  %v1620_v33 = vld [vmem:[#allocation6 + $0x3c8] sm:$0xff] }
 0x1b3   : > { %10376 = vmatpush3.bf16.msra.mxu0 %v10587_v27  ;;  %v12098_v32 = vld [vmem:[#allocation6 + $0x380] sm:$0xff]  ;;  %v1614_v34 = vld [vmem:[#allocation6 + $0x398] sm:$0xff]  ;;  %v1838_v42 = vpack.c.bf16 %v1604_v31, %v1595_v30  ;;  %v1613_v53 = vld [vmem:[#allocation6 + $0x390] sm:$0xff] }
 0x1b4   : > { %3055 = vmatmul.mubr.bf16.gmra.mrb[80].mxu1 %v1829_v24  ;;  %v1623_v35 = vld [vmem:[#allocation6 + $0x3e0] sm:$0xff]  ;;  %v12100_v36 = vld [vmem:[#allocation6 + $0x418] sm:$0xff]  ;;  %v1845_v50 = vpack.c.bf16 %v1620_v33, %v12098_v32  ;;  %v10588_v57 = vld [vmem:[%s14265_s1 + $0x238] sm:$0xff]  }
 0x1b5   : > { %3062 = vmatprep.mubr.bf16.mxu1 %v1839_v26  ;;  %v12102_v37 = vld [vmem:[#allocation6 + $0x460] sm:$0xff]  ;;  %v1395_v38 = vld [vmem:[#allocation2 + $0x1c8] sm:$0xff]  ;;  %v1848_v46 = vpack.c.bf16 %v1623_v35, %v1614_v34  ;;  %10377 = vmatprep.subr.bf16.mxu0 %v10588_v57  ;;  %v1632_v1 = vld [vmem:[#allocation6 + $0x428] sm:$0xff] }
 0x1b6   : > { %v1396_v39 = vld [vmem:[#allocation2 + $0x1d0] sm:$0xff]  ;;  %1427 = vst.msk [vmem:[#allocation6 + $0x6f8] sm:$0xff] %vm439_vm0, %v1395_v38  ;;  %v1331_v40 = vld [vmem:[#allocation2 + $0x1c7] sm:$0xff]  ;;  %1236 = vst.msk [vmem:[#allocation6 + $0x770] sm:$0xff] %vm439_vm0, %v1395_v38  ;;  %v1855_v56 = vpack.c.bf16 %v12102_v37, %v12100_v36 }
 0x1b7   : > { %2902 = vmatmul.mubr.bf16.gmra.mrb[84].mxu0 %v1836_v28  ;;  %v1332_v41 = vld [vmem:[#allocation2 + $0x1cf] sm:$0xff]  ;;  %1428 = vst.msk [vmem:[#allocation6 + $0x740] sm:$0xff] %vm439_vm0, %v1396_v39  ;;  %1363 = vst.msk [vmem:[#allocation6 + $0x6f0] sm:$0xff] %vm439_vm0, %v1331_v40  ;;  %v1333_v48 = vld [vmem:[#allocation2 + $0x1e7] sm:$0xff] }
 0x1b8   : > { %2909 = vmatprep.mubr.bf16.mxu0 %v1846_v29  ;;  %1364 = vst.msk [vmem:[#allocation6 + $0x738] sm:$0xff] %vm439_vm0, %v1332_v41  ;;  %v1268_v43 = vld [vmem:[#allocation2 + $0x1c9] sm:$0xff]  ;;  %v1269_v44 = vld [vmem:[#allocation2 + $0x1d1] sm:$0xff]  ;;  %1237 = vst.msk [vmem:[#allocation6 + $0x7b8] sm:$0xff] %vm439_vm0, %v1396_v39  ;;  %10378 = vmatpush3.bf16.msra.mxu0 %v10588_v57 }
 0x1b9   : > { %v1397_v45 = vld [vmem:[#allocation2 + $0x1e8] sm:$0xff]  ;;  %1300 = vst.msk [vmem:[#allocation6 + $0x778] sm:$0xff] %vm439_vm0, %v1268_v43  ;;  %1301 = vst.msk [vmem:[#allocation6 + $0x7c0] sm:$0xff] %vm439_vm0, %v1269_v44  ;;  %v1398_v47 = vld [vmem:[#allocation2 + $0x1f0] sm:$0xff] }
 0x1ba   : > { %1429 = vst.msk [vmem:[#allocation6 + $0x788] sm:$0xff] %vm439_vm0, %v1397_v45  ;;  %v1334_v49 = vld [vmem:[#allocation2 + $0x1ef] sm:$0xff]  ;;  %1238 = vst.msk [vmem:[#allocation6 + $0x800] sm:$0xff] %vm439_vm0, %v1397_v45  ;;  %v1335_v60 = vld [vmem:[#allocation2 + $0x207] sm:$0xff] }
 0x1bb   : > { %1491 = vst.msk [vmem:[#allocation6 + $0x700] sm:$0xff] %vm439_vm0, %v1268_v43  ;;  %1492 = vst.msk [vmem:[#allocation6 + $0x748] sm:$0xff] %vm439_vm0, %v1269_v44  ;;  %v1270_v51 = vld [vmem:[#allocation2 + $0x1e9] sm:$0xff]  ;;  %v1271_v52 = vld [vmem:[#allocation2 + $0x1f1] sm:$0xff] }
 0x1bc   : > { %1430 = vst.msk [vmem:[#allocation6 + $0x7d0] sm:$0xff] %vm439_vm0, %v1398_v47  ;;  %1365 = vst.msk [vmem:[#allocation6 + $0x780] sm:$0xff] %vm439_vm0, %v1333_v48  ;;  %v1622_v54 = vld [vmem:[#allocation6 + $0x3d8] sm:$0xff]  ;;  %3063 = vmatmul.mubr.bf16.gmra.mrb[84].mxu1 %v1838_v42  ;;  %v1400_v59 = vld [vmem:[#allocation2 + $0x210] sm:$0xff] }
 0x1bd   : > { %1366 = vst.msk [vmem:[#allocation6 + $0x7c8] sm:$0xff] %vm439_vm0, %v1334_v49  ;;  %1239 = vst.msk [vmem:[#allocation6 + $0x848] sm:$0xff] %vm439_vm0, %v1398_v47  ;;  %v1399_v58 = vld [vmem:[#allocation2 + $0x208] sm:$0xff]  ;;  %3070 = vmatprep.mubr.bf16.mxu1 %v1848_v46  ;;  %v1273_v63 = vld [vmem:[#allocation2 + $0x211] sm:$0xff]  ;;  %v1847_v5 = vpack.c.bf16 %v1622_v54, %v1613_v53 }
 0x1be   : > { %1302 = vst.msk [vmem:[#allocation6 + $0x808] sm:$0xff] %vm439_vm0, %v1270_v51  ;;  %1303 = vst.msk [vmem:[#allocation6 + $0x850] sm:$0xff] %vm439_vm0, %v1271_v52  ;;  %v1336_v61 = vld [vmem:[#allocation2 + $0x20f] sm:$0xff]  ;;  %v1641_v2 = vld [vmem:[#allocation6 + $0x470] sm:$0xff] }
 0x1bf   : > { %1493 = vst.msk [vmem:[#allocation6 + $0x790] sm:$0xff] %vm439_vm0, %v1270_v51  ;;  %1494 = vst.msk [vmem:[#allocation6 + $0x7d8] sm:$0xff] %vm439_vm0, %v1271_v52  ;;  %v1272_v62 = vld [vmem:[#allocation2 + $0x209] sm:$0xff]  ;;  %2910 = vmatmul.mubr.bf16.gmra.mrb[88].mxu0 %v1845_v50  ;;  %v1629_v55 = vld [vmem:[#allocation6 + $0x410] sm:$0xff]  ;;  %v1857_v8 = vpack.c.bf16 %v1641_v2, %v1632_v1 }
 0x1c0   : > { %1431 = vst.msk [vmem:[#allocation6 + $0x818] sm:$0xff] %vm439_vm0, %v1399_v58  ;;  %1240 = vst.msk [vmem:[#allocation6 + $0x890] sm:$0xff] %vm439_vm0, %v1399_v58  ;;  %v1401_v0 = vld [vmem:[#allocation2 + $0x228] sm:$0xff]  ;;  %v1402_v3 = vld [vmem:[#allocation2 + $0x230] sm:$0xff]  ;;  %2917 = vmatprep.mubr.bf16.mxu0 %v1855_v56 }
 0x1c1   : > { %1432 = vst.msk [vmem:[#allocation6 + $0x860] sm:$0xff] %vm439_vm0, %v1400_v59  ;;  %1367 = vst.msk [vmem:[#allocation6 + $0x810] sm:$0xff] %vm439_vm0, %v1335_v60  ;;  %v1638_v4 = vld [vmem:[#allocation6 + $0x458] sm:$0xff]  ;;  %v1648_v6 = vld [vmem:[#allocation6 + $0x4a8] sm:$0xff] }
 0x1c2   : > { %1368 = vst.msk [vmem:[#allocation6 + $0x858] sm:$0xff] %vm439_vm0, %v1336_v61  ;;  %1241 = vst.msk [vmem:[#allocation6 + $0x8d8] sm:$0xff] %vm439_vm0, %v1400_v59  ;;  %v1657_v7 = vld [vmem:[#allocation6 + $0x4f0] sm:$0xff]  ;;  %v1854_v9 = vpack.c.bf16 %v1638_v4, %v1629_v55  ;;  %v1631_v11 = vld [vmem:[#allocation6 + $0x420] sm:$0xff] }
 0x1c3   : > { %1304 = vst.msk [vmem:[#allocation6 + $0x898] sm:$0xff] %vm439_vm0, %v1272_v62  ;;  %1305 = vst.msk [vmem:[#allocation6 + $0x8e0] sm:$0xff] %vm439_vm0, %v1273_v63  ;;  %v1864_v10 = vpack.c.bf16 %v1657_v7, %v1648_v6  ;;  %v1640_v12 = vld [vmem:[#allocation6 + $0x468] sm:$0xff]  ;;  %v1647_v13 = vld [vmem:[#allocation6 + $0x4a0] sm:$0xff] }
 0x1c4   : > { %1433 = vst.msk [vmem:[#allocation6 + $0x8a8] sm:$0xff] %vm439_vm0, %v1401_v0  ;;  %1495 = vst.msk [vmem:[#allocation6 + $0x820] sm:$0xff] %vm439_vm0, %v1272_v62  ;;  %3071 = vmatmul.mubr.bf16.gmra.mrb[88].mxu1 %v1847_v5  ;;  %v1656_v14 = vld [vmem:[#allocation6 + $0x4e8] sm:$0xff]  ;;  %v1650_v15 = vld [vmem:[#allocation6 + $0x4b8] sm:$0xff]  ;;  %v1856_v22 = vpack.c.bf16 %v1640_v12, %v1631_v11 }
 0x1c5   : > { %1496 = vst.msk [vmem:[#allocation6 + $0x868] sm:$0xff] %vm439_vm0, %v1273_v63  ;;  %1434 = vst.msk [vmem:[#allocation6 + $0x8f0] sm:$0xff] %vm439_vm0, %v1402_v3  ;;  %3078 = vmatprep.mubr.bf16.mxu1 %v1857_v8  ;;  %v1659_v16 = vld [vmem:[#allocation6 + $0x500] sm:$0xff]  ;;  %v1666_v17 = vld [vmem:[#allocation6 + $0x538] sm:$0xff]  ;;  %v1863_v30 = vpack.c.bf16 %v1656_v14, %v1647_v13 }
 0x1c6   : > { %v1675_v18 = vld [vmem:[#allocation6 + $0x580] sm:$0xff]  ;;  %v1337_v19 = vld [vmem:[#allocation2 + $0x227] sm:$0xff]  ;;  %v1866_v26 = vpack.c.bf16 %v1659_v16, %v1650_v15  ;;  %v1668_v37 = vld [vmem:[#allocation6 + $0x548] sm:$0xff] }
 0x1c7   : > { %2918 = vmatmul.mubr.bf16.gmra.mrb[92].mxu0 %v1854_v9  ;;  %v1338_v20 = vld [vmem:[#allocation2 + $0x22f] sm:$0xff]  ;;  %1369 = vst.msk [vmem:[#allocation6 + $0x8a0] sm:$0xff] %vm439_vm0, %v1337_v19  ;;  %v1873_v34 = vpack.c.bf16 %v1675_v18, %v1666_v17  ;;  %v1649_v35 = vld [vmem:[#allocation6 + $0x4b0] sm:$0xff]  ;;  %v1684_v42 = vld [vmem:[#allocation6 + $0x5c8] sm:$0xff] }
 0x1c8   : > { %2925 = vmatprep.mubr.bf16.mxu0 %v1864_v10  ;;  %v1435_v21 = vld [vmem:[#allocation2 + $0x49] sm:$0xff]  ;;  %1370 = vst.msk [vmem:[#allocation6 + $0x8e8] sm:$0xff] %vm439_vm0, %v1338_v20  ;;  %v1436_v23 = vld [vmem:[#allocation2 + $0x51] sm:$0xff]  ;;  %v1677_v38 = vld [vmem:[#allocation6 + $0x590] sm:$0xff] }
 0x1c9   : > { %1467 = vst.msk [vmem:[#allocation6 + $0x40] sm:$0xff] %vm439_vm0, %v1435_v21  ;;  %v1437_v24 = vld [vmem:[#allocation2 + $0x69] sm:$0xff]  ;;  %v1438_v25 = vld [vmem:[#allocation2 + $0x71] sm:$0xff]  ;;  %1468 = vst.msk [vmem:[#allocation6 + $0x88] sm:$0xff] %vm439_vm0, %v1436_v23  ;;  %v1875_v44 = vpack.c.bf16 %v1677_v38, %v1668_v37 }
 0x1ca   : > { %1469 = vst.msk [vmem:[#allocation6 + $0xd0] sm:$0xff] %vm439_vm0, %v1437_v24  ;;  %1470 = vst.msk [vmem:[#allocation6 + $0x118] sm:$0xff] %vm439_vm0, %v1438_v25  ;;  %v1439_v27 = vld [vmem:[#allocation2 + $0x89] sm:$0xff]  ;;  %v1440_v28 = vld [vmem:[#allocation2 + $0x91] sm:$0xff] }
 0x1cb   : > { %v1441_v29 = vld [vmem:[#allocation2 + $0xa9] sm:$0xff]  ;;  %1471 = vst.msk [vmem:[#allocation6 + $0x160] sm:$0xff] %vm439_vm0, %v1439_v27  ;;  %1472 = vst.msk [vmem:[#allocation6 + $0x1a8] sm:$0xff] %vm439_vm0, %v1440_v28  ;;  %v1442_v31 = vld [vmem:[#allocation2 + $0xb1] sm:$0xff] }
 0x1cc   : > { %1473 = vst.msk [vmem:[#allocation6 + $0x1f0] sm:$0xff] %vm439_vm0, %v1441_v29  ;;  %v1443_v32 = vld [vmem:[#allocation2 + $0xc9] sm:$0xff]  ;;  %v1444_v33 = vld [vmem:[#allocation2 + $0xd1] sm:$0xff]  ;;  %1474 = vst.msk [vmem:[#allocation6 + $0x238] sm:$0xff] %vm439_vm0, %v1442_v31  ;;  %3079 = vmatmul.mubr.bf16.gmra.mrb[92].mxu1 %v1856_v22 }
 0x1cd   : > { %1475 = vst.msk [vmem:[#allocation6 + $0x280] sm:$0xff] %vm439_vm0, %v1443_v32  ;;  %1476 = vst.msk [vmem:[#allocation6 + $0x2c8] sm:$0xff] %vm439_vm0, %v1444_v33  ;;  %3086 = vmatprep.mubr.bf16.mxu1 %v1866_v26  ;;  %v1658_v36 = vld [vmem:[#allocation6 + $0x4f8] sm:$0xff]  ;;  %v1665_v39 = vld [vmem:[#allocation6 + $0x530] sm:$0xff] }
 0x1ce   : > { %v1674_v40 = vld [vmem:[#allocation6 + $0x578] sm:$0xff]  ;;  %v1865_v41 = vpack.c.bf16 %v1658_v36, %v1649_v35  ;;  %v1693_v43 = vld [vmem:[#allocation6 + $0x610] sm:$0xff]  ;;  %v1667_v47 = vld [vmem:[#allocation6 + $0x540] sm:$0xff] }
 0x1cf   : > { %2926 = vmatmul.mubr.bf16.gmra.mrb[96].mxu0 %v1863_v30  ;;  %v1872_v45 = vpack.c.bf16 %v1674_v40, %v1665_v39  ;;  %v1882_v46 = vpack.c.bf16 %v1693_v43, %v1684_v42  ;;  %v1676_v48 = vld [vmem:[#allocation6 + $0x588] sm:$0xff]  ;;  %v1683_v49 = vld [vmem:[#allocation6 + $0x5c0] sm:$0xff]  ;;  %v1686_v51 = vld [vmem:[#allocation6 + $0x5d8] sm:$0xff] }
 0x1d0   : > { %2933 = vmatprep.mubr.bf16.mxu0 %v1873_v34  ;;  %v1692_v50 = vld [vmem:[#allocation6 + $0x608] sm:$0xff]  ;;  %v1695_v52 = vld [vmem:[#allocation6 + $0x620] sm:$0xff]  ;;  %v1702_v54 = vld [vmem:[#allocation6 + $0x658] sm:$0xff]  ;;  %v1874_v58 = vpack.c.bf16 %v1676_v48, %v1667_v47 }
 0x1d1   : > { %v1465_v53 = vld [vmem:[#allocation2 + $0x229] sm:$0xff]  ;;  %v1466_v57 = vld [vmem:[#allocation2 + $0x231] sm:$0xff]  ;;  %v1884_v59 = vpack.c.bf16 %v1695_v52, %v1686_v51  ;;  %v1881_v60 = vpack.c.bf16 %v1692_v50, %v1683_v49  ;;  %v1685_v61 = vld [vmem:[#allocation6 + $0x5d0] sm:$0xff] }
 0x1d2   : > { %v1711_v56 = vld [vmem:[#allocation6 + $0x6a0] sm:$0xff]  ;;  %1497 = vst.msk [vmem:[#allocation6 + $0x8b0] sm:$0xff] %vm439_vm0, %v1465_v53  ;;  %1498 = vst.msk [vmem:[#allocation6 + $0x8f8] sm:$0xff] %vm439_vm0, %v1466_v57  ;;  %v1694_v62 = vld [vmem:[#allocation6 + $0x618] sm:$0xff]  ;;  %vm10912_vm0 = vmmov 0  }
 0x1d3   : > { %v1891_v63 = vpack.c.bf16 %v1711_v56, %v1702_v54  ;;  %v1701_v0 = vld [vmem:[#allocation6 + $0x650] sm:$0xff]  ;;  %v1710_v1 = vld [vmem:[#allocation6 + $0x698] sm:$0xff]  ;;  %v1704_v2 = vld [vmem:[#allocation6 + $0x668] sm:$0xff]  ;;  %v1883_v6 = vpack.c.bf16 %v1694_v62, %v1685_v61 }
 0x1d4   : > { %3087 = vmatmul.mubr.bf16.gmra.mrb[96].mxu1 %v1865_v41  ;;  %v1713_v55 = vld [vmem:[#allocation6 + $0x6b0] sm:$0xff]  ;;  %v1720_v5 = vld [vmem:[#allocation6 + $0x6e8] sm:$0xff]  ;;  %v1890_v13 = vpack.c.bf16 %v1710_v1, %v1701_v0  ;;  %v1703_v14 = vld [vmem:[#allocation6 + $0x660] sm:$0xff] }
 0x1d5   : > { %3094 = vmatprep.mubr.bf16.mxu1 %v1875_v44  ;;  %v1729_v9 = vld [vmem:[#allocation6 + $0x730] sm:$0xff]  ;;  %v1893_v11 = vpack.c.bf16 %v1713_v55, %v1704_v2  ;;  %v1712_v15 = vld [vmem:[#allocation6 + $0x6a8] sm:$0xff]  ;;  %v1722_v17 = vld [vmem:[#allocation6 + $0x6f8] sm:$0xff] }
 0x1d6   : > { %v1900_v16 = vpack.c.bf16 %v1729_v9, %v1720_v5  ;;  %v1731_v18 = vld [vmem:[#allocation6 + $0x740] sm:$0xff]  ;;  %v1728_v20 = vld [vmem:[#allocation6 + $0x728] sm:$0xff]  ;;  %v1738_v22 = vld [vmem:[#allocation6 + $0x778] sm:$0xff]  ;;  %v1892_v24 = vpack.c.bf16 %v1712_v15, %v1703_v14 }
 0x1d7   : > { %2934 = vmatmul.mubr.bf16.gmra.mrb[100].mxu0 %v1872_v45  ;;  %v1719_v19 = vld [vmem:[#allocation6 + $0x6e0] sm:$0xff]  ;;  %v1902_v29 = vpack.c.bf16 %v1731_v18, %v1722_v17  ;;  %v1721_v37 = vld [vmem:[#allocation6 + $0x6f0] sm:$0xff]  ;;  %v1730_v38 = vld [vmem:[#allocation6 + $0x738] sm:$0xff] }
 0x1d8   : > { %2941 = vmatprep.mubr.bf16.mxu0 %v1882_v46  ;;  %v1747_v25 = vld [vmem:[#allocation6 + $0x7c0] sm:$0xff]  ;;  %v1899_v32 = vpack.c.bf16 %v1728_v20, %v1719_v19  ;;  %v1740_v41 = vld [vmem:[#allocation6 + $0x788] sm:$0xff]  ;;  %v1749_v42 = vld [vmem:[#allocation6 + $0x7d0] sm:$0xff]  ;;  %v1901_v50 = vpack.c.bf16 %v1730_v38, %v1721_v37 }
 0x1d9   : > { %v1909_v39 = vpack.c.bf16 %v1747_v25, %v1738_v22  ;;  %v1737_v45 = vld [vmem:[#allocation6 + $0x770] sm:$0xff]  ;;  %v1746_v46 = vld [vmem:[#allocation6 + $0x7b8] sm:$0xff]  ;;  %v1756_v48 = vld [vmem:[#allocation6 + $0x808] sm:$0xff]  ;;  %v1911_v56 = vpack.c.bf16 %v1749_v42, %v1740_v41 }
 0x1da   : > { %v1765_v51 = vld [vmem:[#allocation6 + $0x850] sm:$0xff]  ;;  %v1739_v0 = vld [vmem:[#allocation6 + $0x780] sm:$0xff]  ;;  %v1748_v1 = vld [vmem:[#allocation6 + $0x7c8] sm:$0xff] }
 0x1db   : > { %v1918_v2 = vpack.c.bf16 %v1765_v51, %v1756_v48  ;;  %v1758_v55 = vld [vmem:[#allocation6 + $0x818] sm:$0xff]  ;;  %v1757_v25 = vld [vmem:[#allocation6 + $0x810] sm:$0xff]  ;;  %v1507_v37 = vld [vmem:[#allocation6 + $0x40] sm:$0xff] }
 0x1dc   : > { %3095 = vmatmul.mubr.bf16.gmra.mrb[100].mxu1 %v1874_v58 }
 0x1dd   : > { %3102 = vmatprep.mubr.bf16.mxu1 %v1884_v59  ;;  %v9541_v3 = vpop.f32.mrb[0].mxu0  ;;  %v1908_v59 = vpack.c.bf16 %v1746_v46, %v1737_v45 }
 0x1de   : > { %v9542_v4 = vpop.f32.mrb[1].mxu0 }
 0x1df   : > { %2942 = vmatmul.mubr.bf16.gmra.mrb[104].mxu0 %v1881_v60  ;;  %v9543_v7 = vadd.f32 %v9542_v4, %v9541_v3  ;;  %v9544_v8 = vpop.f32.mrb[2].mxu0  ;;  %v1767_v4 = vld [vmem:[#allocation6 + $0x860] sm:$0xff] }
 0x1e0   : > { %2949 = vmatprep.mubr.bf16.mxu0 %v1891_v63  ;;  %v9545_v10 = vpop.f32.mrb[3].mxu0  ;;  %v1920_v17 = vpack.c.bf16 %v1767_v4, %v1758_v55 }
 0x1e1   : > { %v9546_v12 = vadd.f32 %v9545_v10, %v9544_v8  ;;  %v1764_v8 = vld [vmem:[#allocation6 + $0x848] sm:$0xff]  ;;  %v1774_v10 = vld [vmem:[#allocation6 + $0x898] sm:$0xff] }
 0x1e4   : > { %3103 = vmatmul.mubr.bf16.gmra.mrb[104].mxu1 %v1883_v6 }
 0x1e5   : > { %3110 = vmatprep.mubr.bf16.mxu1 %v1893_v11 }
 0x1e7   : > { %2950 = vmatmul.mubr.bf16.gmra.mrb[108].mxu0 %v1890_v13  ;;  %v9653_v21 = vpop.f32.mrb[0].mxu1  ;;  %v1783_v13 = vld [vmem:[#allocation6 + $0x8e0] sm:$0xff] }
 0x1e8   : > { %2957 = vmatprep.mubr.bf16.mxu0 %v1900_v16  ;;  %v9654_v23 = vpop.f32.mrb[1].mxu1 }
 0x1e9   : > { %v9655_v26 = vadd.f32 %v9654_v23, %v9653_v21  ;;  %v9656_v27 = vpop.f32.mrb[2].mxu1 }
 0x1ea   : > { %v9547_v28 = vpop.f32.mrb[4].mxu0  ;;  %v9657_v30 = vpop.f32.mrb[3].mxu1 }
 0x1eb   : > { %v9548_v31 = vpop.f32.mrb[5].mxu0  ;;  %v12156_v33 = vadd.f32 %v9655_v26, %v9543_v7  ;;  %v9658_v34 = vadd.f32 %v9657_v30, %v9656_v27  ;;  %v1755_v7 = vld [vmem:[#allocation6 + $0x800] sm:$0xff]  ;;  %v1766_v26 = vld [vmem:[#allocation6 + $0x858] sm:$0xff]  ;;  %v1927_v27 = vpack.c.bf16 %v1783_v13, %v1774_v10  ;;  %v1785_v30 = vld [vmem:[#allocation6 + $0x8f0] sm:$0xff] }
 0x1ec   : > { %v9549_v35 = vadd.f32 %v9548_v31, %v9547_v28  ;;  %v9550_v36 = vpop.f32.mrb[6].mxu0  ;;  %3111 = vmatmul.mubr.bf16.gmra.mrb[108].mxu1 %v1892_v24  ;;  %v1917_v20 = vpack.c.bf16 %v1764_v8, %v1755_v7 }
 0x1ed   : > { %v9551_v40 = vpop.f32.mrb[7].mxu0  ;;  %v12158_v43 = vadd.f32 %v9658_v34, %v9546_v12  ;;  %3118 = vmatprep.mubr.bf16.mxu1 %v1902_v29  ;;  %v1910_v12 = vpack.c.bf16 %v1748_v1, %v1739_v0  ;;  %v1776_v29 = vld [vmem:[#allocation6 + $0x8a8] sm:$0xff]  ;;  %v1773_v34 = vld [vmem:[#allocation6 + $0x890] sm:$0xff]  ;;  %v1543_v0 = vld [vmem:[#allocation6 + $0x160] sm:$0xff] }
 0x1ee   : > { %v9552_v44 = vadd.f32 %v9551_v40, %v9550_v36  ;;  %v1516_v40 = vld [vmem:[#allocation6 + $0x88] sm:$0xff]  ;;  %v1929_v45 = vpack.c.bf16 %v1785_v30, %v1776_v29 }
 0x1ef   : > { %2958 = vmatmul.mubr.bf16.gmra.mrb[112].mxu0 %v1899_v32  ;;  %v9659_v47 = vpop.f32.mrb[4].mxu1 }
 0x1f0   : > { %2965 = vmatprep.mubr.bf16.mxu0 %v1909_v39  ;;  %v9660_v49 = vpop.f32.mrb[5].mxu1  ;;  %v1919_v39 = vpack.c.bf16 %v1766_v26, %v1757_v25 }
 0x1f1   : > { %v9661_v52 = vadd.f32 %v9660_v49, %v9659_v47  ;;  %v9662_v53 = vpop.f32.mrb[6].mxu1 }
 0x1f2   : > { %v9553_v54 = vpop.f32.mrb[8].mxu0  ;;  %v9663_v57 = vpop.f32.mrb[7].mxu1 }
 0x1f3   : > { %v9554_v58 = vpop.f32.mrb[9].mxu0  ;;  %v12160_v60 = vadd.f32 %v9661_v52, %v9549_v35  ;;  %v9664_v61 = vadd.f32 %v9663_v57, %v9662_v53  ;;  %v1782_v35 = vld [vmem:[#allocation6 + $0x8d8] sm:$0xff]  ;;  %v1775_v53 = vld [vmem:[#allocation6 + $0x8a0] sm:$0xff]  ;;  %v1784_v57 = vld [vmem:[#allocation6 + $0x8e8] sm:$0xff] }
 0x1f4   : > { %v9555_v62 = vadd.f32 %v9554_v58, %v9553_v54  ;;  %v9556_v63 = vpop.f32.mrb[10].mxu0  ;;  %3119 = vmatmul.mubr.bf16.gmra.mrb[112].mxu1 %v1901_v50  ;;  %v1926_v48 = vpack.c.bf16 %v1782_v35, %v1773_v34  ;;  %v1795_v54 = vpack.c.bf16 %v1516_v40, %v1507_v37 }
 0x1f5   : > { %v9557_v3 = vpop.f32.mrb[11].mxu0  ;;  %v12162_v5 = vadd.f32 %v9664_v61, %v9552_v44  ;;  %3126 = vmatprep.mubr.bf16.mxu1 %v1911_v56  ;;  %v1525_v61 = vld [vmem:[#allocation6 + $0xd0] sm:$0xff] }
 0x1f6   : > { %v9558_v6 = vadd.f32 %v9557_v3, %v9556_v63  ;;  %v1552_v3 = vld [vmem:[#allocation6 + $0x1a8] sm:$0xff] }
 0x1f7   : > { %2966 = vmatmul.mubr.bf16.gmra.mrb[116].mxu0 %v1908_v59  ;;  %v9665_v9 = vpop.f32.mrb[8].mxu1 }
 0x1f8   : > { %2973 = vmatprep.mubr.bf16.mxu0 %v1918_v2  ;;  %v9666_v11 = vpop.f32.mrb[9].mxu1  ;;  %v1928_v2 = vpack.c.bf16 %v1784_v57, %v1775_v53 }
 0x1f9   : > { %v9667_v14 = vadd.f32 %v9666_v11, %v9665_v9  ;;  %v9668_v15 = vpop.f32.mrb[10].mxu1 }
 0x1fa   : > { %v9559_v16 = vpop.f32.mrb[12].mxu0  ;;  %v9669_v18 = vpop.f32.mrb[11].mxu1 }
 0x1fb   : > { %v9560_v19 = vpop.f32.mrb[13].mxu0  ;;  %v12164_v21 = vadd.f32 %v9667_v14, %v9555_v62  ;;  %v9670_v22 = vadd.f32 %v9669_v18, %v9668_v15  ;;  %v1534_v62 = vld [vmem:[#allocation6 + $0x118] sm:$0xff]  ;;  %v1813_v14 = vpack.c.bf16 %v1552_v3, %v1543_v0  ;;  %v1561_v18 = vld [vmem:[#allocation6 + $0x1f0] sm:$0xff] }
 0x1fc   : > { %v9561_v23 = vadd.f32 %v9560_v19, %v9559_v16  ;;  %v9562_v24 = vpop.f32.mrb[14].mxu0  ;;  %3127 = vmatmul.mubr.bf16.gmra.mrb[116].mxu1 %v1910_v12  ;;  %v1804_v9 = vpack.c.bf16 %v1534_v62, %v1525_v61  ;;  %v1570_v19 = vld [vmem:[#allocation6 + $0x238] sm:$0xff] }
 0x1fd   : > { %v9563_v28 = vpop.f32.mrb[15].mxu0  ;;  %v12166_v31 = vadd.f32 %v9670_v22, %v9558_v6  ;;  %3134 = vmatprep.mubr.bf16.mxu1 %v1920_v17  ;;  %v1579_v22 = vld [vmem:[#allocation6 + $0x280] sm:$0xff]  ;;  %v1822_v30 = vpack.c.bf16 %v1570_v19, %v1561_v18  ;;  %v1642_v3 = vld [vmem:[#allocation6 + $0x478] sm:$0xff] }
 0x1fe   : > { %v9564_v32 = vadd.f32 %v9563_v28, %v9562_v24  ;;  %v1588_v24 = vld [vmem:[#allocation6 + $0x2c8] sm:$0xff] }
 0x1ff   : > { %2974 = vmatmul.mubr.bf16.gmra.mrb[120].mxu0 %v1917_v20  ;;  %v9671_v36 = vpop.f32.mrb[12].mxu1  ;;  %v1831_v37 = vpack.c.bf16 %v1588_v24, %v1579_v22 }
 0x200   : > { %2981 = vmatprep.mubr.bf16.mxu0 %v1927_v27  ;;  %v9672_v38 = vpop.f32.mrb[13].mxu1 }
 0x201   : > { %v9673_v41 = vadd.f32 %v9672_v38, %v9671_v36  ;;  %v9674_v42 = vpop.f32.mrb[14].mxu1 }
 0x202   : > { %v9565_v44 = vpop.f32.mrb[16].mxu0  ;;  %v9675_v46 = vpop.f32.mrb[15].mxu1 }
 0x203   : > { %v9566_v47 = vpop.f32.mrb[17].mxu0  ;;  %v12168_v49 = vadd.f32 %v9673_v41, %v9561_v23  ;;  %v9676_v50 = vadd.f32 %v9675_v46, %v9674_v42  ;;  %v1597_v41 = vld [vmem:[#allocation6 + $0x310] sm:$0xff]  ;;  %v1606_v42 = vld [vmem:[#allocation6 + $0x358] sm:$0xff] }
 0x204   : > { %v9567_v51 = vadd.f32 %v9566_v47, %v9565_v44  ;;  %v9568_v52 = vpop.f32.mrb[18].mxu0  ;;  %3135 = vmatmul.mubr.bf16.gmra.mrb[120].mxu1 %v1919_v39  ;;  %v1624_v47 = vld [vmem:[#allocation6 + $0x3e8] sm:$0xff] }
 0x205   : > { %v9569_v56 = vpop.f32.mrb[19].mxu0  ;;  %v12170_v58 = vadd.f32 %v9676_v50, %v9564_v32  ;;  %3142 = vmatprep.mubr.bf16.mxu1 %v1929_v45  ;;  %v1615_v45 = vld [vmem:[#allocation6 + $0x3a0] sm:$0xff] }
 0x206   : > { %v9570_v59 = vadd.f32 %v9569_v56, %v9568_v52  ;;  %v1849_v62 = vpack.c.bf16 %v1624_v47, %v1615_v45 }
 0x207   : > { %2982 = vmatmul.mubr.bf16.gmra.mrb[124].mxu0 %v1926_v48  ;;  %v9677_v63 = vpop.f32.mrb[16].mxu1 }
 0x208   : > { %10379 = vmatprep.mubr.bf16.mxu0 %v1795_v54  ;;  %v9678_v1 = vpop.f32.mrb[17].mxu1  ;;  %v1840_v54 = vpack.c.bf16 %v1606_v42, %v1597_v41 }
 0x209   : > { %v9679_v55 = vadd.f32 %v9678_v1, %v9677_v63  ;;  %v9680_v4 = vpop.f32.mrb[18].mxu1 }
 0x20a   : > { %v9571_v6 = vpop.f32.mrb[20].mxu0  ;;  %v9681_v7 = vpop.f32.mrb[19].mxu1 }
 0x20b   : > { %v9572_v8 = vpop.f32.mrb[21].mxu0  ;;  %v12172_v10 = vadd.f32 %v9679_v55, %v9567_v51  ;;  %v9682_v11 = vadd.f32 %v9681_v7, %v9680_v4  ;;  %v1651_v4 = vld [vmem:[#allocation6 + $0x4c0] sm:$0xff]  ;;  %v1660_v7 = vld [vmem:[#allocation6 + $0x508] sm:$0xff] }
 0x20c   : > { %v9573_v12 = vadd.f32 %v9572_v8, %v9571_v6  ;;  %v9574_v13 = vpop.f32.mrb[22].mxu0  ;;  %3143 = vmatmul.mubr.bf16.gmra.mrb[124].mxu1 %v1928_v2  ;;  %v1633_v2 = vld [vmem:[#allocation6 + $0x430] sm:$0xff] }
 0x20d   : > { %v9575_v15 = vpop.f32.mrb[23].mxu0  ;;  %v12174_v16 = vadd.f32 %v9682_v11, %v9570_v59 }
 0x20e   : > { %v9576_v17 = vadd.f32 %v9575_v15, %v9574_v13 }
 0x20f   : > { %10380 = vmatmul.mubr.bf16.vlgmr.msra.gmra.mrb[128].mxu0 %v1804_v9  ;;  %v9683_v20 = vpop.f32.mrb[20].mxu1 }
 0x210   : > { %10383 = vmatprep.mubr.bf16.mxu0 %v1813_v14  ;;  %v9684_v23 = vpop.f32.mrb[21].mxu1  ;;  %v1858_v14 = vpack.c.bf16 %v1642_v3, %v1633_v2 }
 0x211   : > { %v9685_v25 = vadd.f32 %v9684_v23, %v9683_v20  ;;  %v9686_v26 = vpop.f32.mrb[22].mxu1  ;;  %v1867_v20 = vpack.c.bf16 %v1660_v7, %v1651_v4 }
 0x212   : > { %v9577_v27 = vpop.f32.mrb[24].mxu0  ;;  %v9687_v28 = vpop.f32.mrb[23].mxu1 }
 0x213   : > { %v9578_v29 = vpop.f32.mrb[25].mxu0  ;;  %v12176_v32 = vadd.f32 %v9685_v25, %v9573_v12  ;;  %v9688_v34 = vadd.f32 %v9687_v28, %v9686_v26  ;;  %v1669_v25 = vld [vmem:[#allocation6 + $0x550] sm:$0xff]  ;;  %v1678_v26 = vld [vmem:[#allocation6 + $0x598] sm:$0xff]  ;;  %v1687_v28 = vld [vmem:[#allocation6 + $0x5e0] sm:$0xff] }
 0x214   : > { %v9579_v35 = vadd.f32 %v9578_v29, %v9577_v27  ;;  %v9580_v36 = vpop.f32.mrb[26].mxu0 }
 0x215   : > { %v9581_v38 = vpop.f32.mrb[27].mxu0  ;;  %v12178_v39 = vadd.f32 %v9688_v34, %v9576_v17 }
 0x216   : > { %v9582_v40 = vadd.f32 %v9581_v38, %v9580_v36 }
 0x217   : > { %10384 = vmatmul.mubr.bf16.gmra.mrb[132].mxu0 %v1822_v30  ;;  %v9689_v44 = vpop.f32.mrb[24].mxu1  ;;  %v1696_v30 = vld [vmem:[#allocation6 + $0x628] sm:$0xff] }
 0x218   : > { %10387 = vmatprep.mubr.bf16.mxu0 %v1831_v37  ;;  %v9690_v46 = vpop.f32.mrb[25].mxu1 }
 0x219   : > { %v9691_v48 = vadd.f32 %v9690_v46, %v9689_v44  ;;  %v9692_v50 = vpop.f32.mrb[26].mxu1  ;;  %v1885_v46 = vpack.c.bf16 %v1696_v30, %v1687_v28 }
 0x21a   : > { %v9583_v51 = vpop.f32.mrb[28].mxu0  ;;  %v9693_v52 = vpop.f32.mrb[27].mxu1 }
 0x21b   : > { %v9584_v53 = vpop.f32.mrb[29].mxu0  ;;  %v12180_v56 = vadd.f32 %v9691_v48, %v9579_v35  ;;  %v9694_v57 = vadd.f32 %v9693_v52, %v9692_v50  ;;  %v1714_v52 = vld [vmem:[#allocation6 + $0x6b8] sm:$0xff] }
 0x21c   : > { %v9585_v59 = vadd.f32 %v9584_v53, %v9583_v51  ;;  %v9586_v61 = vpop.f32.mrb[30].mxu0  ;;  %v1705_v51 = vld [vmem:[#allocation6 + $0x670] sm:$0xff] }
 0x21d   : > { %v9587_v63 = vpop.f32.mrb[31].mxu0  ;;  %v12182_v0 = vadd.f32 %v9694_v57, %v9582_v40  ;;  %v1876_v40 = vpack.c.bf16 %v1678_v26, %v1669_v25  ;;  %v1894_v3 = vpack.c.bf16 %v1714_v52, %v1705_v51 }
 0x21e   : > { %v9588_v1 = vadd.f32 %v9587_v63, %v9586_v61 }
 0x21f   : > { %10388 = vmatmul.mubr.bf16.gmra.mrb[136].mxu0 %v1840_v54  ;;  %v9695_v55 = vpop.f32.mrb[28].mxu1  ;;  %v1723_v54 = vld [vmem:[#allocation6 + $0x700] sm:$0xff] }
 0x220   : > { %10391 = vmatprep.mubr.bf16.mxu0 %v1849_v62  ;;  %v9696_v6 = vpop.f32.mrb[29].mxu1 }
 0x221   : > { %v9697_v8 = vadd.f32 %v9696_v6, %v9695_v55  ;;  %v9698_v9 = vpop.f32.mrb[30].mxu1 }
 0x222   : > { %v9589_v11 = vpop.f32.mrb[32].mxu0  ;;  %v9699_v12 = vpop.f32.mrb[31].mxu1 }
 0x223   : > { %v9590_v13 = vpop.f32.mrb[33].mxu0  ;;  %v12184_v15 = vadd.f32 %v9697_v8, %v9585_v59  ;;  %v9700_v17 = vadd.f32 %v9699_v12, %v9698_v9  ;;  %v1732_v59 = vld [vmem:[#allocation6 + $0x748] sm:$0xff]  ;;  %v10589_v9 = vld [vmem:[%s14268_s4 + $0x40] sm:$0xff]  }
 0x224   : > { %v9591_v18 = vadd.f32 %v9590_v13, %v9589_v11  ;;  %v9592_v19 = vpop.f32.mrb[34].mxu0  ;;  %v1903_v8 = vpack.c.bf16 %v1732_v59, %v1723_v54  ;;  %9997 = vmatprep.subr.bf16.mxu1 %v10589_v9 }
 0x225   : > { %v9593_v22 = vpop.f32.mrb[35].mxu0  ;;  %v12186_v23 = vadd.f32 %v9700_v17, %v9588_v1  ;;  %v1750_v17 = vld [vmem:[#allocation6 + $0x7d8] sm:$0xff] }
 0x226   : > { %v9594_v24 = vadd.f32 %v9593_v22, %v9592_v19 }
 0x227   : > { %10392 = vmatmul.mubr.bf16.gmra.mrb[140].mxu0 %v1858_v14  ;;  %v9701_v27 = vpop.f32.mrb[32].mxu1  ;;  %v1741_v14 = vld [vmem:[#allocation6 + $0x790] sm:$0xff] }
 0x228   : > { %10395 = vmatprep.mubr.bf16.mxu0 %v1867_v20  ;;  %v9702_v29 = vpop.f32.mrb[33].mxu1  ;;  %v1759_v20 = vld [vmem:[#allocation6 + $0x820] sm:$0xff]  ;;  %v1912_v30 = vpack.c.bf16 %v1750_v17, %v1741_v14 }
 0x229   : > { %v9703_v34 = vadd.f32 %v9702_v29, %v9701_v27  ;;  %v9704_v35 = vpop.f32.mrb[34].mxu1 }
 0x22a   : > { %v9595_v36 = vpop.f32.mrb[36].mxu0  ;;  %v9705_v37 = vpop.f32.mrb[35].mxu1 }
 0x22b   : > { %v9596_v38 = vpop.f32.mrb[37].mxu0  ;;  %v12188_v41 = vadd.f32 %v9703_v34, %v9591_v18  ;;  %v9706_v42 = vadd.f32 %v9705_v37, %v9704_v35  ;;  %v10590_v18 = vld [vmem:[%s14268_s4] sm:$0xff]  }
 0x22c   : > { %v9597_v44 = vadd.f32 %v9596_v38, %v9595_v36  ;;  %v9598_v45 = vpop.f32.mrb[38].mxu0  ;;  %9998 = vmatpush3.bf16.msra.mxu1 %v10590_v18 }
 0x22d   : > { %v9599_v47 = vpop.f32.mrb[39].mxu0  ;;  %v12190_v48 = vadd.f32 %v9706_v42, %v9594_v24  ;;  %v1768_v24 = vld [vmem:[#allocation6 + $0x868] sm:$0xff] }
 0x22e   : > { %v9600_v50 = vadd.f32 %v9599_v47, %v9598_v45  ;;  %v1921_v38 = vpack.c.bf16 %v1768_v24, %v1759_v20  ;;  %v1777_v45 = vld [vmem:[#allocation6 + $0x8b0] sm:$0xff]  ;;  %v1786_v47 = vld [vmem:[#allocation6 + $0x8f8] sm:$0xff] }
 0x22f   : > { %10396 = vmatmul.mubr.bf16.gmra.mrb[144].mxu0 %v1876_v40  ;;  %v9707_v53 = vpop.f32.mrb[36].mxu1  ;;  %v1930_v59 = vpack.c.bf16 %v1786_v47, %v1777_v45  ;;  %v10593_v47 = vld [vmem:[%s14268_s4 + $0x50] sm:$0xff]  }
 0x230   : > { %10399 = vmatprep.mubr.bf16.mxu0 %v1885_v46  ;;  %v9708_v57 = vpop.f32.mrb[37].mxu1 }
 0x231   : > { %v9709_v61 = vadd.f32 %v9708_v57, %v9707_v53  ;;  %v9710_v62 = vpop.f32.mrb[38].mxu1 }
 0x232   : > { %v9601_v63 = vpop.f32.mrb[40].mxu0  ;;  %v9711_v1 = vpop.f32.mrb[39].mxu1 }
 0x233   : > { %v9602_v2 = vpop.f32.mrb[41].mxu0  ;;  %v12192_v55 = vadd.f32 %v9709_v61, %v9597_v44  ;;  %v9712_v4 = vadd.f32 %v9711_v1, %v9710_v62 }
 0x234   : > { %v9603_v6 = vadd.f32 %v9602_v2, %v9601_v63  ;;  %v9604_v7 = vpop.f32.mrb[42].mxu0  ;;  %v10591_v2 = vld [vmem:[%s14268_s4 + $0x48] sm:$0xff]  }
 0x235   : > { %v9605_v11 = vpop.f32.mrb[43].mxu0  ;;  %v12197_v12 = vadd.f32 %v9712_v4, %v9600_v50  ;;  %9999 = vmatprep.subr.bf16.mxu1 %v10591_v2 }
 0x236   : > { %v9606_v13 = vadd.f32 %v9605_v11, %v9604_v7  ;;  %v10592_v7 = vld [vmem:[%s14268_s4 + $0x8] sm:$0xff]  }
 0x237   : > { %10400 = vmatmul.mubr.bf16.gmra.mrb[148].mxu0 %v1894_v3  ;;  %v9713_v19 = vpop.f32.mrb[40].mxu1  ;;  %10000 = vmatpush3.bf16.msra.mxu1 %v10592_v7 }
 0x238   : > { %10403 = vmatprep.mubr.bf16.mxu0 %v1903_v8  ;;  %v9714_v22 = vpop.f32.mrb[41].mxu1  ;;  %10001 = vmatprep.subr.bf16.mxu1 %v10593_v47 }
 0x239   : > { %v9715_v25 = vadd.f32 %v9714_v22, %v9713_v19  ;;  %v9716_v26 = vpop.f32.mrb[42].mxu1 }
 0x23a   : > { %v9607_v27 = vpop.f32.mrb[44].mxu0  ;;  %v9717_v28 = vpop.f32.mrb[43].mxu1 }
 0x23b   : > { %v9608_v29 = vpop.f32.mrb[45].mxu0  ;;  %v12202_v34 = vadd.f32 %v9715_v25, %v9603_v6  ;;  %v9718_v35 = vadd.f32 %v9717_v28, %v9716_v26 }
 0x23c   : > { %v9609_v36 = vadd.f32 %v9608_v29, %v9607_v27  ;;  %v9610_v37 = vpop.f32.mrb[46].mxu0 }
 0x23d   : > { %v9611_v40 = vpop.f32.mrb[47].mxu0  ;;  %v12204_v42 = vadd.f32 %v9718_v35, %v9606_v13 }
 0x23e   : > { %v9612_v44 = vadd.f32 %v9611_v40, %v9610_v37 }
 0x23f   : > { %10404 = vmatmul.mubr.bf16.gmra.mrb[152].mxu0 %v1912_v30  ;;  %v9719_v46 = vpop.f32.mrb[44].mxu1 }
 0x240   : > { %10407 = vmatprep.mubr.bf16.mxu0 %v1921_v38  ;;  %v9720_v50 = vpop.f32.mrb[45].mxu1 }
 0x241   : > { %v9721_v51 = vadd.f32 %v9720_v50, %v9719_v46  ;;  %v9722_v52 = vpop.f32.mrb[46].mxu1 }
 0x242   : > { %v9613_v53 = vpop.f32.mrb[48].mxu0  ;;  %v9723_v54 = vpop.f32.mrb[47].mxu1 }
 0x243   : > { %v9614_v57 = vpop.f32.mrb[49].mxu0  ;;  %v12206_v61 = vadd.f32 %v9721_v51, %v9609_v36  ;;  %v9724_v62 = vadd.f32 %v9723_v54, %v9722_v52 }
 0x244   : > { %v9615_v63 = vadd.f32 %v9614_v57, %v9613_v53  ;;  %v9616_v1 = vpop.f32.mrb[50].mxu0  ;;  %v10594_v53 = vld [vmem:[%s14268_s4 + $0x10] sm:$0xff]  }
 0x245   : > { %v9617_v3 = vpop.f32.mrb[51].mxu0  ;;  %v12211_v4 = vadd.f32 %v9724_v62, %v9612_v44  ;;  %10002 = vmatpush3.bf16.msra.mxu1 %v10594_v53 }
 0x246   : > { %v9618_v6 = vadd.f32 %v9617_v3, %v9616_v1 }
 0x247   : > { %10408 = vmatmul.mubr.bf16.gmra.mrb[156].mxu0 %v1930_v59  ;;  %v9725_v8 = vpop.f32.mrb[48].mxu1 }
 0x248   : > { %v9726_v9 = vpop.f32.mrb[49].mxu1 }
 0x249   : > { %v9727_v11 = vadd.f32 %v9726_v9, %v9725_v8  ;;  %v9728_v13 = vpop.f32.mrb[50].mxu1 }
 0x24a   : > { %v9619_v14 = vpop.f32.mrb[52].mxu0  ;;  %v9729_v17 = vpop.f32.mrb[51].mxu1 }
 0x24b   : > { %v9620_v18 = vpop.f32.mrb[53].mxu0  ;;  %v12216_v19 = vadd.f32 %v9727_v11, %v9615_v63  ;;  %v9730_v20 = vadd.f32 %v9729_v17, %v9728_v13 }
 0x24c   : > { %v9621_v22 = vadd.f32 %v9620_v18, %v9619_v14  ;;  %v9622_v24 = vpop.f32.mrb[54].mxu0 }
 0x24d   : > { %v9623_v25 = vpop.f32.mrb[55].mxu0  ;;  %v12218_v26 = vadd.f32 %v9730_v20, %v9618_v6 }
 0x24e   : > { %v9624_v27 = vadd.f32 %v9623_v25, %v9622_v24 }
 0x24f   : > { %v9731_v28 = vpop.f32.mrb[52].mxu1 }
 0x250   : > { %v9732_v29 = vpop.f32.mrb[53].mxu1 }
 0x251   : > { %v9733_v30 = vadd.f32 %v9732_v29, %v9731_v28  ;;  %v9734_v35 = vpop.f32.mrb[54].mxu1 }
 0x252   : > { %v9625_v36 = vpop.f32.mrb[56].mxu0  ;;  %v9735_v37 = vpop.f32.mrb[55].mxu1 }
 0x253   : > { %v9626_v38 = vpop.f32.mrb[57].mxu0  ;;  %v12220_v40 = vadd.f32 %v9733_v30, %v9621_v22  ;;  %v9736_v44 = vadd.f32 %v9735_v37, %v9734_v35 }
 0x254   : > { %v9627_v45 = vadd.f32 %v9626_v38, %v9625_v36  ;;  %v9628_v46 = vpop.f32.mrb[58].mxu0  ;;  %v10838_v36 = vld [vmem:[#allocation7] sm:$0xff] }
 0x255   : > { %v9629_v50 = vpop.f32.mrb[59].mxu0  ;;  %v12225_v51 = vadd.f32 %v9736_v44, %v9624_v27  ;;  %514 = vst.msk [vmem:[#allocation3] sm:$0xff] %vm513_vm2, %v10838_v36  ;;  %515 = vst.msk [vmem:[#allocation3 + $0x8] sm:$0xff] %vm513_vm2, %v10838_v36 }
 0x256   : > { %v9630_v52 = vadd.f32 %v9629_v50, %v9628_v46  ;;  %518 = vst.msk [vmem:[#allocation3 + $0x18] sm:$0xff] %vm513_vm2, %v10838_v36  ;;  %519 = vst.msk [vmem:[#allocation3 + $0x20] sm:$0xff] %vm513_vm2, %v10838_v36 }
 0x257   : > { %v9737_v54 = vpop.f32.mrb[56].mxu1  ;;  %521 = vst.msk [vmem:[#allocation3 + $0x30] sm:$0xff] %vm513_vm2, %v10838_v36  ;;  %522 = vst.msk [vmem:[#allocation3 + $0x38] sm:$0xff] %vm513_vm2, %v10838_v36 }
 0x258   : > { %v9738_v57 = vpop.f32.mrb[57].mxu1  ;;  %524 = vst.msk [vmem:[#allocation3 + $0x48] sm:$0xff] %vm513_vm2, %v10838_v36  ;;  %525 = vst.msk [vmem:[#allocation3 + $0x50] sm:$0xff] %vm513_vm2, %v10838_v36 }
 0x259   : > { %v9739_v59 = vadd.f32 %v9738_v57, %v9737_v54  ;;  %v9740_v62 = vpop.f32.mrb[58].mxu1  ;;  %527 = vst.msk [vmem:[#allocation3 + $0x60] sm:$0xff] %vm513_vm2, %v10838_v36  ;;  %528 = vst.msk [vmem:[#allocation3 + $0x68] sm:$0xff] %vm513_vm2, %v10838_v36 }
 0x25a   : > { %v9631_v63 = vpop.f32.mrb[60].mxu0  ;;  %v9741_v1 = vpop.f32.mrb[59].mxu1  ;;  %530 = vst.msk [vmem:[#allocation3 + $0x78] sm:$0xff] %vm513_vm2, %v10838_v36  ;;  %531 = vst.msk [vmem:[#allocation3 + $0x80] sm:$0xff] %vm513_vm2, %v10838_v36 }
 0x25b   : > { %v9632_v2 = vpop.f32.mrb[61].mxu0  ;;  %v12230_v3 = vadd.f32 %v9739_v59, %v9627_v45  ;;  %v9742_v6 = vadd.f32 %v9741_v1, %v9740_v62  ;;  %533 = vst.msk [vmem:[#allocation3 + $0x90] sm:$0xff] %vm513_vm2, %v10838_v36  ;;  %534 = vst.msk [vmem:[#allocation3 + $0x98] sm:$0xff] %vm513_vm2, %v10838_v36 }
 0x25c   : > { %v9633_v7 = vadd.f32 %v9632_v2, %v9631_v63  ;;  %v9634_v8 = vpop.f32.mrb[62].mxu0  ;;  %536 = vst.msk [vmem:[#allocation3 + $0xa8] sm:$0xff] %vm513_vm2, %v10838_v36  ;;  %537 = vst.msk [vmem:[#allocation3 + $0xb0] sm:$0xff] %vm513_vm2, %v10838_v36 }
 0x25d   : > { %v9635_v9 = vpop.f32.mrb[63].mxu0  ;;  %v12232_v11 = vadd.f32 %v9742_v6, %v9630_v52  ;;  %539 = vst.msk [vmem:[#allocation3 + $0xc0] sm:$0xff] %vm513_vm2, %v10838_v36  ;;  %540 = vst.msk [vmem:[#allocation3 + $0xc8] sm:$0xff] %vm513_vm2, %v10838_v36 }
 0x25e   : > { %v9636_v13 = vadd.f32 %v9635_v9, %v9634_v8  ;;  %542 = vst.msk [vmem:[#allocation3 + $0xd8] sm:$0xff] %vm513_vm2, %v10838_v36  ;;  %543 = vst.msk [vmem:[#allocation3 + $0xe0] sm:$0xff] %vm513_vm2, %v10838_v36 }
 0x25f   : > { %v9743_v14 = vpop.f32.mrb[60].mxu1 }
 0x260   : > { %v9744_v17 = vpop.f32.mrb[61].mxu1 }
 0x261   : > { %v9745_v18 = vadd.f32 %v9744_v17, %v9743_v14  ;;  %v9746_v20 = vpop.f32.mrb[62].mxu1 }
 0x262   : > { %v9765_v22 = vpop.f32.mrb[64].mxu0  ;;  %v9747_v24 = vpop.f32.mrb[63].mxu1 }
 0x263   : > { %v9766_v25 = vpop.f32.mrb[65].mxu0  ;;  %v12234_v27 = vadd.f32 %v9745_v18, %v9633_v7  ;;  %v9748_v28 = vadd.f32 %v9747_v24, %v9746_v20 }
 0x264   : > { %v9767_v29 = vadd.f32 %v9766_v25, %v9765_v22  ;;  %v9768_v30 = vpop.f32.mrb[66].mxu0 }
 0x265   : > { %v9769_v35 = vpop.f32.mrb[67].mxu0  ;;  %v12256_v37 = vadd.f32 %v9748_v28, %v9636_v13 }
 0x266   : > { %v2864_v38 = vadd.f32 %v9767_v29, %v12156_v33  ;;  %v9770_v44 = vadd.f32 %v9769_v35, %v9768_v30 }
 0x267   : > { %v9877_v45 = vpop.f32.mrb[64].mxu1 }
 0x268   : > { %v2867_v46 = vadd.f32 %v9770_v44, %v12158_v43  ;;  %v9878_v47 = vpop.f32.mrb[65].mxu1 }
 0x269   : > { %v9879_v50 = vadd.f32 %v9878_v47, %v9877_v45  ;;  %v9880_v52 = vpop.f32.mrb[66].mxu1 }
 0x26a   : > { %v9771_v53 = vpop.f32.mrb[68].mxu0  ;;  %v9881_v54 = vpop.f32.mrb[67].mxu1 }
 0x26b   : > { %v9772_v57 = vpop.f32.mrb[69].mxu0  ;;  %v9882_v59 = vadd.f32 %v9881_v54, %v9880_v52  ;;  %v12260_v1 = vadd.f32 %v9879_v50, %v2864_v38 }
 0x26c   : > { %v9773_v62 = vadd.f32 %v9772_v57, %v9771_v53  ;;  %v9774_v63 = vpop.f32.mrb[70].mxu0 }
 0x26d   : > { %v9775_v2 = vpop.f32.mrb[71].mxu0  ;;  %v12263_v33 = vadd.f32 %v9882_v59, %v2867_v46 }
 0x26e   : > { %v2872_v6 = vadd.f32 %v9773_v62, %v12160_v60  ;;  %v9776_v7 = vadd.f32 %v9775_v2, %v9774_v63  ;;  %v10595_v63 = vld [vmem:[%s14268_s4 + $0x58] sm:$0xff]  }
 0x26f   : > { %v9883_v8 = vpop.f32.mrb[68].mxu1  ;;  %10003 = vmatprep.subr.bf16.mxu1 %v10595_v63 }
 0x270   : > { %v2875_v43 = vadd.f32 %v9776_v7, %v12162_v5  ;;  %v9884_v9 = vpop.f32.mrb[69].mxu1 }
 0x271   : > { %v9885_v13 = vadd.f32 %v9884_v9, %v9883_v8  ;;  %v9886_v14 = vpop.f32.mrb[70].mxu1 }
 0x272   : > { %v9777_v17 = vpop.f32.mrb[72].mxu0  ;;  %v9887_v18 = vpop.f32.mrb[71].mxu1 }
 0x273   : > { %v9778_v20 = vpop.f32.mrb[73].mxu0  ;;  %v9888_v22 = vadd.f32 %v9887_v18, %v9886_v14  ;;  %v12266_v28 = vadd.f32 %v9885_v13, %v2872_v6 }
 0x274   : > { %v9779_v24 = vadd.f32 %v9778_v20, %v9777_v17  ;;  %v9780_v25 = vpop.f32.mrb[74].mxu0 }
 0x275   : > { %v9781_v29 = vpop.f32.mrb[75].mxu0  ;;  %v12269_v35 = vadd.f32 %v9888_v22, %v2875_v43 }
 0x276   : > { %v2880_v60 = vadd.f32 %v9779_v24, %v12164_v21  ;;  %v9782_v30 = vadd.f32 %v9781_v29, %v9780_v25 }
 0x277   : > { %v9889_v36 = vpop.f32.mrb[72].mxu1 }
 0x278   : > { %v2883_v5 = vadd.f32 %v9782_v30, %v12166_v31  ;;  %v9890_v38 = vpop.f32.mrb[73].mxu1 }
 0x279   : > { %v9891_v44 = vadd.f32 %v9890_v38, %v9889_v36  ;;  %v9892_v45 = vpop.f32.mrb[74].mxu1 }
 0x27a   : > { %v9783_v46 = vpop.f32.mrb[76].mxu0  ;;  %v9893_v47 = vpop.f32.mrb[75].mxu1 }
 0x27b   : > { %v9784_v50 = vpop.f32.mrb[77].mxu0  ;;  %v9894_v52 = vadd.f32 %v9893_v47, %v9892_v45  ;;  %v12272_v57 = vadd.f32 %v9891_v44, %v2880_v60 }
 0x27c   : > { %v9785_v53 = vadd.f32 %v9784_v50, %v9783_v46  ;;  %v9786_v54 = vpop.f32.mrb[78].mxu0 }
 0x27d   : > { %v9787_v59 = vpop.f32.mrb[79].mxu0  ;;  %v12278_v31 = vadd.f32 %v9894_v52, %v2883_v5 }
 0x27e   : > { %v2888_v21 = vadd.f32 %v9785_v53, %v12168_v49  ;;  %v9788_v62 = vadd.f32 %v9787_v59, %v9786_v54  ;;  %v10596_v49 = vld [vmem:[%s14268_s4 + $0x18] sm:$0xff]  }
 0x27f   : > { %v9895_v2 = vpop.f32.mrb[76].mxu1  ;;  %10004 = vmatpush3.bf16.msra.mxu1 %v10596_v49 }
 0x280   : > { %v2891_v6 = vadd.f32 %v9788_v62, %v12170_v58  ;;  %v9896_v7 = vpop.f32.mrb[77].mxu1 }
 0x281   : > { %v9897_v8 = vadd.f32 %v9896_v7, %v9895_v2  ;;  %v9898_v43 = vpop.f32.mrb[78].mxu1 }
 0x282   : > { %v9789_v9 = vpop.f32.mrb[80].mxu0  ;;  %v9899_v13 = vpop.f32.mrb[79].mxu1 }
 0x283   : > { %v9790_v14 = vpop.f32.mrb[81].mxu0  ;;  %v9900_v17 = vadd.f32 %v9899_v13, %v9898_v43  ;;  %v12284_v22 = vadd.f32 %v9897_v8, %v2888_v21 }
 0x284   : > { %v9791_v18 = vadd.f32 %v9790_v14, %v9789_v9  ;;  %v9792_v20 = vpop.f32.mrb[82].mxu0 }
 0x285   : > { %v9793_v24 = vpop.f32.mrb[83].mxu0  ;;  %v12287_v29 = vadd.f32 %v9900_v17, %v2891_v6 }
 0x286   : > { %v2896_v58 = vadd.f32 %v9791_v18, %v12172_v10  ;;  %v9794_v25 = vadd.f32 %v9793_v24, %v9792_v20 }
 0x287   : > { %v9901_v60 = vpop.f32.mrb[80].mxu1 }
 0x288   : > { %v2899_v30 = vadd.f32 %v9794_v25, %v12174_v16  ;;  %v9902_v36 = vpop.f32.mrb[81].mxu1 }
 0x289   : > { %v9903_v5 = vadd.f32 %v9902_v36, %v9901_v60  ;;  %v9904_v38 = vpop.f32.mrb[82].mxu1 }
 0x28a   : > { %v9795_v44 = vpop.f32.mrb[84].mxu0  ;;  %v9905_v45 = vpop.f32.mrb[83].mxu1 }
 0x28b   : > { %v9796_v46 = vpop.f32.mrb[85].mxu0  ;;  %v9906_v47 = vadd.f32 %v9905_v45, %v9904_v38  ;;  %v12290_v53 = vadd.f32 %v9903_v5, %v2896_v58 }
 0x28c   : > { %v9797_v50 = vadd.f32 %v9796_v46, %v9795_v44  ;;  %v9798_v52 = vpop.f32.mrb[86].mxu0 }
 0x28d   : > { %v9799_v54 = vpop.f32.mrb[87].mxu0  ;;  %v12293_v21 = vadd.f32 %v9906_v47, %v2899_v30 }
 0x28e   : > { %v2904_v10 = vadd.f32 %v9797_v50, %v12176_v32  ;;  %v9800_v59 = vadd.f32 %v9799_v54, %v9798_v52 }
 0x28f   : > { %v9907_v62 = vpop.f32.mrb[84].mxu1 }
 0x290   : > { %v2907_v16 = vadd.f32 %v9800_v59, %v12178_v39  ;;  %v9908_v63 = vpop.f32.mrb[85].mxu1 }
 0x291   : > { %v9909_v2 = vadd.f32 %v9908_v63, %v9907_v62  ;;  %v9910_v6 = vpop.f32.mrb[86].mxu1 }
 0x292   : > { %v9801_v7 = vpop.f32.mrb[88].mxu0  ;;  %v9911_v8 = vpop.f32.mrb[87].mxu1 }
 0x293   : > { %v9802_v43 = vpop.f32.mrb[89].mxu0  ;;  %v9912_v9 = vadd.f32 %v9911_v8, %v9910_v6  ;;  %v12296_v49 = vadd.f32 %v9909_v2, %v2904_v10 }
 0x294   : > { %v9803_v13 = vadd.f32 %v9802_v43, %v9801_v7  ;;  %v9804_v14 = vpop.f32.mrb[90].mxu0 }
 0x295   : > { %v9805_v17 = vpop.f32.mrb[91].mxu0  ;;  %v12299_v20 = vadd.f32 %v9912_v9, %v2907_v16 }
 0x296   : > { %v2912_v32 = vadd.f32 %v9803_v13, %v12180_v56  ;;  %v9806_v18 = vadd.f32 %v9805_v17, %v9804_v14 }
 0x297   : > { %v9913_v24 = vpop.f32.mrb[88].mxu1 }
 0x298   : > { %v2915_v39 = vadd.f32 %v9806_v18, %v12182_v0  ;;  %v9914_v58 = vpop.f32.mrb[89].mxu1 }
 0x299   : > { %v9915_v25 = vadd.f32 %v9914_v58, %v9913_v24  ;;  %v9916_v60 = vpop.f32.mrb[90].mxu1 }
 0x29a   : > { %v9807_v30 = vpop.f32.mrb[92].mxu0  ;;  %v9917_v36 = vpop.f32.mrb[91].mxu1 }
 0x29b   : > { %v9808_v5 = vpop.f32.mrb[93].mxu0  ;;  %v9918_v38 = vadd.f32 %v9917_v36, %v9916_v60  ;;  %v12302_v46 = vadd.f32 %v9915_v25, %v2912_v32 }
 0x29c   : > { %v9809_v44 = vadd.f32 %v9808_v5, %v9807_v30  ;;  %v9810_v45 = vpop.f32.mrb[94].mxu0 }
 0x29d   : > { %v9811_v47 = vpop.f32.mrb[95].mxu0  ;;  %v12305_v52 = vadd.f32 %v9918_v38, %v2915_v39 }
 0x29e   : > { %v2920_v56 = vadd.f32 %v9809_v44, %v12184_v15  ;;  %v9812_v50 = vadd.f32 %v9811_v47, %v9810_v45 }
 0x29f   : > { %v9919_v54 = vpop.f32.mrb[92].mxu1 }
 0x2a0   : > { %v2923_v0 = vadd.f32 %v9812_v50, %v12186_v23  ;;  %v9920_v10 = vpop.f32.mrb[93].mxu1 }
 0x2a1   : > { %v9921_v59 = vadd.f32 %v9920_v10, %v9919_v54  ;;  %v9922_v62 = vpop.f32.mrb[94].mxu1 }
 0x2a2   : > { %v9813_v16 = vpop.f32.mrb[96].mxu0  ;;  %v9923_v63 = vpop.f32.mrb[95].mxu1 }
 0x2a3   : > { %v9814_v2 = vpop.f32.mrb[97].mxu0  ;;  %v9924_v6 = vadd.f32 %v9923_v63, %v9922_v62  ;;  %v12308_v43 = vadd.f32 %v9921_v59, %v2920_v56 }
 0x2a4   : > { %v9815_v7 = vadd.f32 %v9814_v2, %v9813_v16  ;;  %v9816_v8 = vpop.f32.mrb[98].mxu0 }
 0x2a5   : > { %v9817_v9 = vpop.f32.mrb[99].mxu0  ;;  %v12311_v14 = vadd.f32 %v9924_v6, %v2923_v0 }
 0x2a6   : > { %v2928_v15 = vadd.f32 %v9815_v7, %v12188_v41  ;;  %v9818_v13 = vadd.f32 %v9817_v9, %v9816_v8 }
 0x2a7   : > { %v9925_v17 = vpop.f32.mrb[96].mxu1 }
 0x2a8   : > { %v12314_v23 = vadd.f32 %v9818_v13, %v12190_v48  ;;  %v9926_v32 = vpop.f32.mrb[97].mxu1 }
 0x2a9   : > { %v9927_v18 = vadd.f32 %v9926_v32, %v9925_v17  ;;  %v9928_v24 = vpop.f32.mrb[98].mxu1 }
 0x2aa   : > { %v9819_v39 = vpop.f32.mrb[100].mxu0  ;;  %v9929_v58 = vpop.f32.mrb[99].mxu1 }
 0x2ab   : > { %v9820_v25 = vpop.f32.mrb[101].mxu0  ;;  %v12316_v60 = vadd.f32 %v9929_v58, %v9928_v24  ;;  %v12328_v8 = vadd.f32 %v9927_v18, %v2928_v15 }
 0x2ac   : > { %v9821_v30 = vadd.f32 %v9820_v25, %v9819_v39  ;;  %v9822_v36 = vpop.f32.mrb[102].mxu0 }
 0x2ad   : > { %v9823_v5 = vpop.f32.mrb[103].mxu0 }
 0x2ae   : > { %v2936_v41 = vadd.f32 %v9821_v30, %v12192_v55  ;;  %v9824_v38 = vadd.f32 %v9823_v5, %v9822_v36 }
 0x2af   : > { %v9931_v44 = vpop.f32.mrb[100].mxu1 }
 0x2b0   : > { %v2939_v45 = vadd.f32 %v9824_v38, %v12197_v12  ;;  %v9932_v47 = vpop.f32.mrb[101].mxu1 }
 0x2b1   : > { %v9933_v48 = vadd.f32 %v9932_v47, %v9931_v44  ;;  %v9934_v56 = vpop.f32.mrb[102].mxu1 }
 0x2b2   : > { %v9825_v50 = vpop.f32.mrb[104].mxu0  ;;  %v9935_v54 = vpop.f32.mrb[103].mxu1 }
 0x2b3   : > { %v9826_v0 = vpop.f32.mrb[105].mxu0  ;;  %v9936_v10 = vadd.f32 %v9935_v54, %v9934_v56  ;;  %v12323_v6 = vadd.f32 %v9933_v48, %v2936_v41 }
 0x2b4   : > { %v9827_v59 = vadd.f32 %v9826_v0, %v9825_v50  ;;  %v9828_v62 = vpop.f32.mrb[106].mxu0 }
 0x2b5   : > { %v9829_v16 = vpop.f32.mrb[107].mxu0 }
 0x2b6   : > { %v12321_v63 = vadd.f32 %v9827_v59, %v12202_v34  ;;  %v9830_v2 = vadd.f32 %v9829_v16, %v9828_v62  ;;  %v12347_v59 = vadd.f32 %v9936_v10, %v2939_v45  ;;  %v12358_v45 = vadd.f32 %v12316_v60, %v12314_v23 }
 0x2b7   : > { %v9937_v55 = vpop.f32.mrb[104].mxu1 }
 0x2b8   : > { %14288 = vst [vmem:[#allocation17_spill] sm:$0xff] %v12321_v63  ;;  %v12326_v7 = vadd.f32 %v9830_v2, %v12204_v42  ;;  %v9938_v12 = vpop.f32.mrb[105].mxu1 }
 0x2b9   : > { %v12330_v9 = vadd.f32 %v9938_v12, %v9937_v55  ;;  %v9940_v13 = vpop.f32.mrb[106].mxu1 }
 0x2ba   : > { %14289 = vst [vmem:[#allocation18_spill] sm:$0xff] %v12326_v7  ;;  %v9831_v17 = vpop.f32.mrb[108].mxu0  ;;  %v9941_v32 = vpop.f32.mrb[107].mxu1 }
 0x2bb   : > { %14290 = vst [vmem:[#allocation19_spill] sm:$0xff] %v12330_v9  ;;  %v9832_v24 = vpop.f32.mrb[109].mxu0  ;;  %v12332_v39 = vadd.f32 %v9941_v32, %v9940_v13 }
 0x2bc   : > { %v9833_v34 = vadd.f32 %v9832_v24, %v9831_v17  ;;  %v9834_v58 = vpop.f32.mrb[110].mxu0 }
 0x2bd   : > { %14291 = vst [vmem:[#allocation20_spill] sm:$0xff] %v12332_v39  ;;  %v9835_v25 = vpop.f32.mrb[111].mxu0 }
 0x2be   : > { %v12335_v30 = vadd.f32 %v9833_v34, %v12206_v61  ;;  %v9836_v36 = vadd.f32 %v9835_v25, %v9834_v58 }
 0x2bf   : > { %v9943_v42 = vpop.f32.mrb[108].mxu1 }
 0x2c0   : > { %v12338_v5 = vadd.f32 %v9836_v36, %v12211_v4  ;;  %v9944_v15 = vpop.f32.mrb[109].mxu1 }
 0x2c1   : > { %v12340_v18 = vadd.f32 %v9944_v15, %v9943_v42  ;;  %v9946_v41 = vpop.f32.mrb[110].mxu1 }
 0x2c2   : > { %14292 = vst [vmem:[#allocation21_spill] sm:$0xff] %v12338_v5  ;;  %v9837_v38 = vpop.f32.mrb[112].mxu0  ;;  %v9947_v44 = vpop.f32.mrb[111].mxu1 }
 0x2c3   : > { %v9838_v47 = vpop.f32.mrb[113].mxu0  ;;  %v12342_v48 = vadd.f32 %v9947_v44, %v9946_v41 }
 0x2c4   : > { %v9839_v56 = vadd.f32 %v9838_v47, %v9837_v38  ;;  %v9840_v50 = vpop.f32.mrb[114].mxu0  ;;  %v10597_v38 = vld [vmem:[%s14268_s4 + $0x60] sm:$0xff]  }
 0x2c5   : > { %14293 = vst [vmem:[#allocation22_spill] sm:$0xff] %v12342_v48  ;;  %v9841_v54 = vpop.f32.mrb[115].mxu0  ;;  %10005 = vmatprep.subr.bf16.mxu1 %v10597_v38 }
 0x2c6   : > { %v12345_v61 = vadd.f32 %v9839_v56, %v12216_v19  ;;  %v9842_v0 = vadd.f32 %v9841_v54, %v9840_v50 }
 0x2c7   : > { %v9949_v4 = vpop.f32.mrb[112].mxu1 }
 0x2c8   : > { %14294 = vst [vmem:[#allocation23_spill] sm:$0xff] %v12345_v61  ;;  %v12350_v62 = vadd.f32 %v9842_v0, %v12218_v26  ;;  %v9950_v16 = vpop.f32.mrb[113].mxu1 }
 0x2c9   : > { %v12352_v2 = vadd.f32 %v9950_v16, %v9949_v4  ;;  %v9952_v55 = vpop.f32.mrb[114].mxu1 }
 0x2ca   : > { %14295 = vst [vmem:[#allocation24_spill] sm:$0xff] %v12350_v62  ;;  %v9843_v12 = vpop.f32.mrb[116].mxu0  ;;  %v9953_v13 = vpop.f32.mrb[115].mxu1 }
 0x2cb   : > { %14296 = vst [vmem:[#allocation25_spill] sm:$0xff] %v12352_v2  ;;  %v9844_v17 = vpop.f32.mrb[117].mxu0  ;;  %v12354_v32 = vadd.f32 %v9953_v13, %v9952_v55 }
 0x2cc   : > { %v9845_v24 = vadd.f32 %v9844_v17, %v9843_v12  ;;  %v9846_v34 = vpop.f32.mrb[118].mxu0 }
 0x2cd   : > { %14297 = vst [vmem:[#allocation26_spill] sm:$0xff] %v12354_v32  ;;  %v9847_v19 = vpop.f32.mrb[119].mxu0 }
 0x2ce   : > { %v12361_v10 = vadd.f32 %v9845_v24, %v12220_v40  ;;  %v9848_v26 = vadd.f32 %v9847_v19, %v9846_v34 }
 0x2cf   : > { %v9955_v58 = vpop.f32.mrb[116].mxu1 }
 0x2d0   : > { %14298 = vst [vmem:[#allocation27_spill] sm:$0xff] %v12361_v10  ;;  %v12364_v25 = vadd.f32 %v9848_v26, %v12225_v51  ;;  %v9956_v36 = vpop.f32.mrb[117].mxu1  ;;  %v10598_v51 = vld [vmem:[%s14268_s4 + $0x20] sm:$0xff]  }
 0x2d1   : > { %v12366_v42 = vadd.f32 %v9956_v36, %v9955_v58  ;;  %v9958_v15 = vpop.f32.mrb[118].mxu1  ;;  %10006 = vmatpush3.bf16.msra.mxu1 %v10598_v51  ;;  %v12397_v51 = vld [vmem:[%s14266_s2] ss:$0 sm:$0xff] }
 0x2d2   : > { %14299 = vst [vmem:[#allocation28_spill] sm:$0xff] %v12364_v25  ;;  %v9849_v41 = vpop.f32.mrb[120].mxu0  ;;  %v9959_v44 = vpop.f32.mrb[119].mxu1 }
 0x2d3   : > { %14300 = vst [vmem:[#allocation29_spill] sm:$0xff] %v12366_v42  ;;  %v9850_v23 = vpop.f32.mrb[121].mxu0  ;;  %v12371_v60 = vadd.f32 %v9959_v44, %v9958_v15  ;;  %v10911_v15 = vmov 1983009808  }
 0x2d4   : > { %v9851_v40 = vadd.f32 %v9850_v23, %v9849_v41  ;;  %v9852_v47 = vpop.f32.mrb[122].mxu0  ;;  %v3456_v41 = vunpack.c.l.s4 %v10911_v15 }
 0x2d5   : > { %14301 = vst [vmem:[#allocation30_spill] sm:$0xff] %v12371_v60  ;;  %v9853_v56 = vpop.f32.mrb[123].mxu0 }
 0x2d6   : > { %v12377_v50 = vadd.f32 %v9851_v40, %v12230_v3  ;;  %v9854_v54 = vadd.f32 %v9853_v56, %v9852_v47 }
 0x2d7   : > { %v9961_v0 = vpop.f32.mrb[120].mxu1 }
 0x2d8   : > { %14302 = vst [vmem:[#allocation31_spill] sm:$0xff] %v12377_v50  ;;  %v12380_v4 = vadd.f32 %v9854_v54, %v12232_v11  ;;  %v9962_v16 = vpop.f32.mrb[121].mxu1  ;;  %v3458_v11 = vlaneseq }
 0x2d9   : > { %v12382_v55 = vadd.f32 %v9962_v16, %v9961_v0  ;;  %v9964_v12 = vpop.f32.mrb[122].mxu1  ;;  %v3457_v0 = vunpack.c.0.s8 %v3456_v41 }
 0x2da   : > { %14303 = vst [vmem:[#allocation32_spill] sm:$0xff] %v12380_v4  ;;  %v9855_v13 = vpop.f32.mrb[124].mxu0  ;;  %v9965_v17 = vpop.f32.mrb[123].mxu1  ;;  %v3459_v16 = vshrl.u32 %v3458_v11, 7 }
 0x2db   : > { %14304 = vst [vmem:[#allocation33_spill] sm:$0xff] %v12382_v55  ;;  %v9856_v24 = vpop.f32.mrb[125].mxu0  ;;  %v12384_v34 = vadd.f32 %v9965_v17, %v9964_v12 }
 0x2dc   : > { %v9857_v19 = vadd.f32 %v9856_v24, %v9855_v13  ;;  %v9858_v26 = vpop.f32.mrb[126].mxu0  ;;  %v12413_v41 = vsub.s32 %v3457_v0, %v3459_v16 }
 0x2dd   : > { %14305 = vst [vmem:[#allocation34_spill] sm:$0xff] %v12384_v34  ;;  %v9859_v58 = vpop.f32.mrb[127].mxu0 }
 0x2de   : > { %v12387_v3 = vadd.f32 %v9857_v19, %v12234_v27  ;;  %v9860_v36 = vadd.f32 %v9859_v58, %v9858_v26 }
 0x2df   : > { %v9967_v38 = vpop.f32.mrb[124].mxu1 }
 0x2e0   : > { %14306 = vst [vmem:[#allocation35_spill] sm:$0xff] %v12387_v3  ;;  %v12390_v44 = vadd.f32 %v9860_v36, %v12256_v37  ;;  %v9968_v23 = vpop.f32.mrb[125].mxu1  ;;  %v12405_v37 = vld [vmem:[%s14267_s3] ss:$0 sm:$0xff] }
 0x2e1   : > { %v12392_v40 = vadd.f32 %v9968_v23, %v9967_v38  ;;  %v9970_v47 = vpop.f32.mrb[126].mxu1 }
 0x2e2   : > { %14307 = vst [vmem:[#allocation36_spill] sm:$0xff] %v12390_v44  ;;  %v10381_v56 = vpop.f32.mrb[128].mxu0  ;;  %v9971_v27 = vpop.f32.mrb[127].mxu1 }
 0x2e3   : > { %14308 = vst [vmem:[#allocation37_spill] sm:$0xff] %v12392_v40  ;;  %v3194_v54 = vadd.f32 %v10381_v56, %v12266_v28  ;;  %v3185_v12 = vpop.f32.mrb[129].mxu0  ;;  %v12400_v13 = vadd.f32 %v9971_v27, %v9970_v47 }
 0x2e4   : > { %v3186_v17 = vadd.f32 %v3185_v12, %v12260_v1  ;;  %v10382_v24 = vpop.f32.mrb[130].mxu0 }
 0x2e5   : > { %14309 = vst [vmem:[#allocation38_spill] sm:$0xff] %v12400_v13  ;;  %v3321_v19 = vmul.f32 %v12397_v51, %v3194_v54  ;;  %v3197_v26 = vadd.f32 %v10382_v24, %v12269_v35  ;;  %v3188_v58 = vpop.f32.mrb[131].mxu0  ;;  %v12421_v35 = vadd.f32 %v12340_v18, %v12335_v30 }
 0x2e6   : > { %v3319_v28 = vmul.f32 %v12397_v51, %v3186_v17  ;;  %v3189_v36 = vadd.f32 %v3188_v58, %v12263_v33 }
 0x2e7   : > { %v3360_v15 = vadd.f32 %v12405_v37, %v3321_v19  ;;  %v3322_v11 = vmul.f32 %v12397_v51, %v3197_v26 }
 0x2e8   : > { %v3358_v38 = vadd.f32 %v12405_v37, %v3319_v28  ;;  %v3320_v1 = vmul.f32 %v12397_v51, %v3189_v36 }
 0x2e9   : > { %v3392_v23 = vmax.f32 %v3360_v15, 0.0  ;;  %v3361_v47 = vadd.f32 %v12405_v37, %v3322_v11 }
 0x2ea   : > { %v3390_v56 = vmax.f32 %v3358_v38, 0.0  ;;  %v3359_v33 = vadd.f32 %v12405_v37, %v3320_v1  ;;  %v10385_v27 = vpop.f32.mrb[132].mxu0 }
 0x2eb   : > { %v3488_v54 = vcombine.high %v3392_v23, %v3392_v23  ;;  %v3495_v0 = vrot.slane %v3392_v23, %v12413_v41  ;;  %v12425_v16 = vmax.f32 %v3361_v47, 0.0  ;;  %v12428_v12 = vadd.f32 %v10385_v27, %v12284_v22  ;;  %v3201_v17 = vpop.f32.mrb[133].mxu0 }
 0x2ec   : > { %v3454_v24 = vcombine.high %v3390_v56, %v3390_v56  ;;  %v3461_v19 = vrot.slane %v3390_v56, %v12413_v41  ;;  %v12431_v26 = vmax.f32 %v3359_v33, 0.0  ;;  %v12434_v30 = vadd.f32 %v3201_v17, %v12272_v57  ;;  %v12436_v18 = vpop.f32.mrb[134].mxu0 }
 0x2ed   : > { %v3502_v58 = vrot.slane %v3488_v54, %v12413_v41  ;;  %v3503_v28 = vcombine.high %v3495_v0, %v3495_v0  ;;  %v4183_v36 = vsel %vm4126_vm3, %v3495_v0, -inf  ;;  %v12442_v15 = vpop.f32.mrb[135].mxu0 }
 0x2ee   : > { %v4184_v11 = vrot.slane %v4183_v36, 4  ;;  %v3468_v38 = vrot.slane %v3454_v24, %v12413_v41  ;;  %v3469_v1 = vcombine.high %v3461_v19, %v3461_v19  ;;  %v4127_v23 = vsel %vm4126_vm3, %v3461_v19, -inf }
 0x2ef   : > { %v3504_v57 = vcombine.high %v3502_v58, %v3502_v58  ;;  %v4190_v47 = vsel %vm4126_vm3, %v3503_v28, -inf  ;;  %v4197_v56 = vsel %vm4126_vm3, %v3502_v58, -inf  ;;  %v4128_v33 = vrot.slane %v4127_v23, 4 }
 0x2f0   : > { %v4185_v27 = vmax.f32 %v4183_v36, %v4184_v11  ;;  %v4191_v54 = vrot.slane %v4190_v47, 4  ;;  %v4198_v0 = vrot.slane %v4197_v56, 4  ;;  %v3470_v17 = vcombine.high %v3468_v38, %v3468_v38 }
 0x2f1   : > { %v4204_v22 = vsel %vm4126_vm3, %v3504_v57, -inf  ;;  %v4129_v34 = vmax.f32 %v4127_v23, %v4128_v33  ;;  %v4134_v4 = vsel %vm4126_vm3, %v3469_v1, -inf  ;;  %v4141_v24 = vsel %vm4126_vm3, %v3468_v38, -inf }
 0x2f2   : > { %v4186_v13 = vrot.slane %v4185_v27, 2  ;;  %v4192_v44 = vmax.f32 %v4190_v47, %v4191_v54  ;;  %v4199_v19 = vmax.f32 %v4197_v56, %v4198_v0  ;;  %v4205_v55 = vrot.slane %v4204_v22, 4  ;;  %v12451_v50 = vpop.f32.mrb[136].mxu0 }
 0x2f3   : > { %v4130_v28 = vrot.slane %v4129_v34, 2  ;;  %v4135_v58 = vrot.slane %v4134_v4, 4  ;;  %v4142_v40 = vrot.slane %v4141_v24, 4  ;;  %v4148_v36 = vsel %vm4126_vm3, %v3470_v17, -inf  ;;  %v12454_v11 = vpop.f32.mrb[137].mxu0 }
 0x2f4   : > { %v4187_v3 = vmax.f32 %v4185_v27, %v4186_v13  ;;  %v4193_v57 = vrot.slane %v4192_v44, 2  ;;  %v4200_v23 = vrot.slane %v4199_v19, 2  ;;  %v4206_v33 = vmax.f32 %v4204_v22, %v4205_v55  ;;  %v12456_v1 = vpop.f32.mrb[138].mxu0 }
 0x2f5   : > { %v4131_v38 = vmax.f32 %v4129_v34, %v4130_v28  ;;  %v4136_v32 = vmax.f32 %v4134_v4, %v4135_v58  ;;  %v4143_v47 = vmax.f32 %v4141_v24, %v4142_v40  ;;  %v4149_v56 = vrot.slane %v4148_v36, 4  ;;  %v12458_v54 = vpop.f32.mrb[139].mxu0 }
 0x2f6   : > { %v4188_v0 = vrot.slane %v4187_v3, 1  ;;  %v4194_v62 = vmax.f32 %v4192_v44, %v4193_v57  ;;  %v4201_v60 = vmax.f32 %v4199_v19, %v4200_v23  ;;  %v4207_v25 = vrot.slane %v4206_v33, 2 }
 0x2f7   : > { %v4132_v2 = vrot.slane %v4131_v38, 1  ;;  %v4137_v17 = vrot.slane %v4136_v32, 2  ;;  %v4144_v61 = vrot.slane %v4143_v47, 2  ;;  %v4150_v42 = vmax.f32 %v4148_v36, %v4149_v56 }
 0x2f8   : > { %v4189_v13 = vmax.f32 %v4187_v3, %v4188_v0  ;;  %v4195_v27 = vrot.slane %v4194_v62, 1  ;;  %v4202_v55 = vrot.slane %v4201_v60, 1  ;;  %v4208_v22 = vmax.f32 %v4206_v33, %v4207_v25 }
 0x2f9   : > { %v4133_v34 = vmax.f32 %v4131_v38, %v4132_v2  ;;  %v4138_v4 = vmax.f32 %v4136_v32, %v4137_v17  ;;  %v4145_v40 = vmax.f32 %v4143_v47, %v4144_v61  ;;  %v4151_v24 = vrot.slane %v4150_v42, 2 }
 0x2fa   : > { %v4196_v28 = vmax.f32 %v4194_v62, %v4195_v27  ;;  %v4203_v58 = vmax.f32 %v4201_v60, %v4202_v55  ;;  %v4209_v10 = vrot.slane %v4208_v22, 1  ;;  %v5024_v44 = vsel %vm513_vm2, %v4189_v13, -inf  ;;  %v12461_v19 = vpop.f32.mrb[140].mxu0 }
 0x2fb   : > { %v4139_v57 = vrot.slane %v4138_v4, 1  ;;  %v4146_v23 = vrot.slane %v4145_v40, 1  ;;  %v4152_v36 = vmax.f32 %v4150_v42, %v4151_v24  ;;  %v5023_v3 = vsel %vm513_vm2, %v4133_v34, -inf  ;;  %v12464_v56 = vpop.f32.mrb[141].mxu0 }
 0x2fc   : > { %v4210_v25 = vmax.f32 %v4208_v22, %v4209_v10  ;;  %v5027_v2 = vsel %vm513_vm2, %v4196_v28, -inf  ;;  %v5030_v61 = vsel %vm513_vm2, %v4203_v58, -inf  ;;  %v5025_v32 = vmax.f32 %v5023_v3, %v5024_v44  ;;  %v12468_v62 = vpop.f32.mrb[142].mxu0 }
 0x2fd   : > { %v4140_v60 = vmax.f32 %v4138_v4, %v4139_v57  ;;  %v4147_v33 = vmax.f32 %v4145_v40, %v4146_v23  ;;  %v4153_v38 = vrot.slane %v4152_v36, 1  ;;  %v3512_v47 = vrot.slane %v12425_v16, %v12413_v41  ;;  %v12472_v0 = vpop.f32.mrb[143].mxu0 }
 0x2fe   : > { %v12475_v42 = vsel %vm513_vm2, %v4210_v25, -inf  ;;  %v14310_v10 = vcombine.high %v12425_v16, %v12425_v16  ;;  %v3471_v13 = vcombine.high %v12431_v26, %v12431_v26  ;;  %v3478_v27 = vrot.slane %v12431_v26, %v12413_v41 }
 0x2ff   : > { %v4154_v55 = vmax.f32 %v4152_v36, %v4153_v38  ;;  %v5026_v22 = vsel %vm513_vm2, %v4140_v60, -inf  ;;  %v5029_v34 = vsel %vm513_vm2, %v4147_v33, -inf  ;;  %v3520_v4 = vcombine.high %v3512_v47, %v3512_v47 }
 0x300   : > { %v3519_v17 = vrot.slane %v14310_v10, %v12413_v41  ;;  %v5028_v40 = vmax.f32 %v5026_v22, %v5027_v2  ;;  %v5031_v24 = vmax.f32 %v5029_v34, %v5030_v61  ;;  %v4211_v58 = vsel %vm4126_vm3, %v3512_v47, -inf }
 0x301   : > { %v12489_v16 = vsel %vm513_vm2, %v4154_v55, -inf  ;;  %v4212_v44 = vrot.slane %v4211_v58, 4  ;;  %v4218_v57 = vsel %vm4126_vm3, %v3520_v4, -inf  ;;  %v3485_v33 = vrot.slane %v3471_v13, %v12413_v41 }
 0x302   : > { %v3521_v28 = vcombine.high %v3519_v17, %v3519_v17  ;;  %v4225_v23 = vsel %vm4126_vm3, %v3519_v17, -inf  ;;  %v5034_v26 = vmax.f32 %v12489_v16, %v12475_v42  ;;  %v5280_v36 = vsel %vm5279_vm4, %v5028_v40, %v5025_v32 }
 0x303   : > { %v4219_v3 = vrot.slane %v4218_v57, 4  ;;  %v4226_v25 = vrot.slane %v4225_v23, 4  ;;  %v5282_v2 = vsel %vm5281_vm5, %v5031_v24, %v5280_v36  ;;  %v4213_v61 = vmax.f32 %v4211_v58, %v4212_v44 }
 0x304   : > { %v4232_v60 = vsel %vm4126_vm3, %v3521_v28, -inf  ;;  %v3486_v55 = vcombine.high %v3478_v27, %v3478_v27  ;;  %v3487_v22 = vcombine.high %v3485_v33, %v3485_v33  ;;  %v4155_v42 = vsel %vm4126_vm3, %v3478_v27, -inf }
 0x305   : > { %v4220_v38 = vmax.f32 %v4218_v57, %v4219_v3  ;;  %v4227_v47 = vmax.f32 %v4225_v23, %v4226_v25  ;;  %v4233_v10 = vrot.slane %v4232_v60, 4  ;;  %v4214_v17 = vrot.slane %v4213_v61, 2  ;;  %v12503_v3 = vpop.f32.mrb[144].mxu0 }
 0x306   : > { %v4169_v32 = vsel %vm4126_vm3, %v3485_v33, -inf  ;;  %v4156_v24 = vrot.slane %v4155_v42, 4  ;;  %v4162_v28 = vsel %vm4126_vm3, %v3486_v55, -inf  ;;  %v4176_v13 = vsel %vm4126_vm3, %v3487_v22, -inf }
 0x307   : > { %v4221_v34 = vrot.slane %v4220_v38, 2  ;;  %v4228_v4 = vrot.slane %v4227_v47, 2  ;;  %v4234_v40 = vmax.f32 %v4232_v60, %v4233_v10  ;;  %v4215_v58 = vmax.f32 %v4213_v61, %v4214_v17 }
 0x308   : > { %v4170_v16 = vrot.slane %v4169_v32, 4  ;;  %v4157_v36 = vmax.f32 %v4155_v42, %v4156_v24  ;;  %v4163_v27 = vrot.slane %v4162_v28, 4  ;;  %v4177_v33 = vrot.slane %v4176_v13, 4 }
 0x309   : > { %v4222_v44 = vmax.f32 %v4220_v38, %v4221_v34  ;;  %v4229_v57 = vmax.f32 %v4227_v47, %v4228_v4  ;;  %v4235_v23 = vrot.slane %v4234_v40, 2  ;;  %v4216_v25 = vrot.slane %v4215_v58, 1 }
 0x30a   : > { %v4171_v39 = vmax.f32 %v4169_v32, %v4170_v16  ;;  %v4158_v10 = vrot.slane %v4157_v36, 2  ;;  %v4164_v55 = vmax.f32 %v4162_v28, %v4163_v27  ;;  %v4178_v5 = vmax.f32 %v4176_v13, %v4177_v33 }
 0x30b   : > { %v4223_v7 = vrot.slane %v4222_v44, 1  ;;  %v4230_v48 = vrot.slane %v4229_v57, 1  ;;  %v4236_v60 = vmax.f32 %v4234_v40, %v4235_v23  ;;  %v4217_v61 = vmax.f32 %v4215_v58, %v4216_v25 }
 0x30c   : > { %v4172_v17 = vrot.slane %v4171_v39, 2  ;;  %v4159_v34 = vmax.f32 %v4157_v36, %v4158_v10  ;;  %v4165_v4 = vrot.slane %v4164_v55, 2  ;;  %v4179_v9 = vrot.slane %v4178_v5, 2 }
 0x30d   : > { %v4224_v22 = vmax.f32 %v4222_v44, %v4223_v7  ;;  %v4231_v38 = vmax.f32 %v4229_v57, %v4230_v48  ;;  %v4237_v47 = vrot.slane %v4236_v60, 1  ;;  %v5036_v42 = vsel %vm513_vm2, %v4217_v61, -inf }
 0x30e   : > { %v4173_v24 = vmax.f32 %v4171_v39, %v4172_v17  ;;  %v4160_v23 = vrot.slane %v4159_v34, 1  ;;  %v4166_v58 = vmax.f32 %v4164_v55, %v4165_v4  ;;  %v4180_v13 = vmax.f32 %v4178_v5, %v4179_v9  ;;  %v10600_v9 = vld [vmem:[%s14268_s4 + $0x140] sm:$0xff]  }
 0x30f   : > { %v4238_v32 = vmax.f32 %v4236_v60, %v4237_v47  ;;  %v5039_v16 = vsel %vm513_vm2, %v4224_v22, -inf  ;;  %v5042_v40 = vsel %vm513_vm2, %v4231_v38, -inf  ;;  %v5284_v7 = vsel %vm5283_vm6, %v5034_v26, %v5282_v2  ;;  %10077 = vmatprep.subr.bf16.mxu0 %v10600_v9  ;;  %v12526_v22 = vpop.f32.mrb[145].mxu0 }
 0x310   : > { %v4174_v28 = vrot.slane %v4173_v24, 1  ;;  %v4161_v44 = vmax.f32 %v4159_v34, %v4160_v23  ;;  %v3325_v39 = vmul.f32 %v12397_v51, %v12428_v12  ;;  %v3323_v57 = vmul.f32 %v12397_v51, %v12434_v30 }
 0x311   : > { %v5045_v48 = vsel %vm513_vm2, %v4238_v32, -inf  ;;  %v4167_v36 = vrot.slane %v4166_v58, 1  ;;  %v4181_v27 = vrot.slane %v4180_v13, 1  ;;  %v3213_v33 = vadd.f32 %v12436_v18, %v12287_v29  ;;  %v10602_v32 = vld [vmem:[%s14268_s4 + $0x100] sm:$0xff]  }
 0x312   : > { %v4175_v25 = vmax.f32 %v4173_v24, %v4174_v28  ;;  %v5035_v5 = vsel %vm513_vm2, %v4161_v44, -inf  ;;  %v3364_v26 = vadd.f32 %v12405_v37, %v3325_v39  ;;  %v3362_v2 = vadd.f32 %v12405_v37, %v3323_v57  ;;  %10078 = vmatpush3.bf16.msra.mxu0 %v10602_v32 }
 0x313   : > { %v3205_v12 = vadd.f32 %v12442_v15, %v12278_v31  ;;  %v4168_v30 = vmax.f32 %v4166_v58, %v4167_v36  ;;  %v4182_v60 = vmax.f32 %v4180_v13, %v4181_v27  ;;  %v5037_v10 = vmax.f32 %v5035_v5, %v5036_v42 }
 0x314   : > { %v5041_v61 = vsel %vm513_vm2, %v4175_v25, -inf  ;;  %v3396_v18 = vmax.f32 %v3364_v26, 0.0  ;;  %v3394_v55 = vmax.f32 %v3362_v2, 0.0  ;;  %v3326_v17 = vmul.f32 %v12397_v51, %v3213_v33  ;;  %v12548_v25 = vpop.f32.mrb[146].mxu0 }
 0x315   : > { %v5043_v29 = vmax.f32 %v5041_v61, %v5042_v40  ;;  %v5038_v38 = vsel %vm513_vm2, %v4168_v30, -inf  ;;  %v5044_v47 = vsel %vm513_vm2, %v4182_v60, -inf  ;;  %v5286_v34 = vsel %vm5285_vm7, %v5037_v10, %v5284_v7 }
 0x316   : > { %v3324_v31 = vmul.f32 %v12397_v51, %v3205_v12  ;;  %v5040_v15 = vmax.f32 %v5038_v38, %v5039_v16  ;;  %v5046_v42 = vmax.f32 %v5044_v47, %v5045_v48  ;;  %v3556_v4 = vcombine.high %v3396_v18, %v3396_v18  ;;  %v10599_v47 = vld [vmem:[%s14268_s4 + $0x68] sm:$0xff]  }
 0x317   : > { %v3563_v24 = vrot.slane %v3396_v18, %v12413_v41  ;;  %v3522_v40 = vcombine.high %v3394_v55, %v3394_v55  ;;  %v3529_v23 = vrot.slane %v3394_v55, %v12413_v41  ;;  %v12538_v58 = vadd.f32 %v12405_v37, %v3326_v17  ;;  %10007 = vmatprep.subr.bf16.mxu1 %v10599_v47 }
 0x318   : > { %v12541_v28 = vadd.f32 %v12405_v37, %v3324_v31  ;;  %v5288_v13 = vsel %vm5287_vm8, %v5040_v15, %v5286_v34  ;;  %v3570_v16 = vrot.slane %v3556_v4, %v12413_v41 }
 0x319   : > { %v3571_v7 = vcombine.high %v3563_v24, %v3563_v24  ;;  %v4295_v48 = vsel %vm4126_vm3, %v3563_v24, -inf  ;;  %v5290_v44 = vsel %vm5289_vm9, %v5043_v29, %v5288_v13  ;;  %v3536_v57 = vrot.slane %v3522_v40, %v12413_v41 }
 0x31a   : > { %v4296_v39 = vrot.slane %v4295_v48, 4  ;;  %v3537_v36 = vcombine.high %v3529_v23, %v3529_v23  ;;  %v5292_v27 = vsel %vm5291_vm10, %v5046_v42, %v5290_v44  ;;  %v3572_v33 = vcombine.high %v3570_v16, %v3570_v16 }
 0x31b   : > { %v4302_v9 = vsel %vm4126_vm3, %v3571_v7, -inf  ;;  %v4309_v5 = vsel %vm4126_vm3, %v3570_v16, -inf  ;;  %5351 = vst.msk [vmem:[#allocation3 + $0x20] sm:$0xff] %vm513_vm2, %v5292_v27  ;;  %v3538_v30 = vcombine.high %v3536_v57, %v3536_v57  ;;  %v4239_v10 = vsel %vm4126_vm3, %v3529_v23, -inf }
 0x31c   : > { %v4297_v26 = vmax.f32 %v4295_v48, %v4296_v39  ;;  %v4303_v2 = vrot.slane %v4302_v9, 4  ;;  %v4310_v12 = vrot.slane %v4309_v5, 4  ;;  %v4316_v60 = vsel %vm4126_vm3, %v3572_v33, -inf }
 0x31d   : > { %v4246_v61 = vsel %vm4126_vm3, %v3537_v36, -inf  ;;  %v4253_v29 = vsel %vm4126_vm3, %v3536_v57, -inf  ;;  %v4317_v38 = vrot.slane %v4316_v60, 4  ;;  %v4240_v34 = vrot.slane %v4239_v10, 4 }
 0x31e   : > { %v4298_v18 = vrot.slane %v4297_v26, 2  ;;  %v4304_v55 = vmax.f32 %v4302_v9, %v4303_v2  ;;  %v4311_v17 = vmax.f32 %v4309_v5, %v4310_v12  ;;  %v4247_v31 = vrot.slane %v4246_v61, 4  ;;  %v10601_v5 = vld [vmem:[%s14268_s4 + $0x28] sm:$0xff]  }
 0x31f   : > { %v4254_v15 = vrot.slane %v4253_v29, 4  ;;  %v4260_v42 = vsel %vm4126_vm3, %v3538_v30, -inf  ;;  %v4318_v40 = vmax.f32 %v4316_v60, %v4317_v38  ;;  %v4241_v23 = vmax.f32 %v4239_v10, %v4240_v34  ;;  %10008 = vmatpush3.bf16.msra.mxu1 %v10601_v5 }
 0x320   : > { %v4299_v4 = vmax.f32 %v4297_v26, %v4298_v18  ;;  %v4305_v24 = vrot.slane %v4304_v55, 2  ;;  %v4312_v32 = vrot.slane %v4311_v17, 2  ;;  %v4248_v13 = vmax.f32 %v4246_v61, %v4247_v31 }
 0x321   : > { %v4255_v16 = vmax.f32 %v4253_v29, %v4254_v15  ;;  %v4261_v7 = vrot.slane %v4260_v42, 4  ;;  %v4319_v57 = vrot.slane %v4318_v40, 2  ;;  %v4242_v36 = vrot.slane %v4241_v23, 2 }
 0x322   : > { %v4300_v48 = vrot.slane %v4299_v4, 1  ;;  %v4306_v44 = vmax.f32 %v4304_v55, %v4305_v24  ;;  %v4313_v39 = vmax.f32 %v4311_v17, %v4312_v32  ;;  %v4249_v27 = vrot.slane %v4248_v13, 2 }
 0x323   : > { %v4256_v33 = vrot.slane %v4255_v16, 2  ;;  %v4262_v9 = vmax.f32 %v4260_v42, %v4261_v7  ;;  %v4320_v30 = vmax.f32 %v4318_v40, %v4319_v57  ;;  %v4243_v60 = vmax.f32 %v4241_v23, %v4242_v36  ;;  %v12569_v7 = vpop.f32.mrb[147].mxu0 }
 0x324   : > { %v4301_v26 = vmax.f32 %v4299_v4, %v4300_v48  ;;  %v4307_v2 = vrot.slane %v4306_v44, 1  ;;  %v4314_v12 = vrot.slane %v4313_v39, 1  ;;  %v4250_v10 = vmax.f32 %v4248_v13, %v4249_v27 }
 0x325   : > { %v4257_v61 = vmax.f32 %v4255_v16, %v4256_v33  ;;  %v4263_v29 = vrot.slane %v4262_v9, 2  ;;  %v4321_v17 = vrot.slane %v4320_v30, 1  ;;  %v4244_v47 = vrot.slane %v4243_v60, 1 }
 0x326   : > { %v4308_v18 = vmax.f32 %v4306_v44, %v4307_v2  ;;  %v4315_v55 = vmax.f32 %v4313_v39, %v4314_v12  ;;  %v5048_v38 = vsel %vm513_vm2, %v4301_v26, -inf  ;;  %v4251_v34 = vrot.slane %v4250_v10, 1 }
 0x327   : > { %v4258_v31 = vrot.slane %v4257_v61, 1  ;;  %v4264_v15 = vmax.f32 %v4262_v9, %v4263_v29  ;;  %v4322_v42 = vmax.f32 %v4320_v30, %v4321_v17  ;;  %v3397_v32 = vmax.f32 %v12538_v58, 0.0 }
 0x328   : > { %v5051_v4 = vsel %vm513_vm2, %v4308_v18, -inf  ;;  %v5054_v24 = vsel %vm513_vm2, %v4315_v55, -inf  ;;  %v4245_v40 = vmax.f32 %v4243_v60, %v4244_v47  ;;  %v4252_v23 = vmax.f32 %v4250_v10, %v4251_v34  ;;  %v10603_v55 = vld [vmem:[%s14268_s4 + $0x148] sm:$0xff]  }
 0x329   : > { %v4259_v13 = vmax.f32 %v4257_v61, %v4258_v31  ;;  %v4265_v16 = vrot.slane %v4264_v15, 1  ;;  %v12572_v48 = vsel %vm513_vm2, %v4322_v42, -inf  ;;  %v3573_v44 = vcombine.high %v3397_v32, %v3397_v32  ;;  %v10604_v31 = vld [vmem:[%s14268_s4 + $0x108] sm:$0xff]   ;;  %10079 = vmatprep.subr.bf16.mxu0 %v10603_v55 }
 0x32a   : > { %v3580_v39 = vrot.slane %v3397_v32, %v12413_v41  ;;  %v3395_v57 = vmax.f32 %v12541_v28, 0.0  ;;  %v5047_v27 = vsel %vm513_vm2, %v4245_v40, -inf  ;;  %v5050_v33 = vsel %vm513_vm2, %v4252_v23, -inf  ;;  %10080 = vmatpush3.bf16.msra.mxu0 %v10604_v31 }
 0x32b   : > { %v4266_v36 = vmax.f32 %v4264_v15, %v4265_v16  ;;  %v5053_v58 = vsel %vm513_vm2, %v4259_v13, -inf  ;;  %v5049_v9 = vmax.f32 %v5047_v27, %v5048_v38  ;;  %v5052_v5 = vmax.f32 %v5050_v33, %v5051_v4 }
 0x32c   : > { %v5055_v26 = vmax.f32 %v5053_v58, %v5054_v24  ;;  %v3587_v2 = vrot.slane %v3573_v44, %v12413_v41  ;;  %v3588_v30 = vcombine.high %v3580_v39, %v3580_v39  ;;  %v4323_v60 = vsel %vm4126_vm3, %v3580_v39, -inf }
 0x32d   : > { %v12581_v12 = vsel %vm513_vm2, %v4266_v36, -inf  ;;  %v3539_v10 = vcombine.high %v3395_v57, %v3395_v57  ;;  %v5293_v61 = vsel %vm5279_vm4, %v5052_v5, %v5049_v9  ;;  %v4324_v18 = vrot.slane %v4323_v60, 4 }
 0x32e   : > { %v3589_v29 = vcombine.high %v3587_v2, %v3587_v2  ;;  %v5294_v17 = vsel %vm5281_vm5, %v5055_v26, %v5293_v61  ;;  %v4330_v38 = vsel %vm4126_vm3, %v3588_v30, -inf  ;;  %v4337_v47 = vsel %vm4126_vm3, %v3587_v2, -inf  ;;  %v12602_v30 = vpop.f32.mrb[148].mxu0 }
 0x32f   : > { %v3546_v34 = vrot.slane %v3395_v57, %v12413_v41  ;;  %v4325_v15 = vmax.f32 %v4323_v60, %v4324_v18  ;;  %v4331_v42 = vrot.slane %v4330_v38, 4  ;;  %v4338_v4 = vrot.slane %v4337_v47, 4  ;;  %14311 = vst [vmem:[#allocation39_spill] sm:$0xff] %v12602_v30 }
 0x330   : > { %v4344_v24 = vsel %vm4126_vm3, %v3589_v29, -inf  ;;  %v3553_v40 = vrot.slane %v3539_v10, %v12413_v41 }
 0x331   : > { %v4345_v32 = vrot.slane %v4344_v24, 4  ;;  %v3554_v23 = vcombine.high %v3546_v34, %v3546_v34  ;;  %v4267_v13 = vsel %vm4126_vm3, %v3546_v34, -inf  ;;  %v4326_v16 = vrot.slane %v4325_v15, 2 }
 0x332   : > { %v4332_v44 = vmax.f32 %v4330_v38, %v4331_v42  ;;  %v4339_v39 = vmax.f32 %v4337_v47, %v4338_v4  ;;  %v4268_v57 = vrot.slane %v4267_v13, 4  ;;  %v3555_v27 = vcombine.high %v3553_v40, %v3553_v40 }
 0x333   : > { %v4346_v36 = vmax.f32 %v4344_v24, %v4345_v32  ;;  %v4274_v33 = vsel %vm4126_vm3, %v3554_v23, -inf  ;;  %v4281_v58 = vsel %vm4126_vm3, %v3553_v40, -inf  ;;  %v4327_v9 = vmax.f32 %v4325_v15, %v4326_v16 }
 0x334   : > { %v4333_v5 = vrot.slane %v4332_v44, 2  ;;  %v4340_v26 = vrot.slane %v4339_v39, 2  ;;  %v4269_v2 = vmax.f32 %v4267_v13, %v4268_v57  ;;  %v4275_v10 = vrot.slane %v4274_v33, 4 }
 0x335   : > { %v4347_v60 = vrot.slane %v4346_v36, 2  ;;  %v4282_v61 = vrot.slane %v4281_v58, 4  ;;  %v4288_v29 = vsel %vm4126_vm3, %v3555_v27, -inf  ;;  %v4328_v18 = vrot.slane %v4327_v9, 1 }
 0x336   : > { %v4334_v55 = vmax.f32 %v4332_v44, %v4333_v5  ;;  %v4341_v38 = vmax.f32 %v4339_v39, %v4340_v26  ;;  %v4270_v47 = vrot.slane %v4269_v2, 2  ;;  %v4276_v31 = vmax.f32 %v4274_v33, %v4275_v10 }
 0x337   : > { %v4348_v34 = vmax.f32 %v4346_v36, %v4347_v60  ;;  %v4283_v42 = vmax.f32 %v4281_v58, %v4282_v61  ;;  %v4289_v4 = vrot.slane %v4288_v29, 4  ;;  %v4329_v24 = vmax.f32 %v4327_v9, %v4328_v18 }
 0x338   : > { %v4335_v15 = vrot.slane %v4334_v55, 1  ;;  %v4342_v32 = vrot.slane %v4341_v38, 1  ;;  %v4271_v40 = vmax.f32 %v4269_v2, %v4270_v47  ;;  %v4277_v13 = vrot.slane %v4276_v31, 2 }
 0x339   : > { %v4349_v23 = vrot.slane %v4348_v34, 1  ;;  %v4284_v16 = vrot.slane %v4283_v42, 2  ;;  %v4290_v57 = vmax.f32 %v4288_v29, %v4289_v4  ;;  %v5060_v27 = vsel %vm513_vm2, %v4329_v24, -inf }
 0x33a   : > { %v4336_v28 = vmax.f32 %v4334_v55, %v4335_v15  ;;  %v4343_v63 = vmax.f32 %v4341_v38, %v4342_v32  ;;  %v4272_v30 = vrot.slane %v4271_v40, 1  ;;  %v4278_v39 = vmax.f32 %v4276_v31, %v4277_v13 }
 0x33b   : > { %v4350_v44 = vmax.f32 %v4348_v34, %v4349_v23  ;;  %v4285_v5 = vmax.f32 %v4283_v42, %v4284_v16  ;;  %v4291_v36 = vrot.slane %v4290_v57, 2  ;;  %v14312_v26 = vmax.f32 %v12581_v12, %v12572_v48 }
 0x33c   : > { %v5063_v33 = vsel %vm513_vm2, %v4336_v28, -inf  ;;  %v5066_v58 = vsel %vm513_vm2, %v4343_v63, -inf  ;;  %v4273_v9 = vmax.f32 %v4271_v40, %v4272_v30  ;;  %v4279_v10 = vrot.slane %v4278_v39, 1 }
 0x33d   : > { %v5295_v2 = vsel %vm5283_vm6, %v14312_v26, %v5294_v17  ;;  %v5069_v60 = vsel %vm513_vm2, %v4350_v44, -inf  ;;  %v4286_v61 = vrot.slane %v4285_v5, 1  ;;  %v4292_v29 = vmax.f32 %v4290_v57, %v4291_v36 }
 0x33e   : > { %v5059_v18 = vsel %vm513_vm2, %v4273_v9, -inf  ;;  %v3226_v55 = vadd.f32 %v12451_v50, %v12296_v49  ;;  %v3218_v28 = vadd.f32 %v12454_v11, %v12290_v53  ;;  %v3229_v63 = vadd.f32 %v12456_v1, %v12299_v20  ;;  %v10605_v53 = vld [vmem:[%s14268_s4 + $0x150] sm:$0xff]  }
 0x33f   : > { %v4280_v30 = vmax.f32 %v4278_v39, %v4279_v10  ;;  %v4287_v48 = vmax.f32 %v4285_v5, %v4286_v61  ;;  %v4293_v12 = vrot.slane %v4292_v29, 1  ;;  %v5061_v17 = vmax.f32 %v5059_v18, %v5060_v27  ;;  %10081 = vmatprep.subr.bf16.mxu0 %v10605_v53 }
 0x340   : > { %v3329_v38 = vmul.f32 %v12397_v51, %v3226_v55  ;;  %v3327_v47 = vmul.f32 %v12397_v51, %v3218_v28  ;;  %v3330_v34 = vmul.f32 %v12397_v51, %v3229_v63  ;;  %v3221_v31 = vadd.f32 %v12458_v54, %v12293_v21 }
 0x341   : > { %v4294_v49 = vmax.f32 %v4292_v29, %v4293_v12  ;;  %v5062_v20 = vsel %vm513_vm2, %v4280_v30, -inf  ;;  %v5065_v50 = vsel %vm513_vm2, %v4287_v48, -inf  ;;  %v5296_v11 = vsel %vm5285_vm7, %v5061_v17, %v5295_v2 }
 0x342   : > { %v5064_v1 = vmax.f32 %v5062_v20, %v5063_v33  ;;  %v5067_v42 = vmax.f32 %v5065_v50, %v5066_v58  ;;  %v3368_v4 = vadd.f32 %v12405_v37, %v3329_v38  ;;  %v3366_v24 = vadd.f32 %v12405_v37, %v3327_v47 }
 0x343   : > { %v5068_v21 = vsel %vm513_vm2, %v4294_v49, -inf  ;;  %v3369_v54 = vadd.f32 %v12405_v37, %v3330_v34  ;;  %v3328_v15 = vmul.f32 %v12397_v51, %v3221_v31  ;;  %v3242_v32 = vadd.f32 %v12461_v19, %v12308_v43 }
 0x344   : > { %v5070_v40 = vmax.f32 %v5068_v21, %v5069_v60  ;;  %v5297_v23 = vsel %vm5287_vm8, %v5064_v1, %v5296_v11  ;;  %v3400_v13 = vmax.f32 %v3368_v4, 0.0  ;;  %v3398_v16 = vmax.f32 %v3366_v24, 0.0 }
 0x345   : > { %v5298_v57 = vsel %vm5289_vm9, %v5067_v42, %v5297_v23  ;;  %v3401_v27 = vmax.f32 %v3369_v54, 0.0  ;;  %v3367_v44 = vadd.f32 %v12405_v37, %v3328_v15  ;;  %v12642_v39 = vmul.f32 %v12397_v51, %v3242_v32 }
 0x346   : > { %v5299_v5 = vsel %vm5291_vm10, %v5070_v40, %v5298_v57  ;;  %v3624_v36 = vcombine.high %v3400_v13, %v3400_v13  ;;  %v3631_v33 = vrot.slane %v3400_v13, %v12413_v41  ;;  %v3590_v58 = vcombine.high %v3398_v16, %v3398_v16 }
 0x347   : > { %5352 = vst.msk [vmem:[#allocation3 + $0x38] sm:$0xff] %vm513_vm2, %v5299_v5  ;;  %v3597_v43 = vrot.slane %v3398_v16, %v12413_v41  ;;  %v3641_v19 = vcombine.high %v3401_v27, %v3401_v27  ;;  %v12649_v9 = vrot.slane %v3401_v27, %v12413_v41  ;;  %v12651_v26 = vmax.f32 %v3367_v44, 0.0 }
 0x348   : > { %v3638_v37 = vrot.slane %v3624_v36, %v12413_v41  ;;  %v3639_v51 = vcombine.high %v3631_v33, %v3631_v33  ;;  %v4407_v2 = vsel %vm4126_vm3, %v3631_v33, -inf  ;;  %v3604_v60 = vrot.slane %v3590_v58, %v12413_v41 }
 0x349   : > { %v4408_v10 = vrot.slane %v4407_v2, 4  ;;  %v3605_v61 = vcombine.high %v3597_v43, %v3597_v43  ;;  %v4351_v29 = vsel %vm4126_vm3, %v3597_v43, -inf  ;;  %v12658_v18 = vrot.slane %v3641_v19, %v12413_v41 }
 0x34a   : > { %v3640_v55 = vcombine.high %v3638_v37, %v3638_v37  ;;  %v4414_v28 = vsel %vm4126_vm3, %v3639_v51, -inf  ;;  %v4421_v63 = vsel %vm4126_vm3, %v3638_v37, -inf  ;;  %v3606_v30 = vcombine.high %v3604_v60, %v3604_v60 }
 0x34b   : > { %v4409_v48 = vmax.f32 %v4407_v2, %v4408_v10  ;;  %v4415_v12 = vrot.slane %v4414_v28, 4  ;;  %v4422_v17 = vrot.slane %v4421_v63, 4  ;;  %v4352_v38 = vrot.slane %v4351_v29, 4 }
 0x34c   : > { %v4428_v47 = vsel %vm4126_vm3, %v3640_v55, -inf  ;;  %v4358_v34 = vsel %vm4126_vm3, %v3605_v61, -inf  ;;  %v4365_v31 = vsel %vm4126_vm3, %v3604_v60, -inf  ;;  %v4372_v53 = vsel %vm4126_vm3, %v3606_v30, -inf }
 0x34d   : > { %v4410_v49 = vrot.slane %v4409_v48, 2  ;;  %v4416_v20 = vmax.f32 %v4414_v28, %v4415_v12  ;;  %v4423_v50 = vmax.f32 %v4421_v63, %v4422_v17  ;;  %v4429_v11 = vrot.slane %v4428_v47, 4 }
 0x34e   : > { %v4353_v1 = vmax.f32 %v4351_v29, %v4352_v38  ;;  %v4359_v42 = vrot.slane %v4358_v34, 4  ;;  %v4366_v4 = vrot.slane %v4365_v31, 4  ;;  %v4373_v24 = vrot.slane %v4372_v53, 4 }
 0x34f   : > { %v4411_v21 = vmax.f32 %v4409_v48, %v4410_v49  ;;  %v4417_v54 = vrot.slane %v4416_v20, 2  ;;  %v4424_v15 = vrot.slane %v4423_v50, 2  ;;  %v4430_v32 = vmax.f32 %v4428_v47, %v4429_v11 }
 0x350   : > { %v4354_v40 = vrot.slane %v4353_v1, 2  ;;  %v4360_v23 = vmax.f32 %v4358_v34, %v4359_v42  ;;  %v4367_v13 = vmax.f32 %v4365_v31, %v4366_v4  ;;  %v4374_v16 = vmax.f32 %v4372_v53, %v4373_v24 }
 0x351   : > { %v4412_v57 = vrot.slane %v4411_v21, 1  ;;  %v4418_v27 = vmax.f32 %v4416_v20, %v4417_v54  ;;  %v4425_v44 = vmax.f32 %v4423_v50, %v4424_v15  ;;  %v4431_v5 = vrot.slane %v4430_v32, 2 }
 0x352   : > { %v4355_v36 = vmax.f32 %v4353_v1, %v4354_v40  ;;  %v4361_v33 = vrot.slane %v4360_v23, 2  ;;  %v4368_v58 = vrot.slane %v4367_v13, 2  ;;  %v4375_v43 = vrot.slane %v4374_v16, 2 }
 0x353   : > { %v4413_v19 = vmax.f32 %v4411_v21, %v4412_v57  ;;  %v4419_v37 = vrot.slane %v4418_v27, 1  ;;  %v4426_v51 = vrot.slane %v4425_v44, 1  ;;  %v4432_v2 = vmax.f32 %v4430_v32, %v4431_v5 }
 0x354   : > { %v4356_v60 = vrot.slane %v4355_v36, 1  ;;  %v4362_v10 = vmax.f32 %v4360_v23, %v4361_v33  ;;  %v4369_v61 = vmax.f32 %v4367_v13, %v4368_v58  ;;  %v4376_v29 = vmax.f32 %v4374_v16, %v4375_v43  ;;  %v12687_v43 = vpop.f32.mrb[149].mxu0 }
 0x355   : > { %v4420_v55 = vmax.f32 %v4418_v27, %v4419_v37  ;;  %v4427_v28 = vmax.f32 %v4425_v44, %v4426_v51  ;;  %v4433_v63 = vrot.slane %v4432_v2, 1  ;;  %v5072_v30 = vsel %vm513_vm2, %v4413_v19, -inf }
 0x356   : > { %v4357_v48 = vmax.f32 %v4355_v36, %v4356_v60  ;;  %v4363_v12 = vrot.slane %v4362_v10, 1  ;;  %v4370_v17 = vrot.slane %v4369_v61, 1  ;;  %v4377_v38 = vrot.slane %v4376_v29, 1 }
 0x357   : > { %v4434_v47 = vmax.f32 %v4432_v2, %v4433_v63  ;;  %v5075_v34 = vsel %vm513_vm2, %v4420_v55, -inf  ;;  %v5078_v31 = vsel %vm513_vm2, %v4427_v28, -inf  ;;  %v3656_v53 = vcombine.high %v12649_v9, %v12649_v9 }
 0x358   : > { %v4364_v49 = vmax.f32 %v4362_v10, %v4363_v12  ;;  %v4371_v20 = vmax.f32 %v4369_v61, %v4370_v17  ;;  %v4378_v50 = vmax.f32 %v4376_v29, %v4377_v38  ;;  %v5071_v11 = vsel %vm513_vm2, %v4357_v48, -inf }
 0x359   : > { %v5081_v1 = vsel %vm513_vm2, %v4434_v47, -inf  ;;  %v5073_v42 = vmax.f32 %v5071_v11, %v5072_v30  ;;  %v3657_v4 = vcombine.high %v12658_v18, %v12658_v18  ;;  %v4435_v24 = vsel %vm4126_vm3, %v12649_v9, -inf }
 0x35a   : > { %v5074_v21 = vsel %vm513_vm2, %v4364_v49, -inf  ;;  %v5077_v54 = vsel %vm513_vm2, %v4371_v20, -inf  ;;  %v5080_v15 = vsel %vm513_vm2, %v4378_v50, -inf  ;;  %v4436_v32 = vrot.slane %v4435_v24, 4 }
 0x35b   : > { %v5076_v40 = vmax.f32 %v5074_v21, %v5075_v34  ;;  %v5079_v23 = vmax.f32 %v5077_v54, %v5078_v31  ;;  %v5082_v13 = vmax.f32 %v5080_v15, %v5081_v1  ;;  %v4442_v16 = vsel %vm4126_vm3, %v3656_v53, -inf  ;;  %v10606_v15 = vld [vmem:[%s14268_s4 + $0x110] sm:$0xff]  }
 0x35c   : > { %v4437_v57 = vmax.f32 %v4435_v24, %v4436_v32  ;;  %v4443_v27 = vrot.slane %v4442_v16, 4  ;;  %v4449_v44 = vsel %vm4126_vm3, %v12658_v18, -inf  ;;  %v4456_v5 = vsel %vm4126_vm3, %v3657_v4, -inf  ;;  %v12703_v32 = vpop.f32.mrb[150].mxu0  ;;  %10082 = vmatpush3.bf16.msra.mxu0 %v10606_v15 }
 0x35d   : > { %v5300_v9 = vsel %vm5279_vm4, %v5076_v40, %v5073_v42  ;;  %v4450_v36 = vrot.slane %v4449_v44, 4  ;;  %v4457_v33 = vrot.slane %v4456_v5, 4  ;;  %v3607_v58 = vcombine.high %v12651_v26, %v12651_v26 }
 0x35e   : > { %v5301_v19 = vsel %vm5281_vm5, %v5079_v23, %v5300_v9  ;;  %v4438_v37 = vrot.slane %v4437_v57, 2  ;;  %v4444_v51 = vmax.f32 %v4442_v16, %v4443_v27  ;;  %v3614_v2 = vrot.slane %v12651_v26, %v12413_v41 }
 0x35f   : > { %v4451_v60 = vmax.f32 %v4449_v44, %v4450_v36  ;;  %v4458_v18 = vmax.f32 %v4456_v5, %v4457_v33  ;;  %v3621_v10 = vrot.slane %v3607_v58, %v12413_v41  ;;  %v12694_v61 = vsel %vm5283_vm6, %v5082_v13, %v5301_v19  ;;  %v12710_v58 = vld [vmem:[%s14267_s3] ss:$0 sm:$0xff] }
 0x360   : > { %v4439_v29 = vmax.f32 %v4437_v57, %v4438_v37  ;;  %v4445_v55 = vrot.slane %v4444_v51, 2  ;;  %v3622_v28 = vcombine.high %v3614_v2, %v3614_v2  ;;  %v4379_v63 = vsel %vm4126_vm3, %v3614_v2, -inf }
 0x361   : > { %v4452_v30 = vrot.slane %v4451_v60, 2  ;;  %v4459_v48 = vrot.slane %v4458_v18, 2  ;;  %v3623_v12 = vcombine.high %v3621_v10, %v3621_v10  ;;  %v4380_v17 = vrot.slane %v4379_v63, 4 }
 0x362   : > { %v4440_v38 = vrot.slane %v4439_v29, 1  ;;  %v4446_v47 = vmax.f32 %v4444_v51, %v4445_v55  ;;  %v4386_v26 = vsel %vm4126_vm3, %v3622_v28, -inf  ;;  %v4393_v34 = vsel %vm4126_vm3, %v3621_v10, -inf }
 0x363   : > { %v4453_v31 = vmax.f32 %v4451_v60, %v4452_v30  ;;  %v4460_v53 = vmax.f32 %v4458_v18, %v4459_v48  ;;  %v4381_v49 = vmax.f32 %v4379_v63, %v4380_v17  ;;  %v4387_v20 = vrot.slane %v4386_v26, 4 }
 0x364   : > { %v4441_v50 = vmax.f32 %v4439_v29, %v4440_v38  ;;  %v4447_v11 = vrot.slane %v4446_v47, 1  ;;  %v4394_v1 = vrot.slane %v4393_v34, 4  ;;  %v4400_v42 = vsel %vm4126_vm3, %v3623_v12, -inf }
 0x365   : > { %v4454_v4 = vrot.slane %v4453_v31, 1  ;;  %v4461_v24 = vrot.slane %v4460_v53, 1  ;;  %v4382_v21 = vrot.slane %v4381_v49, 2  ;;  %v4388_v54 = vmax.f32 %v4386_v26, %v4387_v20 }
 0x366   : > { %v4448_v40 = vmax.f32 %v4446_v47, %v4447_v11  ;;  %v5084_v23 = vsel %vm513_vm2, %v4441_v50, -inf  ;;  %v4395_v13 = vmax.f32 %v4393_v34, %v4394_v1  ;;  %v4401_v16 = vrot.slane %v4400_v42, 4 }
 0x367   : > { %v4455_v57 = vmax.f32 %v4453_v31, %v4454_v4  ;;  %v4462_v27 = vmax.f32 %v4460_v53, %v4461_v24  ;;  %v4383_v44 = vmax.f32 %v4381_v49, %v4382_v21  ;;  %v4389_v5 = vrot.slane %v4388_v54, 2  ;;  %v12738_v4 = vpop.f32.mrb[151].mxu0 }
 0x368   : > { %v5087_v9 = vsel %vm513_vm2, %v4448_v40, -inf  ;;  %v4396_v36 = vrot.slane %v4395_v13, 2  ;;  %v4402_v33 = vmax.f32 %v4400_v42, %v4401_v16  ;;  %v3372_v19 = vadd.f32 %v12710_v58, %v12642_v39 }
 0x369   : > { %v5090_v37 = vsel %vm513_vm2, %v4455_v57, -inf  ;;  %v5093_v51 = vsel %vm513_vm2, %v4462_v27, -inf  ;;  %v4384_v2 = vrot.slane %v4383_v44, 1  ;;  %v4390_v60 = vmax.f32 %v4388_v54, %v4389_v5 }
 0x36a   : > { %v4397_v18 = vmax.f32 %v4395_v13, %v4396_v36  ;;  %v4403_v10 = vrot.slane %v4402_v33, 2  ;;  %v3404_v29 = vmax.f32 %v3372_v19, 0.0  ;;  %v3234_v55 = vadd.f32 %v12464_v56, %v12302_v46  ;;  %v12727_v46 = vld [vmem:[%s14266_s2] ss:$0 sm:$0xff] }
 0x36b   : > { %v4385_v28 = vmax.f32 %v4383_v44, %v4384_v2  ;;  %v4391_v63 = vrot.slane %v4390_v60, 1  ;;  %v3245_v30 = vadd.f32 %v12468_v62, %v12311_v14  ;;  %v3237_v39 = vadd.f32 %v12472_v0, %v12305_v52 }
 0x36c   : > { %v4398_v48 = vrot.slane %v4397_v18, 1  ;;  %v4404_v12 = vmax.f32 %v4402_v33, %v4403_v10  ;;  %v3692_v17 = vcombine.high %v3404_v29, %v3404_v29  ;;  %v3699_v38 = vrot.slane %v3404_v29, %v12413_v41 }
 0x36d   : > { %v4392_v47 = vmax.f32 %v4390_v60, %v4391_v63  ;;  %v5083_v26 = vsel %vm513_vm2, %v4385_v28, -inf  ;;  %v3331_v56 = vmul.f32 %v12727_v46, %v3234_v55  ;;  %v3334_v14 = vmul.f32 %v12727_v46, %v3245_v30 }
 0x36e   : > { %v4399_v62 = vmax.f32 %v4397_v18, %v4398_v48  ;;  %v4405_v34 = vrot.slane %v4404_v12, 1  ;;  %v5085_v52 = vmax.f32 %v5083_v26, %v5084_v23  ;;  %v3706_v0 = vrot.slane %v3692_v17, %v12413_v41 }
 0x36f   : > { %v5086_v31 = vsel %vm513_vm2, %v4392_v47, -inf  ;;  %v3707_v53 = vcombine.high %v3699_v38, %v3699_v38  ;;  %v4519_v49 = vsel %vm4126_vm3, %v3699_v38, -inf  ;;  %v3370_v20 = vadd.f32 %v12710_v58, %v3331_v56 }
 0x370   : > { %v4406_v50 = vmax.f32 %v4404_v12, %v4405_v34  ;;  %v5088_v11 = vmax.f32 %v5086_v31, %v5087_v9  ;;  %v5089_v1 = vsel %vm513_vm2, %v4399_v62, -inf  ;;  %v5303_v42 = vsel %vm5285_vm7, %v5085_v52, %v12694_v61 }
 0x371   : > { %v5091_v24 = vmax.f32 %v5089_v1, %v5090_v37  ;;  %v3708_v21 = vcombine.high %v3706_v0, %v3706_v0  ;;  %v4520_v54 = vrot.slane %v4519_v49, 4  ;;  %v4526_v15 = vsel %vm4126_vm3, %v3707_v53, -inf }
 0x372   : > { %v5092_v40 = vsel %vm513_vm2, %v4406_v50, -inf  ;;  %v5304_v23 = vsel %vm5287_vm8, %v5088_v11, %v5303_v42  ;;  %v4527_v13 = vrot.slane %v4526_v15, 4  ;;  %v4533_v16 = vsel %vm4126_vm3, %v3706_v0, -inf }
 0x373   : > { %v5094_v57 = vmax.f32 %v5092_v40, %v5093_v51  ;;  %v5305_v27 = vsel %vm5289_vm9, %v5091_v24, %v5304_v23  ;;  %v4521_v44 = vmax.f32 %v4519_v49, %v4520_v54  ;;  %v4534_v5 = vrot.slane %v4533_v16, 4  ;;  %v10608_v40 = vld [vmem:[%s14268_s4 + $0x118] sm:$0xff]   ;;  %v12765_v23 = vpop.f32.mrb[152].mxu0 }
 0x374   : > { %v4528_v61 = vmax.f32 %v4526_v15, %v4527_v13  ;;  %v4540_v9 = vsel %vm4126_vm3, %v3708_v21, -inf  ;;  %v3402_v36 = vmax.f32 %v3370_v20, 0.0  ;;  %v3373_v33 = vadd.f32 %v12710_v58, %v3334_v14  ;;  %v10607_v15 = vld [vmem:[%s14268_s4 + $0x158] sm:$0xff]  }
 0x375   : > { %v5306_v19 = vsel %vm5291_vm10, %v5094_v57, %v5305_v27  ;;  %v4522_v37 = vrot.slane %v4521_v44, 2  ;;  %v4535_v2 = vmax.f32 %v4533_v16, %v4534_v5  ;;  %v4541_v60 = vrot.slane %v4540_v9, 4  ;;  %10083 = vmatprep.subr.bf16.mxu0 %v10607_v15 }
 0x376   : > { %5353 = vst.msk [vmem:[#allocation3 + $0x50] sm:$0xff] %vm513_vm2, %v5306_v19  ;;  %v4529_v18 = vrot.slane %v4528_v61, 2  ;;  %v3658_v10 = vcombine.high %v3402_v36, %v3402_v36  ;;  %v3665_v51 = vrot.slane %v3402_v36, %v12413_v41  ;;  %v3405_v29 = vmax.f32 %v3373_v33, 0.0  ;;  %10084 = vmatpush3.bf16.msra.mxu0 %v10608_v40 }
 0x377   : > { %v4523_v55 = vmax.f32 %v4521_v44, %v4522_v37  ;;  %v4536_v28 = vrot.slane %v4535_v2, 2  ;;  %v4542_v63 = vmax.f32 %v4540_v9, %v4541_v60  ;;  %v3332_v30 = vmul.f32 %v12727_v46, %v3237_v39 }
 0x378   : > { %v4530_v48 = vmax.f32 %v4528_v61, %v4529_v18  ;;  %v3672_v12 = vrot.slane %v3658_v10, %v12413_v41  ;;  %v3673_v17 = vcombine.high %v3665_v51, %v3665_v51  ;;  %v4463_v38 = vsel %vm4126_vm3, %v3665_v51, -inf }
 0x379   : > { %v4524_v47 = vrot.slane %v4523_v55, 1  ;;  %v4537_v26 = vmax.f32 %v4535_v2, %v4536_v28  ;;  %v4543_v56 = vrot.slane %v4542_v63, 2  ;;  %v4464_v14 = vrot.slane %v4463_v38, 4 }
 0x37a   : > { %v4531_v62 = vrot.slane %v4530_v48, 1  ;;  %v3674_v34 = vcombine.high %v3672_v12, %v3672_v12  ;;  %v4470_v52 = vsel %vm4126_vm3, %v3673_v17, -inf  ;;  %v4477_v0 = vsel %vm4126_vm3, %v3672_v12, -inf }
 0x37b   : > { %v4525_v31 = vmax.f32 %v4523_v55, %v4524_v47  ;;  %v4538_v53 = vrot.slane %v4537_v26, 1  ;;  %v4544_v49 = vmax.f32 %v4542_v63, %v4543_v56  ;;  %v4465_v39 = vmax.f32 %v4463_v38, %v4464_v14 }
 0x37c   : > { %v4532_v20 = vmax.f32 %v4530_v48, %v4531_v62  ;;  %v4471_v50 = vrot.slane %v4470_v52, 4  ;;  %v4478_v11 = vrot.slane %v4477_v0, 4  ;;  %v4484_v1 = vsel %vm4126_vm3, %v3674_v34, -inf }
 0x37d   : > { %v4539_v42 = vmax.f32 %v4537_v26, %v4538_v53  ;;  %v4545_v24 = vrot.slane %v4544_v49, 1  ;;  %v12757_v21 = vsel %vm513_vm2, %v4525_v31, -inf  ;;  %v4466_v54 = vrot.slane %v4465_v39, 2 }
 0x37e   : > { %v5099_v13 = vsel %vm513_vm2, %v4532_v20, -inf  ;;  %v4472_v16 = vmax.f32 %v4470_v52, %v4471_v50  ;;  %v4479_v57 = vmax.f32 %v4477_v0, %v4478_v11  ;;  %v4485_v27 = vrot.slane %v4484_v1, 4 }
 0x37f   : > { %v4546_v44 = vmax.f32 %v4544_v49, %v4545_v24  ;;  %v5102_v5 = vsel %vm513_vm2, %v4539_v42, -inf  ;;  %v4467_v61 = vmax.f32 %v4465_v39, %v4466_v54  ;;  %v3709_v9 = vcombine.high %v3405_v29, %v3405_v29 }
 0x380   : > { %v4473_v36 = vrot.slane %v4472_v16, 2  ;;  %v4480_v33 = vrot.slane %v4479_v57, 2  ;;  %v4486_v19 = vmax.f32 %v4484_v1, %v4485_v27  ;;  %v3716_v37 = vrot.slane %v3405_v29, %v12413_v41 }
 0x381   : > { %v5105_v2 = vsel %vm513_vm2, %v4546_v44, -inf  ;;  %v4468_v60 = vrot.slane %v4467_v61, 1  ;;  %v3723_v18 = vrot.slane %v3709_v9, %v12413_v41  ;;  %v3371_v10 = vadd.f32 %v12710_v58, %v3332_v30  ;;  %v10610_v9 = vld [vmem:[%s14268_s4 + $0x160] sm:$0xff]  }
 0x382   : > { %v4474_v51 = vmax.f32 %v4472_v16, %v4473_v36  ;;  %v4481_v55 = vmax.f32 %v4479_v57, %v4480_v33  ;;  %v4487_v28 = vrot.slane %v4486_v19, 2  ;;  %v3724_v63 = vcombine.high %v3716_v37, %v3716_v37  ;;  %v12788_v36 = vpop.f32.mrb[153].mxu0  ;;  %10085 = vmatprep.subr.bf16.mxu0 %v10610_v9 }
 0x383   : > { %v4469_v48 = vmax.f32 %v4467_v61, %v4468_v60  ;;  %v3725_v12 = vcombine.high %v3723_v18, %v3723_v18  ;;  %v4547_v17 = vsel %vm4126_vm3, %v3716_v37, -inf  ;;  %v4561_v38 = vsel %vm4126_vm3, %v3723_v18, -inf }
 0x384   : > { %v4475_v47 = vrot.slane %v4474_v51, 1  ;;  %v4482_v29 = vrot.slane %v4481_v55, 1  ;;  %v4488_v26 = vmax.f32 %v4486_v19, %v4487_v28  ;;  %v4548_v56 = vrot.slane %v4547_v17, 4 }
 0x385   : > { %v5095_v14 = vsel %vm513_vm2, %v4469_v48, -inf  ;;  %v4554_v62 = vsel %vm4126_vm3, %v3724_v63, -inf  ;;  %v4562_v34 = vrot.slane %v4561_v38, 4  ;;  %v4568_v30 = vsel %vm4126_vm3, %v3725_v12, -inf }
 0x386   : > { %v4476_v52 = vmax.f32 %v4474_v51, %v4475_v47  ;;  %v4483_v0 = vmax.f32 %v4481_v55, %v4482_v29  ;;  %v4489_v31 = vrot.slane %v4488_v26, 1  ;;  %v5097_v53 = vmax.f32 %v5095_v14, %v12757_v21  ;;  %v10609_v21 = vld [vmem:[%s14268_s4 + $0x70] sm:$0xff]  }
 0x387   : > { %v4549_v49 = vmax.f32 %v4547_v17, %v4548_v56  ;;  %v4555_v39 = vrot.slane %v4554_v62, 4  ;;  %v4563_v20 = vmax.f32 %v4561_v38, %v4562_v34  ;;  %v4569_v50 = vrot.slane %v4568_v30, 4  ;;  %10009 = vmatprep.subr.bf16.mxu1 %v10609_v21 }
 0x388   : > { %v4490_v11 = vmax.f32 %v4488_v26, %v4489_v31  ;;  %v5098_v1 = vsel %vm513_vm2, %v4476_v52, -inf  ;;  %v5101_v42 = vsel %vm513_vm2, %v4483_v0, -inf  ;;  %v3403_v24 = vmax.f32 %v3371_v10, 0.0 }
 0x389   : > { %v5100_v54 = vmax.f32 %v5098_v1, %v5099_v13  ;;  %v5103_v15 = vmax.f32 %v5101_v42, %v5102_v5  ;;  %v4550_v40 = vrot.slane %v4549_v49, 2  ;;  %v4556_v16 = vmax.f32 %v4554_v62, %v4555_v39  ;;  %v12807_v39 = vpop.f32.mrb[154].mxu0 }
 0x38a   : > { %v5104_v57 = vsel %vm513_vm2, %v4490_v11, -inf  ;;  %v4564_v27 = vrot.slane %v4563_v20, 2  ;;  %v4570_v44 = vmax.f32 %v4568_v30, %v4569_v50  ;;  %v3675_v61 = vcombine.high %v3403_v24, %v3403_v24 }
 0x38b   : > { %v5106_v33 = vmax.f32 %v5104_v57, %v5105_v2  ;;  %v5307_v13 = vsel %vm5279_vm4, %v5100_v54, %v5097_v53  ;;  %v4551_v5 = vmax.f32 %v4549_v49, %v4550_v40  ;;  %v4557_v19 = vrot.slane %v4556_v16, 2  ;;  %v10611_v53 = vld [vmem:[%s14268_s4 + $0x30] sm:$0xff]   ;;  %v10612_v49 = vld [vmem:[%s14268_s4 + $0x120] sm:$0xff]  }
 0x38c   : > { %v5308_v37 = vsel %vm5281_vm5, %v5103_v15, %v5307_v13  ;;  %v4565_v60 = vmax.f32 %v4563_v20, %v4564_v27  ;;  %v4571_v18 = vrot.slane %v4570_v44, 2  ;;  %v3682_v10 = vrot.slane %v3403_v24, %v12413_v41  ;;  %10010 = vmatpush3.bf16.msra.mxu1 %v10611_v53  ;;  %10086 = vmatpush3.bf16.msra.mxu0 %v10612_v49 }
 0x38d   : > { %v4552_v51 = vrot.slane %v4551_v5, 1  ;;  %v4558_v55 = vmax.f32 %v4556_v16, %v4557_v19  ;;  %v3689_v28 = vrot.slane %v3675_v61, %v12413_v41  ;;  %v12795_v63 = vsel %vm5283_vm6, %v5106_v33, %v5308_v37 }
 0x38e   : > { %v4566_v2 = vrot.slane %v4565_v60, 1  ;;  %v4572_v48 = vmax.f32 %v4570_v44, %v4571_v18  ;;  %v3690_v12 = vcombine.high %v3682_v10, %v3682_v10  ;;  %v4491_v17 = vsel %vm4126_vm3, %v3682_v10, -inf }
 0x38f   : > { %v4553_v38 = vmax.f32 %v4551_v5, %v4552_v51  ;;  %v4559_v47 = vrot.slane %v4558_v55, 1  ;;  %v3691_v29 = vcombine.high %v3689_v28, %v3689_v28  ;;  %v4492_v26 = vrot.slane %v4491_v17, 4 }
 0x390   : > { %v4567_v56 = vmax.f32 %v4565_v60, %v4566_v2  ;;  %v4573_v14 = vrot.slane %v4572_v48, 1  ;;  %v4498_v62 = vsel %vm4126_vm3, %v3690_v12, -inf  ;;  %v4505_v34 = vsel %vm4126_vm3, %v3689_v28, -inf }
 0x391   : > { %v4560_v30 = vmax.f32 %v4558_v55, %v4559_v47  ;;  %v5108_v52 = vsel %vm513_vm2, %v4553_v38, -inf  ;;  %v4493_v0 = vmax.f32 %v4491_v17, %v4492_v26  ;;  %v4499_v31 = vrot.slane %v4498_v62, 4 }
 0x392   : > { %v4574_v20 = vmax.f32 %v4572_v48, %v4573_v14  ;;  %v12810_v50 = vsel %vm513_vm2, %v4567_v56, -inf  ;;  %v4506_v11 = vrot.slane %v4505_v34, 4  ;;  %v4512_v1 = vsel %vm4126_vm3, %v3691_v29, -inf }
 0x393   : > { %v5111_v42 = vsel %vm513_vm2, %v4560_v30, -inf  ;;  %v4494_v24 = vrot.slane %v4493_v0, 2  ;;  %v4500_v54 = vmax.f32 %v4498_v62, %v4499_v31  ;;  %v4513_v15 = vrot.slane %v4512_v1, 4 }
 0x394   : > { %v5117_v40 = vsel %vm513_vm2, %v4574_v20, -inf  ;;  %v4507_v16 = vmax.f32 %v4505_v34, %v4506_v11  ;;  %v3258_v57 = vadd.f32 %v12503_v3, %v12323_v6  ;;  %v3250_v27 = vadd.f32 %v12526_v22, %v12328_v8 }
 0x395   : > { %v4495_v44 = vmax.f32 %v4493_v0, %v4494_v24  ;;  %v4501_v61 = vrot.slane %v4500_v54, 2  ;;  %v4514_v21 = vmax.f32 %v4512_v1, %v4513_v15  ;;  %v3261_v9 = vadd.f32 %v12548_v25, %v12347_v59  ;;  %v12846_v24 = vpop.f32.mrb[155].mxu0 }
 0x396   : > { %v4508_v33 = vrot.slane %v4507_v16, 2  ;;  %v3337_v13 = vmul.f32 %v12727_v46, %v3258_v57  ;;  %v3335_v5 = vmul.f32 %v12727_v46, %v3250_v27  ;;  %v3253_v19 = vadd.f32 %v12569_v7, %v12358_v45 }
 0x397   : > { %v4496_v37 = vrot.slane %v4495_v44, 1  ;;  %v4502_v60 = vmax.f32 %v4500_v54, %v4501_v61  ;;  %v4515_v6 = vrot.slane %v4514_v21, 2  ;;  %v3338_v3 = vmul.f32 %v12727_v46, %v3261_v9 }
 0x398   : > { %v4509_v8 = vmax.f32 %v4507_v16, %v4508_v33  ;;  %v3376_v22 = vadd.f32 %v12710_v58, %v3337_v13  ;;  %v3374_v18 = vadd.f32 %v12710_v58, %v3335_v5  ;;  %v3336_v59 = vmul.f32 %v12727_v46, %v3253_v19 }
 0x399   : > { %v4497_v25 = vmax.f32 %v4495_v44, %v4496_v37  ;;  %v4503_v10 = vrot.slane %v4502_v60, 1  ;;  %v4516_v51 = vmax.f32 %v4514_v21, %v4515_v6  ;;  %v3377_v55 = vadd.f32 %v12710_v58, %v3338_v3 }
 0x39a   : > { %v4510_v28 = vrot.slane %v4509_v8, 1  ;;  %v3408_v2 = vmax.f32 %v3376_v22, 0.0  ;;  %v3406_v45 = vmax.f32 %v3374_v18, 0.0  ;;  %v12831_v7 = vadd.f32 %v12710_v58, %v3336_v59 }
 0x39b   : > { %v4504_v48 = vmax.f32 %v4502_v60, %v4503_v10  ;;  %v4517_v12 = vrot.slane %v4516_v51, 1  ;;  %v5107_v17 = vsel %vm513_vm2, %v4497_v25, -inf  ;;  %v12834_v38 = vmax.f32 %v3377_v55, 0.0 }
 0x39c   : > { %v4511_v47 = vmax.f32 %v4509_v8, %v4510_v28  ;;  %v5109_v29 = vmax.f32 %v5107_v17, %v5108_v52  ;;  %v3760_v26 = vcombine.high %v3408_v2, %v3408_v2  ;;  %v3767_v56 = vrot.slane %v3408_v2, %v12413_v41 }
 0x39d   : > { %v4518_v14 = vmax.f32 %v4516_v51, %v4517_v12  ;;  %v5110_v62 = vsel %vm513_vm2, %v4504_v48, -inf  ;;  %v3726_v34 = vcombine.high %v3406_v45, %v3406_v45  ;;  %v3733_v30 = vrot.slane %v3406_v45, %v12413_v41 }
 0x39e   : > { %v5112_v0 = vmax.f32 %v5110_v62, %v5111_v42  ;;  %v5113_v31 = vsel %vm513_vm2, %v4511_v47, -inf  ;;  %v5310_v53 = vsel %vm5285_vm7, %v5109_v29, %v12795_v63  ;;  %v3774_v49 = vrot.slane %v3760_v26, %v12413_v41 }
 0x39f   : > { %v5115_v20 = vmax.f32 %v5113_v31, %v12810_v50  ;;  %v5116_v52 = vsel %vm513_vm2, %v4518_v14, -inf  ;;  %v3775_v11 = vcombine.high %v3767_v56, %v3767_v56  ;;  %v4631_v1 = vsel %vm4126_vm3, %v3767_v56, -inf }
 0x3a0   : > { %v5118_v54 = vmax.f32 %v5116_v52, %v5117_v40  ;;  %v5311_v15 = vsel %vm5287_vm8, %v5112_v0, %v5310_v53  ;;  %v3776_v42 = vcombine.high %v3774_v49, %v3774_v49  ;;  %v4632_v16 = vrot.slane %v4631_v1, 4  ;;  %v10613_v52 = vld [vmem:[%s14268_s4 + $0x78] sm:$0xff]  }
 0x3a1   : > { %v5312_v57 = vsel %vm5289_vm9, %v5115_v20, %v5311_v15  ;;  %v4638_v63 = vsel %vm4126_vm3, %v3775_v11, -inf  ;;  %v4645_v27 = vsel %vm4126_vm3, %v3774_v49, -inf  ;;  %v3740_v50 = vrot.slane %v3726_v34, %v12413_v41  ;;  %v10614_v11 = vld [vmem:[%s14268_s4 + $0x168] sm:$0xff]   ;;  %10011 = vmatprep.subr.bf16.mxu1 %v10613_v52 }
 0x3a2   : > { %v5313_v44 = vsel %vm5291_vm10, %v5118_v54, %v5312_v57  ;;  %v4633_v61 = vmax.f32 %v4631_v1, %v4632_v16  ;;  %v4639_v21 = vrot.slane %v4638_v63, 4  ;;  %v4646_v9 = vrot.slane %v4645_v27, 4  ;;  %v10615_v1 = vld [vmem:[%s14268_s4 + $0x38] sm:$0xff]   ;;  %v10616_v57 = vld [vmem:[%s14268_s4 + $0x128] sm:$0xff]   ;;  %10087 = vmatprep.subr.bf16.mxu0 %v10614_v11 }
 0x3a3   : > { %5354 = vst.msk [vmem:[#allocation3 + $0x68] sm:$0xff] %vm513_vm2, %v5313_v44  ;;  %v4652_v40 = vsel %vm4126_vm3, %v3776_v42, -inf  ;;  %v3741_v33 = vcombine.high %v3733_v30, %v3733_v30  ;;  %v3742_v13 = vcombine.high %v3740_v50, %v3740_v50  ;;  %v4575_v5 = vsel %vm4126_vm3, %v3733_v30, -inf  ;;  %10012 = vmatpush3.bf16.msra.mxu1 %v10615_v1  ;;  %10088 = vmatpush3.bf16.msra.mxu0 %v10616_v57 }
 0x3a4   : > { %v4634_v19 = vrot.slane %v4633_v61, 2  ;;  %v4640_v37 = vmax.f32 %v4638_v63, %v4639_v21  ;;  %v4647_v60 = vmax.f32 %v4645_v27, %v4646_v9  ;;  %v4653_v6 = vrot.slane %v4652_v40, 4  ;;  %v5447_v63 = vld [vmem:[#allocation3 + $0x8] sm:$0xff]  ;;  %v5448_v27 = vld [vmem:[#allocation3 + $0x20] sm:$0xff] }
 0x3a5   : > { %v4576_v3 = vrot.slane %v4575_v5, 4  ;;  %v4582_v8 = vsel %vm4126_vm3, %v3741_v33, -inf  ;;  %v4589_v22 = vsel %vm4126_vm3, %v3740_v50, -inf  ;;  %v4596_v18 = vsel %vm4126_vm3, %v3742_v13, -inf  ;;  %v12873_v50 = vpop.f32.mrb[156].mxu0  ;;  %5455 = vst.msk [vmem:[#allocation7 + $0x8] sm:$0xff] %vm513_vm2, %v5447_v63 }
 0x3a6   : > { %v4635_v59 = vmax.f32 %v4633_v61, %v4634_v19  ;;  %v4641_v25 = vrot.slane %v4640_v37, 2  ;;  %v4648_v10 = vrot.slane %v4647_v60, 2  ;;  %v4654_v51 = vmax.f32 %v4652_v40, %v4653_v6  ;;  %5456 = vst.msk [vmem:[#allocation7 + $0x50] sm:$0xff] %vm513_vm2, %v5448_v27  ;;  %5503 = vst.msk [vmem:[#allocation7 + $0x20] sm:$0xff] %vm513_vm2, %v5448_v27  ;;  %v12901_v11 = vpop.f32.mrb[157].mxu0 }
 0x3a7   : > { %v4577_v55 = vmax.f32 %v4575_v5, %v4576_v3  ;;  %v4583_v28 = vrot.slane %v4582_v8, 4  ;;  %v4590_v2 = vrot.slane %v4589_v22, 4  ;;  %v4597_v45 = vrot.slane %v4596_v18, 4 }
 0x3a8   : > { %v4636_v48 = vrot.slane %v4635_v59, 1  ;;  %v4642_v12 = vmax.f32 %v4640_v37, %v4641_v25  ;;  %v4649_v17 = vmax.f32 %v4647_v60, %v4648_v10  ;;  %v4655_v47 = vrot.slane %v4654_v51, 2 }
 0x3a9   : > { %v4578_v29 = vrot.slane %v4577_v55, 2  ;;  %v4584_v26 = vmax.f32 %v4582_v8, %v4583_v28  ;;  %v4591_v56 = vmax.f32 %v4589_v22, %v4590_v2  ;;  %v4598_v14 = vmax.f32 %v4596_v18, %v4597_v45 }
 0x3aa   : > { %v4637_v62 = vmax.f32 %v4635_v59, %v4636_v48  ;;  %v4643_v34 = vrot.slane %v4642_v12, 1  ;;  %v4650_v30 = vrot.slane %v4649_v17, 1  ;;  %v4656_v0 = vmax.f32 %v4654_v51, %v4655_v47 }
 0x3ab   : > { %v4579_v31 = vmax.f32 %v4577_v55, %v4578_v29  ;;  %v4585_v53 = vrot.slane %v4584_v26, 2  ;;  %v4592_v49 = vrot.slane %v4591_v56, 2  ;;  %v4599_v20 = vrot.slane %v4598_v14, 2 }
 0x3ac   : > { %v4644_v54 = vmax.f32 %v4642_v12, %v4643_v34  ;;  %v4651_v15 = vmax.f32 %v4649_v17, %v4650_v30  ;;  %v4657_v42 = vrot.slane %v4656_v0, 1  ;;  %v5120_v16 = vsel %vm513_vm2, %v4637_v62, -inf  ;;  %v5431_v30 = vld [vmem:[#allocation3 + $0x7] sm:$0xff] }
 0x3ad   : > { %v4580_v44 = vrot.slane %v4579_v31, 1  ;;  %v4586_v61 = vmax.f32 %v4584_v26, %v4585_v53  ;;  %v4593_v21 = vmax.f32 %v4591_v56, %v4592_v49  ;;  %v4600_v9 = vmax.f32 %v4598_v14, %v4599_v20  ;;  %5439 = vst.msk [vmem:[#allocation7] sm:$0xff] %vm513_vm2, %v5431_v30 }
 0x3ae   : > { %v4658_v40 = vmax.f32 %v4656_v0, %v4657_v42  ;;  %v5123_v33 = vsel %vm513_vm2, %v4644_v54, -inf  ;;  %v5126_v13 = vsel %vm513_vm2, %v4651_v15, -inf  ;;  %v3777_v5 = vcombine.high %v12834_v38, %v12834_v38  ;;  %v5432_v0 = vld [vmem:[#allocation3 + $0x1f] sm:$0xff] }
 0x3af   : > { %v4581_v19 = vmax.f32 %v4579_v31, %v4580_v44  ;;  %v4587_v37 = vrot.slane %v4586_v61, 1  ;;  %v4594_v60 = vrot.slane %v4593_v21, 1  ;;  %v4601_v6 = vrot.slane %v4600_v9, 1  ;;  %v10617_v31 = vld [vmem:[%s14268_s4 + $0x170] sm:$0xff]   ;;  %5440 = vst.msk [vmem:[#allocation7 + $0x48] sm:$0xff] %vm513_vm2, %v5432_v0  ;;  %5487 = vst.msk [vmem:[#allocation7 + $0x18] sm:$0xff] %vm513_vm2, %v5432_v0 }
 0x3b0   : > { %v5129_v3 = vsel %vm513_vm2, %v4658_v40, -inf  ;;  %v3784_v8 = vrot.slane %v12834_v38, %v12413_v41  ;;  %v3791_v22 = vrot.slane %v3777_v5, %v12413_v41  ;;  %v3407_v18 = vmax.f32 %v12831_v7, 0.0  ;;  %10089 = vmatprep.subr.bf16.mxu0 %v10617_v31  ;;  %v10618_v0 = vld [vmem:[%s14268_s4 + $0x130] sm:$0xff]   ;;  %v12921_v31 = vpop.f32.mrb[158].mxu0 }
 0x3b1   : > { %v4588_v59 = vmax.f32 %v4586_v61, %v4587_v37  ;;  %v4595_v25 = vmax.f32 %v4593_v21, %v4594_v60  ;;  %v4602_v10 = vmax.f32 %v4600_v9, %v4601_v6  ;;  %v5119_v51 = vsel %vm513_vm2, %v4581_v19, -inf  ;;  %10090 = vmatpush3.bf16.msra.mxu0 %v10618_v0 }
 0x3b2   : > { %v5121_v55 = vmax.f32 %v5119_v51, %v5120_v16  ;;  %v3792_v28 = vcombine.high %v3784_v8, %v3784_v8  ;;  %v3793_v2 = vcombine.high %v3791_v22, %v3791_v22  ;;  %v4659_v45 = vsel %vm4126_vm3, %v3784_v8, -inf }
 0x3b3   : > { %v5122_v48 = vsel %vm513_vm2, %v4588_v59, -inf  ;;  %v5125_v12 = vsel %vm513_vm2, %v4595_v25, -inf  ;;  %v5128_v38 = vsel %vm513_vm2, %v4602_v10, -inf  ;;  %v4660_v17 = vrot.slane %v4659_v45, 4 }
 0x3b4   : > { %v5124_v47 = vmax.f32 %v5122_v48, %v5123_v33  ;;  %v5127_v29 = vmax.f32 %v5125_v12, %v5126_v13  ;;  %v5130_v7 = vmax.f32 %v5128_v38, %v5129_v3  ;;  %v4666_v26 = vsel %vm4126_vm3, %v3792_v28, -inf }
 0x3b5   : > { %v4661_v56 = vmax.f32 %v4659_v45, %v4660_v17  ;;  %v4667_v14 = vrot.slane %v4666_v26, 4  ;;  %v4673_v62 = vsel %vm4126_vm3, %v3791_v22, -inf  ;;  %v4680_v34 = vsel %vm4126_vm3, %v3793_v2, -inf }
 0x3b6   : > { %v5314_v53 = vsel %vm5279_vm4, %v5124_v47, %v5121_v55  ;;  %v4674_v49 = vrot.slane %v4673_v62, 4  ;;  %v4681_v20 = vrot.slane %v4680_v34, 4  ;;  %v3743_v52 = vcombine.high %v3407_v18, %v3407_v18 }
 0x3b7   : > { %v5315_v1 = vsel %vm5281_vm5, %v5127_v29, %v5314_v53  ;;  %v4662_v54 = vrot.slane %v4661_v56, 2  ;;  %v4668_v15 = vmax.f32 %v4666_v26, %v4667_v14  ;;  %v3750_v42 = vrot.slane %v3407_v18, %v12413_v41 }
 0x3b8   : > { %v4675_v16 = vmax.f32 %v4673_v62, %v4674_v49  ;;  %v4682_v57 = vmax.f32 %v4680_v34, %v4681_v20  ;;  %v3757_v63 = vrot.slane %v3743_v52, %v12413_v41  ;;  %v12908_v27 = vsel %vm5283_vm6, %v5130_v7, %v5315_v1  ;;  %v14313_v34 = vld [vmem:[#allocation39_spill] sm:$0xff] }
 0x3b9   : > { %v4663_v44 = vmax.f32 %v4661_v56, %v4662_v54  ;;  %v4669_v61 = vrot.slane %v4668_v15, 2  ;;  %v3758_v21 = vcombine.high %v3750_v42, %v3750_v42  ;;  %v4603_v9 = vsel %vm4126_vm3, %v3750_v42, -inf  ;;  %v14314_v42 = vld [vmem:[#allocation17_spill] sm:$0xff] }
 0x3ba   : > { %v4676_v40 = vrot.slane %v4675_v16, 2  ;;  %v4683_v33 = vrot.slane %v4682_v57, 2  ;;  %v3759_v13 = vcombine.high %v3757_v63, %v3757_v63  ;;  %v4604_v5 = vrot.slane %v4603_v9, 4 }
 0x3bb   : > { %v4664_v19 = vrot.slane %v4663_v44, 1  ;;  %v4670_v37 = vmax.f32 %v4668_v15, %v4669_v61  ;;  %v4610_v60 = vsel %vm4126_vm3, %v3758_v21, -inf  ;;  %v4617_v6 = vsel %vm4126_vm3, %v3757_v63, -inf  ;;  %v14317_v61 = vld [vmem:[#allocation22_spill] sm:$0xff] }
 0x3bc   : > { %v4677_v3 = vmax.f32 %v4675_v16, %v4676_v40  ;;  %v4684_v8 = vmax.f32 %v4682_v57, %v4683_v33  ;;  %v4605_v22 = vmax.f32 %v4603_v9, %v4604_v5  ;;  %v4611_v18 = vrot.slane %v4610_v60, 4  ;;  %v14315_v16 = vld [vmem:[#allocation19_spill] sm:$0xff]  ;;  %v14318_v9 = vld [vmem:[#allocation18_spill] sm:$0xff]  ;;  %v14319_v40 = vld [vmem:[#allocation20_spill] sm:$0xff] }
 0x3bd   : > { %v4665_v59 = vmax.f32 %v4663_v44, %v4664_v19  ;;  %v4671_v25 = vrot.slane %v4670_v37, 1  ;;  %v4618_v10 = vrot.slane %v4617_v6, 4  ;;  %v4624_v51 = vsel %vm4126_vm3, %v3759_v13, -inf  ;;  %v14316_v44 = vld [vmem:[#allocation21_spill] sm:$0xff] }
 0x3be   : > { %v4678_v55 = vrot.slane %v4677_v3, 1  ;;  %v4685_v28 = vrot.slane %v4684_v8, 1  ;;  %v4606_v2 = vrot.slane %v4605_v22, 2  ;;  %v4612_v45 = vmax.f32 %v4610_v60, %v4611_v18 }
 0x3bf   : > { %v4672_v48 = vmax.f32 %v4670_v37, %v4671_v25  ;;  %v5132_v12 = vsel %vm513_vm2, %v4665_v59, -inf  ;;  %v4619_v38 = vmax.f32 %v4617_v6, %v4618_v10  ;;  %v4625_v17 = vrot.slane %v4624_v51, 4 }
 0x3c0   : > { %v4679_v47 = vmax.f32 %v4677_v3, %v4678_v55  ;;  %v4686_v29 = vmax.f32 %v4684_v8, %v4685_v28  ;;  %v4607_v7 = vmax.f32 %v4605_v22, %v4606_v2  ;;  %v4613_v26 = vrot.slane %v4612_v45, 2 }
 0x3c1   : > { %v5135_v56 = vsel %vm513_vm2, %v4672_v48, -inf  ;;  %v4620_v14 = vrot.slane %v4619_v38, 2  ;;  %v4626_v62 = vmax.f32 %v4624_v51, %v4625_v17  ;;  %v3274_v30 = vadd.f32 %v14313_v34, %v12421_v35 }
 0x3c2   : > { %v5138_v53 = vsel %vm513_vm2, %v4679_v47, -inf  ;;  %v5141_v49 = vsel %vm513_vm2, %v4686_v29, -inf  ;;  %v4608_v20 = vrot.slane %v4607_v7, 1  ;;  %v4614_v52 = vmax.f32 %v4612_v45, %v4613_v26 }
 0x3c3   : > { %v4621_v1 = vmax.f32 %v4619_v38, %v4620_v14  ;;  %v4627_v54 = vrot.slane %v4626_v62, 2  ;;  %v3341_v15 = vmul.f32 %v12727_v46, %v3274_v30  ;;  %v3105_v57 = vadd.f32 %v14315_v16, %v14314_v42  ;;  %v12952_v14 = vpop.f32.mrb[159].mxu0 }
 0x3c4   : > { %v4609_v35 = vmax.f32 %v4607_v7, %v4608_v20  ;;  %v4615_v63 = vrot.slane %v4614_v52, 1  ;;  %v3116_v21 = vadd.f32 %v14317_v61, %v14316_v44  ;;  %v3108_v33 = vadd.f32 %v14319_v40, %v14318_v9 }
 0x3c5   : > { %v4622_v13 = vrot.slane %v4621_v1, 1  ;;  %v4628_v5 = vmax.f32 %v4626_v62, %v4627_v54  ;;  %v3380_v19 = vadd.f32 %v12710_v58, %v3341_v15  ;;  %v3266_v37 = vadd.f32 %v12687_v43, %v3105_v57 }
 0x3c6   : > { %v4616_v60 = vmax.f32 %v4614_v52, %v4615_v63  ;;  %v5131_v6 = vsel %vm513_vm2, %v4609_v35, -inf  ;;  %v3277_v3 = vadd.f32 %v12703_v32, %v3116_v21  ;;  %v3269_v8 = vadd.f32 %v12738_v4, %v3108_v33 }
 0x3c7   : > { %v4623_v22 = vmax.f32 %v4621_v1, %v4622_v13  ;;  %v4629_v18 = vrot.slane %v4628_v5, 1  ;;  %v5133_v59 = vmax.f32 %v5131_v6, %v5132_v12  ;;  %v3412_v25 = vmax.f32 %v3380_v19, 0.0 }
 0x3c8   : > { %v5134_v10 = vsel %vm513_vm2, %v4616_v60, -inf  ;;  %v3339_v51 = vmul.f32 %v12727_v46, %v3266_v37  ;;  %v3342_v55 = vmul.f32 %v12727_v46, %v3277_v3  ;;  %v3340_v28 = vmul.f32 %v12727_v46, %v3269_v8 }
 0x3c9   : > { %v4630_v43 = vmax.f32 %v4628_v5, %v4629_v18  ;;  %v5136_v2 = vmax.f32 %v5134_v10, %v5135_v56  ;;  %v5137_v45 = vsel %vm513_vm2, %v4623_v22, -inf  ;;  %v5317_v32 = vsel %vm5285_vm7, %v5133_v59, %v12908_v27 }
 0x3ca   : > { %v5139_v4 = vmax.f32 %v5137_v45, %v5138_v53  ;;  %v3828_v48 = vcombine.high %v3412_v25, %v3412_v25  ;;  %v3835_v12 = vrot.slane %v3412_v25, %v12413_v41  ;;  %v3378_v38 = vadd.f32 %v12710_v58, %v3339_v51 }
 0x3cb   : > { %v5140_v17 = vsel %vm513_vm2, %v4630_v43, -inf  ;;  %v5318_v47 = vsel %vm5287_vm8, %v5136_v2, %v5317_v32  ;;  %v3381_v29 = vadd.f32 %v12710_v58, %v3342_v55  ;;  %v3379_v46 = vadd.f32 %v12710_v58, %v3340_v28 }
 0x3cc   : > { %v5142_v7 = vmax.f32 %v5140_v17, %v5141_v49  ;;  %v5319_v26 = vsel %vm5289_vm9, %v5139_v4, %v5318_v47  ;;  %v3842_v56 = vrot.slane %v3828_v48, %v12413_v41  ;;  %v3843_v27 = vcombine.high %v3835_v12, %v3835_v12 }
 0x3cd   : > { %v4743_v62 = vsel %vm4126_vm3, %v3835_v12, -inf  ;;  %v3410_v34 = vmax.f32 %v3378_v38, 0.0  ;;  %v12955_v30 = vmax.f32 %v3381_v29, 0.0  ;;  %v12957_v0 = vmax.f32 %v3379_v46, 0.0 }
 0x3ce   : > { %v5320_v53 = vsel %vm5291_vm10, %v5142_v7, %v5319_v26  ;;  %v3844_v20 = vcombine.high %v3842_v56, %v3842_v56  ;;  %v4744_v52 = vrot.slane %v4743_v62, 4  ;;  %v4750_v58 = vsel %vm4126_vm3, %v3843_v27, -inf }
 0x3cf   : > { %5355 = vst.msk [vmem:[#allocation3 + $0x80] sm:$0xff] %vm513_vm2, %v5320_v53  ;;  %v4751_v49 = vrot.slane %v4750_v58, 4  ;;  %v4757_v1 = vsel %vm4126_vm3, %v3842_v56, -inf  ;;  %v3794_v54 = vcombine.high %v3410_v34, %v3410_v34  ;;  %v3801_v15 = vrot.slane %v3410_v34, %v12413_v41 }
 0x3d0   : > { %v4745_v42 = vmax.f32 %v4743_v62, %v4744_v52  ;;  %v4758_v16 = vrot.slane %v4757_v1, 4  ;;  %v4764_v57 = vsel %vm4126_vm3, %v3844_v20, -inf  ;;  %v3845_v35 = vcombine.high %v12955_v30, %v12955_v30 }
 0x3d1   : > { %v4752_v63 = vmax.f32 %v4750_v58, %v4751_v49  ;;  %v4765_v44 = vrot.slane %v4764_v57, 4  ;;  %v3808_v61 = vrot.slane %v3794_v54, %v12413_v41  ;;  %v3809_v21 = vcombine.high %v3801_v15, %v3801_v15  ;;  %v10619_v54 = vld [vmem:[%s14268_s4 + $0x178] sm:$0xff]  }
 0x3d2   : > { %v4746_v9 = vrot.slane %v4745_v42, 2  ;;  %v4759_v40 = vmax.f32 %v4757_v1, %v4758_v16  ;;  %v4687_v33 = vsel %vm4126_vm3, %v3801_v15, -inf  ;;  %v12971_v13 = vrot.slane %v12955_v30, %v12413_v41  ;;  %v10620_v15 = vld [vmem:[%s14268_s4 + $0x138] sm:$0xff]   ;;  %10091 = vmatprep.subr.bf16.mxu0 %v10619_v54 }
 0x3d3   : > { %v4753_v5 = vrot.slane %v4752_v63, 2  ;;  %v4766_v19 = vmax.f32 %v4764_v57, %v4765_v44  ;;  %v3810_v37 = vcombine.high %v3808_v61, %v3808_v61  ;;  %v4688_v60 = vrot.slane %v4687_v33, 4  ;;  %10092 = vmatpush3.bf16.msra.mxu0 %v10620_v15  ;;  %v14320_v15 = vld [vmem:[#allocation27_spill] sm:$0xff] }
 0x3d4   : > { %v4747_v6 = vmax.f32 %v4745_v42, %v4746_v9  ;;  %v4760_v3 = vrot.slane %v4759_v40, 2  ;;  %v4694_v8 = vsel %vm4126_vm3, %v3809_v21, -inf  ;;  %v4701_v22 = vsel %vm4126_vm3, %v3808_v61, -inf  ;;  %v5496_v42 = vld [vmem:[#allocation3 + $0x38] sm:$0xff] }
 0x3d5   : > { %v4754_v18 = vmax.f32 %v4752_v63, %v4753_v5  ;;  %v4767_v59 = vrot.slane %v4766_v19, 2  ;;  %v4689_v25 = vmax.f32 %v4687_v33, %v4688_v60  ;;  %v4695_v10 = vrot.slane %v4694_v8, 4  ;;  %5504 = vst.msk [vmem:[#allocation7 + $0x68] sm:$0xff] %vm513_vm2, %v5496_v42  ;;  %5457 = vst.msk [vmem:[#allocation7 + $0x98] sm:$0xff] %vm513_vm2, %v5496_v42  ;;  %v5433_v61 = vld [vmem:[#allocation3 + $0x37] sm:$0xff]  ;;  %v5434_v5 = vld [vmem:[#allocation3 + $0x4f] sm:$0xff] }
 0x3d6   : > { %v4748_v51 = vrot.slane %v4747_v6, 1  ;;  %v4761_v55 = vmax.f32 %v4759_v40, %v4760_v3  ;;  %v4702_v28 = vrot.slane %v4701_v22, 4  ;;  %v4708_v43 = vsel %vm4126_vm3, %v3810_v37, -inf  ;;  %5552 = vst.msk [vmem:[#allocation7 + $0x38] sm:$0xff] %vm513_vm2, %v5496_v42  ;;  %5441 = vst.msk [vmem:[#allocation7 + $0x90] sm:$0xff] %vm513_vm2, %v5433_v61  ;;  %v5498_v37 = vld [vmem:[#allocation3 + $0x68] sm:$0xff] }
 0x3d7   : > { %v4755_v2 = vrot.slane %v4754_v18, 1  ;;  %v4768_v45 = vmax.f32 %v4766_v19, %v4767_v59  ;;  %v4690_v32 = vrot.slane %v4689_v25, 2  ;;  %v4696_v4 = vmax.f32 %v4694_v8, %v4695_v10  ;;  %v10621_v19 = vld [vmem:[%s14268_s4 + $0xc0] sm:$0xff]   ;;  %5488 = vst.msk [vmem:[#allocation7 + $0x60] sm:$0xff] %vm513_vm2, %v5433_v61  ;;  %5536 = vst.msk [vmem:[#allocation7 + $0x30] sm:$0xff] %vm513_vm2, %v5433_v61 }
 0x3d8   : > { %v4749_v48 = vmax.f32 %v4747_v6, %v4748_v51  ;;  %v4762_v12 = vrot.slane %v4761_v55, 1  ;;  %v4703_v38 = vmax.f32 %v4701_v22, %v4702_v28  ;;  %v4709_v17 = vrot.slane %v4708_v43, 4  ;;  %5442 = vst.msk [vmem:[#allocation7 + $0xd8] sm:$0xff] %vm513_vm2, %v5434_v5  ;;  %5506 = vst.msk [vmem:[#allocation7 + $0xf8] sm:$0xff] %vm513_vm2, %v5498_v37  ;;  %10037 = vmatprep.subr.bf16.mxu1 %v10621_v19  ;;  %v5435_v10 = vld [vmem:[#allocation3 + $0x67] sm:$0xff]  ;;  %v5436_v51 = vld [vmem:[#allocation3 + $0x7f] sm:$0xff] }
 0x3d9   : > { %v4756_v47 = vmax.f32 %v4754_v18, %v4755_v2  ;;  %v4769_v29 = vrot.slane %v4768_v45, 1  ;;  %v4691_v46 = vmax.f32 %v4689_v25, %v4690_v32  ;;  %v4697_v7 = vrot.slane %v4696_v4, 2  ;;  %5459 = vst.msk [vmem:[#allocation7 + $0x128] sm:$0xff] %vm513_vm2, %v5498_v37  ;;  %5489 = vst.msk [vmem:[#allocation7 + $0xa8] sm:$0xff] %vm513_vm2, %v5434_v5  ;;  %v5452_v25 = vld [vmem:[#allocation3 + $0x80] sm:$0xff] }
 0x3da   : > { %v4763_v26 = vmax.f32 %v4761_v55, %v4762_v12  ;;  %v12977_v56 = vsel %vm513_vm2, %v4749_v48, -inf  ;;  %v4704_v27 = vrot.slane %v4703_v38, 2  ;;  %v4710_v62 = vmax.f32 %v4708_v43, %v4709_v17  ;;  %5537 = vst.msk [vmem:[#allocation7 + $0x78] sm:$0xff] %vm513_vm2, %v5434_v5  ;;  %5554 = vst.msk [vmem:[#allocation7 + $0xc8] sm:$0xff] %vm513_vm2, %v5498_v37  ;;  %v14321_v42 = vld [vmem:[#allocation29_spill] sm:$0xff] }
 0x3db   : > { %v4770_v34 = vmax.f32 %v4768_v45, %v4769_v29  ;;  %v12980_v30 = vsel %vm513_vm2, %v4756_v47, -inf  ;;  %v4692_v53 = vrot.slane %v4691_v46, 1  ;;  %v4698_v20 = vmax.f32 %v4696_v4, %v4697_v7  ;;  %5460 = vst.msk [vmem:[#allocation7 + $0x170] sm:$0xff] %vm513_vm2, %v5452_v25  ;;  %5443 = vst.msk [vmem:[#allocation7 + $0x120] sm:$0xff] %vm513_vm2, %v5435_v10  ;;  %v10626_v45 = vld [vmem:[%s14268_s4 + $0x200] sm:$0xff]  }
 0x3dc   : > { %v12983_v52 = vsel %vm513_vm2, %v4763_v26, -inf  ;;  %v4705_v58 = vmax.f32 %v4703_v38, %v4704_v27  ;;  %v4711_v49 = vrot.slane %v4710_v62, 2  ;;  %v3859_v1 = vrot.slane %v3845_v35, %v12413_v41  ;;  %v5450_v35 = vld [vmem:[#allocation3 + $0x50] sm:$0xff]  ;;  %5444 = vst.msk [vmem:[#allocation7 + $0x168] sm:$0xff] %vm513_vm2, %v5436_v51  ;;  %5507 = vst.msk [vmem:[#allocation7 + $0x140] sm:$0xff] %vm513_vm2, %v5452_v25  ;;  %10411 = vmatprep.subr.bf16.mxu0 %v10626_v45  ;;  %v14323_v45 = vld [vmem:[#allocation25_spill] sm:$0xff] }
 0x3dd   : > { %v12993_v16 = vsel %vm513_vm2, %v4770_v34, -inf  ;;  %v4693_v57 = vmax.f32 %v4691_v46, %v4692_v53  ;;  %v4699_v63 = vrot.slane %v4698_v20, 1  ;;  %v3860_v44 = vcombine.high %v12971_v13, %v12971_v13  ;;  %5458 = vst.msk [vmem:[#allocation7 + $0xe0] sm:$0xff] %vm513_vm2, %v5450_v35  ;;  %5505 = vst.msk [vmem:[#allocation7 + $0xb0] sm:$0xff] %vm513_vm2, %v5450_v35 }
 0x3de   : > { %v4706_v21 = vrot.slane %v4705_v58, 1  ;;  %v4712_v9 = vmax.f32 %v4710_v62, %v4711_v49  ;;  %v3861_v40 = vcombine.high %v3859_v1, %v3859_v1  ;;  %v4771_v33 = vsel %vm4126_vm3, %v12971_v13, -inf  ;;  %5553 = vst.msk [vmem:[#allocation7 + $0x80] sm:$0xff] %vm513_vm2, %v5450_v35  ;;  %5490 = vst.msk [vmem:[#allocation7 + $0xf0] sm:$0xff] %vm513_vm2, %v5435_v10 }
 0x3df   : > { %v4700_v13 = vmax.f32 %v4698_v20, %v4699_v63  ;;  %v5143_v60 = vsel %vm513_vm2, %v4693_v57, -inf  ;;  %v4772_v6 = vrot.slane %v4771_v33, 4  ;;  %v4778_v3 = vsel %vm4126_vm3, %v3860_v44, -inf  ;;  %5491 = vst.msk [vmem:[#allocation7 + $0x138] sm:$0xff] %vm513_vm2, %v5436_v51  ;;  %5555 = vst.msk [vmem:[#allocation7 + $0x110] sm:$0xff] %vm513_vm2, %v5452_v25 }
 0x3e0   : > { %v4707_v8 = vmax.f32 %v4705_v58, %v4706_v21  ;;  %v4713_v22 = vrot.slane %v4712_v9, 1  ;;  %v5145_v18 = vmax.f32 %v5143_v60, %v12977_v56  ;;  %v4779_v59 = vrot.slane %v4778_v3, 4  ;;  %5538 = vst.msk [vmem:[#allocation7 + $0xc0] sm:$0xff] %vm513_vm2, %v5435_v10  ;;  %5539 = vst.msk [vmem:[#allocation7 + $0x108] sm:$0xff] %vm513_vm2, %v5436_v51 }
 0x3e1   : > { %v5146_v55 = vsel %vm513_vm2, %v4700_v13, -inf  ;;  %v4773_v28 = vmax.f32 %v4771_v33, %v4772_v6  ;;  %v4785_v43 = vsel %vm4126_vm3, %v3859_v1, -inf  ;;  %v4792_v2 = vsel %vm4126_vm3, %v3861_v40, -inf }
 0x3e2   : > { %v4714_v32 = vmax.f32 %v4712_v9, %v4713_v22  ;;  %v5148_v4 = vmax.f32 %v5146_v55, %v12980_v30  ;;  %v5149_v48 = vsel %vm513_vm2, %v4707_v8, -inf  ;;  %v4780_v12 = vmax.f32 %v4778_v3, %v4779_v59 }
 0x3e3   : > { %v5151_v38 = vmax.f32 %v5149_v48, %v12983_v52  ;;  %v4774_v17 = vrot.slane %v4773_v28, 2  ;;  %v4786_v47 = vrot.slane %v4785_v43, 4  ;;  %v4793_v29 = vrot.slane %v4792_v2, 4 }
 0x3e4   : > { %v5152_v46 = vsel %vm513_vm2, %v4714_v32, -inf  ;;  %v5321_v7 = vsel %vm5279_vm4, %v5148_v4, %v5145_v18  ;;  %v4781_v26 = vrot.slane %v4780_v12, 2  ;;  %v3811_v56 = vcombine.high %v12957_v0, %v12957_v0 }
 0x3e5   : > { %v5154_v27 = vmax.f32 %v5152_v46, %v12993_v16  ;;  %v5322_v62 = vsel %vm5281_vm5, %v5151_v38, %v5321_v7  ;;  %v4775_v34 = vmax.f32 %v4773_v28, %v4774_v17  ;;  %v4787_v30 = vmax.f32 %v4785_v43, %v4786_v47 }
 0x3e6   : > { %v4782_v53 = vmax.f32 %v4780_v12, %v4781_v26  ;;  %v4794_v20 = vmax.f32 %v4792_v2, %v4793_v29  ;;  %v3818_v52 = vrot.slane %v12957_v0, %v12413_v41  ;;  %v3825_v58 = vrot.slane %v3811_v56, %v12413_v41  ;;  %v14322_v2 = vld [vmem:[#allocation23_spill] sm:$0xff]  ;;  %v13066_v29 = vld [vmem:[%s14266_s2] ss:$0 sm:$0xff] }
 0x3e7   : > { %v4776_v49 = vrot.slane %v4775_v34, 1  ;;  %v4788_v1 = vrot.slane %v4787_v30, 2  ;;  %v13048_v54 = vsel %vm5283_vm6, %v5154_v27, %v5322_v62  ;;  %v3129_v57 = vadd.f32 %v14321_v42, %v14320_v15  ;;  %v14324_v27 = vld [vmem:[#allocation28_spill] sm:$0xff]  ;;  %v14325_v62 = vld [vmem:[#allocation30_spill] sm:$0xff] }
 0x3e8   : > { %v4783_v16 = vrot.slane %v4782_v53, 1  ;;  %v4795_v63 = vrot.slane %v4794_v20, 2  ;;  %v3826_v44 = vcombine.high %v3818_v52, %v3818_v52  ;;  %v3827_v35 = vcombine.high %v3825_v58, %v3825_v58 }
 0x3e9   : > { %v4777_v61 = vmax.f32 %v4775_v34, %v4776_v49  ;;  %v4789_v21 = vmax.f32 %v4787_v30, %v4788_v1  ;;  %v4715_v9 = vsel %vm4126_vm3, %v3818_v52, -inf  ;;  %v4729_v0 = vsel %vm4126_vm3, %v3825_v58, -inf  ;;  %v14326_v58 = vld [vmem:[#allocation24_spill] sm:$0xff]  ;;  %v14327_v49 = vld [vmem:[#allocation26_spill] sm:$0xff] }
 0x3ea   : > { %v4784_v40 = vmax.f32 %v4782_v53, %v4783_v16  ;;  %v4796_v33 = vmax.f32 %v4794_v20, %v4795_v63  ;;  %v4716_v5 = vrot.slane %v4715_v9, 4  ;;  %v4722_v19 = vsel %vm4126_vm3, %v3826_v44, -inf  ;;  %v13075_v53 = vld [vmem:[%s14267_s3] ss:$0 sm:$0xff] }
 0x3eb   : > { %v4790_v37 = vrot.slane %v4789_v21, 1  ;;  %v5156_v13 = vsel %vm513_vm2, %v4777_v61, -inf  ;;  %v4723_v60 = vrot.slane %v4722_v19, 4  ;;  %v4730_v6 = vrot.slane %v4729_v0, 4 }
 0x3ec   : > { %v4797_v3 = vrot.slane %v4796_v33, 1  ;;  %v5159_v8 = vsel %vm513_vm2, %v4784_v40, -inf  ;;  %v4717_v22 = vmax.f32 %v4715_v9, %v4716_v5  ;;  %v4736_v18 = vsel %vm4126_vm3, %v3827_v35, -inf }
 0x3ed   : > { %v4791_v59 = vmax.f32 %v4789_v21, %v4790_v37  ;;  %v4724_v25 = vmax.f32 %v4722_v19, %v4723_v60  ;;  %v4731_v10 = vmax.f32 %v4729_v0, %v4730_v6  ;;  %v4737_v51 = vrot.slane %v4736_v18, 4 }
 0x3ee   : > { %v4798_v55 = vmax.f32 %v4796_v33, %v4797_v3  ;;  %v4718_v28 = vrot.slane %v4717_v22, 2  ;;  %v3290_v43 = vadd.f32 %v12765_v23, %v3129_v57  ;;  %v3121_v32 = vadd.f32 %v14323_v45, %v14322_v2 }
 0x3ef   : > { %v5162_v4 = vsel %vm513_vm2, %v4791_v59, -inf  ;;  %v4725_v48 = vrot.slane %v4724_v25, 2  ;;  %v4732_v12 = vrot.slane %v4731_v10, 2  ;;  %v4738_v38 = vmax.f32 %v4736_v18, %v4737_v51 }
 0x3f0   : > { %v5165_v17 = vsel %vm513_vm2, %v4798_v55, -inf  ;;  %v4719_v47 = vmax.f32 %v4717_v22, %v4718_v28  ;;  %v3345_v46 = vmul.f32 %v13066_v29, %v3290_v43  ;;  %v3282_v23 = vadd.f32 %v12788_v36, %v3121_v32 }
 0x3f1   : > { %v4726_v7 = vmax.f32 %v4724_v25, %v4725_v48  ;;  %v4733_v26 = vmax.f32 %v4731_v10, %v4732_v12  ;;  %v4739_v56 = vrot.slane %v4738_v38, 2  ;;  %v3132_v34 = vadd.f32 %v14325_v62, %v14324_v27 }
 0x3f2   : > { %v4720_v30 = vrot.slane %v4719_v47, 1  ;;  %v3384_v20 = vadd.f32 %v13075_v53, %v3345_v46  ;;  %v3343_v52 = vmul.f32 %v13066_v29, %v3282_v23  ;;  %v3124_v1 = vadd.f32 %v14327_v49, %v14326_v58 }
 0x3f3   : > { %v4727_v36 = vrot.slane %v4726_v7, 1  ;;  %v4734_v15 = vrot.slane %v4733_v26, 1  ;;  %v4740_v42 = vmax.f32 %v4738_v38, %v4739_v56  ;;  %v3293_v57 = vadd.f32 %v12807_v39, %v3132_v34 }
 0x3f4   : > { %v4721_v16 = vmax.f32 %v4719_v47, %v4720_v30  ;;  %v3416_v63 = vmax.f32 %v3384_v20, 0.0  ;;  %v3382_v44 = vadd.f32 %v13075_v53, %v3343_v52  ;;  %v13084_v35 = vadd.f32 %v12846_v24, %v3124_v1 }
 0x3f5   : > { %v4728_v61 = vmax.f32 %v4726_v7, %v4727_v36  ;;  %v4735_v21 = vmax.f32 %v4733_v26, %v4734_v15  ;;  %v4741_v9 = vrot.slane %v4740_v42, 1  ;;  %v13087_v0 = vmul.f32 %v13066_v29, %v3293_v57 }
 0x3f6   : > { %v5155_v40 = vsel %vm513_vm2, %v4721_v16, -inf  ;;  %v3896_v33 = vcombine.high %v3416_v63, %v3416_v63  ;;  %v3903_v5 = vrot.slane %v3416_v63, %v12413_v41  ;;  %v3414_v19 = vmax.f32 %v3382_v44, 0.0 }
 0x3f7   : > { %v4742_v39 = vmax.f32 %v4740_v42, %v4741_v9  ;;  %v5157_v37 = vmax.f32 %v5155_v40, %v5156_v13  ;;  %v5158_v60 = vsel %vm513_vm2, %v4728_v61, -inf  ;;  %v5161_v6 = vsel %vm513_vm2, %v4735_v21, -inf }
 0x3f8   : > { %v5160_v24 = vmax.f32 %v5158_v60, %v5159_v8  ;;  %v5163_v3 = vmax.f32 %v5161_v6, %v5162_v4  ;;  %v3910_v22 = vrot.slane %v3896_v33, %v12413_v41  ;;  %v3911_v18 = vcombine.high %v3903_v5, %v3903_v5 }
 0x3f9   : > { %v5164_v59 = vsel %vm513_vm2, %v4742_v39, -inf  ;;  %v5324_v25 = vsel %vm5285_vm7, %v5157_v37, %v13048_v54  ;;  %v4855_v10 = vsel %vm4126_vm3, %v3903_v5, -inf  ;;  %v3862_v51 = vcombine.high %v3414_v19, %v3414_v19 }
 0x3fa   : > { %v5166_v55 = vmax.f32 %v5164_v59, %v5165_v17  ;;  %v5325_v13 = vsel %vm5287_vm8, %v5160_v24, %v5324_v25  ;;  %v3912_v28 = vcombine.high %v3910_v22, %v3910_v22  ;;  %v4856_v43 = vrot.slane %v4855_v10, 4 }
 0x3fb   : > { %v5326_v2 = vsel %vm5289_vm9, %v5163_v3, %v5325_v13  ;;  %v4862_v8 = vsel %vm4126_vm3, %v3911_v18, -inf  ;;  %v4869_v45 = vsel %vm4126_vm3, %v3910_v22, -inf  ;;  %v3869_v32 = vrot.slane %v3414_v19, %v12413_v41 }
 0x3fc   : > { %v5327_v4 = vsel %vm5291_vm10, %v5166_v55, %v5326_v2  ;;  %v4857_v48 = vmax.f32 %v4855_v10, %v4856_v43  ;;  %v4863_v54 = vrot.slane %v4862_v8, 4  ;;  %v4870_v12 = vrot.slane %v4869_v45, 4  ;;  %v5577_v43 = vld [vmem:[#allocation7 + $0x8] sm:$0xff]  ;;  %v5586_v2 = vld [vmem:[#allocation7 + $0x50] sm:$0xff] }
 0x3fd   : > { %5356 = vst.msk [vmem:[#allocation3 + $0x98] sm:$0xff] %vm513_vm2, %v5327_v4  ;;  %v4876_v38 = vsel %vm4126_vm3, %v3912_v28, -inf  ;;  %v3876_v17 = vrot.slane %v3862_v51, %v12413_v41  ;;  %v3877_v47 = vcombine.high %v3869_v32, %v3869_v32  ;;  %v4799_v46 = vsel %vm4126_vm3, %v3869_v32, -inf }
 0x3fe   : > { %v4858_v23 = vrot.slane %v4857_v48, 2  ;;  %v4864_v7 = vmax.f32 %v4862_v8, %v4863_v54  ;;  %v4871_v26 = vmax.f32 %v4869_v45, %v4870_v12  ;;  %v4877_v56 = vrot.slane %v4876_v38, 4 }
 0x3ff   : > { %v3878_v27 = vcombine.high %v3876_v17, %v3876_v17  ;;  %v4800_v62 = vrot.slane %v4799_v46, 4  ;;  %v4806_v34 = vsel %vm4126_vm3, %v3877_v47, -inf  ;;  %v4813_v30 = vsel %vm4126_vm3, %v3876_v17, -inf }
 0x400   : > { %v4859_v20 = vmax.f32 %v4857_v48, %v4858_v23  ;;  %v4865_v52 = vrot.slane %v4864_v7, 2  ;;  %v4872_v58 = vrot.slane %v4871_v26, 2  ;;  %v4878_v49 = vmax.f32 %v4876_v38, %v4877_v56 }
 0x401   : > { %v4801_v1 = vmax.f32 %v4799_v46, %v4800_v62  ;;  %v4807_v36 = vrot.slane %v4806_v34, 4  ;;  %v4814_v15 = vrot.slane %v4813_v30, 4  ;;  %v4820_v42 = vsel %vm4126_vm3, %v3878_v27, -inf }
 0x402   : > { %v4860_v57 = vrot.slane %v4859_v20, 1  ;;  %v4866_v16 = vmax.f32 %v4864_v7, %v4865_v52  ;;  %v4873_v63 = vmax.f32 %v4871_v26, %v4872_v58  ;;  %v4879_v44 = vrot.slane %v4878_v49, 2 }
 0x403   : > { %v4802_v61 = vrot.slane %v4801_v1, 2  ;;  %v4808_v21 = vmax.f32 %v4806_v34, %v4807_v36  ;;  %v4815_v9 = vmax.f32 %v4813_v30, %v4814_v15  ;;  %v4821_v40 = vrot.slane %v4820_v42, 4 }
 0x404   : > { %v4861_v33 = vmax.f32 %v4859_v20, %v4860_v57  ;;  %v4867_v5 = vrot.slane %v4866_v16, 1  ;;  %v4874_v19 = vrot.slane %v4873_v63, 1  ;;  %v4880_v39 = vmax.f32 %v4878_v49, %v4879_v44  ;;  %v5500_v37 = vld [vmem:[#allocation3 + $0x98] sm:$0xff] }
 0x405   : > { %v5437_v60 = vld [vmem:[#allocation3 + $0x97] sm:$0xff]  ;;  %v4803_v6 = vmax.f32 %v4801_v1, %v4802_v61  ;;  %v4809_v24 = vrot.slane %v4808_v21, 2  ;;  %v4816_v3 = vrot.slane %v4815_v9, 2  ;;  %v4822_v22 = vmax.f32 %v4820_v42, %v4821_v40  ;;  %5508 = vst.msk [vmem:[#allocation7 + $0x188] sm:$0xff] %vm513_vm2, %v5500_v37  ;;  %5461 = vst.msk [vmem:[#allocation7 + $0x1b8] sm:$0xff] %vm513_vm2, %v5500_v37 }
 0x406   : > { %5445 = vst.msk [vmem:[#allocation7 + $0x1b0] sm:$0xff] %vm513_vm2, %v5437_v60  ;;  %5492 = vst.msk [vmem:[#allocation7 + $0x180] sm:$0xff] %vm513_vm2, %v5437_v60  ;;  %v4868_v18 = vmax.f32 %v4866_v16, %v4867_v5  ;;  %v4875_v59 = vmax.f32 %v4873_v63, %v4874_v19  ;;  %v4881_v25 = vrot.slane %v4880_v39, 1  ;;  %v5168_v10 = vsel %vm513_vm2, %v4861_v33, -inf  ;;  %v14328_v49 = vld [vmem:[#allocation35_spill] sm:$0xff]  ;;  %v5551_v16 = vld [vmem:[#allocation3 + $0xe0] sm:$0xff] }
 0x407   : > { %5556 = vst.msk [vmem:[#allocation7 + $0x158] sm:$0xff] %vm513_vm2, %v5500_v37  ;;  %5540 = vst.msk [vmem:[#allocation7 + $0x150] sm:$0xff] %vm513_vm2, %v5437_v60  ;;  %v4804_v51 = vrot.slane %v4803_v6, 1  ;;  %v4810_v55 = vmax.f32 %v4808_v21, %v4809_v24  ;;  %v4817_v13 = vmax.f32 %v4815_v9, %v4816_v3  ;;  %v4823_v28 = vrot.slane %v4822_v22, 2  ;;  %v5535_v63 = vld [vmem:[#allocation3 + $0xdf] sm:$0xff] }
 0x408   : > { %v4882_v8 = vmax.f32 %v4880_v39, %v4881_v25  ;;  %v5171_v45 = vsel %vm513_vm2, %v4868_v18, -inf  ;;  %v5174_v32 = vsel %vm513_vm2, %v4875_v59, -inf  ;;  %v3385_v4 = vadd.f32 %v13075_v53, %v13087_v0  ;;  %5559 = vst.msk [vmem:[#allocation7 + $0x230] sm:$0xff] %vm513_vm2, %v5551_v16  ;;  %5543 = vst.msk [vmem:[#allocation7 + $0x228] sm:$0xff] %vm513_vm2, %v5535_v63 }
 0x409   : > { %v4805_v48 = vmax.f32 %v4803_v6, %v4804_v51  ;;  %v4811_v54 = vrot.slane %v4810_v55, 1  ;;  %v4818_v12 = vrot.slane %v4817_v13, 1  ;;  %v4824_v38 = vmax.f32 %v4822_v22, %v4823_v28 }
 0x40a   : > { %v5177_v17 = vsel %vm513_vm2, %v4882_v8, -inf  ;;  %v3417_v47 = vmax.f32 %v3385_v4, 0.0  ;;  %v3344_v46 = vmul.f32 %v13066_v29, %v13084_v35  ;;  %v5649_v23 = vpack.c.bf16 %v5586_v2, %v5577_v43  ;;  %v14329_v35 = vld [vmem:[#allocation37_spill] sm:$0xff] }
 0x40b   : > { %v4812_v7 = vmax.f32 %v4810_v55, %v4811_v54  ;;  %v4819_v26 = vmax.f32 %v4817_v13, %v4818_v12  ;;  %v4825_v56 = vrot.slane %v4824_v38, 1  ;;  %v5167_v27 = vsel %vm513_vm2, %v4805_v48, -inf }
 0x40c   : > { %v5169_v62 = vmax.f32 %v5167_v27, %v5168_v10  ;;  %v3913_v34 = vcombine.high %v3417_v47, %v3417_v47  ;;  %v3920_v0 = vrot.slane %v3417_v47, %v12413_v41  ;;  %v3383_v30 = vadd.f32 %v13075_v53, %v3344_v46  ;;  %6292 = vmatprep.mubr.bf16.mxu1 %v5649_v23 }
 0x40d   : > { %v4826_v20 = vmax.f32 %v4824_v38, %v4825_v56  ;;  %v5170_v52 = vsel %vm513_vm2, %v4812_v7, -inf  ;;  %v5173_v58 = vsel %vm513_vm2, %v4819_v26, -inf  ;;  %v3145_v1 = vadd.f32 %v14329_v35, %v14328_v49 }
 0x40e   : > { %v5172_v36 = vmax.f32 %v5170_v52, %v5171_v45  ;;  %v5175_v15 = vmax.f32 %v5173_v58, %v5174_v32  ;;  %v3927_v42 = vrot.slane %v3913_v34, %v12413_v41  ;;  %v3928_v57 = vcombine.high %v3920_v0, %v3920_v0 }
 0x40f   : > { %v5176_v44 = vsel %vm513_vm2, %v4826_v20, -inf  ;;  %v4883_v61 = vsel %vm4126_vm3, %v3920_v0, -inf  ;;  %v3415_v21 = vmax.f32 %v3383_v30, 0.0  ;;  %v3306_v9 = vadd.f32 %v12873_v50, %v3145_v1 }
 0x410   : > { %v5178_v40 = vmax.f32 %v5176_v44, %v5177_v17  ;;  %v5328_v33 = vsel %vm5279_vm4, %v5172_v36, %v5169_v62  ;;  %v3929_v5 = vcombine.high %v3927_v42, %v3927_v42  ;;  %v4884_v19 = vrot.slane %v4883_v61, 4 }
 0x411   : > { %v5329_v39 = vsel %vm5281_vm5, %v5175_v15, %v5328_v33  ;;  %v4890_v37 = vsel %vm4126_vm3, %v3928_v57, -inf  ;;  %v4897_v60 = vsel %vm4126_vm3, %v3927_v42, -inf  ;;  %v3879_v6 = vcombine.high %v3415_v21, %v3415_v21 }
 0x412   : > { %v4885_v24 = vmax.f32 %v4883_v61, %v4884_v19  ;;  %v4891_v3 = vrot.slane %v4890_v37, 4  ;;  %v4898_v22 = vrot.slane %v4897_v60, 4  ;;  %v4904_v50 = vsel %vm4126_vm3, %v3929_v5, -inf }
 0x413   : > { %v4905_v18 = vrot.slane %v4904_v50, 4  ;;  %v3886_v59 = vrot.slane %v3415_v21, %v12413_v41  ;;  %v3893_v25 = vrot.slane %v3879_v6, %v12413_v41  ;;  %v13146_v10 = vsel %vm5283_vm6, %v5178_v40, %v5329_v39  ;;  %v5576_v21 = vld [vmem:[#allocation7] sm:$0xff] }
 0x414   : > { %v4886_v51 = vrot.slane %v4885_v24, 2  ;;  %v4892_v55 = vmax.f32 %v4890_v37, %v4891_v3  ;;  %v4899_v13 = vmax.f32 %v4897_v60, %v4898_v22  ;;  %v3349_v28 = vmul.f32 %v13066_v29, %v3306_v9  ;;  %v5585_v9 = vld [vmem:[#allocation7 + $0x48] sm:$0xff] }
 0x415   : > { %v4906_v43 = vmax.f32 %v4904_v50, %v4905_v18  ;;  %v3894_v2 = vcombine.high %v3886_v59, %v3886_v59  ;;  %v3895_v8 = vcombine.high %v3893_v25, %v3893_v25  ;;  %v4827_v45 = vsel %vm4126_vm3, %v3886_v59, -inf  ;;  %v14330_v18 = vld [vmem:[#allocation31_spill] sm:$0xff]  ;;  %v14331_v59 = vld [vmem:[#allocation33_spill] sm:$0xff] }
 0x416   : > { %v4887_v32 = vmax.f32 %v4885_v24, %v4886_v51  ;;  %v4893_v4 = vrot.slane %v4892_v55, 2  ;;  %v4900_v48 = vrot.slane %v4899_v13, 2  ;;  %v4828_v54 = vrot.slane %v4827_v45, 4  ;;  %v10622_v24 = vld [vmem:[%s14268_s4 + $0x80] sm:$0xff]   ;;  %v10623_v51 = vld [vmem:[%s14268_s4 + $0xc8] sm:$0xff]  }
 0x417   : > { %v4907_v12 = vrot.slane %v4906_v43, 2  ;;  %v4834_v38 = vsel %vm4126_vm3, %v3894_v2, -inf  ;;  %v4841_v17 = vsel %vm4126_vm3, %v3893_v25, -inf  ;;  %v4848_v47 = vsel %vm4126_vm3, %v3895_v8, -inf  ;;  %v14333_v2 = vld [vmem:[#allocation38_spill] sm:$0xff] }
 0x418   : > { %v4888_v46 = vrot.slane %v4887_v32, 1  ;;  %v4894_v23 = vmax.f32 %v4892_v55, %v4893_v4  ;;  %v4901_v7 = vmax.f32 %v4899_v13, %v4900_v48  ;;  %v4829_v26 = vmax.f32 %v4827_v45, %v4828_v54 }
 0x419   : > { %v4908_v56 = vmax.f32 %v4906_v43, %v4907_v12  ;;  %v4835_v27 = vrot.slane %v4834_v38, 4  ;;  %v4842_v62 = vrot.slane %v4841_v17, 4  ;;  %v4849_v34 = vrot.slane %v4848_v47, 4  ;;  %v14332_v43 = vld [vmem:[#allocation36_spill] sm:$0xff] }
 0x41a   : > { %v4889_v0 = vmax.f32 %v4887_v32, %v4888_v46  ;;  %v4895_v30 = vrot.slane %v4894_v23, 1  ;;  %v4902_v20 = vrot.slane %v4901_v7, 1  ;;  %v4830_v52 = vrot.slane %v4829_v26, 2 }
 0x41b   : > { %v4909_v58 = vrot.slane %v4908_v56, 1  ;;  %v4836_v49 = vmax.f32 %v4834_v38, %v4835_v27  ;;  %v4843_v35 = vmax.f32 %v4841_v17, %v4842_v62  ;;  %v4850_v1 = vmax.f32 %v4848_v47, %v4849_v34  ;;  %v10624_v47 = vld [vmem:[%s14268_s4 + $0x88] sm:$0xff]  }
 0x41c   : > { %v4896_v36 = vmax.f32 %v4894_v23, %v4895_v30  ;;  %v4903_v15 = vmax.f32 %v4901_v7, %v4902_v20  ;;  %v5180_v42 = vsel %vm513_vm2, %v4889_v0, -inf  ;;  %v4831_v57 = vmax.f32 %v4829_v26, %v4830_v52 }
 0x41d   : > { %v4910_v16 = vmax.f32 %v4908_v56, %v4909_v58  ;;  %v4837_v63 = vrot.slane %v4836_v49, 2  ;;  %v4844_v44 = vrot.slane %v4843_v35, 2  ;;  %v4851_v61 = vrot.slane %v4850_v1, 2 }
 0x41e   : > { %v5183_v40 = vsel %vm513_vm2, %v4896_v36, -inf  ;;  %v5186_v33 = vsel %vm513_vm2, %v4903_v15, -inf  ;;  %v4832_v5 = vrot.slane %v4831_v57, 1  ;;  %v3388_v19 = vadd.f32 %v13075_v53, %v3349_v28  ;;  %v10627_v36 = vld [vmem:[%s14268_s4 + $0x90] sm:$0xff]  }
 0x41f   : > { %v5189_v39 = vsel %vm513_vm2, %v4910_v16, -inf  ;;  %v4838_v37 = vmax.f32 %v4836_v49, %v4837_v63  ;;  %v4845_v60 = vmax.f32 %v4843_v35, %v4844_v44  ;;  %v4852_v6 = vmax.f32 %v4850_v1, %v4851_v61  ;;  %v10628_v16 = vld [vmem:[%s14268_s4 + $0xd8] sm:$0xff]  }
 0x420   : > { %v4833_v3 = vmax.f32 %v4831_v57, %v4832_v5  ;;  %v3420_v22 = vmax.f32 %v3388_v19, 0.0  ;;  %v5648_v50 = vpack.c.bf16 %v5585_v9, %v5576_v21  ;;  %v3137_v25 = vadd.f32 %v14331_v59, %v14330_v18  ;;  %v14335_v18 = vld [vmem:[#allocation34_spill] sm:$0xff] }
 0x421   : > { %v4839_v55 = vrot.slane %v4838_v37, 1  ;;  %v4846_v13 = vrot.slane %v4845_v60, 1  ;;  %v4853_v28 = vrot.slane %v4852_v6, 1  ;;  %v3148_v8 = vadd.f32 %v14333_v2, %v14332_v43 }
 0x422   : > { %v5179_v45 = vsel %vm513_vm2, %v4833_v3, -inf  ;;  %v3964_v32 = vcombine.high %v3420_v22, %v3420_v22  ;;  %v3971_v4 = vrot.slane %v3420_v22, %v12413_v41  ;;  %6293 = vmatmul.mubr.bf16.vlgmr.msra.gmra.mrb[128].mxu1 %v5648_v50  ;;  %v3298_v48 = vadd.f32 %v12901_v11, %v3137_v25  ;;  %v10625_v11 = vld [vmem:[%s14268_s4 + $0xd0] sm:$0xff]   ;;  %v14334_v50 = vld [vmem:[#allocation32_spill] sm:$0xff] }
 0x423   : > { %v4840_v54 = vmax.f32 %v4838_v37, %v4839_v55  ;;  %v4847_v12 = vmax.f32 %v4845_v60, %v4846_v13  ;;  %v4854_v38 = vmax.f32 %v4852_v6, %v4853_v28  ;;  %v5181_v17 = vmax.f32 %v5179_v45, %v5180_v42  ;;  %10038 = vmatpush3.bf16.msra.mxu1 %v10622_v24  ;;  %v10630_v6 = vld [vmem:[%s14268_s4 + $0x98] sm:$0xff]  }
 0x424   : > { %v3978_v46 = vrot.slane %v3964_v32, %v12413_v41  ;;  %v3979_v23 = vcombine.high %v3971_v4, %v3971_v4  ;;  %v4967_v7 = vsel %vm4126_vm3, %v3971_v4, -inf  ;;  %v3347_v26 = vmul.f32 %v13066_v29, %v3298_v48  ;;  %10039 = vmatprep.subr.bf16.mxu1 %v10623_v51 }
 0x425   : > { %v5182_v56 = vsel %vm513_vm2, %v4840_v54, -inf  ;;  %v5185_v27 = vsel %vm513_vm2, %v4847_v12, -inf  ;;  %v5188_v62 = vsel %vm513_vm2, %v4854_v38, -inf  ;;  %v5331_v34 = vsel %vm5285_vm7, %v5181_v17, %v13146_v10  ;;  %v10633_v54 = vld [vmem:[%s14268_s4 + $0xa0] sm:$0xff]  }
 0x426   : > { %v5184_v0 = vmax.f32 %v5182_v56, %v5183_v40  ;;  %v5187_v30 = vmax.f32 %v5185_v27, %v5186_v33  ;;  %v5190_v20 = vmax.f32 %v5188_v62, %v5189_v39  ;;  %v3980_v52 = vcombine.high %v3978_v46, %v3978_v46 }
 0x427   : > { %v4968_v58 = vrot.slane %v4967_v7, 4  ;;  %v4974_v49 = vsel %vm4126_vm3, %v3979_v23, -inf  ;;  %v4981_v35 = vsel %vm4126_vm3, %v3978_v46, -inf  ;;  %v3386_v1 = vadd.f32 %v13075_v53, %v3347_v26  ;;  %10040 = vmatpush3.bf16.msra.mxu1 %v10624_v47  ;;  %v10634_v46 = vld [vmem:[%s14268_s4 + $0xe8] sm:$0xff]  }
 0x428   : > { %v5332_v15 = vsel %vm5287_vm8, %v5184_v0, %v5331_v34  ;;  %v4975_v42 = vrot.slane %v4974_v49, 4  ;;  %v4982_v10 = vrot.slane %v4981_v35, 4  ;;  %v4988_v57 = vsel %vm4126_vm3, %v3980_v52, -inf  ;;  %10041 = vmatprep.subr.bf16.mxu1 %v10625_v11 }
 0x429   : > { %v5333_v63 = vsel %vm5289_vm9, %v5187_v30, %v5332_v15  ;;  %v4969_v44 = vmax.f32 %v4967_v7, %v4968_v58  ;;  %v4989_v61 = vrot.slane %v4988_v57, 4  ;;  %v3418_v21 = vmax.f32 %v3386_v1, 0.0 }
 0x42a   : > { %v5334_v9 = vsel %vm5291_vm10, %v5190_v20, %v5333_v63  ;;  %v4976_v40 = vmax.f32 %v4974_v49, %v4975_v42  ;;  %v4983_v33 = vmax.f32 %v4981_v35, %v4982_v10  ;;  %v3309_v5 = vadd.f32 %v12921_v31, %v3148_v8  ;;  %v10631_v31 = vld [vmem:[%s14268_s4 + $0xe0] sm:$0xff]   ;;  %v10636_v49 = vld [vmem:[%s14268_s4 + $0xa8] sm:$0xff]   ;;  %v10637_v42 = vld [vmem:[%s14268_s4 + $0xf0] sm:$0xff]  }
 0x42b   : > { %5357 = vst.msk [vmem:[#allocation3 + $0xb0] sm:$0xff] %vm513_vm2, %v5334_v9  ;;  %v4970_v19 = vrot.slane %v4969_v44, 2  ;;  %v4990_v39 = vmax.f32 %v4988_v57, %v4989_v61  ;;  %v3930_v37 = vcombine.high %v3418_v21, %v3418_v21  ;;  %v3937_v60 = vrot.slane %v3418_v21, %v12413_v41  ;;  %10042 = vmatpush3.bf16.msra.mxu1 %v10627_v36 }
 0x42c   : > { %v4977_v24 = vrot.slane %v4976_v40, 2  ;;  %v4984_v3 = vrot.slane %v4983_v33, 2  ;;  %v3350_v22 = vmul.f32 %v13066_v29, %v3309_v5  ;;  %v3140_v59 = vadd.f32 %v14335_v18, %v14334_v50  ;;  %10043 = vmatprep.subr.bf16.mxu1 %v10628_v16 }
 0x42d   : > { %v4971_v25 = vmax.f32 %v4969_v44, %v4970_v19  ;;  %v4991_v51 = vrot.slane %v4990_v39, 2  ;;  %v3944_v55 = vrot.slane %v3930_v37, %v12413_v41  ;;  %v3945_v13 = vcombine.high %v3937_v60, %v3937_v60  ;;  %v13245_v19 = vld [vmem:[#allocation7 + $0x10] sm:$0xff] }
 0x42e   : > { %v4978_v28 = vmax.f32 %v4976_v40, %v4977_v24  ;;  %v4985_v43 = vmax.f32 %v4983_v33, %v4984_v3  ;;  %v4911_v2 = vsel %vm4126_vm3, %v3937_v60, -inf  ;;  %v3389_v8 = vadd.f32 %v13075_v53, %v3350_v22  ;;  %520 = vst.msk [vmem:[#allocation3 + $0x28] sm:$0x1] %vm516_vm11, %v13245_v19  ;;  %523 = vst.msk [vmem:[#allocation3 + $0x40] sm:$0x1] %vm516_vm11, %v13245_v19  ;;  %v10640_v24 = vld [vmem:[%s14268_s4 + $0xf8] sm:$0xff]  }
 0x42f   : > { %v4972_v45 = vrot.slane %v4971_v25, 1  ;;  %v4992_v32 = vmax.f32 %v4990_v39, %v4991_v51  ;;  %v3946_v4 = vcombine.high %v3944_v55, %v3944_v55  ;;  %v4912_v48 = vrot.slane %v4911_v2, 4  ;;  %10044 = vmatpush3.bf16.msra.mxu1 %v10630_v6  ;;  %517 = vst.msk [vmem:[#allocation3 + $0x10] sm:$0x1] %vm516_vm11, %v13245_v19  ;;  %526 = vst.msk [vmem:[#allocation3 + $0x58] sm:$0x1] %vm516_vm11, %v13245_v19 }
 0x430   : > { %v4979_v12 = vrot.slane %v4978_v28, 1  ;;  %v4986_v38 = vrot.slane %v4985_v43, 1  ;;  %v4918_v17 = vsel %vm4126_vm3, %v3945_v13, -inf  ;;  %v4925_v47 = vsel %vm4126_vm3, %v3944_v55, -inf  ;;  %10045 = vmatprep.subr.bf16.mxu1 %v10631_v31  ;;  %529 = vst.msk [vmem:[#allocation3 + $0x70] sm:$0x1] %vm516_vm11, %v13245_v19 }
 0x431   : > { %v4973_v23 = vmax.f32 %v4971_v25, %v4972_v45  ;;  %v4993_v7 = vrot.slane %v4992_v32, 1  ;;  %v4913_v26 = vmax.f32 %v4911_v2, %v4912_v48  ;;  %v4919_v11 = vrot.slane %v4918_v17, 4  ;;  %532 = vst.msk [vmem:[#allocation3 + $0x88] sm:$0x1] %vm516_vm11, %v13245_v19  ;;  %535 = vst.msk [vmem:[#allocation3 + $0xa0] sm:$0x1] %vm516_vm11, %v13245_v19 }
 0x432   : > { %v4980_v56 = vmax.f32 %v4978_v28, %v4979_v12  ;;  %v4987_v27 = vmax.f32 %v4985_v43, %v4986_v38  ;;  %v4926_v62 = vrot.slane %v4925_v47, 4  ;;  %v4932_v34 = vsel %vm4126_vm3, %v3946_v4, -inf  ;;  %v5454_v0 = vld [vmem:[#allocation3 + $0xb0] sm:$0xff]  ;;  %538 = vst.msk [vmem:[#allocation3 + $0xb8] sm:$0x1] %vm516_vm11, %v13245_v19  ;;  %v10642_v43 = vld [vmem:[%s14268_s4 + $0xb8] sm:$0xff]  }
 0x433   : > { %v5438_v30 = vld [vmem:[#allocation3 + $0xaf] sm:$0xff]  ;;  %v4994_v20 = vmax.f32 %v4992_v32, %v4993_v7  ;;  %v4914_v52 = vrot.slane %v4913_v26, 2  ;;  %v4920_v58 = vmax.f32 %v4918_v17, %v4919_v11  ;;  %10046 = vmatpush3.bf16.msra.mxu1 %v10633_v54  ;;  %5462 = vst.msk [vmem:[#allocation7 + $0x200] sm:$0xff] %vm513_vm2, %v5454_v0  ;;  %5509 = vst.msk [vmem:[#allocation7 + $0x1d0] sm:$0xff] %vm513_vm2, %v5454_v0  ;;  %v13232_v35 = vsel %vm513_vm2, %v4973_v23, -inf }
 0x434   : > { %5446 = vst.msk [vmem:[#allocation7 + $0x1f8] sm:$0xff] %vm513_vm2, %v5438_v30  ;;  %5493 = vst.msk [vmem:[#allocation7 + $0x1c8] sm:$0xff] %vm513_vm2, %v5438_v30  ;;  %v13235_v1 = vsel %vm513_vm2, %v4980_v56, -inf  ;;  %v4927_v36 = vmax.f32 %v4925_v47, %v4926_v62  ;;  %v4933_v15 = vrot.slane %v4932_v34, 4  ;;  %10047 = vmatprep.subr.bf16.mxu1 %v10634_v46  ;;  %v13241_v10 = vsel %vm513_vm2, %v4987_v27, -inf  ;;  %v5604_v38 = vld [vmem:[#allocation7 + $0xe0] sm:$0xff] }
 0x435   : > { %5557 = vst.msk [vmem:[#allocation7 + $0x1a0] sm:$0xff] %vm513_vm2, %v5454_v0  ;;  %5541 = vst.msk [vmem:[#allocation7 + $0x198] sm:$0xff] %vm513_vm2, %v5438_v30  ;;  %v4915_v57 = vmax.f32 %v4913_v26, %v4914_v52  ;;  %v4921_v16 = vrot.slane %v4920_v58, 2  ;;  %v3421_v63 = vmax.f32 %v3389_v8, 0.0  ;;  %v3301_v21 = vadd.f32 %v12952_v14, %v3140_v59  ;;  %v10639_v14 = vld [vmem:[%s14268_s4 + $0xb0] sm:$0xff]   ;;  %v5511_v7 = vld [vmem:[#allocation3 + $0x21] sm:$0xff] }
 0x436   : > { %v4928_v44 = vrot.slane %v4927_v36, 2  ;;  %v4934_v61 = vmax.f32 %v4932_v34, %v4933_v15  ;;  %541 = vst.msk [vmem:[#allocation3 + $0xd0] sm:$0x1] %vm516_vm11, %v13245_v19  ;;  %544 = vst.msk [vmem:[#allocation3 + $0xe8] sm:$0x1] %vm516_vm11, %v13245_v19  ;;  %v13261_v39 = vsel %vm513_vm2, %v4994_v20, -inf }
 0x437   : > { %v4916_v9 = vrot.slane %v4915_v57, 1  ;;  %v4922_v40 = vmax.f32 %v4920_v58, %v4921_v16  ;;  %v3981_v33 = vcombine.high %v3421_v63, %v3421_v63  ;;  %v3988_v5 = vrot.slane %v3421_v63, %v12413_v41  ;;  %10048 = vmatpush3.bf16.msra.mxu1 %v10636_v49  ;;  %v5512_v26 = vld [vmem:[#allocation3 + $0x39] sm:$0xff]  ;;  %v5603_v11 = vld [vmem:[#allocation7 + $0xd8] sm:$0xff]  ;;  %v5513_v56 = vld [vmem:[#allocation3 + $0x51] sm:$0xff]  ;;  %5519 = vst.msk [vmem:[#allocation7 + $0x28] sm:$0xff] %vm513_vm2, %v5511_v7 }
 0x438   : > { %v4929_v37 = vmax.f32 %v4927_v36, %v4928_v44  ;;  %v4935_v60 = vrot.slane %v4934_v61, 2  ;;  %v3348_v6 = vmul.f32 %v13066_v29, %v3301_v21  ;;  %10049 = vmatprep.subr.bf16.mxu1 %v10637_v42  ;;  %5520 = vst.msk [vmem:[#allocation7 + $0x70] sm:$0xff] %vm513_vm2, %v5512_v26  ;;  %v5514_v0 = vld [vmem:[#allocation3 + $0x69] sm:$0xff]  ;;  %5521 = vst.msk [vmem:[#allocation7 + $0xb8] sm:$0xff] %vm513_vm2, %v5513_v56  ;;  %v5515_v30 = vld [vmem:[#allocation3 + $0x81] sm:$0xff] }
 0x439   : > { %v4917_v3 = vmax.f32 %v4915_v57, %v4916_v9  ;;  %v4923_v22 = vrot.slane %v4922_v40, 1  ;;  %v3995_v50 = vrot.slane %v3981_v33, %v12413_v41  ;;  %v3996_v18 = vcombine.high %v3988_v5, %v3988_v5  ;;  %v5516_v20 = vld [vmem:[#allocation3 + $0x99] sm:$0xff]  ;;  %5472 = vst.msk [vmem:[#allocation7 + $0x58] sm:$0xff] %vm513_vm2, %v5511_v7  ;;  %5568 = vst.msk [vmem:[#allocation7 + $0x40] sm:$0xff] %vm513_vm2, %v5512_v26  ;;  %v5463_v36 = vld [vmem:[#allocation3 + $0x9] sm:$0xff] }
 0x43a   : > { %v4930_v59 = vrot.slane %v4929_v37, 1  ;;  %v4936_v31 = vmax.f32 %v4934_v61, %v4935_v60  ;;  %v4995_v25 = vsel %vm4126_vm3, %v3988_v5, -inf  ;;  %v13270_v51 = vadd.f32 %v13075_v53, %v3348_v6  ;;  %v10643_v53 = vld [vmem:[%s14268_s4 + $0x1c0] sm:$0xff]   ;;  %5569 = vst.msk [vmem:[#allocation7 + $0x88] sm:$0xff] %vm513_vm2, %v5513_v56  ;;  %5473 = vst.msk [vmem:[#allocation7 + $0xa0] sm:$0xff] %vm513_vm2, %v5512_v26  ;;  %v5595_v16 = vld [vmem:[#allocation7 + $0x98] sm:$0xff] }
 0x43b   : > { %v4924_v55 = vmax.f32 %v4922_v40, %v4923_v22  ;;  %v5191_v29 = vsel %vm513_vm2, %v4917_v3, -inf  ;;  %v3997_v13 = vcombine.high %v3995_v50, %v3995_v50  ;;  %v4996_v28 = vrot.slane %v4995_v25, 4  ;;  %10050 = vmatpush3.bf16.msra.mxu1 %v10639_v14  ;;  %5474 = vst.msk [vmem:[#allocation7 + $0xe8] sm:$0xff] %vm513_vm2, %v5513_v56  ;;  %5522 = vst.msk [vmem:[#allocation7 + $0x100] sm:$0xff] %vm513_vm2, %v5514_v0  ;;  %v5594_v21 = vld [vmem:[#allocation7 + $0x90] sm:$0xff]  ;;  %v5589_v5 = vld [vmem:[#allocation7 + $0x68] sm:$0xff] }
 0x43c   : > { %v4931_v2 = vmax.f32 %v4929_v37, %v4930_v59  ;;  %v4937_v8 = vrot.slane %v4936_v31, 1  ;;  %v5193_v45 = vmax.f32 %v5191_v29, %v13232_v35  ;;  %v5002_v32 = vsel %vm4126_vm3, %v3996_v18, -inf  ;;  %10051 = vmatprep.subr.bf16.mxu1 %v10640_v24  ;;  %5523 = vst.msk [vmem:[#allocation7 + $0x148] sm:$0xff] %vm513_vm2, %v5515_v30  ;;  %5524 = vst.msk [vmem:[#allocation7 + $0x190] sm:$0xff] %vm513_vm2, %v5516_v20  ;;  %v5622_v9 = vld [vmem:[#allocation7 + $0x170] sm:$0xff]  ;;  %v5613_v6 = vld [vmem:[#allocation7 + $0x128] sm:$0xff] }
 0x43d   : > { %v5194_v4 = vsel %vm513_vm2, %v4924_v55, -inf  ;;  %v4997_v48 = vmax.f32 %v4995_v25, %v4996_v28  ;;  %v5003_v54 = vrot.slane %v5002_v32, 4  ;;  %v5009_v12 = vsel %vm4126_vm3, %v3995_v50, -inf  ;;  %5570 = vst.msk [vmem:[#allocation7 + $0xd0] sm:$0xff] %vm513_vm2, %v5514_v0  ;;  %5571 = vst.msk [vmem:[#allocation7 + $0x118] sm:$0xff] %vm513_vm2, %v5515_v30  ;;  %v5567_v15 = vld [vmem:[#allocation3 + $0xe1] sm:$0xff] }
 0x43e   : > { %v4938_v17 = vmax.f32 %v4936_v31, %v4937_v8  ;;  %v5196_v47 = vmax.f32 %v5194_v4, %v13235_v1  ;;  %v5197_v46 = vsel %vm513_vm2, %v4931_v2, -inf  ;;  %v5010_v23 = vrot.slane %v5009_v12, 4  ;;  %v5517_v1 = vld [vmem:[#allocation3 + $0xb1] sm:$0xff]  ;;  %5572 = vst.msk [vmem:[#allocation7 + $0x160] sm:$0xff] %vm513_vm2, %v5516_v20  ;;  %5475 = vst.msk [vmem:[#allocation7 + $0x130] sm:$0xff] %vm513_vm2, %v5514_v0 }
 0x43f   : > { %v5199_v27 = vmax.f32 %v5197_v46, %v13241_v10  ;;  %v13286_v62 = vmax.f32 %v5002_v32, %v5003_v54  ;;  %v5016_v34 = vsel %vm4126_vm3, %v3997_v13, -inf  ;;  %10052 = vmatpush3.bf16.msra.mxu1 %v10642_v43  ;;  %v4998_v49 = vrot.slane %v4997_v48, 2  ;;  %5476 = vst.msk [vmem:[#allocation7 + $0x178] sm:$0xff] %vm513_vm2, %v5515_v30  ;;  %5477 = vst.msk [vmem:[#allocation7 + $0x1c0] sm:$0xff] %vm513_vm2, %v5516_v20  ;;  %v5580_v3 = vld [vmem:[#allocation7 + $0x20] sm:$0xff]  ;;  %v5581_v31 = vld [vmem:[#allocation7 + $0x28] sm:$0xff] }
 0x440   : > { %v5200_v52 = vsel %vm513_vm2, %v4938_v17, -inf  ;;  %v5335_v58 = vsel %vm5279_vm4, %v5196_v47, %v5193_v45  ;;  %v5017_v35 = vrot.slane %v5016_v34, 4  ;;  %10117 = vmatprep.subr.bf16.mxu1 %v10643_v53  ;;  %v5011_v57 = vmax.f32 %v5009_v12, %v5010_v23  ;;  %5525 = vst.msk [vmem:[#allocation7 + $0x1d8] sm:$0xff] %vm513_vm2, %v5517_v1  ;;  %5471 = vst.msk [vmem:[#allocation7 + $0x10] sm:$0xff] %vm513_vm2, %v5463_v36  ;;  %v5590_v25 = vld [vmem:[#allocation7 + $0x70] sm:$0xff]  ;;  %v5599_v45 = vld [vmem:[#allocation7 + $0xb8] sm:$0xff] }
 0x441   : > { %v5202_v42 = vmax.f32 %v5200_v52, %v13261_v39  ;;  %v5336_v10 = vsel %vm5281_vm5, %v5199_v27, %v5335_v58  ;;  %5573 = vst.msk [vmem:[#allocation7 + $0x1a8] sm:$0xff] %vm513_vm2, %v5517_v1  ;;  %5575 = vst.msk [vmem:[#allocation7 + $0x238] sm:$0xff] %vm513_vm2, %v5567_v15  ;;  %v3419_v44 = vmax.f32 %v13270_v51, 0.0  ;;  %v5658_v61 = vpack.c.bf16 %v5604_v38, %v5595_v16  ;;  %v5621_v32 = vld [vmem:[#allocation7 + $0x168] sm:$0xff]  ;;  %v10629_v53 = vld [vmem:[%s14268_s4 + $0x208] sm:$0xff]  }
 0x442   : > { %5478 = vst.msk [vmem:[#allocation7 + $0x208] sm:$0xff] %vm513_vm2, %v5517_v1  ;;  %v5018_v63 = vmax.f32 %v5016_v34, %v5017_v35  ;;  %v5005_v40 = vrot.slane %v13286_v62, 2  ;;  %v5657_v14 = vpack.c.bf16 %v5603_v11, %v5594_v21  ;;  %v4999_v39 = vmax.f32 %v4997_v48, %v4998_v49  ;;  %v5608_v28 = vld [vmem:[#allocation7 + $0x100] sm:$0xff]  ;;  %v5607_v46 = vld [vmem:[#allocation7 + $0xf8] sm:$0xff]  ;;  %v5598_v58 = vld [vmem:[#allocation7 + $0xb0] sm:$0xff] }
 0x443   : > { %v13318_v33 = vsel %vm5283_vm6, %v5202_v42, %v5336_v10  ;;  %v3947_v37 = vcombine.high %v3419_v44, %v3419_v44  ;;  %v3954_v60 = vrot.slane %v3419_v44, %v12413_v41  ;;  %6300 = vmatprep.mubr.bf16.mxu1 %v5658_v61  ;;  %v5012_v24 = vrot.slane %v5011_v57, 2  ;;  %v5612_v23 = vld [vmem:[#allocation7 + $0x120] sm:$0xff]  ;;  %v5626_v49 = vld [vmem:[#allocation7 + $0x190] sm:$0xff]  ;;  %v5631_v35 = vld [vmem:[#allocation7 + $0x1b8] sm:$0xff]  ;;  %546 = vst.msk [vmem:[#allocation4] sm:$0xff] %vm545_vm12, %v13245_v19 }
 0x444   : > { %6301 = vmatmul.mubr.bf16.gmra.mrb[132].mxu1 %v5657_v14  ;;  %v5667_v22 = vpack.c.bf16 %v5622_v9, %v5613_v6  ;;  %v5019_v50 = vrot.slane %v5018_v63, 2  ;;  %v5652_v51 = vpack.c.bf16 %v5589_v5, %v5580_v3  ;;  %v5006_v55 = vmax.f32 %v13286_v62, %v5005_v40  ;;  %v5640_v7 = vld [vmem:[#allocation7 + $0x200] sm:$0xff]  ;;  %v10844_v62 = vld [vmem:[%s14268_s4 + $0x200] sm:$0xff]   ;;  %v5617_v44 = vld [vmem:[#allocation7 + $0x148] sm:$0xff]  ;;  %549 = vst.msk [vmem:[#allocation4 + $0x10] sm:$0xff] %vm545_vm12, %v13245_v19 }
 0x445   : > { %v3961_v18 = vrot.slane %v3947_v37, %v12413_v41  ;;  %v3962_v59 = vcombine.high %v3954_v60, %v3954_v60  ;;  %v4939_v29 = vsel %vm4126_vm3, %v3954_v60, -inf  ;;  %v5653_v13 = vpack.c.bf16 %v5590_v25, %v5581_v31  ;;  %v10632_v34 = vld [vmem:[%s14268_s4 + $0x210] sm:$0xff]   ;;  %v5639_v61 = vld [vmem:[#allocation7 + $0x1f8] sm:$0xff]  ;;  %v10635_v37 = vld [vmem:[%s14268_s4 + $0x218] sm:$0xff]   ;;  %551 = vst.msk [vmem:[#allocation4 + $0x20] sm:$0xff] %vm545_vm12, %v13245_v19 }
 0x446   : > { %6308 = vmatprep.mubr.bf16.mxu1 %v5667_v22  ;;  %v5000_v43 = vrot.slane %v4999_v39, 1  ;;  %v4940_v8 = vrot.slane %v4939_v29, 4  ;;  %v5013_v4 = vmax.f32 %v5011_v57, %v5012_v24  ;;  %v5662_v12 = vpack.c.bf16 %v5608_v28, %v5599_v45  ;;  %v5630_v60 = vld [vmem:[#allocation7 + $0x1b0] sm:$0xff]  ;;  %553 = vst.msk [vmem:[#allocation4 + $0x30] sm:$0xff] %vm545_vm12, %v13245_v19  ;;  %555 = vst.msk [vmem:[#allocation4 + $0x40] sm:$0xff] %vm545_vm12, %v13245_v19 }
 0x447   : > { %v3963_v2 = vcombine.high %v3961_v18, %v3961_v18  ;;  %v4946_v48 = vsel %vm4126_vm3, %v3962_v59, -inf  ;;  %v4953_v54 = vsel %vm4126_vm3, %v3961_v18, -inf  ;;  %6422 = vmatprep.mubr.bf16.mxu0 %v5653_v13  ;;  %v5020_v38 = vmax.f32 %v5018_v63, %v5019_v50  ;;  %v5588_v50 = vld [vmem:[#allocation7 + $0x60] sm:$0xff]  ;;  %v5579_v13 = vld [vmem:[#allocation7 + $0x18] sm:$0xff]  ;;  %557 = vst.msk [vmem:[#allocation4 + $0x50] sm:$0xff] %vm545_vm12, %v13245_v19 }
 0x448   : > { %v4941_v17 = vmax.f32 %v4939_v29, %v4940_v8  ;;  %v4947_v47 = vrot.slane %v4946_v48, 4  ;;  %6423 = vmatmul.mubr.bf16.vlgmr.msra.gmra.mrb[160].mxu0 %v5652_v51  ;;  %v5007_v26 = vrot.slane %v5006_v55, 1  ;;  %v4954_v11 = vrot.slane %v4953_v54, 4  ;;  %v5625_v29 = vld [vmem:[#allocation7 + $0x188] sm:$0xff]  ;;  %v10638_v8 = vld [vmem:[%s14268_s4 + $0x220] sm:$0xff]  }
 0x449   : > { %v4960_v56 = vsel %vm4126_vm3, %v3963_v2, -inf  ;;  %6430 = vmatprep.mubr.bf16.mxu0 %v5662_v12  ;;  %v5666_v27 = vpack.c.bf16 %v5621_v32, %v5612_v23  ;;  %10412 = vmatpush3.bf16.msra.mxu0 %v10844_v62  ;;  %v5001_v0 = vmax.f32 %v4999_v39, %v5000_v43  ;;  %v5014_v1 = vrot.slane %v5013_v4, 1  ;;  %548 = vst.msk [vmem:[#allocation4 + $0x8] sm:$0x1f] %vm547_vm13, %v13245_v19 }
 0x44a   : > { %v4942_v30 = vrot.slane %v4941_v17, 2  ;;  %v4948_v20 = vmax.f32 %v4946_v48, %v4947_v47  ;;  %v4961_v52 = vrot.slane %v4960_v56, 4  ;;  %10413 = vmatprep.subr.bf16.mxu0 %v10629_v53  ;;  %v4955_v36 = vmax.f32 %v4953_v54, %v4954_v11  ;;  %v5616_v48 = vld [vmem:[#allocation7 + $0x140] sm:$0xff]  ;;  %v10641_v11 = vld [vmem:[%s14268_s4 + $0x228] sm:$0xff]   ;;  %550 = vst.msk [vmem:[#allocation4 + $0x18] sm:$0x1f] %vm547_vm13, %v13245_v19 }
 0x44b   : > { %v5661_v15 = vpack.c.bf16 %v5607_v46, %v5598_v58  ;;  %v5676_v42 = vpack.c.bf16 %v5640_v7, %v5631_v35  ;;  %v5021_v10 = vrot.slane %v5020_v38, 1  ;;  %v5008_v21 = vmax.f32 %v5006_v55, %v5007_v26  ;;  %v5597_v58 = vld [vmem:[#allocation7 + $0xa8] sm:$0xff]  ;;  %v10644_v35 = vld [vmem:[%s14268_s4 + $0x230] sm:$0xff]   ;;  %558 = vst.msk [vmem:[#allocation4 + $0x58] sm:$0x1f] %vm547_vm13, %v13245_v19 }
 0x44c   : > { %6309 = vmatmul.mubr.bf16.gmra.mrb[136].mxu1 %v5666_v27  ;;  %v4943_v57 = vmax.f32 %v4941_v17, %v4942_v30  ;;  %v4949_v16 = vrot.slane %v4948_v20, 2  ;;  %v4962_v63 = vmax.f32 %v4960_v56, %v4961_v52  ;;  %v4956_v9 = vrot.slane %v4955_v36, 2  ;;  %v5578_v56 = vld [vmem:[#allocation7 + $0x10] sm:$0xff]  ;;  %v5587_v27 = vld [vmem:[#allocation7 + $0x58] sm:$0xff]  ;;  %552 = vst.msk [vmem:[#allocation4 + $0x28] sm:$0x1f] %vm547_vm13, %v13245_v19 }
 0x44d   : > { %10414 = vmatpush3.bf16.msra.mxu0 %v10629_v53  ;;  %v5671_v40 = vpack.c.bf16 %v5626_v49, %v5617_v44  ;;  %6316 = vmatprep.mubr.bf16.mxu1 %v5676_v42  ;;  %v5015_v6 = vmax.f32 %v5013_v4, %v5014_v1  ;;  %v5204_v24 = vsel %vm513_vm2, %v5001_v0, -inf  ;;  %v5675_v22 = vpack.c.bf16 %v5639_v61, %v5630_v60  ;;  %v5606_v0 = vld [vmem:[#allocation7 + $0xf0] sm:$0xff]  ;;  %v10646_v49 = vld [vmem:[%s14268_s4 + $0x1c8] sm:$0xff]   ;;  %v10647_v42 = vld [vmem:[%s14268_s4 + $0x238] sm:$0xff]  }
 0x44e   : > { %v4944_v5 = vrot.slane %v4943_v57, 1  ;;  %v4950_v14 = vmax.f32 %v4948_v20, %v4949_v16  ;;  %v4963_v39 = vrot.slane %v4962_v63, 2  ;;  %10415 = vmatprep.subr.bf16.mxu0 %v10632_v34  ;;  %v4957_v3 = vmax.f32 %v4955_v36, %v4956_v9  ;;  %v10648_v36 = vld [vmem:[%s14268_s4 + $0x188] sm:$0xff]   ;;  %v5624_v16 = vld [vmem:[#allocation7 + $0x180] sm:$0xff]  ;;  %v10651_v61 = vld [vmem:[%s14268_s4 + $0x1d8] sm:$0xff]  }
 0x44f   : > { %v5022_v18 = vmax.f32 %v5020_v38, %v5021_v10  ;;  %v5207_v51 = vsel %vm513_vm2, %v5008_v21, -inf  ;;  %v5651_v45 = vpack.c.bf16 %v5588_v50, %v5579_v13  ;;  %v5210_v32 = vsel %vm513_vm2, %v5015_v6, -inf  ;;  %v5605_v10 = vld [vmem:[#allocation7 + $0xe8] sm:$0xff]  ;;  %v10650_v44 = vld [vmem:[%s14268_s4 + $0x190] sm:$0xff]   ;;  %v5623_v60 = vld [vmem:[#allocation7 + $0x178] sm:$0xff] }
 0x450   : > { %v4945_v59 = vmax.f32 %v4943_v57, %v4944_v5  ;;  %v4951_v31 = vrot.slane %v4950_v14, 1  ;;  %v4964_v25 = vmax.f32 %v4962_v63, %v4963_v39  ;;  %6431 = vmatmul.mubr.bf16.gmra.mrb[164].mxu0 %v5661_v15  ;;  %v4958_v55 = vrot.slane %v4957_v3, 1  ;;  %v10649_v15 = vld [vmem:[%s14268_s4 + $0x1d0] sm:$0xff]   ;;  %v5615_v57 = vld [vmem:[#allocation7 + $0x138] sm:$0xff]  ;;  %v10652_v39 = vld [vmem:[%s14268_s4 + $0x198] sm:$0xff]  }
 0x451   : > { %6438 = vmatprep.mubr.bf16.mxu0 %v5671_v40  ;;  %10416 = vmatpush3.bf16.msra.mxu0 %v10632_v34  ;;  %v5213_v54 = vsel %vm513_vm2, %v5022_v18, -inf  ;;  %v5670_v17 = vpack.c.bf16 %v5625_v29, %v5616_v48  ;;  %v5650_v52 = vpack.c.bf16 %v5587_v27, %v5578_v56  ;;  %v5660_v1 = vpack.c.bf16 %v5606_v0, %v5597_v58  ;;  %v5596_v63 = vld [vmem:[#allocation7 + $0xa0] sm:$0xff]  ;;  %v10654_v6 = vld [vmem:[%s14268_s4 + $0x1a0] sm:$0xff]   ;;  %v10655_v13 = vld [vmem:[%s14268_s4 + $0x1e8] sm:$0xff]  }
 0x452   : > { %v4952_v28 = vmax.f32 %v4950_v14, %v4951_v31  ;;  %v4965_v43 = vrot.slane %v4964_v25, 1  ;;  %v5203_v2 = vsel %vm513_vm2, %v4945_v59, -inf  ;;  %10417 = vmatprep.subr.bf16.mxu0 %v10635_v37  ;;  %v4959_v53 = vmax.f32 %v4957_v3, %v4958_v55  ;;  %v5634_v3 = vld [vmem:[#allocation7 + $0x1d0] sm:$0xff]  ;;  %v5593_v59 = vld [vmem:[#allocation7 + $0x88] sm:$0xff]  ;;  %v5632_v48 = vld [vmem:[#allocation7 + $0x1c0] sm:$0xff] }
 0x453   : > { %v5205_v4 = vmax.f32 %v5203_v2, %v5204_v24  ;;  %v5659_v40 = vpack.c.bf16 %v5605_v10, %v5596_v63  ;;  %v5669_v14 = vpack.c.bf16 %v5624_v16, %v5615_v57  ;;  %v5635_v24 = vld [vmem:[#allocation7 + $0x1d8] sm:$0xff]  ;;  %v5633_v55 = vld [vmem:[#allocation7 + $0x1c8] sm:$0xff]  ;;  %v5646_v16 = vld [vmem:[#allocation7 + $0x230] sm:$0xff]  ;;  %554 = vst.msk [vmem:[#allocation4 + $0x38] sm:$0x1f] %vm547_vm13, %v13245_v19  ;;  %vm8133_vm3 = vcmask 517120  }
 0x454   : > { %6317 = vmatmul.mubr.bf16.gmra.mrb[140].mxu1 %v5675_v22  ;;  %v4966_v12 = vmax.f32 %v4964_v25, %v4965_v43  ;;  %v5206_v38 = vsel %vm513_vm2, %v4952_v28, -inf  ;;  %v5209_v46 = vsel %vm513_vm2, %v4959_v53, -inf  ;;  %v5614_v22 = vld [vmem:[#allocation7 + $0x130] sm:$0xff]  ;;  %v5584_v28 = vld [vmem:[#allocation7 + $0x40] sm:$0xff]  ;;  %v10660_v56 = vld [vmem:[%s14268_s4 + $0x1b8] sm:$0xff]  }
 0x455   : > { %6357 = vmatprep.mubr.bf16.mxu1 %v5651_v45  ;;  %v5208_v47 = vmax.f32 %v5206_v38, %v5207_v51  ;;  %v5338_v23 = vsel %vm5285_vm7, %v5205_v4, %v13318_v33  ;;  %10418 = vmatpush3.bf16.msra.mxu0 %v10635_v37  ;;  %v5211_v7 = vmax.f32 %v5209_v46, %v5210_v32  ;;  %v10645_v33 = vld [vmem:[%s14268_s4 + $0x180] sm:$0xff]   ;;  %v10657_v45 = vld [vmem:[%s14268_s4 + $0x1f0] sm:$0xff]   ;;  %v5641_v32 = vld [vmem:[#allocation7 + $0x208] sm:$0xff] }
 0x456   : > { %v5212_v26 = vsel %vm513_vm2, %v4966_v12, -inf  ;;  %10419 = vmatprep.subr.bf16.mxu0 %v10638_v8  ;;  %v10653_v37 = vld [vmem:[%s14268_s4 + $0x1e0] sm:$0xff]   ;;  %v5668_v31 = vpack.c.bf16 %v5623_v60, %v5614_v22  ;;  %v5656_v2 = vpack.c.bf16 %v5593_v59, %v5584_v28  ;;  %v5592_v53 = vld [vmem:[#allocation7 + $0x80] sm:$0xff]  ;;  %v5611_v4 = vld [vmem:[#allocation7 + $0x118] sm:$0xff]  ;;  %v5677_v38 = vpack.c.bf16 %v5641_v32, %v5632_v48  ;;  %556 = vst.msk [vmem:[#allocation4 + $0x48] sm:$0x1f] %vm547_vm13, %v13245_v19 }
 0x457   : > { %v5214_v62 = vmax.f32 %v5212_v26, %v5213_v54  ;;  %v5339_v34 = vsel %vm5287_vm8, %v5208_v47, %v5338_v23  ;;  %v10658_v54 = vld [vmem:[%s14268_s4 + $0x1b0] sm:$0xff]   ;;  %v5629_v12 = vld [vmem:[#allocation7 + $0x1a8] sm:$0xff]  ;;  %v5602_v46 = vld [vmem:[#allocation7 + $0xd0] sm:$0xff] }
 0x458   : > { %v5340_v30 = vsel %vm5289_vm9, %v5211_v7, %v5339_v34  ;;  %6439 = vmatmul.mubr.bf16.gmra.mrb[168].mxu0 %v5670_v17  ;;  %v5583_v17 = vld [vmem:[#allocation7 + $0x38] sm:$0xff]  ;;  %v10659_v47 = vld [vmem:[%s14268_s4 + $0x1f8] sm:$0xff]   ;;  %v5665_v7 = vpack.c.bf16 %v5611_v4, %v5602_v46  ;;  %v5620_v26 = vld [vmem:[#allocation7 + $0x160] sm:$0xff] }
 0x459   : > { %v5341_v20 = vsel %vm5291_vm10, %v5214_v62, %v5340_v30  ;;  %10420 = vmatpush3.bf16.msra.mxu0 %v10638_v8  ;;  %v10656_v8 = vld [vmem:[%s14268_s4 + $0x1a8] sm:$0xff]   ;;  %v5655_v23 = vpack.c.bf16 %v5592_v53, %v5583_v17  ;;  %v5610_v62 = vld [vmem:[#allocation7 + $0x110] sm:$0xff] }
 0x45a   : > { %5358 = vst.msk [vmem:[#allocation3 + $0xc8] sm:$0xff] %vm513_vm2, %v5341_v20  ;;  %10421 = vmatprep.subr.bf16.mxu0 %v10641_v11  ;;  %v5591_v27 = vld [vmem:[#allocation7 + $0x78] sm:$0xff]  ;;  %v5582_v30 = vld [vmem:[#allocation7 + $0x30] sm:$0xff]  ;;  %v5601_v20 = vld [vmem:[#allocation7 + $0xc8] sm:$0xff] }
 0x45b   : > { %v5647_v0 = vld [vmem:[#allocation7 + $0x238] sm:$0xff]  ;;  %v5618_v63 = vld [vmem:[#allocation7 + $0x150] sm:$0xff] }
 0x45c   : > { %6358 = vmatmul.mubr.bf16.vlgmr.msra.gmra.mrb[144].mxu1 %v5650_v52  ;;  %v5664_v52 = vpack.c.bf16 %v5610_v62, %v5601_v20  ;;  %v5627_v10 = vld [vmem:[#allocation7 + $0x198] sm:$0xff] }
 0x45d   : > { %6365 = vmatprep.mubr.bf16.mxu1 %v5660_v1  ;;  %10118 = vmatpush3.bf16.msra.mxu1 %v10645_v33  ;;  %v5654_v33 = vpack.c.bf16 %v5591_v27, %v5582_v30  ;;  %v5600_v1 = vld [vmem:[#allocation7 + $0xc0] sm:$0xff] }
 0x45e   : > { %10422 = vmatpush3.bf16.msra.mxu0 %v10641_v11  ;;  %10119 = vmatprep.subr.bf16.mxu1 %v10646_v49  ;;  %v5674_v11 = vpack.c.bf16 %v5629_v12, %v5620_v26  ;;  %v5609_v49 = vld [vmem:[#allocation7 + $0x108] sm:$0xff] }
 0x45f   : > { %10423 = vmatprep.subr.bf16.mxu0 %v10644_v35 }
 0x461   : > { %10120 = vmatpush3.bf16.msra.mxu1 %v10648_v36  ;;  %v5518_v21 = vld [vmem:[#allocation3 + $0xc9] sm:$0xff]  ;;  %v5663_v36 = vpack.c.bf16 %v5609_v49, %v5600_v1 }
 0x462   : > { %v5502_v9 = vld [vmem:[#allocation3 + $0xc8] sm:$0xff]  ;;  %10424 = vmatpush3.bf16.msra.mxu0 %v10644_v35  ;;  %10121 = vmatprep.subr.bf16.mxu1 %v10649_v15  ;;  %5526 = vst.msk [vmem:[#allocation7 + $0x220] sm:$0xff] %vm513_vm2, %v5518_v21  ;;  %5574 = vst.msk [vmem:[#allocation7 + $0x1f0] sm:$0xff] %vm513_vm2, %v5518_v21  ;;  %v5628_v35 = vld [vmem:[#allocation7 + $0x1a0] sm:$0xff] }
 0x463   : > { %v5486_v5 = vld [vmem:[#allocation3 + $0xc7] sm:$0xff]  ;;  %5510 = vst.msk [vmem:[#allocation7 + $0x218] sm:$0xff] %vm513_vm2, %v5502_v9  ;;  %10425 = vmatprep.subr.bf16.mxu0 %v10647_v42  ;;  %5558 = vst.msk [vmem:[#allocation7 + $0x1e8] sm:$0xff] %vm513_vm2, %v5502_v9  ;;  %v5645_v9 = vld [vmem:[#allocation7 + $0x228] sm:$0xff] }
 0x464   : > { %5494 = vst.msk [vmem:[#allocation7 + $0x210] sm:$0xff] %vm513_vm2, %v5486_v5  ;;  %5542 = vst.msk [vmem:[#allocation7 + $0x1e0] sm:$0xff] %vm513_vm2, %v5486_v5  ;;  %6366 = vmatmul.mubr.bf16.gmra.mrb[148].mxu1 %v5659_v40  ;;  %v5619_v15 = vld [vmem:[#allocation7 + $0x158] sm:$0xff]  ;;  %vm561_vm2 = vcmask 518144  }
 0x465   : > { %6373 = vmatprep.mubr.bf16.mxu1 %v5669_v14  ;;  %10122 = vmatpush3.bf16.msra.mxu1 %v10650_v44  ;;  %v5672_v44 = vpack.c.bf16 %v5627_v10, %v5618_v63 }
 0x466   : > { %10426 = vmatpush3.bf16.msra.mxu0 %v10647_v42  ;;  %10123 = vmatprep.subr.bf16.mxu1 %v10651_v61  ;;  %v5673_v42 = vpack.c.bf16 %v5628_v35, %v5619_v15 }
 0x469   : > { %10124 = vmatpush3.bf16.msra.mxu1 %v10652_v39  ;;  %v5644_v50 = vld [vmem:[#allocation7 + $0x220] sm:$0xff]  ;;  %v5638_v34 = vld [vmem:[#allocation7 + $0x1f0] sm:$0xff] }
 0x46a   : > { %v5643_v18 = vld [vmem:[#allocation7 + $0x218] sm:$0xff]  ;;  %10125 = vmatprep.subr.bf16.mxu1 %v10653_v37  ;;  %v5680_v25 = vpack.c.bf16 %v5644_v50, %v5635_v24  ;;  %v5683_v58 = vpack.c.bf16 %v5647_v0, %v5638_v34  ;;  %v5637_v57 = vld [vmem:[#allocation7 + $0x1e8] sm:$0xff] }
 0x46b   : > { %v5679_v51 = vpack.c.bf16 %v5643_v18, %v5634_v3  ;;  %v5642_v29 = vld [vmem:[#allocation7 + $0x210] sm:$0xff]  ;;  %v5682_v61 = vpack.c.bf16 %v5646_v16, %v5637_v57  ;;  %v5636_v21 = vld [vmem:[#allocation7 + $0x1e0] sm:$0xff] }
 0x46c   : > { %6374 = vmatmul.mubr.bf16.gmra.mrb[152].mxu1 %v5668_v31  ;;  %v5678_v43 = vpack.c.bf16 %v5642_v29, %v5633_v55  ;;  %6446 = vmatprep.mubr.bf16.mxu0 %v5680_v25  ;;  %v5681_v40 = vpack.c.bf16 %v5645_v9, %v5636_v21  ;;  %v10661_v9 = vld [vmem:[%s14271_s7 + $0x40] sm:$0xff]  }
 0x46d   : > { %10126 = vmatpush3.bf16.msra.mxu1 %v10654_v6  ;;  %6447 = vmatmul.mubr.bf16.gmra.mrb[172].mxu0 %v5679_v51 }
 0x46e   : > { %6381 = vmatprep.mubr.bf16.mxu1 %v5678_v43  ;;  %10427 = vmatprep.mubr.bf16.mxu0 %v5656_v2 }
 0x46f   : > { %10127 = vmatprep.subr.bf16.mxu1 %v10655_v13 }
 0x471   : > { %10128 = vmatpush3.bf16.msra.mxu1 %v10656_v8 }
 0x472   : > { %10129 = vmatprep.subr.bf16.mxu1 %v10657_v45 }
 0x474   : > { %6382 = vmatmul.mubr.bf16.gmra.mrb[156].mxu1 %v5677_v38 }
 0x475   : > { %10130 = vmatpush3.bf16.msra.mxu1 %v10658_v54  ;;  %6487 = vmatprep.mubr.bf16.mxu1 %v5655_v23 }
 0x476   : > { %10428 = vmatmul.mubr.bf16.vlgmr.msra.gmra.mrb[176].mxu0 %v5665_v7  ;;  %10131 = vmatprep.subr.bf16.mxu1 %v10659_v47 }
 0x477   : > { %10431 = vmatprep.mubr.bf16.mxu0 %v5674_v11 }
 0x479   : > { %10132 = vmatpush3.bf16.msra.mxu1 %v10660_v56 }
 0x47a   : > { %10169 = vmatprep.subr.bf16.mxu1 %v10661_v9  ;;  %v10679_v9 = vld [vmem:[%s14271_s7 + $0x28] sm:$0xff]  }
 0x47c   : > { %6488 = vmatmul.mubr.bf16.vlgmr.msra.gmra.mrb[160].mxu1 %v5654_v33 }
 0x47d   : > { %6495 = vmatprep.mubr.bf16.mxu1 %v5664_v52 }
 0x47e   : > { %10432 = vmatmul.mubr.bf16.gmra.mrb[180].mxu0 %v5683_v58 }
 0x484   : > { %6496 = vmatmul.mubr.bf16.gmra.mrb[164].mxu1 %v5663_v36 }
 0x485   : > { %6503 = vmatprep.mubr.bf16.mxu1 %v5673_v42 }
 0x48c   : > { %6504 = vmatmul.mubr.bf16.gmra.mrb[168].mxu1 %v5672_v44 }
 0x48d   : > { %6511 = vmatprep.mubr.bf16.mxu1 %v5682_v61 }
 0x494   : > { %6512 = vmatmul.mubr.bf16.gmra.mrb[172].mxu1 %v5681_v40 }
 0x4f5   : > { %v10013_v5 = vpop.f32.mrb[128].mxu1 }
 0x4f6   : > { %v10014_v14 = vpop.f32.mrb[129].mxu1 }
 0x4f7   : > { %v10015_v39 = vadd.f32 %v10014_v14, %v10013_v5  ;;  %v10016_v37 = vpop.f32.mrb[130].mxu1  ;;  %v10662_v14 = vld [vmem:[%s14271_s7] sm:$0xff]  }
 0x4f8   : > { %v10017_v60 = vpop.f32.mrb[131].mxu1  ;;  %10170 = vmatpush3.bf16.msra.mxu1 %v10662_v14 }
 0x4f9   : > { %v10018_v6 = vadd.f32 %v10017_v60, %v10016_v37  ;;  %v10663_v37 = vld [vmem:[%s14271_s7 + $0x48] sm:$0xff]  }
 0x4fa   : > { %10171 = vmatprep.subr.bf16.mxu1 %v10663_v37  ;;  %v10681_v37 = vld [vmem:[%s14271_s7 + $0x70] sm:$0xff]  }
 0x517   : > { %v10019_v24 = vpop.f32.mrb[132].mxu1 }
 0x518   : > { %v10020_v3 = vpop.f32.mrb[133].mxu1 }
 0x519   : > { %v10021_v22 = vadd.f32 %v10020_v3, %v10019_v24  ;;  %v10022_v50 = vpop.f32.mrb[134].mxu1  ;;  %v10664_v3 = vld [vmem:[%s14271_s7 + $0x8] sm:$0xff]  }
 0x51a   : > { %v10023_v18 = vpop.f32.mrb[135].mxu1  ;;  %10172 = vmatpush3.bf16.msra.mxu1 %v10664_v3 }
 0x51b   : > { %v10024_v59 = vadd.f32 %v10023_v18, %v10022_v50  ;;  %v10093_v31 = vpop.f32.mrb[160].mxu0  ;;  %v10668_v50 = vld [vmem:[%s14271_s7 + $0x80] sm:$0xff]  }
 0x51c   : > { %v10094_v25 = vpop.f32.mrb[161].mxu0 }
 0x51d   : > { %v10095_v51 = vadd.f32 %v10094_v25, %v10093_v31  ;;  %v10096_v55 = vpop.f32.mrb[162].mxu0  ;;  %v10665_v31 = vld [vmem:[%s14271_s7 + $0x50] sm:$0xff]   ;;  %v10670_v25 = vld [vmem:[%s14271_s7 + $0xc8] sm:$0xff]  }
 0x51e   : > { %v10097_v29 = vpop.f32.mrb[163].mxu0  ;;  %10173 = vmatprep.subr.bf16.mxu1 %v10665_v31  ;;  %v10695_v31 = vld [vmem:[%s14271_s7 + $0xf0] sm:$0xff]  }
 0x51f   : > { %v10025_v13 = vpop.f32.mrb[136].mxu1  ;;  %v10098_v28 = vadd.f32 %v10097_v29, %v10096_v55 }
 0x520   : > { %v10026_v19 = vpop.f32.mrb[137].mxu1 }
 0x521   : > { %v10027_v43 = vadd.f32 %v10026_v19, %v10025_v13  ;;  %v10028_v2 = vpop.f32.mrb[138].mxu1  ;;  %v10672_v19 = vld [vmem:[%s14271_s7 + $0x88] sm:$0xff]  }
 0x522   : > { %v10029_v8 = vpop.f32.mrb[139].mxu1 }
 0x523   : > { %v13434_v45 = vadd.f32 %v10029_v8, %v10028_v2  ;;  %v10099_v32 = vpop.f32.mrb[164].mxu0 }
 0x524   : > { %v10100_v53 = vpop.f32.mrb[165].mxu0 }
 0x525   : > { %v10101_v4 = vadd.f32 %v10100_v53, %v10099_v32  ;;  %v10102_v48 = vpop.f32.mrb[166].mxu0  ;;  %v10667_v53 = vld [vmem:[%s14271_s7 + $0x10] sm:$0xff]  }
 0x526   : > { %v10103_v54 = vpop.f32.mrb[167].mxu0  ;;  %10174 = vmatpush3.bf16.msra.mxu1 %v10667_v53 }
 0x527   : > { %v10031_v12 = vpop.f32.mrb[140].mxu1  ;;  %v10104_v38 = vadd.f32 %v10103_v54, %v10102_v48 }
 0x528   : > { %v10032_v17 = vpop.f32.mrb[141].mxu1 }
 0x529   : > { %v13436_v47 = vadd.f32 %v10032_v17, %v10031_v12  ;;  %v10034_v46 = vpop.f32.mrb[142].mxu1  ;;  %v10676_v12 = vld [vmem:[%s14271_s7 + $0x90] sm:$0xff]  }
 0x52a   : > { %v10035_v23 = vpop.f32.mrb[143].mxu1 }
 0x52b   : > { %v13438_v7 = vadd.f32 %v10035_v23, %v10034_v46  ;;  %v10105_v26 = vpop.f32.mrb[168].mxu0 }
 0x52c   : > { %v10106_v11 = vpop.f32.mrb[169].mxu0 }
 0x52d   : > { %v10107_v56 = vadd.f32 %v10106_v11, %v10105_v26  ;;  %v10108_v27 = vpop.f32.mrb[170].mxu0  ;;  %v10671_v26 = vld [vmem:[%s14271_s7 + $0x18] sm:$0xff]  }
 0x52e   : > { %v10109_v62 = vpop.f32.mrb[171].mxu0  ;;  %v10678_v11 = vld [vmem:[%s14271_s7 + $0xd8] sm:$0xff]  }
 0x52f   : > { %v10053_v34 = vpop.f32.mrb[144].mxu1  ;;  %v10110_v0 = vadd.f32 %v10109_v62, %v10108_v27 }
 0x530   : > { %v10054_v30 = vpop.f32.mrb[145].mxu1 }
 0x531   : > { %v10055_v33 = vadd.f32 %v10054_v30, %v10053_v34  ;;  %v10056_v20 = vpop.f32.mrb[146].mxu1  ;;  %v10673_v34 = vld [vmem:[%s14271_s7 + $0x60] sm:$0xff]  }
 0x532   : > { %v10057_v52 = vpop.f32.mrb[147].mxu1 }
 0x533   : > { %v6360_v58 = vadd.f32 %v10055_v33, %v10015_v39  ;;  %v10058_v49 = vadd.f32 %v10057_v52, %v10056_v20  ;;  %v10680_v52 = vld [vmem:[%s14271_s7 + $0x98] sm:$0xff]  }
 0x535   : > { %v6363_v35 = vadd.f32 %v10058_v49, %v10018_v6  ;;  %v13440_v1 = vadd.f32 %v10095_v51, %v6360_v58  ;;  %v7146_v58 = vld [vmem:[#allocation4 + $0x9] sm:$0xf] }
 0x536   : > { %7150 = vst.msk [vmem:[#allocation8 + $0x8] sm:$0xf] %vm7105_vm14, %v7146_v58 }
 0x537   : > { %v10059_v36 = vpop.f32.mrb[148].mxu1  ;;  %v13442_v15 = vadd.f32 %v10098_v28, %v6363_v35 }
 0x538   : > { %v10060_v42 = vpop.f32.mrb[149].mxu1 }
 0x539   : > { %v10061_v10 = vadd.f32 %v10060_v42, %v10059_v36  ;;  %v10062_v57 = vpop.f32.mrb[150].mxu1  ;;  %v10675_v36 = vld [vmem:[%s14271_s7 + $0x20] sm:$0xff]   ;;  %v10677_v42 = vld [vmem:[%s14271_s7 + $0x68] sm:$0xff]  }
 0x53a   : > { %v10063_v16 = vpop.f32.mrb[151].mxu1 }
 0x53b   : > { %v6368_v63 = vadd.f32 %v10061_v10, %v10021_v22  ;;  %v10064_v44 = vadd.f32 %v10063_v16, %v10062_v57  ;;  %v10666_v22 = vld [vmem:[%s14271_s7 + $0xc0] sm:$0xff]  }
 0x53c   : > { %10191 = vmatprep.subr.bf16.mxu0 %v10666_v22  ;;  %v10684_v16 = vld [vmem:[%s14271_s7 + $0xa0] sm:$0xff]  }
 0x53d   : > { %v6371_v61 = vadd.f32 %v10064_v44, %v10024_v59  ;;  %v13444_v21 = vadd.f32 %v10101_v4, %v6368_v63  ;;  %10192 = vmatpush3.bf16.msra.mxu0 %v10668_v50  ;;  %v10669_v4 = vld [vmem:[%s14271_s7 + $0x58] sm:$0xff]   ;;  %v13550_v22 = vld [vmem:[%s14269_s5] ss:$0 sm:$0xff]  ;;  %v10683_v50 = vld [vmem:[%s14271_s7 + $0x30] sm:$0xff]  }
 0x53e   : > { %10193 = vmatprep.subr.bf16.mxu0 %v10670_v25  ;;  %10175 = vmatprep.subr.bf16.mxu1 %v10669_v4  ;;  %v7182_v25 = vld [vmem:[#allocation4 + $0x57] sm:$0xf] }
 0x53f   : > { %v10065_v40 = vpop.f32.mrb[152].mxu1  ;;  %v13449_v5 = vadd.f32 %v10104_v38, %v6371_v61  ;;  %v7130_v38 = vld [vmem:[#allocation4 + $0x7] sm:$0xf]  ;;  %10176 = vmatpush3.bf16.msra.mxu1 %v10671_v26  ;;  %7186 = vst.msk [vmem:[#allocation8 + $0x84] sm:$0xf] %vm7105_vm14, %v7182_v25 }
 0x540   : > { %v10066_v39 = vpop.f32.mrb[153].mxu1  ;;  %v10111_v60 = vpop.f32.mrb[172].mxu0  ;;  %7134 = vst.msk [vmem:[#allocation8] sm:$0xf] %vm7105_vm14, %v7130_v38  ;;  %10177 = vmatprep.subr.bf16.mxu1 %v10673_v34  ;;  %v10696_v38 = vld [vmem:[%s14271_s7 + $0x140] sm:$0xff]  }
 0x541   : > { %v10067_v6 = vadd.f32 %v10066_v39, %v10065_v40  ;;  %v10068_v24 = vpop.f32.mrb[154].mxu1  ;;  %v10112_v18 = vpop.f32.mrb[173].mxu0  ;;  %10194 = vmatpush3.bf16.msra.mxu0 %v10672_v19  ;;  %v10686_v40 = vld [vmem:[%s14271_s7 + $0xe8] sm:$0xff]  }
 0x542   : > { %v10069_v59 = vpop.f32.mrb[155].mxu1  ;;  %v10113_v51 = vadd.f32 %v10112_v18, %v10111_v60  ;;  %v10114_v55 = vpop.f32.mrb[174].mxu0  ;;  %v10688_v18 = vld [vmem:[%s14271_s7 + $0xa8] sm:$0xff]  }
 0x543   : > { %v6376_v29 = vadd.f32 %v10067_v6, %v10027_v43  ;;  %v10070_v13 = vadd.f32 %v10069_v59, %v10068_v24  ;;  %v10115_v28 = vpop.f32.mrb[175].mxu0  ;;  %v10674_v43 = vld [vmem:[%s14271_s7 + $0xd0] sm:$0xff]   ;;  %10178 = vmatpush3.bf16.msra.mxu1 %v10675_v36 }
 0x544   : > { %v10116_v2 = vadd.f32 %v10115_v28, %v10114_v55  ;;  %10195 = vmatprep.subr.bf16.mxu0 %v10674_v43  ;;  %10179 = vmatprep.subr.bf16.mxu1 %v10677_v42  ;;  %v13565_v55 = vld [vmem:[%s14270_s6] ss:$0 sm:$0xff] }
 0x545   : > { %v6379_v8 = vadd.f32 %v10070_v13, %v13434_v45  ;;  %v13476_v32 = vadd.f32 %v10107_v56, %v6376_v29  ;;  %v7138_v56 = vld [vmem:[#allocation4 + $0x8] sm:$0xf]  ;;  %10196 = vmatpush3.bf16.msra.mxu0 %v10676_v12 }
 0x546   : > { %7142 = vst.msk [vmem:[#allocation8 + $0x4] sm:$0xf] %vm7105_vm14, %v7138_v56  ;;  %10197 = vmatprep.subr.bf16.mxu0 %v10678_v11  ;;  %v10685_v29 = vld [vmem:[%s14271_s7 + $0x78] sm:$0xff]  }
 0x547   : > { %v10071_v48 = vpop.f32.mrb[156].mxu1  ;;  %v13487_v54 = vadd.f32 %v10110_v0, %v6379_v8  ;;  %10180 = vmatpush3.bf16.msra.mxu1 %v10679_v9  ;;  %v10701_v56 = vld [vmem:[%s14271_s7 + $0xb8] sm:$0xff]  }
 0x548   : > { %v10072_v45 = vpop.f32.mrb[157].mxu1  ;;  %10181 = vmatprep.subr.bf16.mxu1 %v10681_v37 }
 0x549   : > { %v13492_v17 = vpop.f32.mrb[176].mxu0  ;;  %v10073_v46 = vadd.f32 %v10072_v45, %v10071_v48  ;;  %v10074_v23 = vpop.f32.mrb[158].mxu1  ;;  %10198 = vmatpush3.bf16.msra.mxu0 %v10680_v52  ;;  %v10687_v48 = vld [vmem:[%s14271_s7 + $0x38] sm:$0xff]  }
 0x54a   : > { %v6554_v27 = vpop.f32.mrb[177].mxu0  ;;  %v10075_v62 = vpop.f32.mrb[159].mxu1  ;;  %v10699_v45 = vld [vmem:[%s14271_s7 + $0xf8] sm:$0xff]  }
 0x54b   : > { %v13505_v0 = vpop.f32.mrb[178].mxu0  ;;  %v6384_v30 = vadd.f32 %v10073_v46, %v13436_v47  ;;  %v10076_v33 = vadd.f32 %v10075_v62, %v10074_v23  ;;  %v10682_v47 = vld [vmem:[%s14271_s7 + $0xe0] sm:$0xff]   ;;  %10182 = vmatpush3.bf16.msra.mxu1 %v10683_v50 }
 0x54c   : > { %v6557_v20 = vpop.f32.mrb[179].mxu0  ;;  %10199 = vmatprep.subr.bf16.mxu0 %v10682_v47  ;;  %10183 = vmatprep.subr.bf16.mxu1 %v10685_v29 }
 0x54d   : > { %v6387_v49 = vadd.f32 %v10076_v33, %v13438_v7  ;;  %v13512_v35 = vadd.f32 %v10113_v51, %v6384_v30  ;;  %10200 = vmatpush3.bf16.msra.mxu0 %v10684_v16  ;;  %v7190_v51 = vld [vmem:[#allocation4 + $0x58] sm:$0xf] }
 0x54e   : > { %10201 = vmatprep.subr.bf16.mxu0 %v10686_v40  ;;  %7194 = vst.msk [vmem:[#allocation8 + $0x88] sm:$0xf] %vm7105_vm14, %v7190_v51 }
 0x54f   : > { %v10133_v7 = vpop.f32.mrb[160].mxu1  ;;  %v13524_v10 = vadd.f32 %v10116_v2, %v6387_v49  ;;  %v10697_v2 = vld [vmem:[%s14271_s7 + $0xb0] sm:$0xff]   ;;  %10184 = vmatpush3.bf16.msra.mxu1 %v10687_v48 }
 0x550   : > { %v10134_v57 = vpop.f32.mrb[161].mxu1  ;;  %10213 = vmatprep.subr.bf16.mxu1 %v10696_v38 }
 0x551   : > { %v13529_v63 = vpop.f32.mrb[180].mxu0  ;;  %v10135_v44 = vadd.f32 %v10134_v57, %v10133_v7  ;;  %v10136_v61 = vpop.f32.mrb[162].mxu1  ;;  %10202 = vmatpush3.bf16.msra.mxu0 %v10688_v18 }
 0x552   : > { %v13537_v14 = vpop.f32.mrb[181].mxu0  ;;  %v10137_v39 = vpop.f32.mrb[163].mxu1  ;;  %10203 = vmatprep.subr.bf16.mxu0 %v10695_v31 }
 0x553   : > { %v13542_v60 = vpop.f32.mrb[182].mxu0  ;;  %v6490_v6 = vadd.f32 %v10135_v44, %v13440_v1  ;;  %v10138_v24 = vadd.f32 %v10137_v39, %v10136_v61 }
 0x554   : > { %v13545_v3 = vpop.f32.mrb[183].mxu0 }
 0x555   : > { %v6555_v59 = vadd.f32 %v6554_v27, %v6490_v6  ;;  %v6493_v1 = vadd.f32 %v10138_v24, %v13442_v15  ;;  %10204 = vmatpush3.bf16.msra.mxu0 %v10697_v2  ;;  %v7198_v27 = vld [vmem:[#allocation4 + $0x59] sm:$0xf] }
 0x556   : > { %10205 = vmatprep.subr.bf16.mxu0 %v10699_v45  ;;  %7202 = vst.msk [vmem:[#allocation8 + $0x8c] sm:$0xf] %vm7105_vm14, %v7198_v27 }
 0x557   : > { %v6592_v15 = vmul.f32 %v13550_v22, %v6555_v59  ;;  %v6558_v13 = vadd.f32 %v6557_v20, %v6493_v1  ;;  %v10139_v28 = vpop.f32.mrb[164].mxu1 }
 0x558   : > { %v10140_v19 = vpop.f32.mrb[165].mxu1 }
 0x559   : > { %v6607_v8 = vadd.f32 %v13565_v55, %v6592_v15  ;;  %v6593_v53 = vmul.f32 %v13550_v22, %v6558_v13  ;;  %v10141_v43 = vadd.f32 %v10140_v19, %v10139_v28  ;;  %v10142_v4 = vpop.f32.mrb[166].mxu1  ;;  %10206 = vmatpush3.bf16.msra.mxu0 %v10701_v56 }
 0x55a   : > { %v10143_v12 = vpop.f32.mrb[167].mxu1 }
 0x55b   : > { %v6615_v46 = vmax.f32 %v6607_v8, 0.0  ;;  %v6608_v23 = vadd.f32 %v13565_v55, %v6593_v53  ;;  %v6498_v26 = vadd.f32 %v10141_v43, %v13444_v21  ;;  %v10144_v11 = vadd.f32 %v10143_v12, %v10142_v4  ;;  %v10716_v21 = vld [vmem:[%s14271_s7 + $0x1c0] sm:$0xff]  }
 0x55c   : > { %10235 = vmatprep.subr.bf16.mxu0 %v10716_v21 }
 0x55d   : > { %v6631_v62 = vcombine.high %v6615_v46, %v6615_v46  ;;  %v6638_v34 = vrot.slane %v6615_v46, %v12413_v41  ;;  %v6616_v30 = vmax.f32 %v6608_v23, 0.0  ;;  %v6563_v33 = vadd.f32 %v13492_v17, %v6498_v26 }
 0x55e   : > { %v6501_v20 = vadd.f32 %v10144_v11, %v13449_v5 }
 0x55f   : > { %v6645_v52 = vrot.slane %v6631_v62, %v12413_v41  ;;  %v6646_v58 = vcombine.high %v6638_v34, %v6638_v34  ;;  %v6800_v49 = vsel %vm6799_vm15, %v6638_v34, -inf  ;;  %v6648_v36 = vcombine.high %v6616_v30, %v6616_v30  ;;  %v13601_v47 = vpop.f32.mrb[168].mxu1 }
 0x560   : > { %v6801_v17 = vrot.slane %v6800_v49, 4  ;;  %v6655_v42 = vrot.slane %v6616_v30, %v12413_v41  ;;  %v13605_v7 = vmul.f32 %v13550_v22, %v6563_v33  ;;  %v13608_v57 = vadd.f32 %v13505_v0, %v6501_v20  ;;  %v13610_v16 = vpop.f32.mrb[169].mxu1 }
 0x561   : > { %v6647_v5 = vcombine.high %v6645_v52, %v6645_v52  ;;  %v6807_v44 = vsel %vm6799_vm15, %v6646_v58, -inf  ;;  %v6814_v61 = vsel %vm6799_vm15, %v6645_v52, -inf  ;;  %v6662_v9 = vrot.slane %v6648_v36, %v12413_v41  ;;  %v13615_v40 = vpop.f32.mrb[170].mxu1 }
 0x562   : > { %v6802_v39 = vmax.f32 %v6800_v49, %v6801_v17  ;;  %v6808_v37 = vrot.slane %v6807_v44, 4  ;;  %v6815_v6 = vrot.slane %v6814_v61, 4  ;;  %v6663_v24 = vcombine.high %v6655_v42, %v6655_v42  ;;  %v13617_v50 = vpop.f32.mrb[171].mxu1 }
 0x563   : > { %v6821_v0 = vsel %vm6799_vm15, %v6647_v5, -inf  ;;  %v6664_v18 = vcombine.high %v6662_v9, %v6662_v9  ;;  %v6828_v59 = vsel %vm6799_vm15, %v6655_v42, -inf  ;;  %v6842_v1 = vsel %vm6799_vm15, %v6662_v9, -inf }
 0x564   : > { %v6803_v31 = vrot.slane %v6802_v39, 2  ;;  %v6809_v25 = vmax.f32 %v6807_v44, %v6808_v37  ;;  %v6816_v51 = vmax.f32 %v6814_v61, %v6815_v6  ;;  %v6822_v29 = vrot.slane %v6821_v0, 4 }
 0x565   : > { %v6829_v15 = vrot.slane %v6828_v59, 4  ;;  %v6835_v13 = vsel %vm6799_vm15, %v6663_v24, -inf  ;;  %v6843_v28 = vrot.slane %v6842_v1, 4  ;;  %v6849_v19 = vsel %vm6799_vm15, %v6664_v18, -inf }
 0x566   : > { %v6804_v2 = vmax.f32 %v6802_v39, %v6803_v31  ;;  %v6810_v8 = vrot.slane %v6809_v25, 2  ;;  %v6817_v53 = vrot.slane %v6816_v51, 2  ;;  %v6823_v43 = vmax.f32 %v6821_v0, %v6822_v29 }
 0x567   : > { %v6830_v4 = vmax.f32 %v6828_v59, %v6829_v15  ;;  %v6836_v48 = vrot.slane %v6835_v13, 4  ;;  %v6844_v45 = vmax.f32 %v6842_v1, %v6843_v28  ;;  %v6850_v12 = vrot.slane %v6849_v19, 4  ;;  %v13624_v38 = vpop.f32.mrb[172].mxu1 }
 0x568   : > { %v6805_v46 = vrot.slane %v6804_v2, 1  ;;  %v6811_v23 = vmax.f32 %v6809_v25, %v6810_v8  ;;  %v6818_v26 = vmax.f32 %v6816_v51, %v6817_v53  ;;  %v6824_v11 = vrot.slane %v6823_v43, 2  ;;  %v13626_v56 = vpop.f32.mrb[173].mxu1 }
 0x569   : > { %v6831_v27 = vrot.slane %v6830_v4, 2  ;;  %v6837_v62 = vmax.f32 %v6835_v13, %v6836_v48  ;;  %v6845_v34 = vrot.slane %v6844_v45, 2  ;;  %v6851_v30 = vmax.f32 %v6849_v19, %v6850_v12  ;;  %v13628_v33 = vpop.f32.mrb[174].mxu1 }
 0x56a   : > { %v6806_v21 = vmax.f32 %v6804_v2, %v6805_v46  ;;  %v6812_v20 = vrot.slane %v6811_v23, 1  ;;  %v6819_v52 = vrot.slane %v6818_v26, 1  ;;  %v6825_v58 = vmax.f32 %v6823_v43, %v6824_v11  ;;  %v13630_v49 = vpop.f32.mrb[175].mxu1 }
 0x56b   : > { %v6832_v36 = vmax.f32 %v6830_v4, %v6831_v27  ;;  %v6838_v17 = vrot.slane %v6837_v62, 2  ;;  %v6846_v42 = vmax.f32 %v6844_v45, %v6845_v34  ;;  %v6852_v5 = vrot.slane %v6851_v30, 2 }
 0x56c   : > { %v6813_v44 = vmax.f32 %v6811_v23, %v6812_v20  ;;  %v6820_v61 = vmax.f32 %v6818_v26, %v6819_v52  ;;  %v6826_v9 = vrot.slane %v6825_v58, 1  ;;  %v7024_v39 = vsel %vm545_vm12, %v6806_v21, -inf }
 0x56d   : > { %v6833_v37 = vrot.slane %v6832_v36, 1  ;;  %v6839_v6 = vmax.f32 %v6837_v62, %v6838_v17  ;;  %v6847_v24 = vrot.slane %v6846_v42, 1  ;;  %v6853_v0 = vmax.f32 %v6851_v30, %v6852_v5 }
 0x56e   : > { %v6827_v18 = vmax.f32 %v6825_v58, %v6826_v9  ;;  %v7027_v59 = vsel %vm545_vm12, %v6813_v44, -inf  ;;  %v7030_v1 = vsel %vm545_vm12, %v6820_v61, -inf  ;;  %v6609_v31 = vadd.f32 %v13565_v55, %v13605_v7 }
 0x56f   : > { %v6834_v25 = vmax.f32 %v6832_v36, %v6833_v37  ;;  %v6840_v51 = vrot.slane %v6839_v6, 1  ;;  %v6848_v29 = vmax.f32 %v6846_v42, %v6847_v24  ;;  %v6854_v15 = vrot.slane %v6853_v0, 1 }
 0x570   : > { %v7033_v13 = vsel %vm545_vm12, %v6827_v18, -inf  ;;  %v6617_v28 = vmax.f32 %v6609_v31, 0.0  ;;  %v6595_v19 = vmul.f32 %v13550_v22, %v13608_v57  ;;  %v10147_v2 = vadd.f32 %v13610_v16, %v13601_v47 }
 0x571   : > { %v6841_v8 = vmax.f32 %v6839_v6, %v6840_v51  ;;  %v6855_v53 = vmax.f32 %v6853_v0, %v6854_v15  ;;  %v7025_v43 = vsel %vm545_vm12, %v6834_v25, -inf  ;;  %v7031_v4 = vsel %vm545_vm12, %v6848_v29, -inf }
 0x572   : > { %v7026_v7 = vmax.f32 %v7024_v39, %v7025_v43  ;;  %v7032_v48 = vmax.f32 %v7030_v1, %v7031_v4  ;;  %v6665_v45 = vcombine.high %v6617_v28, %v6617_v28  ;;  %v6672_v12 = vrot.slane %v6617_v28, %v12413_v41 }
 0x573   : > { %v7028_v46 = vsel %vm545_vm12, %v6841_v8, -inf  ;;  %v7034_v23 = vsel %vm545_vm12, %v6855_v53, -inf  ;;  %v6610_v57 = vadd.f32 %v13565_v55, %v6595_v19  ;;  %v6506_v26 = vadd.f32 %v10147_v2, %v13476_v32 }
 0x574   : > { %v7029_v47 = vmax.f32 %v7027_v59, %v7028_v46  ;;  %v7035_v16 = vmax.f32 %v7033_v13, %v7034_v23  ;;  %v6679_v11 = vrot.slane %v6665_v45, %v12413_v41  ;;  %v6680_v27 = vcombine.high %v6672_v12, %v6672_v12 }
 0x575   : > { %v6856_v62 = vsel %vm6799_vm15, %v6672_v12, -inf  ;;  %v6618_v34 = vmax.f32 %v6610_v57, 0.0  ;;  %v6571_v30 = vadd.f32 %v13537_v14, %v6506_v26  ;;  %v10150_v21 = vadd.f32 %v13617_v50, %v13615_v40 }
 0x576   : > { %v7088_v20 = vsel %vm5279_vm4, %v7029_v47, %v7026_v7  ;;  %v6681_v52 = vcombine.high %v6679_v11, %v6679_v11  ;;  %v6857_v58 = vrot.slane %v6856_v62, 4  ;;  %v6863_v36 = vsel %vm6799_vm15, %v6680_v27, -inf }
 0x577   : > { %v7089_v32 = vsel %vm5281_vm5, %v7032_v48, %v7088_v20  ;;  %v6864_v17 = vrot.slane %v6863_v36, 4  ;;  %v6870_v42 = vsel %vm6799_vm15, %v6679_v11, -inf  ;;  %v6682_v5 = vcombine.high %v6618_v34, %v6618_v34 }
 0x578   : > { %v7090_v44 = vsel %vm5283_vm6, %v7035_v16, %v7089_v32  ;;  %v6858_v61 = vmax.f32 %v6856_v62, %v6857_v58  ;;  %v6871_v9 = vrot.slane %v6870_v42, 4  ;;  %v6877_v14 = vsel %vm6799_vm15, %v6681_v52, -inf }
 0x579   : > { %7106 = vst.msk [vmem:[#allocation4 + $0x18] sm:$0xf] %vm7105_vm14, %v7090_v44  ;;  %v6865_v40 = vmax.f32 %v6863_v36, %v6864_v17  ;;  %v6878_v50 = vrot.slane %v6877_v14, 4  ;;  %v6689_v39 = vrot.slane %v6618_v34, %v12413_v41  ;;  %v6696_v37 = vrot.slane %v6682_v5, %v12413_v41 }
 0x57a   : > { %v6859_v6 = vrot.slane %v6858_v61, 2  ;;  %v6872_v24 = vmax.f32 %v6870_v42, %v6871_v9  ;;  %v6596_v0 = vmul.f32 %v13550_v22, %v6571_v30  ;;  %v6509_v18 = vadd.f32 %v10150_v21, %v13487_v54 }
 0x57b   : > { %v6866_v59 = vrot.slane %v6865_v40, 2  ;;  %v6879_v1 = vmax.f32 %v6877_v14, %v6878_v50  ;;  %v6697_v31 = vcombine.high %v6689_v39, %v6689_v39  ;;  %v6698_v25 = vcombine.high %v6696_v37, %v6696_v37 }
 0x57c   : > { %v6860_v51 = vmax.f32 %v6858_v61, %v6859_v6  ;;  %v6873_v29 = vrot.slane %v6872_v24, 2  ;;  %v6884_v15 = vsel %vm6799_vm15, %v6689_v39, -inf  ;;  %v6898_v13 = vsel %vm6799_vm15, %v6696_v37, -inf }
 0x57d   : > { %v6867_v28 = vmax.f32 %v6865_v40, %v6866_v59  ;;  %v6880_v19 = vrot.slane %v6879_v1, 2  ;;  %v6885_v2 = vrot.slane %v6884_v15, 4  ;;  %v6891_v8 = vsel %vm6799_vm15, %v6697_v31, -inf }
 0x57e   : > { %v6861_v53 = vrot.slane %v6860_v51, 1  ;;  %v6874_v43 = vmax.f32 %v6872_v24, %v6873_v29  ;;  %v6892_v4 = vrot.slane %v6891_v8, 4  ;;  %v6899_v7 = vrot.slane %v6898_v13, 4 }
 0x57f   : > { %v6868_v54 = vrot.slane %v6867_v28, 1  ;;  %v6881_v48 = vmax.f32 %v6879_v1, %v6880_v19  ;;  %v6886_v45 = vmax.f32 %v6884_v15, %v6885_v2  ;;  %v6905_v12 = vsel %vm6799_vm15, %v6698_v25, -inf }
 0x580   : > { %v6862_v46 = vmax.f32 %v6860_v51, %v6861_v53  ;;  %v6875_v23 = vrot.slane %v6874_v43, 1  ;;  %v6893_v57 = vmax.f32 %v6891_v8, %v6892_v4  ;;  %v6900_v26 = vmax.f32 %v6898_v13, %v6899_v7  ;;  %v7131_v47 = vld [vmem:[#allocation4 + $0x17] sm:$0xf] }
 0x581   : > { %v7139_v16 = vld [vmem:[#allocation4 + $0x18] sm:$0xf]  ;;  %v6869_v11 = vmax.f32 %v6867_v28, %v6868_v54  ;;  %v6882_v27 = vrot.slane %v6881_v48, 1  ;;  %v6887_v62 = vrot.slane %v6886_v45, 2  ;;  %v6906_v34 = vrot.slane %v6905_v12, 4 }
 0x582   : > { %7135 = vst.msk [vmem:[#allocation8 + $0x24] sm:$0xf] %vm7105_vm14, %v7131_v47  ;;  %7143 = vst.msk [vmem:[#allocation8 + $0x28] sm:$0xf] %vm7105_vm14, %v7139_v16  ;;  %v7147_v30 = vld [vmem:[#allocation4 + $0x19] sm:$0xf]  ;;  %v6876_v21 = vmax.f32 %v6874_v43, %v6875_v23  ;;  %v6611_v50 = vadd.f32 %v13565_v55, %v6596_v0  ;;  %v6574_v24 = vadd.f32 %v13545_v3, %v6509_v18 }
 0x583   : > { %v7036_v20 = vsel %vm545_vm12, %v6862_v46, -inf  ;;  %v6894_v52 = vrot.slane %v6893_v57, 2  ;;  %v6901_v58 = vrot.slane %v6900_v26, 2  ;;  %7151 = vst.msk [vmem:[#allocation8 + $0x2c] sm:$0xf] %vm7105_vm14, %v7147_v30  ;;  %v6883_v32 = vmax.f32 %v6881_v48, %v6882_v27 }
 0x584   : > { %v7154_v36 = vld [vmem:[#allocation4 + $0x17] sm:$0xf]  ;;  %v7039_v17 = vsel %vm545_vm12, %v6869_v11, -inf  ;;  %v6888_v42 = vmax.f32 %v6886_v45, %v6887_v62  ;;  %v6907_v5 = vmax.f32 %v6905_v12, %v6906_v34  ;;  %v7042_v9 = vsel %vm545_vm12, %v6876_v21, -inf }
 0x585   : > { %7158 = vst.msk [vmem:[#allocation8 + $0xc] sm:$0xf] %vm7105_vm14, %v7154_v36  ;;  %v7162_v44 = vld [vmem:[#allocation4 + $0x18] sm:$0xf]  ;;  %v6895_v14 = vmax.f32 %v6893_v57, %v6894_v52  ;;  %v6902_v40 = vmax.f32 %v6900_v26, %v6901_v58  ;;  %v7045_v39 = vsel %vm545_vm12, %v6883_v32, -inf  ;;  %v6619_v31 = vmax.f32 %v6611_v50, 0.0 }
 0x586   : > { %v7170_v61 = vld [vmem:[#allocation4 + $0x19] sm:$0xf]  ;;  %7166 = vst.msk [vmem:[#allocation8 + $0x10] sm:$0xf] %vm7105_vm14, %v7162_v44  ;;  %v6889_v37 = vrot.slane %v6888_v42, 1  ;;  %v6908_v6 = vrot.slane %v6907_v5, 2  ;;  %v10153_v25 = vadd.f32 %v13626_v56, %v13624_v38  ;;  %v6597_v0 = vmul.f32 %v13550_v22, %v6574_v24 }
 0x587   : > { %7174 = vst.msk [vmem:[#allocation8 + $0x14] sm:$0xf] %vm7105_vm14, %v7170_v61  ;;  %v6896_v59 = vrot.slane %v6895_v14, 1  ;;  %v6903_v1 = vrot.slane %v6902_v40, 1  ;;  %v13686_v15 = vadd.f32 %v13630_v49, %v13628_v33  ;;  %v6699_v19 = vcombine.high %v6619_v31, %v6619_v31 }
 0x588   : > { %v6890_v51 = vmax.f32 %v6888_v42, %v6889_v37  ;;  %v6909_v29 = vmax.f32 %v6907_v5, %v6908_v6  ;;  %v6706_v2 = vrot.slane %v6619_v31, %v12413_v41  ;;  %v6612_v8 = vadd.f32 %v13565_v55, %v6597_v0 }
 0x589   : > { %v6897_v13 = vmax.f32 %v6895_v14, %v6896_v59  ;;  %v6904_v28 = vmax.f32 %v6902_v40, %v6903_v1  ;;  %v13692_v38 = vadd.f32 %v10153_v25, %v13512_v35  ;;  %v6713_v33 = vrot.slane %v6699_v19, %v12413_v41 }
 0x58a   : > { %v6910_v3 = vrot.slane %v6909_v29, 1  ;;  %v7037_v18 = vsel %vm545_vm12, %v6890_v51, -inf  ;;  %v6714_v54 = vcombine.high %v6706_v2, %v6706_v2  ;;  %v6912_v45 = vsel %vm6799_vm15, %v6706_v2, -inf }
 0x58b   : > { %v7038_v56 = vmax.f32 %v7036_v20, %v7037_v18  ;;  %v7040_v53 = vsel %vm545_vm12, %v6897_v13, -inf  ;;  %v7043_v43 = vsel %vm545_vm12, %v6904_v28, -inf  ;;  %v6715_v48 = vcombine.high %v6713_v33, %v6713_v33 }
 0x58c   : > { %v6911_v49 = vmax.f32 %v6909_v29, %v6910_v3  ;;  %v7041_v4 = vmax.f32 %v7039_v17, %v7040_v53  ;;  %v7044_v7 = vmax.f32 %v7042_v9, %v7043_v43  ;;  %v6926_v12 = vsel %vm6799_vm15, %v6713_v33, -inf }
 0x58d   : > { %v6620_v46 = vmax.f32 %v6612_v8, 0.0  ;;  %v6913_v57 = vrot.slane %v6912_v45, 4  ;;  %v6919_v26 = vsel %vm6799_vm15, %v6714_v54, -inf  ;;  %v6927_v27 = vrot.slane %v6926_v12, 4 }
 0x58e   : > { %v7046_v35 = vsel %vm545_vm12, %v6911_v49, -inf  ;;  %v7091_v23 = vsel %vm5279_vm4, %v7041_v4, %v7038_v56  ;;  %v6920_v11 = vrot.slane %v6919_v26, 4  ;;  %v6933_v34 = vsel %vm6799_vm15, %v6715_v48, -inf }
 0x58f   : > { %v7047_v47 = vmax.f32 %v7045_v39, %v7046_v35  ;;  %v7092_v16 = vsel %vm5281_vm5, %v7044_v7, %v7091_v23  ;;  %v6914_v62 = vmax.f32 %v6912_v45, %v6913_v57  ;;  %v6716_v30 = vcombine.high %v6620_v46, %v6620_v46 }
 0x590   : > { %v6723_v21 = vrot.slane %v6620_v46, %v12413_v41  ;;  %v6921_v52 = vmax.f32 %v6919_v26, %v6920_v11  ;;  %v6928_v58 = vmax.f32 %v6926_v12, %v6927_v27  ;;  %v6934_v36 = vrot.slane %v6933_v34, 4 }
 0x591   : > { %v7093_v20 = vsel %vm5283_vm6, %v7047_v47, %v7092_v16  ;;  %v6915_v32 = vrot.slane %v6914_v62, 2  ;;  %v6730_v17 = vrot.slane %v6716_v30, %v12413_v41  ;;  %v6579_v23 = vadd.f32 %v13529_v63, %v13692_v38 }
 0x592   : > { %7107 = vst.msk [vmem:[#allocation4 + $0x28] sm:$0xf] %vm7105_vm14, %v7093_v20  ;;  %v6731_v42 = vcombine.high %v6723_v21, %v6723_v21  ;;  %v6940_v5 = vsel %vm6799_vm15, %v6723_v21, -inf  ;;  %v6922_v44 = vrot.slane %v6921_v52, 2  ;;  %v6929_v61 = vrot.slane %v6928_v58, 2 }
 0x593   : > { %v6935_v9 = vmax.f32 %v6933_v34, %v6934_v36  ;;  %v6941_v14 = vrot.slane %v6940_v5, 4  ;;  %v6916_v40 = vmax.f32 %v6914_v62, %v6915_v32  ;;  %v6732_v50 = vcombine.high %v6730_v17, %v6730_v17 }
 0x594   : > { %v6947_v39 = vsel %vm6799_vm15, %v6731_v42, -inf  ;;  %v6954_v37 = vsel %vm6799_vm15, %v6730_v17, -inf  ;;  %v6923_v6 = vmax.f32 %v6921_v52, %v6922_v44  ;;  %v6930_v24 = vmax.f32 %v6928_v58, %v6929_v61 }
 0x595   : > { %v6936_v59 = vrot.slane %v6935_v9, 2  ;;  %v6942_v1 = vmax.f32 %v6940_v5, %v6941_v14  ;;  %v6948_v31 = vrot.slane %v6947_v39, 4  ;;  %v6955_v25 = vrot.slane %v6954_v37, 4 }
 0x596   : > { %v6961_v51 = vsel %vm6799_vm15, %v6732_v50, -inf  ;;  %v6917_v29 = vrot.slane %v6916_v40, 1  ;;  %v6924_v3 = vrot.slane %v6923_v6, 1  ;;  %v6931_v18 = vrot.slane %v6930_v24, 1 }
 0x597   : > { %v6937_v0 = vmax.f32 %v6935_v9, %v6936_v59  ;;  %v6943_v13 = vrot.slane %v6942_v1, 2  ;;  %v6949_v28 = vmax.f32 %v6947_v39, %v6948_v31  ;;  %v6956_v19 = vmax.f32 %v6954_v37, %v6955_v25 }
 0x598   : > { %v6962_v2 = vrot.slane %v6961_v51, 4  ;;  %v6918_v7 = vmax.f32 %v6916_v40, %v6917_v29  ;;  %v6925_v47 = vmax.f32 %v6923_v6, %v6924_v3  ;;  %v6932_v16 = vmax.f32 %v6930_v24, %v6931_v18 }
 0x599   : > { %v6944_v8 = vmax.f32 %v6942_v1, %v6943_v13  ;;  %v7132_v56 = vld [vmem:[#allocation4 + $0x27] sm:$0xf]  ;;  %v6950_v43 = vrot.slane %v6949_v28, 2  ;;  %v6957_v33 = vrot.slane %v6956_v19, 2  ;;  %v6938_v54 = vrot.slane %v6937_v0, 1 }
 0x59a   : > { %v7140_v53 = vld [vmem:[#allocation4 + $0x28] sm:$0xf]  ;;  %v6963_v49 = vmax.f32 %v6961_v51, %v6962_v2  ;;  %7136 = vst.msk [vmem:[#allocation8 + $0x48] sm:$0xf] %vm7105_vm14, %v7132_v56  ;;  %v6517_v27 = vadd.f32 %v13686_v15, %v13524_v10  ;;  %v6598_v63 = vmul.f32 %v13550_v22, %v6579_v23  ;;  %v7048_v58 = vsel %vm545_vm12, %v6918_v7, -inf }
 0x59b   : > { %7144 = vst.msk [vmem:[#allocation8 + $0x4c] sm:$0xf] %vm7105_vm14, %v7140_v53  ;;  %v7148_v4 = vld [vmem:[#allocation4 + $0x29] sm:$0xf]  ;;  %v6945_v48 = vrot.slane %v6944_v8, 1  ;;  %v6951_v12 = vmax.f32 %v6949_v28, %v6950_v43  ;;  %v6958_v46 = vmax.f32 %v6956_v19, %v6957_v33  ;;  %v6939_v52 = vmax.f32 %v6937_v0, %v6938_v54 }
 0x59c   : > { %7152 = vst.msk [vmem:[#allocation8 + $0x50] sm:$0xf] %vm7105_vm14, %v7148_v4  ;;  %v7155_v45 = vld [vmem:[#allocation4 + $0x27] sm:$0xf]  ;;  %v6964_v35 = vrot.slane %v6963_v49, 2  ;;  %v6582_v15 = vadd.f32 %v13542_v60, %v6517_v27  ;;  %v7051_v5 = vsel %vm545_vm12, %v6925_v47, -inf  ;;  %v6613_v44 = vadd.f32 %v13565_v55, %v6598_v63 }
 0x59d   : > { %7159 = vst.msk [vmem:[#allocation8 + $0x30] sm:$0xf] %vm7105_vm14, %v7155_v45  ;;  %v7163_v57 = vld [vmem:[#allocation4 + $0x28] sm:$0xf]  ;;  %v6946_v11 = vmax.f32 %v6944_v8, %v6945_v48  ;;  %v6952_v30 = vrot.slane %v6951_v12, 1  ;;  %v6959_v21 = vrot.slane %v6958_v46, 1 }
 0x59e   : > { %v7171_v26 = vld [vmem:[#allocation4 + $0x29] sm:$0xf]  ;;  %7167 = vst.msk [vmem:[#allocation8 + $0x34] sm:$0xf] %vm7105_vm14, %v7163_v57  ;;  %v6965_v20 = vmax.f32 %v6963_v49, %v6964_v35  ;;  %v6599_v61 = vmul.f32 %v13550_v22, %v6582_v15  ;;  %v7054_v9 = vsel %vm545_vm12, %v6932_v16, -inf  ;;  %v6621_v37 = vmax.f32 %v6613_v44, 0.0 }
 0x59f   : > { %7175 = vst.msk [vmem:[#allocation8 + $0x38] sm:$0xf] %vm7105_vm14, %v7171_v26  ;;  %v7179_v62 = vld [vmem:[#allocation4 + $0x27] sm:$0xf]  ;;  %v7049_v10 = vsel %vm545_vm12, %v6946_v11, -inf  ;;  %v6953_v36 = vmax.f32 %v6951_v12, %v6952_v30  ;;  %v6960_v32 = vmax.f32 %v6958_v46, %v6959_v21  ;;  %v7057_v24 = vsel %vm545_vm12, %v6939_v52, -inf }
 0x5a0   : > { %v7187_v34 = vld [vmem:[#allocation4 + $0x28] sm:$0xf]  ;;  %7183 = vst.msk [vmem:[#allocation8 + $0x18] sm:$0xf] %vm7105_vm14, %v7179_v62  ;;  %v6966_v17 = vrot.slane %v6965_v20, 1  ;;  %v7050_v42 = vmax.f32 %v7048_v58, %v7049_v10  ;;  %v6614_v6 = vadd.f32 %v13565_v55, %v6599_v61  ;;  %v6733_v22 = vcombine.high %v6621_v37, %v6621_v37 }
 0x5a1   : > { %7191 = vst.msk [vmem:[#allocation8 + $0x1c] sm:$0xf] %vm7105_vm14, %v7187_v34  ;;  %v7195_v38 = vld [vmem:[#allocation4 + $0x29] sm:$0xf]  ;;  %v7052_v40 = vsel %vm545_vm12, %v6953_v36, -inf  ;;  %v7055_v50 = vsel %vm545_vm12, %v6960_v32, -inf  ;;  %v6740_v25 = vrot.slane %v6621_v37, %v12413_v41 }
 0x5a2   : > { %7199 = vst.msk [vmem:[#allocation8 + $0x20] sm:$0xf] %vm7105_vm14, %v7195_v38  ;;  %v6967_v14 = vmax.f32 %v6965_v20, %v6966_v17  ;;  %v7053_v60 = vmax.f32 %v7051_v5, %v7052_v40  ;;  %v7056_v39 = vmax.f32 %v7054_v9, %v7055_v50  ;;  %v6622_v29 = vmax.f32 %v6614_v6, 0.0 }
 0x5a3   : > { %v6747_v13 = vrot.slane %v6733_v22, %v12413_v41  ;;  %v6748_v28 = vcombine.high %v6740_v25, %v6740_v25  ;;  %v6968_v55 = vsel %vm6799_vm15, %v6740_v25, -inf }
 0x5a4   : > { %v7058_v59 = vsel %vm545_vm12, %v6967_v14, -inf  ;;  %v7094_v31 = vsel %vm5279_vm4, %v7053_v60, %v7050_v42  ;;  %v6969_v19 = vrot.slane %v6968_v55, 4  ;;  %v6750_v2 = vcombine.high %v6622_v29, %v6622_v29 }
 0x5a5   : > { %v7059_v1 = vmax.f32 %v7057_v24, %v7058_v59  ;;  %v7095_v51 = vsel %vm5281_vm5, %v7056_v39, %v7094_v31  ;;  %v6757_v3 = vrot.slane %v6622_v29, %v12413_v41  ;;  %v6749_v18 = vcombine.high %v6747_v13, %v6747_v13 }
 0x5a6   : > { %v6975_v8 = vsel %vm6799_vm15, %v6748_v28, -inf  ;;  %v6982_v56 = vsel %vm6799_vm15, %v6747_v13, -inf  ;;  %v6970_v53 = vmax.f32 %v6968_v55, %v6969_v19  ;;  %v6764_v49 = vrot.slane %v6750_v2, %v12413_v41 }
 0x5a7   : > { %v7096_v0 = vsel %vm5283_vm6, %v7059_v1, %v7095_v51  ;;  %v6976_v43 = vrot.slane %v6975_v8, 4  ;;  %v6983_v33 = vrot.slane %v6982_v56, 4  ;;  %v6989_v4 = vsel %vm6799_vm15, %v6749_v18, -inf  ;;  %v10691_v18 = vld [vmem:[#allocation8 + $0x4] ss:$36 sps:$4 sm:$0xff]  }
 0x5a8   : > { %7108 = vst.msk [vmem:[#allocation4 + $0x38] sm:$0xf] %vm7105_vm14, %v7096_v0  ;;  %v6765_v7 = vcombine.high %v6757_v3, %v6757_v3  ;;  %v6996_v54 = vsel %vm6799_vm15, %v6757_v3, -inf  ;;  %v6971_v48 = vrot.slane %v6970_v53, 2  ;;  %v6990_v46 = vrot.slane %v6989_v4, 4 }
 0x5a9   : > { %v6977_v45 = vmax.f32 %v6975_v8, %v6976_v43  ;;  %v6984_v12 = vmax.f32 %v6982_v56, %v6983_v33  ;;  %v6766_v35 = vcombine.high %v6764_v49, %v6764_v49  ;;  %v6997_v23 = vrot.slane %v6996_v54, 4  ;;  %v10689_v3 = vld [vmem:[#allocation8] ss:$36 sps:$4 sm:$0xff]  }
 0x5aa   : > { %v7003_v57 = vsel %vm6799_vm15, %v6765_v7, -inf  ;;  %v7010_v26 = vsel %vm6799_vm15, %v6764_v49, -inf  ;;  %v6972_v47 = vmax.f32 %v6970_v53, %v6971_v48  ;;  %v6991_v27 = vmax.f32 %v6989_v4, %v6990_v46  ;;  %v10698_v46 = vld [vmem:[%s14271_s7 + $0x100] sm:$0xff]  }
 0x5ab   : > { %v6978_v16 = vrot.slane %v6977_v45, 2  ;;  %v6985_v11 = vrot.slane %v6984_v12, 2  ;;  %v6998_v62 = vmax.f32 %v6996_v54, %v6997_v23  ;;  %v7004_v34 = vrot.slane %v7003_v57, 4 }
 0x5ac   : > { %v7011_v30 = vrot.slane %v7010_v26, 4  ;;  %v7017_v21 = vsel %vm6799_vm15, %v6766_v35, -inf  ;;  %v6973_v63 = vrot.slane %v6972_v47, 1  ;;  %v6992_v58 = vrot.slane %v6991_v27, 2 }
 0x5ad   : > { %v6979_v38 = vmax.f32 %v6977_v45, %v6978_v16  ;;  %v6986_v52 = vmax.f32 %v6984_v12, %v6985_v11  ;;  %v6999_v36 = vrot.slane %v6998_v62, 2  ;;  %v7005_v32 = vmax.f32 %v7003_v57, %v7004_v34 }
 0x5ae   : > { %v7012_v17 = vmax.f32 %v7010_v26, %v7011_v30  ;;  %v7018_v42 = vrot.slane %v7017_v21, 4  ;;  %v6993_v14 = vmax.f32 %v6991_v27, %v6992_v58  ;;  %v6974_v1 = vmax.f32 %v6972_v47, %v6973_v63  ;;  %v10700_v47 = vld [vmem:[%s14271_s7 + $0x148] sm:$0xff]   ;;  %v10709_v63 = vld [vmem:[%s14271_s7 + $0x150] sm:$0xff]   ;;  %v10725_v58 = vld [vmem:[%s14271_s7 + $0x158] sm:$0xff]  }
 0x5af   : > { %v7133_v20 = vld [vmem:[#allocation4 + $0x37] sm:$0xf]  ;;  %v6980_v61 = vrot.slane %v6979_v38, 1  ;;  %v6987_v9 = vrot.slane %v6986_v52, 1  ;;  %v7000_v60 = vmax.f32 %v6998_v62, %v6999_v36  ;;  %v7006_v39 = vrot.slane %v7005_v32, 2 }
 0x5b0   : > { %7137 = vst.msk [vmem:[#allocation8 + $0x6c] sm:$0xf] %vm7105_vm14, %v7133_v20  ;;  %v7141_v10 = vld [vmem:[#allocation4 + $0x38] sm:$0xf]  ;;  %v7013_v37 = vrot.slane %v7012_v17, 2  ;;  %v7019_v6 = vmax.f32 %v7017_v21, %v7018_v42  ;;  %v6994_v31 = vrot.slane %v6993_v14, 1 }
 0x5b1   : > { %v7149_v15 = vld [vmem:[#allocation4 + $0x39] sm:$0xf]  ;;  %7145 = vst.msk [vmem:[#allocation8 + $0x70] sm:$0xf] %vm7105_vm14, %v7141_v10  ;;  %v7001_v22 = vrot.slane %v7000_v60, 1  ;;  %v7007_v25 = vmax.f32 %v7005_v32, %v7006_v39  ;;  %v6981_v0 = vmax.f32 %v6979_v38, %v6980_v61  ;;  %v6988_v13 = vmax.f32 %v6986_v52, %v6987_v9  ;;  %v10717_v52 = vld [vmem:[%s14271_s7 + $0x110] sm:$0xff]  }
 0x5b2   : > { %7153 = vst.msk [vmem:[#allocation8 + $0x74] sm:$0xf] %vm7105_vm14, %v7149_v15  ;;  %v7156_v5 = vld [vmem:[#allocation4 + $0x37] sm:$0xf]  ;;  %v7014_v51 = vmax.f32 %v7012_v17, %v7013_v37  ;;  %v7020_v29 = vrot.slane %v7019_v6, 2  ;;  %v6995_v8 = vmax.f32 %v6993_v14, %v6994_v31  ;;  %v7060_v56 = vsel %vm545_vm12, %v6974_v1, -inf }
 0x5b3   : > { %v7164_v44 = vld [vmem:[#allocation4 + $0x38] sm:$0xf]  ;;  %7160 = vst.msk [vmem:[#allocation8 + $0x54] sm:$0xf] %vm7105_vm14, %v7156_v5  ;;  %v7002_v28 = vmax.f32 %v7000_v60, %v7001_v22  ;;  %v7008_v55 = vrot.slane %v7007_v25, 1  ;;  %v7063_v54 = vsel %vm545_vm12, %v6981_v0, -inf }
 0x5b4   : > { %7168 = vst.msk [vmem:[#allocation8 + $0x58] sm:$0xf] %vm7105_vm14, %v7164_v44  ;;  %v7172_v40 = vld [vmem:[#allocation4 + $0x39] sm:$0xf]  ;;  %v7015_v19 = vrot.slane %v7014_v51, 1  ;;  %v7021_v2 = vmax.f32 %v7019_v6, %v7020_v29  ;;  %v7066_v35 = vsel %vm545_vm12, %v6988_v13, -inf }
 0x5b5   : > { %v7180_v50 = vld [vmem:[#allocation4 + $0x37] sm:$0xf]  ;;  %7176 = vst.msk [vmem:[#allocation8 + $0x5c] sm:$0xf] %vm7105_vm14, %v7172_v40  ;;  %v7009_v33 = vmax.f32 %v7007_v25, %v7008_v55  ;;  %v7061_v7 = vsel %vm545_vm12, %v7002_v28, -inf  ;;  %v7069_v27 = vsel %vm545_vm12, %v6995_v8, -inf }
 0x5b6   : > { %7184 = vst.msk [vmem:[#allocation8 + $0x3c] sm:$0xf] %vm7105_vm14, %v7180_v50  ;;  %v7188_v24 = vld [vmem:[#allocation4 + $0x38] sm:$0xf]  ;;  %v7016_v49 = vmax.f32 %v7014_v51, %v7015_v19  ;;  %v7022_v4 = vrot.slane %v7021_v2, 1  ;;  %v7062_v48 = vmax.f32 %v7060_v56, %v7061_v7  ;;  %v10727_v10 = vld [vmem:[%s14271_s7 + $0x118] sm:$0xff]  }
 0x5b7   : > { %v7196_v59 = vld [vmem:[#allocation4 + $0x39] sm:$0xf]  ;;  %7192 = vst.msk [vmem:[#allocation8 + $0x40] sm:$0xf] %vm7105_vm14, %v7188_v24  ;;  %v10692_v53 = vld [vmem:[#allocation8 + $0x48] ss:$36 sps:$4 sm:$0xff]  }
 0x5b8   : > { %7200 = vst.msk [vmem:[#allocation8 + $0x44] sm:$0xf] %vm7105_vm14, %v7196_v59  ;;  %v10694_v43 = vld [vmem:[#allocation8 + $0x4c] ss:$36 sps:$4 sm:$0xff]   ;;  %v7279_v45 = vpack.c.bf16 %v10692_v53, %v10689_v3  ;;  %v7023_v23 = vmax.f32 %v7021_v2, %v7022_v4  ;;  %v7064_v57 = vsel %vm545_vm12, %v7009_v33, -inf  ;;  %v7067_v26 = vsel %vm545_vm12, %v7016_v49, -inf }
 0x5b9   : > { %v7280_v12 = vpack.c.bf16 %v10694_v43, %v10691_v18  ;;  %v7065_v16 = vmax.f32 %v7063_v54, %v7064_v57  ;;  %v7068_v11 = vmax.f32 %v7066_v35, %v7067_v26  ;;  %v10702_v21 = vld [vmem:[%s14271_s7 + $0x108] sm:$0xff]   ;;  %v10729_v15 = vld [vmem:[%s14271_s7 + $0x160] sm:$0xff]   ;;  %v10703_v40 = vld [vmem:[#allocation8 + $0x8] ss:$36 sps:$4 sm:$0xff]  }
 0x5ba   : > { %v7070_v62 = vsel %vm545_vm12, %v7023_v23, -inf  ;;  %v10731_v61 = vld [vmem:[%s14271_s7 + $0x120] sm:$0xff]   ;;  %v10733_v9 = vld [vmem:[%s14271_s7 + $0x168] sm:$0xff]   ;;  %v10737_v60 = vld [vmem:[%s14271_s7 + $0x170] sm:$0xff]  }
 0x5bb   : > { %7896 = vmatprep.mubr.bf16.mxu1 %v7280_v12  ;;  %v7071_v34 = vmax.f32 %v7069_v27, %v7070_v62  ;;  %v7097_v30 = vsel %vm5279_vm4, %v7065_v16, %v7062_v48  ;;  %v10735_v14 = vld [vmem:[%s14271_s7 + $0x128] sm:$0xff]   ;;  %v10705_v50 = vld [vmem:[#allocation8 + $0xc] ss:$36 sps:$4 sm:$0xff]   ;;  %v10739_v0 = vld [vmem:[%s14271_s7 + $0x130] sm:$0xff]  }
 0x5bc   : > { %7897 = vmatmul.mubr.bf16.vlgmr.msra.gmra.mrb[176].mxu1 %v7279_v45  ;;  %v7098_v20 = vsel %vm5281_vm5, %v7068_v11, %v7097_v30  ;;  %v10706_v39 = vld [vmem:[#allocation8 + $0x50] ss:$36 sps:$4 sm:$0xff]   ;;  %v10726_v29 = vld [vmem:[%s14271_s7 + $0x1c8] sm:$0xff]   ;;  %v10741_v28 = vld [vmem:[%s14271_s7 + $0x178] sm:$0xff]  }
 0x5bd   : > { %10214 = vmatpush3.bf16.msra.mxu1 %v10698_v46  ;;  %v7099_v38 = vsel %vm5283_vm6, %v7071_v34, %v7098_v20  ;;  %v10718_v6 = vld [vmem:[%s14271_s7 + $0x180] sm:$0xff]   ;;  %v7281_v1 = vpack.c.bf16 %v10706_v39, %v10703_v40  ;;  %v10728_v55 = vld [vmem:[%s14271_s7 + $0x188] sm:$0xff]   ;;  %v10730_v19 = vld [vmem:[%s14271_s7 + $0x1d0] sm:$0xff]  }
 0x5be   : > { %10215 = vmatprep.subr.bf16.mxu1 %v10700_v47  ;;  %7109 = vst.msk [vmem:[#allocation4 + $0x48] sm:$0xf] %vm7105_vm14, %v7099_v38  ;;  %v10712_v24 = vld [vmem:[#allocation8 + $0x14] ss:$36 sps:$4 sm:$0xff]   ;;  %v10721_v22 = vld [vmem:[#allocation8 + $0x1c] ss:$36 sps:$4 sm:$0xff]  }
 0x5bf   : > { %v10743_v2 = vld [vmem:[%s14271_s7 + $0x138] sm:$0xff]   ;;  %v10710_v18 = vld [vmem:[#allocation8 + $0x10] ss:$36 sps:$4 sm:$0xff]   ;;  %v10732_v8 = vld [vmem:[%s14271_s7 + $0x190] sm:$0xff]  }
 0x5c0   : > { %v10734_v56 = vld [vmem:[%s14271_s7 + $0x1d8] sm:$0xff]   ;;  %v10747_v53 = vld [vmem:[%s14271_s7 + $0x200] sm:$0xff]   ;;  %v10750_v7 = vld [vmem:[%s14271_s7 + $0x208] sm:$0xff]  }
 0x5c1   : > { %10216 = vmatpush3.bf16.msra.mxu1 %v10702_v21  ;;  %v13847_v33 = vld [vmem:[#allocation9] sm:$0xff]  ;;  %v10736_v49 = vld [vmem:[%s14271_s7 + $0x198] sm:$0xff]   ;;  %v10742_v48 = vld [vmem:[%s14271_s7 + $0x1e8] sm:$0xff]  }
 0x5c2   : > { %10217 = vmatprep.subr.bf16.mxu1 %v10709_v63  ;;  %v10738_v4 = vld [vmem:[%s14271_s7 + $0x1e0] sm:$0xff]   ;;  %v10751_v45 = vld [vmem:[%s14271_s7 + $0x210] sm:$0xff]   ;;  %v10744_v12 = vld [vmem:[%s14271_s7 + $0x1a8] sm:$0xff]   ;;  %562 = vst.msk [vmem:[#allocation5 + $0x8] sm:$0x7] %vm561_vm2, %v13847_v33 }
 0x5c3   : > { %v10740_v54 = vld [vmem:[%s14271_s7 + $0x1a0] sm:$0xff]   ;;  %v10745_v46 = vld [vmem:[%s14271_s7 + $0x1f0] sm:$0xff]   ;;  %v10752_v35 = vld [vmem:[%s14271_s7 + $0x218] sm:$0xff]   ;;  %564 = vst.msk [vmem:[#allocation5 + $0x18] sm:$0x7] %vm561_vm2, %v13847_v33 }
 0x5c4   : > { %v10746_v23 = vld [vmem:[%s14271_s7 + $0x1b0] sm:$0xff]   ;;  %v10748_v57 = vld [vmem:[%s14271_s7 + $0x1f8] sm:$0xff]   ;;  %v10753_v26 = vld [vmem:[%s14271_s7 + $0x220] sm:$0xff]   ;;  %568 = vst.msk [vmem:[#allocation5 + $0x38] sm:$0x7] %vm561_vm2, %v13847_v33 }
 0x5c5   : > { %10218 = vmatpush3.bf16.msra.mxu1 %v10717_v52  ;;  %v7157_v36 = vld [vmem:[#allocation4 + $0x47] sm:$0xf]  ;;  %v10754_v11 = vld [vmem:[%s14271_s7 + $0x228] sm:$0xff]   ;;  %560 = vst.msk [vmem:[#allocation5] sm:$0xff] %vm559_vm1, %v13847_v33  ;;  %563 = vst.msk [vmem:[#allocation5 + $0x10] sm:$0xff] %vm559_vm1, %v13847_v33 }
 0x5c6   : > { %10219 = vmatprep.subr.bf16.mxu1 %v10725_v58  ;;  %v7165_v32 = vld [vmem:[#allocation4 + $0x48] sm:$0xf]  ;;  %7161 = vst.msk [vmem:[#allocation8 + $0x78] sm:$0xf] %vm7105_vm14, %v7157_v36  ;;  %v10719_v27 = vld [vmem:[#allocation8 + $0x18] ss:$36 sps:$4 sm:$0xff]  }
 0x5c7   : > { %v7173_v17 = vld [vmem:[#allocation4 + $0x49] sm:$0xf]  ;;  %7169 = vst.msk [vmem:[#allocation8 + $0x7c] sm:$0xf] %vm7105_vm14, %v7165_v32  ;;  %v10755_v34 = vld [vmem:[%s14271_s7 + $0x230] sm:$0xff]   ;;  %v10759_v38 = vld [vmem:[%s14274_s10 + $0x40] sm:$0xff]  }
 0x5c8   : > { %7177 = vst.msk [vmem:[#allocation8 + $0x80] sm:$0xf] %vm7105_vm14, %v7173_v17  ;;  %v7181_v42 = vld [vmem:[#allocation4 + $0x47] sm:$0xf]  ;;  %v10760_v52 = vld [vmem:[%s14274_s10 + $0xc0] sm:$0xff]   ;;  %v10764_v36 = vld [vmem:[%s14274_s10 + $0xc8] sm:$0xff]  }
 0x5c9   : > { %v7189_v5 = vld [vmem:[#allocation4 + $0x48] sm:$0xf]  ;;  %7185 = vst.msk [vmem:[#allocation8 + $0x60] sm:$0xf] %vm7105_vm14, %v7181_v42  ;;  %10220 = vmatpush3.bf16.msra.mxu1 %v10727_v10  ;;  %v10757_v20 = vld [vmem:[#allocation8 + $0x20] ss:$36 sps:$4 sm:$0xff]  }
 0x5ca   : > { %v7197_v44 = vld [vmem:[#allocation4 + $0x49] sm:$0xf]  ;;  %7193 = vst.msk [vmem:[#allocation8 + $0x64] sm:$0xf] %vm7105_vm14, %v7189_v5  ;;  %10221 = vmatprep.subr.bf16.mxu1 %v10729_v15  ;;  %v10761_v58 = vld [vmem:[%s14274_s10] sm:$0xff]   ;;  %v10763_v15 = vld [vmem:[%s14274_s10 + $0x48] sm:$0xff]  }
 0x5cb   : > { %7201 = vst.msk [vmem:[#allocation8 + $0x68] sm:$0xf] %vm7105_vm14, %v7197_v44  ;;  %v10749_v47 = vld [vmem:[%s14271_s7 + $0x1b8] sm:$0xff]   ;;  %v10762_v10 = vld [vmem:[%s14274_s10 + $0x80] sm:$0xff]   ;;  %v10765_v32 = vld [vmem:[%s14274_s10 + $0x8] sm:$0xff]  }
 0x5cc   : > { %v10756_v30 = vld [vmem:[%s14271_s7 + $0x238] sm:$0xff]   ;;  %565 = vst.msk [vmem:[#allocation5 + $0x20] sm:$0xff] %vm559_vm1, %v13847_v33  ;;  %567 = vst.msk [vmem:[#allocation5 + $0x30] sm:$0xff] %vm559_vm1, %v13847_v33  ;;  %v10766_v17 = vld [vmem:[%s14274_s10 + $0x88] sm:$0xff]  }
 0x5cd   : > { %10222 = vmatpush3.bf16.msra.mxu1 %v10731_v61  ;;  %v10708_v37 = vld [vmem:[#allocation8 + $0x54] ss:$36 sps:$4 sm:$0xff]   ;;  %566 = vst.msk [vmem:[#allocation5 + $0x28] sm:$0x7] %vm561_vm2, %v13847_v33  ;;  %v10767_v42 = vld [vmem:[%s14274_s10 + $0x50] sm:$0xff]   ;;  %v10773_v40 = vld [vmem:[%s14274_s10 + $0x18] sm:$0xff]  }
 0x5ce   : > { %10223 = vmatprep.subr.bf16.mxu1 %v10733_v9  ;;  %v7282_v31 = vpack.c.bf16 %v10708_v37, %v10705_v50  ;;  %v10713_v3 = vld [vmem:[#allocation8 + $0x58] ss:$36 sps:$4 sm:$0xff]   ;;  %v10768_v5 = vld [vmem:[%s14274_s10 + $0xd0] sm:$0xff]   ;;  %v10771_v9 = vld [vmem:[%s14274_s10 + $0x58] sm:$0xff]  }
 0x5cf   : > { %v10715_v59 = vld [vmem:[#allocation8 + $0x5c] ss:$36 sps:$4 sm:$0xff]   ;;  %v7283_v43 = vpack.c.bf16 %v10713_v3, %v10710_v18  ;;  %v8219_v50 = vld [vmem:[#allocation5 + $0x7] sm:$0x3]  ;;  %v8227_v37 = vld [vmem:[#allocation5 + $0x9] sm:$0x3] }
 0x5d0   : > { %v7284_v51 = vpack.c.bf16 %v10715_v59, %v10712_v24  ;;  %7937 = vmatprep.mubr.bf16.mxu0 %v7282_v31  ;;  %v10722_v16 = vld [vmem:[#allocation8 + $0x60] ss:$36 sps:$4 sm:$0xff]   ;;  %8221 = vst.msk [vmem:[#allocation9] sm:$0x3] %vm8133_vm3, %v8219_v50  ;;  %v8223_v39 = vld [vmem:[#allocation5 + $0x8] sm:$0x3] }
 0x5d1   : > { %v10724_v25 = vld [vmem:[#allocation8 + $0x64] ss:$36 sps:$4 sm:$0xff]   ;;  %10224 = vmatpush3.bf16.msra.mxu1 %v10735_v14  ;;  %7938 = vmatmul.mubr.bf16.vlgmr.msra.gmra.mrb[184].mxu0 %v7281_v1  ;;  %v7285_v62 = vpack.c.bf16 %v10722_v16, %v10719_v27  ;;  %v10776_v24 = vld [vmem:[%s14274_s10 + $0xe0] sm:$0xff]   ;;  %8225 = vst.msk [vmem:[#allocation9 + $0x2] sm:$0x3] %vm8133_vm3, %v8223_v39  ;;  %v10779_v31 = vld [vmem:[%s14274_s10 + $0x68] sm:$0xff]  }
 0x5d2   : > { %10225 = vmatprep.subr.bf16.mxu1 %v10737_v60  ;;  %v7286_v13 = vpack.c.bf16 %v10724_v25, %v10721_v22  ;;  %7978 = vmatprep.mubr.bf16.mxu1 %v7284_v51  ;;  %v10758_v21 = vld [vmem:[#allocation8 + $0x68] ss:$36 sps:$4 sm:$0xff]   ;;  %v10769_v44 = vld [vmem:[%s14274_s10 + $0x10] sm:$0xff]   ;;  %8229 = vst.msk [vmem:[#allocation9 + $0x4] sm:$0x3] %vm8133_vm3, %v8227_v37  ;;  %v10777_v59 = vld [vmem:[%s14274_s10 + $0x20] sm:$0xff]  }
 0x5d3   : > { %10236 = vmatpush3.bf16.msra.mxu0 %v10718_v6  ;;  %v7287_v63 = vpack.c.bf16 %v10758_v21, %v10757_v20  ;;  %v10770_v61 = vld [vmem:[%s14274_s10 + $0x90] sm:$0xff]   ;;  %v10772_v14 = vld [vmem:[%s14274_s10 + $0xd8] sm:$0xff]   ;;  %v10775_v6 = vld [vmem:[%s14274_s10 + $0x60] sm:$0xff]  }
 0x5d4   : > { %8019 = vmatprep.mubr.bf16.mxu0 %v7286_v13  ;;  %10237 = vmatprep.subr.bf16.mxu0 %v10726_v29  ;;  %v10774_v60 = vld [vmem:[%s14274_s10 + $0x98] sm:$0xff]   ;;  %v10778_v1 = vld [vmem:[%s14274_s10 + $0xa0] sm:$0xff]   ;;  %v10780_v22 = vld [vmem:[%s14274_s10 + $0xe8] sm:$0xff]  }
 0x5d5   : > { %10226 = vmatpush3.bf16.msra.mxu1 %v10739_v0  ;;  %v10781_v25 = vld [vmem:[%s14274_s10 + $0x28] sm:$0xff]   ;;  %v10783_v29 = vld [vmem:[%s14274_s10 + $0x70] sm:$0xff]  }
 0x5d6   : > { %10227 = vmatprep.subr.bf16.mxu1 %v10741_v28  ;;  %v10782_v51 = vld [vmem:[%s14274_s10 + $0xa8] sm:$0xff]   ;;  %v10784_v0 = vld [vmem:[%s14274_s10 + $0xf0] sm:$0xff]  }
 0x5d7   : > { %10238 = vmatpush3.bf16.msra.mxu0 %v10728_v55  ;;  %v10785_v13 = vld [vmem:[%s14274_s10 + $0x30] sm:$0xff]   ;;  %v10787_v55 = vld [vmem:[%s14274_s10 + $0x78] sm:$0xff]   ;;  %v8249_v3 = vld [vmem:[#allocation5 + $0x38] sm:$0x3] }
 0x5d8   : > { %10239 = vmatprep.subr.bf16.mxu0 %v10730_v19  ;;  %v10786_v28 = vld [vmem:[%s14274_s10 + $0xb0] sm:$0xff]   ;;  %v10788_v19 = vld [vmem:[%s14274_s10 + $0xf8] sm:$0xff]   ;;  %8251 = vst.msk [vmem:[#allocation9 + $0x20] sm:$0x3] %vm8133_vm3, %v8249_v3 }
 0x5d9   : > { %10228 = vmatpush3.bf16.msra.mxu1 %v10743_v2  ;;  %v8245_v2 = vld [vmem:[#allocation5 + $0x37] sm:$0x3] }
 0x5da   : > { %10435 = vmatprep.subr.bf16.mxu1 %v13847_v33  ;;  %8247 = vst.msk [vmem:[#allocation9 + $0x1e] sm:$0x3] %vm8133_vm3, %v8245_v2 }
 0x5db   : > { %10240 = vmatpush3.bf16.msra.mxu0 %v10732_v8  ;;  %v10789_v8 = vld [vmem:[%s14274_s10 + $0x38] sm:$0xff]  }
 0x5dc   : > { %7979 = vmatmul.mubr.bf16.vlgmr.msra.gmra.mrb[180].mxu1 %v7283_v43  ;;  %10241 = vmatprep.subr.bf16.mxu0 %v10734_v56  ;;  %v10790_v56 = vld [vmem:[%s14274_s10 + $0xb8] sm:$0xff]   ;;  %v10794_v43 = vld [vmem:[%s14274_s10 + $0x140] sm:$0xff]  }
 0x5dd   : > { %10436 = vmatpush3.bf16.msra.mxu1 %v10747_v53  ;;  %10451 = vmatprep.mubr.msk.bf16.mxu1 %vm10912_vm0, %v13847_v33 }
 0x5de   : > { %10437 = vmatprep.subr.bf16.mxu1 %v13847_v33 }
 0x5df   : > { %10242 = vmatpush3.bf16.msra.mxu0 %v10736_v49  ;;  %v10795_v49 = vld [vmem:[%s14274_s10 + $0x1c0] sm:$0xff]  }
 0x5e0   : > { %10243 = vmatprep.subr.bf16.mxu0 %v10738_v4 }
 0x5e1   : > { %10438 = vmatpush3.bf16.msra.mxu1 %v10750_v7 }
 0x5e2   : > { %10439 = vmatprep.subr.bf16.mxu1 %v13847_v33 }
 0x5e3   : > { %10244 = vmatpush3.bf16.msra.mxu0 %v10740_v54 }
 0x5e4   : > { %10245 = vmatprep.subr.bf16.mxu0 %v10742_v48 }
 0x5e5   : > { %10440 = vmatpush3.bf16.msra.mxu1 %v10751_v45  ;;  %v8253_v45 = vld [vmem:[#allocation5 + $0x39] sm:$0x3] }
 0x5e6   : > { %10441 = vmatprep.subr.bf16.mxu1 %v13847_v33  ;;  %8255 = vst.msk [vmem:[#allocation9 + $0x22] sm:$0x3] %vm8133_vm3, %v8253_v45 }
 0x5e7   : > { %10246 = vmatpush3.bf16.msra.mxu0 %v10744_v12 }
 0x5e8   : > { %10247 = vmatprep.subr.bf16.mxu0 %v10745_v46 }
 0x5e9   : > { %10442 = vmatpush3.bf16.msra.mxu1 %v10752_v35 }
 0x5ea   : > { %10443 = vmatprep.subr.bf16.mxu1 %v13847_v33 }
 0x5eb   : > { %10248 = vmatpush3.bf16.msra.mxu0 %v10746_v23 }
 0x5ec   : > { %10249 = vmatprep.subr.bf16.mxu0 %v10748_v57 }
 0x5ed   : > { %10444 = vmatpush3.bf16.msra.mxu1 %v10753_v26 }
 0x5ee   : > { %10445 = vmatprep.subr.bf16.mxu1 %v13847_v33 }
 0x5ef   : > { %10250 = vmatpush3.bf16.msra.mxu0 %v10749_v47 }
 0x5f0   : > { %10266 = vmatprep.subr.bf16.mxu0 %v10759_v38 }
 0x5f1   : > { %10446 = vmatpush3.bf16.msra.mxu1 %v10754_v11 }
 0x5f2   : > { %10447 = vmatprep.subr.bf16.mxu1 %v13847_v33  ;;  %8020 = vmatmul.mubr.bf16.vlgmr.msra.gmra.mrb[188].mxu0 %v7285_v62 }
 0x5f3   : > { %10267 = vmatpush3.bf16.msra.mxu0 %v10761_v58 }
 0x5f4   : > { %10268 = vmatprep.subr.bf16.mxu0 %v10763_v15 }
 0x5f5   : > { %10448 = vmatpush3.bf16.msra.mxu1 %v10755_v34 }
 0x5f6   : > { %10449 = vmatprep.subr.bf16.mxu1 %v13847_v33 }
 0x5f7   : > { %10269 = vmatpush3.bf16.msra.mxu0 %v10765_v32 }
 0x5f8   : > { %10270 = vmatprep.subr.bf16.mxu0 %v10767_v42 }
 0x5f9   : > { %10450 = vmatpush3.bf16.msra.mxu1 %v10756_v30 }
 0x5fa   : > { %10288 = vmatprep.subr.bf16.mxu1 %v10760_v52 }
 0x5fb   : > { %10271 = vmatpush3.bf16.msra.mxu0 %v10769_v44 }
 0x5fc   : > { %10452 = vmatmul.mubr.bf16.vlgmr.msra.gmra.mrb[184].mxu1 %v7287_v63  ;;  %10272 = vmatprep.subr.bf16.mxu0 %v10771_v9  ;;  %v9446_v9 = vld [vmem:[%s14273_s9] ss:$0 sm:$0xff] }
 0x5fd   : > { %10289 = vmatpush3.bf16.msra.mxu1 %v10762_v10 }
 0x5fe   : > { %10290 = vmatprep.subr.bf16.mxu1 %v10764_v36 }
 0x5ff   : > { %10273 = vmatpush3.bf16.msra.mxu0 %v10773_v40 }
 0x600   : > { %10274 = vmatprep.subr.bf16.mxu0 %v10775_v6 }
 0x601   : > { %10291 = vmatpush3.bf16.msra.mxu1 %v10766_v17 }
 0x602   : > { %10292 = vmatprep.subr.bf16.mxu1 %v10768_v5  ;;  %v9445_v5 = vld [vmem:[%s14272_s8] ss:$0 sm:$0xff] }
 0x603   : > { %10275 = vmatpush3.bf16.msra.mxu0 %v10777_v59 }
 0x604   : > { %10276 = vmatprep.subr.bf16.mxu0 %v10779_v31 }
 0x605   : > { %10293 = vmatpush3.bf16.msra.mxu1 %v10770_v61 }
 0x606   : > { %10294 = vmatprep.subr.bf16.mxu1 %v10772_v14 }
 0x607   : > { %10277 = vmatpush3.bf16.msra.mxu0 %v10781_v25 }
 0x608   : > { %10278 = vmatprep.subr.bf16.mxu0 %v10783_v29 }
 0x609   : > { %10295 = vmatpush3.bf16.msra.mxu1 %v10774_v60 }
 0x60a   : > { %10296 = vmatprep.subr.bf16.mxu1 %v10776_v24 }
 0x60b   : > { %10279 = vmatpush3.bf16.msra.mxu0 %v10785_v13 }
 0x60c   : > { %10280 = vmatprep.subr.bf16.mxu0 %v10787_v55 }
 0x60d   : > { %10297 = vmatpush3.bf16.msra.mxu1 %v10778_v1 }
 0x60e   : > { %10298 = vmatprep.subr.bf16.mxu1 %v10780_v22 }
 0x60f   : > { %10281 = vmatpush3.bf16.msra.mxu0 %v10789_v8 }
 0x610   : > { %10310 = vmatprep.subr.bf16.mxu0 %v10794_v43 }
 0x611   : > { %10299 = vmatpush3.bf16.msra.mxu1 %v10782_v51 }
 0x612   : > { %10300 = vmatprep.subr.bf16.mxu1 %v10784_v0 }
 0x615   : > { %10301 = vmatpush3.bf16.msra.mxu1 %v10786_v28 }
 0x616   : > { %10302 = vmatprep.subr.bf16.mxu1 %v10788_v19 }
 0x619   : > { %10303 = vmatpush3.bf16.msra.mxu1 %v10790_v56 }
 0x61a   : > { %10332 = vmatprep.subr.bf16.mxu1 %v10795_v49 }
 0x68f   : > { %v10185_v18 = vpop.f32.mrb[176].mxu1 }
 0x690   : > { %v10186_v53 = vpop.f32.mrb[177].mxu1 }
 0x691   : > { %v10187_v4 = vadd.f32 %v10186_v53, %v10185_v18  ;;  %v10188_v7 = vpop.f32.mrb[178].mxu1 }
 0x692   : > { %v10189_v54 = vpop.f32.mrb[179].mxu1 }
 0x693   : > { %v10190_v48 = vadd.f32 %v10189_v54, %v10188_v7 }
 0x6a4   : > { %v10207_v12 = vpop.f32.mrb[184].mxu0 }
 0x6a5   : > { %v10208_v46 = vpop.f32.mrb[185].mxu0 }
 0x6a6   : > { %v10209_v35 = vadd.f32 %v10208_v46, %v10207_v12  ;;  %v10210_v23 = vpop.f32.mrb[186].mxu0 }
 0x6a7   : > { %v10211_v57 = vpop.f32.mrb[187].mxu0 }
 0x6a8   : > { %v7940_v26 = vadd.f32 %v10209_v35, %v10187_v4  ;;  %v10212_v47 = vadd.f32 %v10211_v57, %v10210_v23 }
 0x6aa   : > { %v7943_v16 = vadd.f32 %v10212_v47, %v10190_v48 }
 0x6af   : > { %v10229_v11 = vpop.f32.mrb[180].mxu1 }
 0x6b0   : > { %v10230_v27 = vpop.f32.mrb[181].mxu1 }
 0x6b1   : > { %v10231_v62 = vadd.f32 %v10230_v27, %v10229_v11  ;;  %v10232_v34 = vpop.f32.mrb[182].mxu1 }
 0x6b2   : > { %v10233_v30 = vpop.f32.mrb[183].mxu1 }
 0x6b3   : > { %v7981_v21 = vadd.f32 %v10231_v62, %v7940_v26  ;;  %v10234_v20 = vadd.f32 %v10233_v30, %v10232_v34 }
 0x6b5   : > { %v7984_v63 = vadd.f32 %v10234_v20, %v7943_v16 }
 0x6c5   : > { %v10251_v38 = vpop.f32.mrb[188].mxu0 }
 0x6c6   : > { %v10252_v52 = vpop.f32.mrb[189].mxu0 }
 0x6c7   : > { %v10253_v58 = vadd.f32 %v10252_v52, %v10251_v38  ;;  %v10254_v10 = vpop.f32.mrb[190].mxu0 }
 0x6c8   : > { %v10255_v15 = vpop.f32.mrb[191].mxu0 }
 0x6c9   : > { %v10256_v36 = vadd.f32 %v10255_v15, %v10254_v10  ;;  %v8022_v32 = vadd.f32 %v10253_v58, %v7981_v21 }
 0x6cb   : > { %v8025_v17 = vadd.f32 %v10256_v36, %v7984_v63 }
 0x6cf   : > { %v8062_v42 = vpop.f32.mrb[184].mxu1 }
 0x6d0   : > { %v8063_v44 = vadd.f32 %v8062_v42, %v8022_v32  ;;  %v10453_v61 = vpop.f32.mrb[185].mxu1 }
 0x6d1   : > { %v8065_v14 = vpop.f32.mrb[186].mxu1 }
 0x6d2   : > { %v8076_v40 = vmul.f32 %v9445_v5, %v8063_v44  ;;  %v8066_v50 = vadd.f32 %v8065_v14, %v8025_v17  ;;  %v10454_v60 = vpop.f32.mrb[187].mxu1 }
 0x6d4   : > { %v8085_v39 = vadd.f32 %v9446_v9, %v8076_v40  ;;  %v8077_v37 = vmul.f32 %v9445_v5, %v8066_v50 }
 0x6d6   : > { %v8087_v6 = vmax.f32 %v8085_v39, 0.0  ;;  %v8086_v24 = vadd.f32 %v9446_v9, %v8077_v37 }
 0x6d8   : > { %v8091_v59 = vcombine.high %v8087_v6, %v8087_v6  ;;  %v8098_v1 = vrot.slane %v8087_v6, %v12413_v41  ;;  %v8088_v31 = vmax.f32 %v8086_v24, 0.0 }
 0x6da   : > { %v8105_v22 = vrot.slane %v8091_v59, %v12413_v41  ;;  %v8106_v25 = vcombine.high %v8098_v1, %v8098_v1  ;;  %v8134_v51 = vsel %vm8133_vm3, %v8098_v1, -inf  ;;  %v8108_v29 = vcombine.high %v8088_v31, %v8088_v31 }
 0x6db   : > { %v8135_v0 = vrot.slane %v8134_v51, 4  ;;  %v8115_v13 = vrot.slane %v8088_v31, %v12413_v41 }
 0x6dc   : > { %v8107_v28 = vcombine.high %v8105_v22, %v8105_v22  ;;  %v8141_v55 = vsel %vm8133_vm3, %v8106_v25, -inf  ;;  %v8148_v19 = vsel %vm8133_vm3, %v8105_v22, -inf  ;;  %v8122_v2 = vrot.slane %v8108_v29, %v12413_v41 }
 0x6dd   : > { %v8136_v3 = vmax.f32 %v8134_v51, %v8135_v0  ;;  %v8142_v18 = vrot.slane %v8141_v55, 4  ;;  %v8149_v8 = vrot.slane %v8148_v19, 4  ;;  %v8123_v56 = vcombine.high %v8115_v13, %v8115_v13 }
 0x6de   : > { %v8155_v53 = vsel %vm8133_vm3, %v8107_v28, -inf  ;;  %v8124_v43 = vcombine.high %v8122_v2, %v8122_v2  ;;  %v8162_v49 = vsel %vm8133_vm3, %v8115_v13, -inf  ;;  %v8176_v4 = vsel %vm8133_vm3, %v8122_v2, -inf }
 0x6df   : > { %v8137_v7 = vrot.slane %v8136_v3, 2  ;;  %v8143_v54 = vmax.f32 %v8141_v55, %v8142_v18  ;;  %v8150_v48 = vmax.f32 %v8148_v19, %v8149_v8  ;;  %v8156_v45 = vrot.slane %v8155_v53, 4 }
 0x6e0   : > { %v8163_v12 = vrot.slane %v8162_v49, 4  ;;  %v8169_v46 = vsel %vm8133_vm3, %v8123_v56, -inf  ;;  %v8177_v35 = vrot.slane %v8176_v4, 4  ;;  %v8183_v23 = vsel %vm8133_vm3, %v8124_v43, -inf }
 0x6e1   : > { %v8138_v57 = vmax.f32 %v8136_v3, %v8137_v7  ;;  %v8144_v26 = vrot.slane %v8143_v54, 2  ;;  %v8151_v47 = vrot.slane %v8150_v48, 2  ;;  %v8157_v16 = vmax.f32 %v8155_v53, %v8156_v45 }
 0x6e2   : > { %v8164_v11 = vmax.f32 %v8162_v49, %v8163_v12  ;;  %v8170_v27 = vrot.slane %v8169_v46, 4  ;;  %v8178_v62 = vmax.f32 %v8176_v4, %v8177_v35  ;;  %v8184_v34 = vrot.slane %v8183_v23, 4 }
 0x6e3   : > { %v8139_v30 = vrot.slane %v8138_v57, 1  ;;  %v8145_v21 = vmax.f32 %v8143_v54, %v8144_v26  ;;  %v8152_v20 = vmax.f32 %v8150_v48, %v8151_v47  ;;  %v8158_v63 = vrot.slane %v8157_v16, 2 }
 0x6e4   : > { %v8165_v38 = vrot.slane %v8164_v11, 2  ;;  %v8171_v52 = vmax.f32 %v8169_v46, %v8170_v27  ;;  %v8179_v58 = vrot.slane %v8178_v62, 2  ;;  %v8185_v10 = vmax.f32 %v8183_v23, %v8184_v34 }
 0x6e5   : > { %v8140_v15 = vmax.f32 %v8138_v57, %v8139_v30  ;;  %v8146_v36 = vrot.slane %v8145_v21, 1  ;;  %v8153_v32 = vrot.slane %v8152_v20, 1  ;;  %v8159_v17 = vmax.f32 %v8157_v16, %v8158_v63 }
 0x6e6   : > { %v8166_v42 = vmax.f32 %v8164_v11, %v8165_v38  ;;  %v8172_v5 = vrot.slane %v8171_v52, 2  ;;  %v8180_v44 = vmax.f32 %v8178_v62, %v8179_v58  ;;  %v8186_v61 = vrot.slane %v8185_v10, 2 }
 0x6e7   : > { %v8147_v9 = vmax.f32 %v8145_v21, %v8146_v36  ;;  %v8154_v14 = vmax.f32 %v8152_v20, %v8153_v32  ;;  %v8160_v40 = vrot.slane %v8159_v17, 1  ;;  %v8190_v59 = vsel %vm559_vm1, %v8140_v15, -inf  ;;  %v10797_v15 = vld [vmem:[%s14274_s10 + $0x180] sm:$0xff]  }
 0x6e8   : > { %v8167_v50 = vrot.slane %v8166_v42, 1  ;;  %v8173_v60 = vmax.f32 %v8171_v52, %v8172_v5  ;;  %v8181_v39 = vrot.slane %v8180_v44, 1  ;;  %v8187_v37 = vmax.f32 %v8185_v10, %v8186_v61  ;;  %v10796_v10 = vld [vmem:[%s14274_s10 + $0x100] sm:$0xff]   ;;  %v10802_v5 = vld [vmem:[%s14274_s10 + $0x1c8] sm:$0xff]  }
 0x6e9   : > { %v8161_v6 = vmax.f32 %v8159_v17, %v8160_v40  ;;  %v8191_v24 = vsel %vm559_vm1, %v8154_v14, -inf  ;;  %v8193_v22 = vsel %vm559_vm1, %v8147_v9, -inf  ;;  %v10803_v9 = vld [vmem:[%s14274_s10 + $0x108] sm:$0xff]   ;;  %v10805_v40 = vld [vmem:[%s14274_s10 + $0x150] sm:$0xff]  }
 0x6ea   : > { %v8174_v1 = vrot.slane %v8173_v60, 1  ;;  %v8182_v31 = vmax.f32 %v8180_v44, %v8181_v39  ;;  %v8168_v51 = vmax.f32 %v8166_v42, %v8167_v50  ;;  %v8188_v29 = vrot.slane %v8187_v37, 1  ;;  %v10801_v42 = vld [vmem:[%s14274_s10 + $0x148] sm:$0xff]   ;;  %v10806_v50 = vld [vmem:[%s14274_s10 + $0x1d0] sm:$0xff]  }
 0x6eb   : > { %v8194_v25 = vsel %vm559_vm1, %v8161_v6, -inf  ;;  %v8192_v0 = vmax.f32 %v8190_v59, %v8191_v24  ;;  %v10804_v14 = vld [vmem:[%s14274_s10 + $0x188] sm:$0xff]   ;;  %v10808_v39 = vld [vmem:[%s14274_s10 + $0x190] sm:$0xff]   ;;  %v10810_v6 = vld [vmem:[%s14274_s10 + $0x1d8] sm:$0xff]  }
 0x6ec   : > { %v8195_v13 = vmax.f32 %v8193_v22, %v8194_v25  ;;  %v8175_v28 = vmax.f32 %v8173_v60, %v8174_v1  ;;  %v8189_v55 = vmax.f32 %v8187_v37, %v8188_v29  ;;  %v8197_v19 = vsel %vm559_vm1, %v8182_v31, -inf  ;;  %v10807_v60 = vld [vmem:[%s14274_s10 + $0x110] sm:$0xff]   ;;  %v10809_v37 = vld [vmem:[%s14274_s10 + $0x158] sm:$0xff]   ;;  %v10813_v1 = vld [vmem:[%s14274_s10 + $0x160] sm:$0xff]  }
 0x6ed   : > { %v8196_v3 = vsel %vm559_vm1, %v8168_v51, -inf  ;;  %v10811_v24 = vld [vmem:[%s14274_s10 + $0x118] sm:$0xff]   ;;  %v10814_v31 = vld [vmem:[%s14274_s10 + $0x1e0] sm:$0xff]   ;;  %v10817_v51 = vld [vmem:[%s14274_s10 + $0x168] sm:$0xff]  }
 0x6ee   : > { %v8206_v2 = vsel %vm5279_vm4, %v8195_v13, %v8192_v0  ;;  %v8199_v18 = vsel %vm559_vm1, %v8175_v28, -inf  ;;  %v8200_v8 = vsel %vm559_vm1, %v8189_v55, -inf  ;;  %v8198_v56 = vmax.f32 %v8196_v3, %v8197_v19  ;;  %v10812_v59 = vld [vmem:[%s14274_s10 + $0x198] sm:$0xff]   ;;  %v10815_v22 = vld [vmem:[%s14274_s10 + $0x120] sm:$0xff]   ;;  %v10818_v29 = vld [vmem:[%s14274_s10 + $0x1e8] sm:$0xff]  }
 0x6ef   : > { %8211 = vst.msk [vmem:[#allocation5 + $0x18] sm:$0x3] %vm8133_vm3, %v8206_v2  ;;  %v8201_v53 = vmax.f32 %v8199_v18, %v8200_v8  ;;  %v10816_v25 = vld [vmem:[%s14274_s10 + $0x1a0] sm:$0xff]   ;;  %v10819_v0 = vld [vmem:[%s14274_s10 + $0x128] sm:$0xff]   ;;  %v10821_v28 = vld [vmem:[%s14274_s10 + $0x170] sm:$0xff]  }
 0x6f0   : > { %v10820_v13 = vld [vmem:[%s14274_s10 + $0x1a8] sm:$0xff]   ;;  %v10822_v55 = vld [vmem:[%s14274_s10 + $0x1f0] sm:$0xff]   ;;  %v10825_v3 = vld [vmem:[%s14274_s10 + $0x178] sm:$0xff]  }
 0x6f1   : > { %v8207_v43 = vsel %vm5279_vm4, %v8201_v53, %v8198_v56  ;;  %v10823_v19 = vld [vmem:[%s14274_s10 + $0x130] sm:$0xff]   ;;  %v10826_v18 = vld [vmem:[%s14274_s10 + $0x1f8] sm:$0xff]   ;;  %v10829_v53 = vld [vmem:[%s14274_s10 + $0x200] sm:$0xff]   ;;  %vm9134_vm4 = vcmask 1041408  }
 0x6f2   : > { %8212 = vst.msk [vmem:[#allocation5 + $0x28] sm:$0x3] %vm8133_vm3, %v8207_v43  ;;  %v10824_v2 = vld [vmem:[%s14274_s10 + $0x1b0] sm:$0xff]   ;;  %v10827_v8 = vld [vmem:[%s14274_s10 + $0x138] sm:$0xff]  }
 0x6f3   : > { %v10828_v56 = vld [vmem:[%s14274_s10 + $0x1b8] sm:$0xff]  }
 0x6f6   : > { %v8220_v49 = vld [vmem:[#allocation5 + $0x17] sm:$0x3]  ;;  %v8228_v7 = vld [vmem:[#allocation5 + $0x19] sm:$0x3] }
 0x6f7   : > { %v8224_v4 = vld [vmem:[#allocation5 + $0x18] sm:$0x3]  ;;  %8222 = vst.msk [vmem:[#allocation9 + $0x12] sm:$0x3] %vm8133_vm3, %v8220_v49  ;;  %8230 = vst.msk [vmem:[#allocation9 + $0x16] sm:$0x3] %vm8133_vm3, %v8228_v7 }
 0x6f8   : > { %8226 = vst.msk [vmem:[#allocation9 + $0x14] sm:$0x3] %vm8133_vm3, %v8224_v4  ;;  %v8231_v54 = vld [vmem:[#allocation5 + $0x17] sm:$0x3]  ;;  %v8239_v45 = vld [vmem:[#allocation5 + $0x19] sm:$0x3] }
 0x6f9   : > { %v8235_v48 = vld [vmem:[#allocation5 + $0x18] sm:$0x3]  ;;  %8233 = vst.msk [vmem:[#allocation9 + $0x6] sm:$0x3] %vm8133_vm3, %v8231_v54  ;;  %8241 = vst.msk [vmem:[#allocation9 + $0xa] sm:$0x3] %vm8133_vm3, %v8239_v45 }
 0x6fa   : > { %8237 = vst.msk [vmem:[#allocation9 + $0x8] sm:$0x3] %vm8133_vm3, %v8235_v48  ;;  %v8232_v12 = vld [vmem:[#allocation5 + $0x27] sm:$0x3]  ;;  %v8240_v35 = vld [vmem:[#allocation5 + $0x29] sm:$0x3] }
 0x6fb   : > { %v8236_v46 = vld [vmem:[#allocation5 + $0x28] sm:$0x3]  ;;  %8234 = vst.msk [vmem:[#allocation9 + $0x18] sm:$0x3] %vm8133_vm3, %v8232_v12  ;;  %8242 = vst.msk [vmem:[#allocation9 + $0x1c] sm:$0x3] %vm8133_vm3, %v8240_v35 }
 0x6fc   : > { %8238 = vst.msk [vmem:[#allocation9 + $0x1a] sm:$0x3] %vm8133_vm3, %v8236_v46  ;;  %v8244_v23 = vld [vmem:[#allocation5 + $0x27] sm:$0x3]  ;;  %v8252_v26 = vld [vmem:[#allocation5 + $0x29] sm:$0x3] }
 0x6fd   : > { %v8248_v57 = vld [vmem:[#allocation5 + $0x28] sm:$0x3]  ;;  %8246 = vst.msk [vmem:[#allocation9 + $0xc] sm:$0x3] %vm8133_vm3, %v8244_v23  ;;  %8254 = vst.msk [vmem:[#allocation9 + $0x10] sm:$0x3] %vm8133_vm3, %v8252_v26 }
 0x6fe   : > { %8250 = vst.msk [vmem:[#allocation9 + $0xe] sm:$0x3] %vm8133_vm3, %v8248_v57  ;;  %v10830_v4 = vld [vmem:[%s14274_s10 + $0x208] sm:$0xff]   ;;  %v10831_v7 = vld [vmem:[%s14274_s10 + $0x210] sm:$0xff]   ;;  %v10832_v54 = vld [vmem:[%s14274_s10 + $0x218] sm:$0xff]  }
 0x6ff   : > { %v10791_v47 = vld [vmem:[#allocation9] ss:$18 sps:$4 sm:$0xff]   ;;  %v10834_v45 = vld [vmem:[%s14274_s10 + $0x228] sm:$0xff]   ;;  %v10836_v35 = vld [vmem:[%s14274_s10 + $0x238] sm:$0xff]  }
 0x700   : > { %v8276_v27 = vrot.slane %v10791_v47, %v12413_v41  ;;  %v10833_v48 = vld [vmem:[%s14274_s10 + $0x220] sm:$0xff]   ;;  %v10835_v12 = vld [vmem:[%s14274_s10 + $0x230] sm:$0xff]  }
 0x702   : > { %v10793_v16 = vld [vmem:[#allocation9 + $0x4] ss:$18 sps:$4 sm:$0xff]   ;;  %v8284_v21 = vcombine.high %v8276_v27, %v8276_v27  ;;  %v8321_v36 = vpack.c.bf16 %v8276_v27, %v8276_v27 }
 0x703   : > { %v10798_v11 = vld [vmem:[#allocation9 + $0x8] ss:$18 sps:$4 sm:$0xff]   ;;  %v8283_v62 = vrot.slane %v10793_v16, %v12413_v41 }
 0x704   : > { %v14072_v30 = vrot.slane %v10798_v11, %v12413_v41  ;;  %v8322_v52 = vpack.c.bf16 %v8284_v21, %v8284_v21  ;;  %v10837_v46 = vld [vmem:[#allocation9 + $0x10] ss:$18 sps:$4 sm:$0x33]  }
 0x705   : > { %v10800_v34 = vld [vmem:[#allocation9 + $0xc] ss:$18 sps:$4 sm:$0xff]   ;;  %v8285_v20 = vcombine.high %v8283_v62, %v8283_v62  ;;  %v8323_v32 = vpack.c.bf16 %v8283_v62, %v8283_v62  ;;  %v8311_v23 = vrot.slane %v10837_v46, %v12413_v41 }
 0x706   : > { %v8302_v63 = vcombine.high %v14072_v30, %v14072_v30  ;;  %v14077_v38 = vrot.slane %v10800_v34, %v12413_v41  ;;  %8938 = vmatprep.mubr.bf16.mxu0 %v8322_v52  ;;  %v8325_v43 = vpack.c.bf16 %v14072_v30, %v14072_v30 }
 0x707   : > { %v8324_v58 = vpack.c.bf16 %v8285_v20, %v8285_v20  ;;  %8939 = vmatmul.mubr.bf16.vlgmr.msra.gmra.mrb[192].mxu0 %v8321_v36  ;;  %v8329_v57 = vpack.c.bf16 %v8311_v23, %v8311_v23 }
 0x708   : > { %v8303_v17 = vcombine.high %v14077_v38, %v14077_v38  ;;  %v8326_v44 = vpack.c.bf16 %v8302_v63, %v8302_v63  ;;  %10311 = vmatpush3.bf16.msra.mxu0 %v10796_v10  ;;  %v8327_v49 = vpack.c.bf16 %v14077_v38, %v14077_v38 }
 0x709   : > { %8978 = vmatprep.mubr.bf16.mxu1 %v8324_v58  ;;  %10312 = vmatprep.subr.bf16.mxu0 %v10801_v42 }
 0x70a   : > { %8979 = vmatmul.mubr.bf16.vlgmr.msra.gmra.mrb[188].mxu1 %v8323_v32  ;;  %v8328_v61 = vpack.c.bf16 %v8303_v17, %v8303_v17  ;;  %9018 = vmatprep.mubr.bf16.mxu0 %v8326_v44 }
 0x70b   : > { %10333 = vmatpush3.bf16.msra.mxu1 %v10797_v15 }
 0x70c   : > { %9058 = vmatprep.mubr.bf16.mxu1 %v8328_v61  ;;  %10334 = vmatprep.subr.bf16.mxu1 %v10802_v5 }
 0x70d   : > { %10313 = vmatpush3.bf16.msra.mxu0 %v10803_v9  ;;  %v9519_v9 = vld [vmem:[%s14275_s11] ss:$0 sm:$0xff] }
 0x70e   : > { %10314 = vmatprep.subr.bf16.mxu0 %v10805_v40 }
 0x70f   : > { %10335 = vmatpush3.bf16.msra.mxu1 %v10804_v14 }
 0x710   : > { %10336 = vmatprep.subr.bf16.mxu1 %v10806_v50  ;;  %v9520_v50 = vld [vmem:[%s14276_s12] ss:$0 sm:$0xff] }
 0x711   : > { %10315 = vmatpush3.bf16.msra.mxu0 %v10807_v60 }
 0x712   : > { %10316 = vmatprep.subr.bf16.mxu0 %v10809_v37 }
 0x713   : > { %10337 = vmatpush3.bf16.msra.mxu1 %v10808_v39 }
 0x714   : > { %10338 = vmatprep.subr.bf16.mxu1 %v10810_v6 }
 0x715   : > { %10317 = vmatpush3.bf16.msra.mxu0 %v10811_v24 }
 0x716   : > { %10318 = vmatprep.subr.bf16.mxu0 %v10813_v1 }
 0x717   : > { %10339 = vmatpush3.bf16.msra.mxu1 %v10812_v59 }
 0x718   : > { %10340 = vmatprep.subr.bf16.mxu1 %v10814_v31 }
 0x719   : > { %10319 = vmatpush3.bf16.msra.mxu0 %v10815_v22 }
 0x71a   : > { %10320 = vmatprep.subr.bf16.mxu0 %v10817_v51 }
 0x71b   : > { %10341 = vmatpush3.bf16.msra.mxu1 %v10816_v25 }
 0x71c   : > { %10342 = vmatprep.subr.bf16.mxu1 %v10818_v29 }
 0x71d   : > { %10321 = vmatpush3.bf16.msra.mxu0 %v10819_v0 }
 0x71e   : > { %10322 = vmatprep.subr.bf16.mxu0 %v10821_v28 }
 0x71f   : > { %10343 = vmatpush3.bf16.msra.mxu1 %v10820_v13 }
 0x720   : > { %10344 = vmatprep.subr.bf16.mxu1 %v10822_v55 }
 0x721   : > { %10323 = vmatpush3.bf16.msra.mxu0 %v10823_v19 }
 0x722   : > { %10324 = vmatprep.subr.bf16.mxu0 %v10825_v3 }
 0x723   : > { %10345 = vmatpush3.bf16.msra.mxu1 %v10824_v2 }
 0x724   : > { %10346 = vmatprep.subr.bf16.mxu1 %v10826_v18 }
 0x725   : > { %10325 = vmatpush3.bf16.msra.mxu0 %v10827_v8 }
 0x726   : > { %10455 = vmatprep.subr.bf16.mxu0 %v13847_v33 }
 0x727   : > { %10347 = vmatpush3.bf16.msra.mxu1 %v10828_v56 }
 0x728   : > { %9019 = vmatmul.mubr.bf16.vlgmr.msra.gmra.mrb[196].mxu0 %v8325_v43 }
 0x729   : > { %10456 = vmatpush3.bf16.msra.mxu0 %v10829_v53  ;;  %10471 = vmatprep.mubr.msk.bf16.mxu0 %vm10912_vm0, %v13847_v33 }
 0x72a   : > { %9059 = vmatmul.mubr.bf16.vlgmr.msra.gmra.mrb[192].mxu1 %v8327_v49  ;;  %10457 = vmatprep.subr.bf16.mxu0 %v13847_v33 }
 0x72d   : > { %10458 = vmatpush3.bf16.msra.mxu0 %v10830_v4 }
 0x72e   : > { %10459 = vmatprep.subr.bf16.mxu0 %v13847_v33 }
 0x731   : > { %10460 = vmatpush3.bf16.msra.mxu0 %v10831_v7 }
 0x732   : > { %10461 = vmatprep.subr.bf16.mxu0 %v13847_v33 }
 0x735   : > { %10462 = vmatpush3.bf16.msra.mxu0 %v10832_v54 }
 0x736   : > { %10463 = vmatprep.subr.bf16.mxu0 %v13847_v33 }
 0x739   : > { %10464 = vmatpush3.bf16.msra.mxu0 %v10833_v48 }
 0x73a   : > { %10465 = vmatprep.subr.bf16.mxu0 %v13847_v33 }
 0x73d   : > { %10466 = vmatpush3.bf16.msra.mxu0 %v10834_v45 }
 0x73e   : > { %10467 = vmatprep.subr.bf16.mxu0 %v13847_v33 }
 0x741   : > { %10468 = vmatpush3.bf16.msra.mxu0 %v10835_v12 }
 0x742   : > { %10469 = vmatprep.subr.bf16.mxu0 %v13847_v33 }
 0x745   : > { %10470 = vmatpush3.bf16.msra.mxu0 %v10836_v35 }
 0x748   : > { %10472 = vmatmul.mubr.bf16.vlgmr.msra.gmra.mrb[200].mxu0 %v8329_v57 }
 0x7da   : > { %v10282_v26 = vpop.f32.mrb[192].mxu0 }
 0x7db   : > { %v10283_v16 = vpop.f32.mrb[193].mxu0 }
 0x7dc   : > { %v10284_v27 = vadd.f32 %v10283_v16, %v10282_v26  ;;  %v10285_v34 = vpop.f32.mrb[194].mxu0 }
 0x7dd   : > { %v10304_v47 = vpop.f32.mrb[188].mxu1  ;;  %v10286_v21 = vpop.f32.mrb[195].mxu0 }
 0x7de   : > { %v10305_v11 = vpop.f32.mrb[189].mxu1 }
 0x7df   : > { %v10306_v62 = vadd.f32 %v10305_v11, %v10304_v47  ;;  %v10307_v30 = vpop.f32.mrb[190].mxu1 }
 0x7e0   : > { %v10308_v20 = vpop.f32.mrb[191].mxu1 }
 0x7e1   : > { %v8981_v63 = vadd.f32 %v10306_v62, %v10284_v27 }
 0x7fb   : > { %v10326_v38 = vpop.f32.mrb[196].mxu0 }
 0x7fc   : > { %v10327_v58 = vpop.f32.mrb[197].mxu0 }
 0x7fd   : > { %v10348_v52 = vpop.f32.mrb[192].mxu1  ;;  %v10328_v10 = vadd.f32 %v10327_v58, %v10326_v38  ;;  %v10329_v36 = vpop.f32.mrb[198].mxu0 }
 0x7fe   : > { %v10349_v33 = vpop.f32.mrb[193].mxu1  ;;  %v10330_v17 = vpop.f32.mrb[199].mxu0 }
 0x7ff   : > { %v10350_v15 = vadd.f32 %v10349_v33, %v10348_v52  ;;  %v10351_v32 = vpop.f32.mrb[194].mxu1  ;;  %v9021_v5 = vadd.f32 %v10328_v10, %v8981_v63 }
 0x800   : > { %v10352_v42 = vpop.f32.mrb[195].mxu1 }
 0x801   : > { %v9061_v44 = vadd.f32 %v10350_v15, %v9021_v5 }
 0x81b   : > { %v9100_v61 = vpop.f32.mrb[200].mxu0 }
 0x81c   : > { %v9101_v14 = vadd.f32 %v9100_v61, %v9061_v44  ;;  %v10473_v40 = vpop.f32.mrb[201].mxu0 }
 0x81d   : > { %v9103_v60 = vpop.f32.mrb[202].mxu0 }
 0x81e   : > { %v9113_v39 = vmul.f32 %v9519_v9, %v9101_v14  ;;  %v10474_v37 = vpop.f32.mrb[203].mxu0 }
 0x820   : > { %v9121_v6 = vadd.f32 %v9520_v50, %v9113_v39 }
 0x822   : > { %v9122_v24 = vmax.f32 %v9121_v6, 0.0 }
 0x824   : > { %v9130_v59 = vrot.slane %v9122_v24, %v12413_v41 }
 0x826   : > { %v9131_v1 = vcombine.high %v9130_v59, %v9130_v59  ;;  %v9135_v31 = vsel %vm9134_vm4, %v9130_v59, -inf }
 0x827   : > { %v9136_v22 = vrot.slane %v9135_v31, 4 }
 0x828   : > { %v9142_v25 = vsel %vm9134_vm4, %v9131_v1, -inf }
 0x829   : > { %v9137_v51 = vmax.f32 %v9135_v31, %v9136_v22  ;;  %v9143_v29 = vrot.slane %v9142_v25, 4 }
 0x82b   : > { %v9138_v0 = vrot.slane %v9137_v51, 2  ;;  %v9144_v13 = vmax.f32 %v9142_v25, %v9143_v29 }
 0x82d   : > { %v9139_v28 = vmax.f32 %v9137_v51, %v9138_v0  ;;  %v9145_v55 = vrot.slane %v9144_v13, 2 }
 0x82f   : > { %v9140_v19 = vrot.slane %v9139_v28, 1  ;;  %v9146_v2 = vmax.f32 %v9144_v13, %v9145_v55 }
 0x831   : > { %v9147_v3 = vrot.slane %v9146_v2, 1  ;;  %v9141_v18 = vmax.f32 %v9139_v28, %v9140_v19 }
 0x833   : > { %v9148_v41 = vmax.f32 %v9146_v2, %v9147_v3 }
 0x835   : > { %v9149_v8 = vmax.f32 %v9141_v18, %v9148_v41 }
 0x837   : > { %9150 = vst [vmem:[%s432_s22] sm:$0x1] %v9149_v8 }
 0x838   : > { %10859 = shalt.err (!%p10856_p3)
}
 0x839   : > { %s10860_s16 = scalar_lea.hbm %s14222_s20, 16  ;;  %s10864_s22 = scalar_lea.hbm %s14277_s13, 32 }
 0x83a   : > { %p10861_p4 = scmp.ne.s32.totalorder %s14222_s20, %s10860_s16  ;;  %p10865_p9 = scmp.lt.u32.totalorder %s14222_s20, %s14277_s13 }
 0x83b   : > { %p10866_p10 = scmp.lt.u32.totalorder %s10864_s22, %s10860_s16  ;;  %p10868_p12 = scmp.lt.u32.totalorder %s10860_s16, %s14222_s20 }
 0x83c   : > { %p10862_p7 = pnand %p10861_p4, %p11022_p5 }
 0x83d   : > { %p10867_p11 = por %p10866_p10, %p10865_p9 }
 0x83e   : > { %p10863_p8 = pneg %p10862_p7 }
 0x83f   : > { %p10869_p13 = por %p10868_p12, %p10867_p11 }
 0x841   : > { %p10870_p0 = pnand %p10869_p13, %p10863_p8 }
 0x843   : > { %10873 = shalt.err (!%p10870_p0)
}
 0x844   : > { %10475 = dma.vmem_to_hbm [thread:$0]  (%p11022_p5), %s14224_s23, 16, %s14222_s20, %s9152_s15  }
 0x845 PF: > { %p10481_p1 = scmp.ge.s32.totalorder %s10908_s28, 2  ;;  %s9176_s29 = sand.u32 1, %s10896_s25  }
 0x846   : > { %s9177_s19 = scalar_lea.sflag [#allocation11], %s9176_s29 }
 0x847   : > { %p10478_p2 = pnand %p10481_p1, %p11026_p6 }
 0x849   : > { %10891 = dma.done.wait (!%p10478_p2), %s9177_s19, 16  }
 0x84a   : > { %10893 = vsyncadd (!%p10478_p2), %s9177_s19, 4294967280  ;;  %s14337_s28 = sld [smem:[#allocation14_spill]]  ;;  %s14338_s30 = sld [smem:[#allocation13_spill]] }
 0x84b   : > { %s14339_s27 = sld [smem:[#allocation15_spill]]  ;;  %s14340_s25 = smov %s10900_s26 }
 0x850   : > { %p23_p3 = scmp.ge.s32.totalorder %s14337_s28, 4   ;;  %s14341_s26 = smov %s14338_s30 }
 0x852   :  { %25 = sbr.rel (!%p23_p3) target bundleno = 3 (0x3), region = 115 }
 0x859   :  { %9181 = vsyncpa [#allocation11], 1 }
 0x85a   :  { %9183 = vsyncpa [#allocation11 + $0x1], 1 }

</bundles_post_ra>
